<compile_context>
chip_gen: v6e
topology: v6e:2x2x1
jax: 0.10.0
libtpu: 0.0.40
codegen_flags: <defaults>
</compile_context>

<pallas_src>
import functools

import jax
import jax.numpy as jnp
from jax.experimental import pallas as pl
from jax.experimental.pallas import tpu as pltpu


# ----------------------------------------------------------------------------
# Pallas kernel: one grid step == one chunk of time steps (both layers).
# ----------------------------------------------------------------------------
def _lstm_kernel(x_ref,     # (T, B, Cp)    padded input chunk
                 w0_ref,    # (Cp + H, 4H)  layer-0 stacked [W_ih; W_hh] (gate-permuted)
                 b0_ref,    # (1, 4H)       layer-0 bias (b_ih + b_hh, permuted)
                 w1_ref,    # (2H, 4H)      layer-1 stacked [W_ih; W_hh]
                 b1_ref,    # (1, 4H)
                 out_ref,   # (B, H)        final hidden state of the top layer
                 h1_ref, c1_ref, h2_ref, c2_ref):   # (B, H) f32 VMEM state
    chunk = pl.program_id(0)

    @pl.when(chunk == 0)
    def _():
        h1_ref[...] = jnp.zeros_like(h1_ref)
        c1_ref[...] = jnp.zeros_like(c1_ref)
        h2_ref[...] = jnp.zeros_like(h2_ref)
        c2_ref[...] = jnp.zeros_like(c2_ref)

    t_steps = x_ref.shape[0]
    hdim = h1_ref.shape[-1]

    # Constant-across-steps operands, loaded once outside the recurrence loop.
    w0 = w0_ref[...]
    w1 = w1_ref[...]
    b0 = b0_ref[...]
    b1 = b1_ref[...]

    def gate_update(gates, c_prev):
        # Gate order is (i, f, o, g): sigmoids are one contiguous (B, 3H) slab,
        # tanh one (B, H) slab -> fewer EUP pushes per step.
        sig = jax.nn.sigmoid(gates[:, : 3 * hdim])
        g_g = jnp.tanh(gates[:, 3 * hdim:])
        i_g = sig[:, 0 * hdim:1 * hdim]
        f_g = sig[:, 1 * hdim:2 * hdim]
        o_g = sig[:, 2 * hdim:3 * hdim]
        c_new = f_g * c_prev + i_g * g_g
        h_new = o_g * jnp.tanh(c_new)
        return h_new, c_new

    def step(t, carry):
        h1, c1, h2, c2 = carry
        x_t = x_ref[t].astype(jnp.float32)                      # (B, Cp)
        # Layer 0: single fused matmul over [x_t ; h1] (lane-aligned concat).
        g0 = jnp.dot(jnp.concatenate([x_t, h1], axis=-1), w0,
                     preferred_element_type=jnp.float32) + b0
        h1, c1 = gate_update(g0, c1)
        # Layer 1: single fused matmul over [h1_new ; h2] (K = 2H).
        g1 = jnp.dot(jnp.concatenate([h1, h2], axis=-1), w1,
                     preferred_element_type=jnp.float32) + b1
        h2, c2 = gate_update(g1, c2)
        return (h1, c1, h2, c2)

    carry0 = (h1_ref[...], c1_ref[...], h2_ref[...], c2_ref[...])
    h1, c1, h2, c2 = jax.lax.fori_loop(0, t_steps, step, carry0,
                                       unroll=(t_steps <= 32))

    # Persist state for the next chunk.
    h1_ref[...] = h1
    c1_ref[...] = c1
    h2_ref[...] = h2
    c2_ref[...] = c2
    # Output block index is constant across the grid, so writing every chunk is
    # safe; the last chunk's write is the final top-layer hidden state.
    out_ref[...] = h2.astype(out_ref.dtype)


# ----------------------------------------------------------------------------
# Wrapper
# ----------------------------------------------------------------------------
def _round_up(n, m):
    return ((n + m - 1) // m) * m


def _time_chunk(seq_len, max_chunk=128):
    """Largest divisor of seq_len that is <= max_chunk (uniform chunks)."""
    for c in range(min(seq_len, max_chunk), 0, -1):
        if seq_len % c == 0:
            return c
    return seq_len


def lstm_backbone_forward(x, params, *, backbone=True):
    """x: (batch, seq, n_channels). Returns (None, feats) like the PyTorch module."""
    (wih0, whh0, bih0, bhh0, wih1, whh1, bih1, bhh1) = params
    B, S, C = x.shape
    H = whh0.shape[0]            # weights stored transposed: whh0 is (H, 4H)

    # Permute the 4H gate axis from PyTorch order (i, f, g, o) to (i, f, o, g).
    perm = jnp.concatenate([
        jnp.arange(0 * H, 1 * H),
        jnp.arange(1 * H, 2 * H),
        jnp.arange(3 * H, 4 * H),
        jnp.arange(2 * H, 3 * H),
    ])
    pg = lambda w: w[:, perm]

    # Pad channels to a lane multiple so the in-kernel [x_t ; h] concat is
    # 128-lane aligned and layer-0 K is MXU-friendly (padded rows are zeros).
    Cp = _round_up(max(C, 1), 128)
    x_sbf = jnp.transpose(x, (1, 0, 2))                        # (S, B, C)
    x_sbf = jnp.pad(x_sbf, ((0, 0), (0, 0), (0, Cp - C)))      # (S, B, Cp)

    wih0_p = jnp.pad(pg(wih0), ((0, Cp - C), (0, 0)))          # (Cp, 4H)
    w0 = jnp.concatenate([wih0_p, pg(whh0)], axis=0)           # (Cp + H, 4H)
    w1 = jnp.concatenate([pg(wih1), pg(whh1)], axis=0)         # (2H, 4H)
    b0 = (bih0 + bhh0)[perm].reshape(1, 4 * H)
    b1 = (bih1 + bhh1)[perm].reshape(1, 4 * H)

    tc = _time_chunk(S)
    n_chunks = S // tc

    feats = pl.pallas_call(
        _lstm_kernel,
        out_shape=jax.ShapeDtypeStruct((B, H), x.dtype),
        grid_spec=pltpu.PrefetchScalarGridSpec(
            num_scalar_prefetch=0,
            grid=(n_chunks,),
            in_specs=[
                pl.BlockSpec((tc, B, Cp), lambda c: (c, 0, 0)),    # x chunk
                pl.BlockSpec((Cp + H, 4 * H), lambda c: (0, 0)),   # w0 (stacked)
                pl.BlockSpec((1, 4 * H), lambda c: (0, 0)),        # b0
                pl.BlockSpec((2 * H, 4 * H), lambda c: (0, 0)),    # w1 (stacked)
                pl.BlockSpec((1, 4 * H), lambda c: (0, 0)),        # b1
            ],
            out_specs=pl.BlockSpec((B, H), lambda c: (0, 0)),
            scratch_shapes=[pltpu.VMEM((B, H), jnp.float32)] * 4,  # h1,c1,h2,c2
        ),
        compiler_params=pltpu.CompilerParams(
            # The recurrence serializes the chunk axis.
            dimension_semantics=("arbitrary",),
        ),
    )(x_sbf, w0, b0, w1, b1)

    # backbone=True branch of the PyTorch module: return (None, feats).
    # TODO(synk): backbone=False classifier head (one (B,H)@(H,n_classes) matmul)
    # is not exercised here.
    return None, feats


# ----------------------------------------------------------------------------
# Pure-JAX reference (mirrors torch.nn.LSTM math) for validation.
# ----------------------------------------------------------------------------
def _lstm_reference(x, params):
    (wih0, whh0, bih0, bhh0, wih1, whh1, bih1, bhh1) = params
    B, S, C = x.shape
    H = whh0.shape[0]
    x_sbf = jnp.transpose(x, (1, 0, 2)).astype(jnp.float32)

    def cell(x_in, h, c, wih, whh, b):
        gates = (jnp.dot(x_in, wih, precision=jax.lax.Precision.HIGHEST)
                 + jnp.dot(h, whh, precision=jax.lax.Precision.HIGHEST) + b)
        i = jax.nn.sigmoid(gates[:, 0 * H:1 * H])
        f = jax.nn.sigmoid(gates[:, 1 * H:2 * H])
        g = jnp.tanh(gates[:, 2 * H:3 * H])
        o = jax.nn.sigmoid(gates[:, 3 * H:4 * H])
        c_new = f * c + i * g
        return o * jnp.tanh(c_new), c_new

    def step(carry, x_t):
        h1, c1, h2, c2 = carry
        h1, c1 = cell(x_t, h1, c1, wih0, whh0, bih0 + bhh0)
        h2, c2 = cell(h1, h2, c2, wih1, whh1, bih1 + bhh1)
        return (h1, c1, h2, c2), None

    z = jnp.zeros((B, H), jnp.float32)
    (h1, c1, h2, c2), _ = jax.lax.scan(step, (z, z, z, z), x_sbf)
    return h2


# ----------------------------------------------------------------------------
# Parameter init (deterministic, PyTorch-style uniform(-1/sqrt(H), 1/sqrt(H)))
# ----------------------------------------------------------------------------
def init_lstm_params(key, n_channels, hidden):
    bound = 1.0 / jnp.sqrt(hidden)
    ks = jax.random.split(key, 8)
    u = lambda k, shape: jax.random.uniform(k, shape, jnp.float32, -bound, bound)
    # Stored already transposed for x @ W form: (in, 4H) / (H, 4H).
    wih0 = u(ks[0], (n_channels, 4 * hidden))
    whh0 = u(ks[1], (hidden, 4 * hidden))
    bih0 = u(ks[2], (4 * hidden,))
    bhh0 = u(ks[3], (4 * hidden,))
    wih1 = u(ks[4], (hidden, 4 * hidden))
    whh1 = u(ks[5], (hidden, 4 * hidden))
    bih1 = u(ks[6], (4 * hidden,))
    bhh1 = u(ks[7], (4 * hidden,))
    return (wih0, whh0, bih0, bhh0, wih1, whh1, bih1, bhh1)


if __name__ == "__main__":
    B, S, C, H = 2, 8, 4, 128   # batch, seq, n_channels, LSTM_units (module default)

    key = jax.random.PRNGKey(0)
    kx, kp = jax.random.split(key)
    x = jax.random.normal(kx, (B, S, C), jnp.float32)
    params = init_lstm_params(kp, C, H)

    _, feats = jax.jit(functools.partial(lstm_backbone_forward, backbone=True))(x, params)
    feats = jax.block_until_ready(feats)
    assert feats.shape == (B, H), feats.shape

    ref = _lstm_reference(x, params)
    max_err = float(jnp.max(jnp.abs(feats - ref)))
    assert jnp.allclose(feats, ref, atol=1e-4, rtol=1e-4), max_err

    print("KERNEL_OK")
</pallas_src>

<mosaic_0001>
module attributes {stable_mosaic.version = 11 : i64} {
  func.func @_lstm_kernel(%arg0: i32, %arg1: memref<8x2x128xf32, #tpu.memory_space<vmem>>, %arg2: memref<256x512xf32, #tpu.memory_space<vmem>>, %arg3: memref<1x512xf32, #tpu.memory_space<vmem>>, %arg4: memref<256x512xf32, #tpu.memory_space<vmem>>, %arg5: memref<1x512xf32, #tpu.memory_space<vmem>>, %arg6: memref<2x128xf32, #tpu.memory_space<vmem>>, %arg7: memref<2x128xf32, #tpu.memory_space<vmem>>, %arg8: memref<2x128xf32, #tpu.memory_space<vmem>>, %arg9: memref<2x128xf32, #tpu.memory_space<vmem>>, %arg10: memref<2x128xf32, #tpu.memory_space<vmem>>) attributes {dimension_semantics = [#tpu.dimension_semantics<arbitrary>], iteration_bounds = array<i64: 1>, scalar_prefetch = 0 : i64, scratch_operands = 4 : i64, tpu.core_type = #tpu.core_type<tc>, window_params = [{transform_indices = @transform_0, window_bounds = array<i64: 8, 2, 128>}, {pipeline_mode = #tpu.pipeline_mode<synchronous>, transform_indices = @transform_1, window_bounds = array<i64: 256, 512>}, {pipeline_mode = #tpu.pipeline_mode<synchronous>, transform_indices = @transform_2, window_bounds = array<i64: 1, 512>}, {pipeline_mode = #tpu.pipeline_mode<synchronous>, transform_indices = @transform_3, window_bounds = array<i64: 256, 512>}, {pipeline_mode = #tpu.pipeline_mode<synchronous>, transform_indices = @transform_4, window_bounds = array<i64: 1, 512>}, {pipeline_mode = #tpu.pipeline_mode<synchronous>, transform_indices = @transform_5, window_bounds = array<i64: 2, 128>}]} {
    %c0_i32 = arith.constant 0 : i32
    %0 = arith.cmpi eq, %arg0, %c0_i32 : i32
    %1 = arith.extui %0 : i1 to i32
    %c0_i32_0 = arith.constant 0 : i32
    %2 = arith.cmpi ne, %1, %c0_i32_0 : i32
    scf.if %2 {
      %cst_74 = arith.constant 0.000000e+00 : f32
      %360 = vector.broadcast %cst_74 : f32 to vector<2x128xf32>
      %c0_75 = arith.constant 0 : index
      %c0_76 = arith.constant 0 : index
      %361 = vector.load %arg7[%c0_75, %c0_76] : memref<2x128xf32, #tpu.memory_space<vmem>>, vector<2x128xf32>
      tpu.vector_store %arg7[%c0_75, %c0_76], %360 {strides = array<i32>} : memref<2x128xf32, #tpu.memory_space<vmem>>, vector<2x128xf32>,
      %cst_77 = arith.constant 0.000000e+00 : f32
      %362 = vector.broadcast %cst_77 : f32 to vector<2x128xf32>
      %c0_78 = arith.constant 0 : index
      %c0_79 = arith.constant 0 : index
      %363 = vector.load %arg8[%c0_78, %c0_79] : memref<2x128xf32, #tpu.memory_space<vmem>>, vector<2x128xf32>
      tpu.vector_store %arg8[%c0_78, %c0_79], %362 {strides = array<i32>} : memref<2x128xf32, #tpu.memory_space<vmem>>, vector<2x128xf32>,
      %cst_80 = arith.constant 0.000000e+00 : f32
      %364 = vector.broadcast %cst_80 : f32 to vector<2x128xf32>
      %c0_81 = arith.constant 0 : index
      %c0_82 = arith.constant 0 : index
      %365 = vector.load %arg9[%c0_81, %c0_82] : memref<2x128xf32, #tpu.memory_space<vmem>>, vector<2x128xf32>
      tpu.vector_store %arg9[%c0_81, %c0_82], %364 {strides = array<i32>} : memref<2x128xf32, #tpu.memory_space<vmem>>, vector<2x128xf32>,
      %cst_83 = arith.constant 0.000000e+00 : f32
      %366 = vector.broadcast %cst_83 : f32 to vector<2x128xf32>
      %c0_84 = arith.constant 0 : index
      %c0_85 = arith.constant 0 : index
      %367 = vector.load %arg10[%c0_84, %c0_85] : memref<2x128xf32, #tpu.memory_space<vmem>>, vector<2x128xf32>
      tpu.vector_store %arg10[%c0_84, %c0_85], %366 {strides = array<i32>} : memref<2x128xf32, #tpu.memory_space<vmem>>, vector<2x128xf32>,
    } else {
    }
    %c0 = arith.constant 0 : index
    %c0_1 = arith.constant 0 : index
    %3 = vector.load %arg2[%c0, %c0_1] : memref<256x512xf32, #tpu.memory_space<vmem>>, vector<256x512xf32>
    %c0_2 = arith.constant 0 : index
    %c0_3 = arith.constant 0 : index
    %4 = vector.load %arg4[%c0_2, %c0_3] : memref<256x512xf32, #tpu.memory_space<vmem>>, vector<256x512xf32>
    %c0_4 = arith.constant 0 : index
    %c0_5 = arith.constant 0 : index
    %5 = vector.load %arg3[%c0_4, %c0_5] : memref<1x512xf32, #tpu.memory_space<vmem>>, vector<1x512xf32>
    %c0_6 = arith.constant 0 : index
    %c0_7 = arith.constant 0 : index
    %6 = vector.load %arg5[%c0_6, %c0_7] : memref<1x512xf32, #tpu.memory_space<vmem>>, vector<1x512xf32>
    %c0_8 = arith.constant 0 : index
    %c0_9 = arith.constant 0 : index
    %7 = vector.load %arg7[%c0_8, %c0_9] : memref<2x128xf32, #tpu.memory_space<vmem>>, vector<2x128xf32>
    %c0_10 = arith.constant 0 : index
    %c0_11 = arith.constant 0 : index
    %8 = vector.load %arg8[%c0_10, %c0_11] : memref<2x128xf32, #tpu.memory_space<vmem>>, vector<2x128xf32>
    %c0_12 = arith.constant 0 : index
    %c0_13 = arith.constant 0 : index
    %9 = vector.load %arg9[%c0_12, %c0_13] : memref<2x128xf32, #tpu.memory_space<vmem>>, vector<2x128xf32>
    %c0_14 = arith.constant 0 : index
    %c0_15 = arith.constant 0 : index
    %10 = vector.load %arg10[%c0_14, %c0_15] : memref<2x128xf32, #tpu.memory_space<vmem>>, vector<2x128xf32>
    %c0_i32_16 = arith.constant 0 : i32
    %11 = arith.index_cast %c0_i32_16 : i32 to index
    %c0_17 = arith.constant 0 : index
    %c0_18 = arith.constant 0 : index
    %12 = vector.load %arg1[%11, %c0_17, %c0_18] : memref<8x2x128xf32, #tpu.memory_space<vmem>>, vector<1x2x128xf32>
    %13 = vector.shape_cast %12 : vector<1x2x128xf32> to vector<2x128xf32>
    %14 = tpu.concatenate %13, %7 in 1 : vector<2x128xf32>, vector<2x128xf32> -> vector<2x256xf32>
    %cst = arith.constant dense<0.000000e+00> : vector<2x512xf32>
    %15 = tpu.matmul %14, %3, %cst {dimension_numbers = #tpu.dot_dimension_numbers<[1], [0], [0], [1], [0, 0, 1, 1], [], []>} : vector<2x256xf32>, vector<256x512xf32>, vector<2x512xf32> -> vector<2x512xf32>
    %16 = vector.broadcast %5 : vector<1x512xf32> to vector<2x512xf32>
    %17 = arith.addf %15, %16 : vector<2x512xf32>
    %18 = vector.extract_strided_slice %17 {offsets = [0, 0], sizes = [2, 384], strides = [1, 1]} : vector<2x512xf32> to vector<2x384xf32>
    %19 = arith.negf %18 : vector<2x384xf32>
    %20 = math.exp %19 : vector<2x384xf32>
    %cst_19 = arith.constant 1.000000e+00 : f32
    %21 = vector.broadcast %cst_19 : f32 to vector<2x384xf32>
    %22 = arith.addf %21, %20 : vector<2x384xf32>
    %23 = arith.divf %21, %22 : vector<2x384xf32>
    %24 = vector.extract_strided_slice %17 {offsets = [0, 384], sizes = [2, 128], strides = [1, 1]} : vector<2x512xf32> to vector<2x128xf32>
    %25 = math.tanh %24 : vector<2x128xf32>
    %26 = vector.extract_strided_slice %23 {offsets = [0, 0], sizes = [2, 128], strides = [1, 1]} : vector<2x384xf32> to vector<2x128xf32>
    %27 = vector.extract_strided_slice %23 {offsets = [0, 128], sizes = [2, 128], strides = [1, 1]} : vector<2x384xf32> to vector<2x128xf32>
    %28 = vector.extract_strided_slice %23 {offsets = [0, 256], sizes = [2, 128], strides = [1, 1]} : vector<2x384xf32> to vector<2x128xf32>
    %29 = arith.mulf %27, %8 : vector<2x128xf32>
    %30 = arith.mulf %26, %25 : vector<2x128xf32>
    %31 = arith.addf %29, %30 : vector<2x128xf32>
    %32 = math.tanh %31 : vector<2x128xf32>
    %33 = arith.mulf %28, %32 : vector<2x128xf32>
    %34 = tpu.concatenate %33, %9 in 1 : vector<2x128xf32>, vector<2x128xf32> -> vector<2x256xf32>
    %cst_20 = arith.constant dense<0.000000e+00> : vector<2x512xf32>
    %35 = tpu.matmul %34, %4, %cst_20 {dimension_numbers = #tpu.dot_dimension_numbers<[1], [0], [0], [1], [0, 0, 1, 1], [], []>} : vector<2x256xf32>, vector<256x512xf32>, vector<2x512xf32> -> vector<2x512xf32>
    %36 = vector.broadcast %6 : vector<1x512xf32> to vector<2x512xf32>
    %37 = arith.addf %35, %36 : vector<2x512xf32>
    %38 = vector.extract_strided_slice %37 {offsets = [0, 0], sizes = [2, 384], strides = [1, 1]} : vector<2x512xf32> to vector<2x384xf32>
    %39 = arith.negf %38 : vector<2x384xf32>
    %40 = math.exp %39 : vector<2x384xf32>
    %cst_21 = arith.constant 1.000000e+00 : f32
    %41 = vector.broadcast %cst_21 : f32 to vector<2x384xf32>
    %42 = arith.addf %41, %40 : vector<2x384xf32>
    %43 = arith.divf %41, %42 : vector<2x384xf32>
    %44 = vector.extract_strided_slice %37 {offsets = [0, 384], sizes = [2, 128], strides = [1, 1]} : vector<2x512xf32> to vector<2x128xf32>
    %45 = math.tanh %44 : vector<2x128xf32>
    %46 = vector.extract_strided_slice %43 {offsets = [0, 0], sizes = [2, 128], strides = [1, 1]} : vector<2x384xf32> to vector<2x128xf32>
    %47 = vector.extract_strided_slice %43 {offsets = [0, 128], sizes = [2, 128], strides = [1, 1]} : vector<2x384xf32> to vector<2x128xf32>
    %48 = vector.extract_strided_slice %43 {offsets = [0, 256], sizes = [2, 128], strides = [1, 1]} : vector<2x384xf32> to vector<2x128xf32>
    %49 = arith.mulf %47, %10 : vector<2x128xf32>
    %50 = arith.mulf %46, %45 : vector<2x128xf32>
    %51 = arith.addf %49, %50 : vector<2x128xf32>
    %52 = math.tanh %51 : vector<2x128xf32>
    %53 = arith.mulf %48, %52 : vector<2x128xf32>
    %c1_i32 = arith.constant 1 : i32
    %54 = arith.index_cast %c1_i32 : i32 to index
    %c0_22 = arith.constant 0 : index
    %c0_23 = arith.constant 0 : index
    %55 = vector.load %arg1[%54, %c0_22, %c0_23] : memref<8x2x128xf32, #tpu.memory_space<vmem>>, vector<1x2x128xf32>
    %56 = vector.shape_cast %55 : vector<1x2x128xf32> to vector<2x128xf32>
    %57 = tpu.concatenate %56, %33 in 1 : vector<2x128xf32>, vector<2x128xf32> -> vector<2x256xf32>
    %cst_24 = arith.constant dense<0.000000e+00> : vector<2x512xf32>
    %58 = tpu.matmul %57, %3, %cst_24 {dimension_numbers = #tpu.dot_dimension_numbers<[1], [0], [0], [1], [0, 0, 1, 1], [], []>} : vector<2x256xf32>, vector<256x512xf32>, vector<2x512xf32> -> vector<2x512xf32>
    %59 = vector.broadcast %5 : vector<1x512xf32> to vector<2x512xf32>
    %60 = arith.addf %58, %59 : vector<2x512xf32>
    %61 = vector.extract_strided_slice %60 {offsets = [0, 0], sizes = [2, 384], strides = [1, 1]} : vector<2x512xf32> to vector<2x384xf32>
    %62 = arith.negf %61 : vector<2x384xf32>
    %63 = math.exp %62 : vector<2x384xf32>
    %cst_25 = arith.constant 1.000000e+00 : f32
    %64 = vector.broadcast %cst_25 : f32 to vector<2x384xf32>
    %65 = arith.addf %64, %63 : vector<2x384xf32>
    %66 = arith.divf %64, %65 : vector<2x384xf32>
    %67 = vector.extract_strided_slice %60 {offsets = [0, 384], sizes = [2, 128], strides = [1, 1]} : vector<2x512xf32> to vector<2x128xf32>
    %68 = math.tanh %67 : vector<2x128xf32>
    %69 = vector.extract_strided_slice %66 {offsets = [0, 0], sizes = [2, 128], strides = [1, 1]} : vector<2x384xf32> to vector<2x128xf32>
    %70 = vector.extract_strided_slice %66 {offsets = [0, 128], sizes = [2, 128], strides = [1, 1]} : vector<2x384xf32> to vector<2x128xf32>
    %71 = vector.extract_strided_slice %66 {offsets = [0, 256], sizes = [2, 128], strides = [1, 1]} : vector<2x384xf32> to vector<2x128xf32>
    %72 = arith.mulf %70, %31 : vector<2x128xf32>
    %73 = arith.mulf %69, %68 : vector<2x128xf32>
    %74 = arith.addf %72, %73 : vector<2x128xf32>
    %75 = math.tanh %74 : vector<2x128xf32>
    %76 = arith.mulf %71, %75 : vector<2x128xf32>
    %77 = tpu.concatenate %76, %53 in 1 : vector<2x128xf32>, vector<2x128xf32> -> vector<2x256xf32>
    %cst_26 = arith.constant dense<0.000000e+00> : vector<2x512xf32>
    %78 = tpu.matmul %77, %4, %cst_26 {dimension_numbers = #tpu.dot_dimension_numbers<[1], [0], [0], [1], [0, 0, 1, 1], [], []>} : vector<2x256xf32>, vector<256x512xf32>, vector<2x512xf32> -> vector<2x512xf32>
    %79 = vector.broadcast %6 : vector<1x512xf32> to vector<2x512xf32>
    %80 = arith.addf %78, %79 : vector<2x512xf32>
    %81 = vector.extract_strided_slice %80 {offsets = [0, 0], sizes = [2, 384], strides = [1, 1]} : vector<2x512xf32> to vector<2x384xf32>
    %82 = arith.negf %81 : vector<2x384xf32>
    %83 = math.exp %82 : vector<2x384xf32>
    %cst_27 = arith.constant 1.000000e+00 : f32
    %84 = vector.broadcast %cst_27 : f32 to vector<2x384xf32>
    %85 = arith.addf %84, %83 : vector<2x384xf32>
    %86 = arith.divf %84, %85 : vector<2x384xf32>
    %87 = vector.extract_strided_slice %80 {offsets = [0, 384], sizes = [2, 128], strides = [1, 1]} : vector<2x512xf32> to vector<2x128xf32>
    %88 = math.tanh %87 : vector<2x128xf32>
    %89 = vector.extract_strided_slice %86 {offsets = [0, 0], sizes = [2, 128], strides = [1, 1]} : vector<2x384xf32> to vector<2x128xf32>
    %90 = vector.extract_strided_slice %86 {offsets = [0, 128], sizes = [2, 128], strides = [1, 1]} : vector<2x384xf32> to vector<2x128xf32>
    %91 = vector.extract_strided_slice %86 {offsets = [0, 256], sizes = [2, 128], strides = [1, 1]} : vector<2x384xf32> to vector<2x128xf32>
    %92 = arith.mulf %90, %51 : vector<2x128xf32>
    %93 = arith.mulf %89, %88 : vector<2x128xf32>
    %94 = arith.addf %92, %93 : vector<2x128xf32>
    %95 = math.tanh %94 : vector<2x128xf32>
    %96 = arith.mulf %91, %95 : vector<2x128xf32>
    %c2_i32 = arith.constant 2 : i32
    %97 = arith.index_cast %c2_i32 : i32 to index
    %c0_28 = arith.constant 0 : index
    %c0_29 = arith.constant 0 : index
    %98 = vector.load %arg1[%97, %c0_28, %c0_29] : memref<8x2x128xf32, #tpu.memory_space<vmem>>, vector<1x2x128xf32>
    %99 = vector.shape_cast %98 : vector<1x2x128xf32> to vector<2x128xf32>
    %100 = tpu.concatenate %99, %76 in 1 : vector<2x128xf32>, vector<2x128xf32> -> vector<2x256xf32>
    %cst_30 = arith.constant dense<0.000000e+00> : vector<2x512xf32>
    %101 = tpu.matmul %100, %3, %cst_30 {dimension_numbers = #tpu.dot_dimension_numbers<[1], [0], [0], [1], [0, 0, 1, 1], [], []>} : vector<2x256xf32>, vector<256x512xf32>, vector<2x512xf32> -> vector<2x512xf32>
    %102 = vector.broadcast %5 : vector<1x512xf32> to vector<2x512xf32>
    %103 = arith.addf %101, %102 : vector<2x512xf32>
    %104 = vector.extract_strided_slice %103 {offsets = [0, 0], sizes = [2, 384], strides = [1, 1]} : vector<2x512xf32> to vector<2x384xf32>
    %105 = arith.negf %104 : vector<2x384xf32>
    %106 = math.exp %105 : vector<2x384xf32>
    %cst_31 = arith.constant 1.000000e+00 : f32
    %107 = vector.broadcast %cst_31 : f32 to vector<2x384xf32>
    %108 = arith.addf %107, %106 : vector<2x384xf32>
    %109 = arith.divf %107, %108 : vector<2x384xf32>
    %110 = vector.extract_strided_slice %103 {offsets = [0, 384], sizes = [2, 128], strides = [1, 1]} : vector<2x512xf32> to vector<2x128xf32>
    %111 = math.tanh %110 : vector<2x128xf32>
    %112 = vector.extract_strided_slice %109 {offsets = [0, 0], sizes = [2, 128], strides = [1, 1]} : vector<2x384xf32> to vector<2x128xf32>
    %113 = vector.extract_strided_slice %109 {offsets = [0, 128], sizes = [2, 128], strides = [1, 1]} : vector<2x384xf32> to vector<2x128xf32>
    %114 = vector.extract_strided_slice %109 {offsets = [0, 256], sizes = [2, 128], strides = [1, 1]} : vector<2x384xf32> to vector<2x128xf32>
    %115 = arith.mulf %113, %74 : vector<2x128xf32>
    %116 = arith.mulf %112, %111 : vector<2x128xf32>
    %117 = arith.addf %115, %116 : vector<2x128xf32>
    %118 = math.tanh %117 : vector<2x128xf32>
    %119 = arith.mulf %114, %118 : vector<2x128xf32>
    %120 = tpu.concatenate %119, %96 in 1 : vector<2x128xf32>, vector<2x128xf32> -> vector<2x256xf32>
    %cst_32 = arith.constant dense<0.000000e+00> : vector<2x512xf32>
    %121 = tpu.matmul %120, %4, %cst_32 {dimension_numbers = #tpu.dot_dimension_numbers<[1], [0], [0], [1], [0, 0, 1, 1], [], []>} : vector<2x256xf32>, vector<256x512xf32>, vector<2x512xf32> -> vector<2x512xf32>
    %122 = vector.broadcast %6 : vector<1x512xf32> to vector<2x512xf32>
    %123 = arith.addf %121, %122 : vector<2x512xf32>
    %124 = vector.extract_strided_slice %123 {offsets = [0, 0], sizes = [2, 384], strides = [1, 1]} : vector<2x512xf32> to vector<2x384xf32>
    %125 = arith.negf %124 : vector<2x384xf32>
    %126 = math.exp %125 : vector<2x384xf32>
    %cst_33 = arith.constant 1.000000e+00 : f32
    %127 = vector.broadcast %cst_33 : f32 to vector<2x384xf32>
    %128 = arith.addf %127, %126 : vector<2x384xf32>
    %129 = arith.divf %127, %128 : vector<2x384xf32>
    %130 = vector.extract_strided_slice %123 {offsets = [0, 384], sizes = [2, 128], strides = [1, 1]} : vector<2x512xf32> to vector<2x128xf32>
    %131 = math.tanh %130 : vector<2x128xf32>
    %132 = vector.extract_strided_slice %129 {offsets = [0, 0], sizes = [2, 128], strides = [1, 1]} : vector<2x384xf32> to vector<2x128xf32>
    %133 = vector.extract_strided_slice %129 {offsets = [0, 128], sizes = [2, 128], strides = [1, 1]} : vector<2x384xf32> to vector<2x128xf32>
    %134 = vector.extract_strided_slice %129 {offsets = [0, 256], sizes = [2, 128], strides = [1, 1]} : vector<2x384xf32> to vector<2x128xf32>
    %135 = arith.mulf %133, %94 : vector<2x128xf32>
    %136 = arith.mulf %132, %131 : vector<2x128xf32>
    %137 = arith.addf %135, %136 : vector<2x128xf32>
    %138 = math.tanh %137 : vector<2x128xf32>
    %139 = arith.mulf %134, %138 : vector<2x128xf32>
    %c3_i32 = arith.constant 3 : i32
    %140 = arith.index_cast %c3_i32 : i32 to index
    %c0_34 = arith.constant 0 : index
    %c0_35 = arith.constant 0 : index
    %141 = vector.load %arg1[%140, %c0_34, %c0_35] : memref<8x2x128xf32, #tpu.memory_space<vmem>>, vector<1x2x128xf32>
    %142 = vector.shape_cast %141 : vector<1x2x128xf32> to vector<2x128xf32>
    %143 = tpu.concatenate %142, %119 in 1 : vector<2x128xf32>, vector<2x128xf32> -> vector<2x256xf32>
    %cst_36 = arith.constant dense<0.000000e+00> : vector<2x512xf32>
    %144 = tpu.matmul %143, %3, %cst_36 {dimension_numbers = #tpu.dot_dimension_numbers<[1], [0], [0], [1], [0, 0, 1, 1], [], []>} : vector<2x256xf32>, vector<256x512xf32>, vector<2x512xf32> -> vector<2x512xf32>
    %145 = vector.broadcast %5 : vector<1x512xf32> to vector<2x512xf32>
    %146 = arith.addf %144, %145 : vector<2x512xf32>
    %147 = vector.extract_strided_slice %146 {offsets = [0, 0], sizes = [2, 384], strides = [1, 1]} : vector<2x512xf32> to vector<2x384xf32>
    %148 = arith.negf %147 : vector<2x384xf32>
    %149 = math.exp %148 : vector<2x384xf32>
    %cst_37 = arith.constant 1.000000e+00 : f32
    %150 = vector.broadcast %cst_37 : f32 to vector<2x384xf32>
    %151 = arith.addf %150, %149 : vector<2x384xf32>
    %152 = arith.divf %150, %151 : vector<2x384xf32>
    %153 = vector.extract_strided_slice %146 {offsets = [0, 384], sizes = [2, 128], strides = [1, 1]} : vector<2x512xf32> to vector<2x128xf32>
    %154 = math.tanh %153 : vector<2x128xf32>
    %155 = vector.extract_strided_slice %152 {offsets = [0, 0], sizes = [2, 128], strides = [1, 1]} : vector<2x384xf32> to vector<2x128xf32>
    %156 = vector.extract_strided_slice %152 {offsets = [0, 128], sizes = [2, 128], strides = [1, 1]} : vector<2x384xf32> to vector<2x128xf32>
    %157 = vector.extract_strided_slice %152 {offsets = [0, 256], sizes = [2, 128], strides = [1, 1]} : vector<2x384xf32> to vector<2x128xf32>
    %158 = arith.mulf %156, %117 : vector<2x128xf32>
    %159 = arith.mulf %155, %154 : vector<2x128xf32>
    %160 = arith.addf %158, %159 : vector<2x128xf32>
    %161 = math.tanh %160 : vector<2x128xf32>
    %162 = arith.mulf %157, %161 : vector<2x128xf32>
    %163 = tpu.concatenate %162, %139 in 1 : vector<2x128xf32>, vector<2x128xf32> -> vector<2x256xf32>
    %cst_38 = arith.constant dense<0.000000e+00> : vector<2x512xf32>
    %164 = tpu.matmul %163, %4, %cst_38 {dimension_numbers = #tpu.dot_dimension_numbers<[1], [0], [0], [1], [0, 0, 1, 1], [], []>} : vector<2x256xf32>, vector<256x512xf32>, vector<2x512xf32> -> vector<2x512xf32>
    %165 = vector.broadcast %6 : vector<1x512xf32> to vector<2x512xf32>
    %166 = arith.addf %164, %165 : vector<2x512xf32>
    %167 = vector.extract_strided_slice %166 {offsets = [0, 0], sizes = [2, 384], strides = [1, 1]} : vector<2x512xf32> to vector<2x384xf32>
    %168 = arith.negf %167 : vector<2x384xf32>
    %169 = math.exp %168 : vector<2x384xf32>
    %cst_39 = arith.constant 1.000000e+00 : f32
    %170 = vector.broadcast %cst_39 : f32 to vector<2x384xf32>
    %171 = arith.addf %170, %169 : vector<2x384xf32>
    %172 = arith.divf %170, %171 : vector<2x384xf32>
    %173 = vector.extract_strided_slice %166 {offsets = [0, 384], sizes = [2, 128], strides = [1, 1]} : vector<2x512xf32> to vector<2x128xf32>
    %174 = math.tanh %173 : vector<2x128xf32>
    %175 = vector.extract_strided_slice %172 {offsets = [0, 0], sizes = [2, 128], strides = [1, 1]} : vector<2x384xf32> to vector<2x128xf32>
    %176 = vector.extract_strided_slice %172 {offsets = [0, 128], sizes = [2, 128], strides = [1, 1]} : vector<2x384xf32> to vector<2x128xf32>
    %177 = vector.extract_strided_slice %172 {offsets = [0, 256], sizes = [2, 128], strides = [1, 1]} : vector<2x384xf32> to vector<2x128xf32>
    %178 = arith.mulf %176, %137 : vector<2x128xf32>
    %179 = arith.mulf %175, %174 : vector<2x128xf32>
    %180 = arith.addf %178, %179 : vector<2x128xf32>
    %181 = math.tanh %180 : vector<2x128xf32>
    %182 = arith.mulf %177, %181 : vector<2x128xf32>
    %c4_i32 = arith.constant 4 : i32
    %183 = arith.index_cast %c4_i32 : i32 to index
    %c0_40 = arith.constant 0 : index
    %c0_41 = arith.constant 0 : index
    %184 = vector.load %arg1[%183, %c0_40, %c0_41] : memref<8x2x128xf32, #tpu.memory_space<vmem>>, vector<1x2x128xf32>
    %185 = vector.shape_cast %184 : vector<1x2x128xf32> to vector<2x128xf32>
    %186 = tpu.concatenate %185, %162 in 1 : vector<2x128xf32>, vector<2x128xf32> -> vector<2x256xf32>
    %cst_42 = arith.constant dense<0.000000e+00> : vector<2x512xf32>
    %187 = tpu.matmul %186, %3, %cst_42 {dimension_numbers = #tpu.dot_dimension_numbers<[1], [0], [0], [1], [0, 0, 1, 1], [], []>} : vector<2x256xf32>, vector<256x512xf32>, vector<2x512xf32> -> vector<2x512xf32>
    %188 = vector.broadcast %5 : vector<1x512xf32> to vector<2x512xf32>
    %189 = arith.addf %187, %188 : vector<2x512xf32>
    %190 = vector.extract_strided_slice %189 {offsets = [0, 0], sizes = [2, 384], strides = [1, 1]} : vector<2x512xf32> to vector<2x384xf32>
    %191 = arith.negf %190 : vector<2x384xf32>
    %192 = math.exp %191 : vector<2x384xf32>
    %cst_43 = arith.constant 1.000000e+00 : f32
    %193 = vector.broadcast %cst_43 : f32 to vector<2x384xf32>
    %194 = arith.addf %193, %192 : vector<2x384xf32>
    %195 = arith.divf %193, %194 : vector<2x384xf32>
    %196 = vector.extract_strided_slice %189 {offsets = [0, 384], sizes = [2, 128], strides = [1, 1]} : vector<2x512xf32> to vector<2x128xf32>
    %197 = math.tanh %196 : vector<2x128xf32>
    %198 = vector.extract_strided_slice %195 {offsets = [0, 0], sizes = [2, 128], strides = [1, 1]} : vector<2x384xf32> to vector<2x128xf32>
    %199 = vector.extract_strided_slice %195 {offsets = [0, 128], sizes = [2, 128], strides = [1, 1]} : vector<2x384xf32> to vector<2x128xf32>
    %200 = vector.extract_strided_slice %195 {offsets = [0, 256], sizes = [2, 128], strides = [1, 1]} : vector<2x384xf32> to vector<2x128xf32>
    %201 = arith.mulf %199, %160 : vector<2x128xf32>
    %202 = arith.mulf %198, %197 : vector<2x128xf32>
    %203 = arith.addf %201, %202 : vector<2x128xf32>
    %204 = math.tanh %203 : vector<2x128xf32>
    %205 = arith.mulf %200, %204 : vector<2x128xf32>
    %206 = tpu.concatenate %205, %182 in 1 : vector<2x128xf32>, vector<2x128xf32> -> vector<2x256xf32>
    %cst_44 = arith.constant dense<0.000000e+00> : vector<2x512xf32>
    %207 = tpu.matmul %206, %4, %cst_44 {dimension_numbers = #tpu.dot_dimension_numbers<[1], [0], [0], [1], [0, 0, 1, 1], [], []>} : vector<2x256xf32>, vector<256x512xf32>, vector<2x512xf32> -> vector<2x512xf32>
    %208 = vector.broadcast %6 : vector<1x512xf32> to vector<2x512xf32>
    %209 = arith.addf %207, %208 : vector<2x512xf32>
    %210 = vector.extract_strided_slice %209 {offsets = [0, 0], sizes = [2, 384], strides = [1, 1]} : vector<2x512xf32> to vector<2x384xf32>
    %211 = arith.negf %210 : vector<2x384xf32>
    %212 = math.exp %211 : vector<2x384xf32>
    %cst_45 = arith.constant 1.000000e+00 : f32
    %213 = vector.broadcast %cst_45 : f32 to vector<2x384xf32>
    %214 = arith.addf %213, %212 : vector<2x384xf32>
    %215 = arith.divf %213, %214 : vector<2x384xf32>
    %216 = vector.extract_strided_slice %209 {offsets = [0, 384], sizes = [2, 128], strides = [1, 1]} : vector<2x512xf32> to vector<2x128xf32>
    %217 = math.tanh %216 : vector<2x128xf32>
    %218 = vector.extract_strided_slice %215 {offsets = [0, 0], sizes = [2, 128], strides = [1, 1]} : vector<2x384xf32> to vector<2x128xf32>
    %219 = vector.extract_strided_slice %215 {offsets = [0, 128], sizes = [2, 128], strides = [1, 1]} : vector<2x384xf32> to vector<2x128xf32>
    %220 = vector.extract_strided_slice %215 {offsets = [0, 256], sizes = [2, 128], strides = [1, 1]} : vector<2x384xf32> to vector<2x128xf32>
    %221 = arith.mulf %219, %180 : vector<2x128xf32>
    %222 = arith.mulf %218, %217 : vector<2x128xf32>
    %223 = arith.addf %221, %222 : vector<2x128xf32>
    %224 = math.tanh %223 : vector<2x128xf32>
    %225 = arith.mulf %220, %224 : vector<2x128xf32>
    %c5_i32 = arith.constant 5 : i32
    %226 = arith.index_cast %c5_i32 : i32 to index
    %c0_46 = arith.constant 0 : index
    %c0_47 = arith.constant 0 : index
    %227 = vector.load %arg1[%226, %c0_46, %c0_47] : memref<8x2x128xf32, #tpu.memory_space<vmem>>, vector<1x2x128xf32>
    %228 = vector.shape_cast %227 : vector<1x2x128xf32> to vector<2x128xf32>
    %229 = tpu.concatenate %228, %205 in 1 : vector<2x128xf32>, vector<2x128xf32> -> vector<2x256xf32>
    %cst_48 = arith.constant dense<0.000000e+00> : vector<2x512xf32>
    %230 = tpu.matmul %229, %3, %cst_48 {dimension_numbers = #tpu.dot_dimension_numbers<[1], [0], [0], [1], [0, 0, 1, 1], [], []>} : vector<2x256xf32>, vector<256x512xf32>, vector<2x512xf32> -> vector<2x512xf32>
    %231 = vector.broadcast %5 : vector<1x512xf32> to vector<2x512xf32>
    %232 = arith.addf %230, %231 : vector<2x512xf32>
    %233 = vector.extract_strided_slice %232 {offsets = [0, 0], sizes = [2, 384], strides = [1, 1]} : vector<2x512xf32> to vector<2x384xf32>
    %234 = arith.negf %233 : vector<2x384xf32>
    %235 = math.exp %234 : vector<2x384xf32>
    %cst_49 = arith.constant 1.000000e+00 : f32
    %236 = vector.broadcast %cst_49 : f32 to vector<2x384xf32>
    %237 = arith.addf %236, %235 : vector<2x384xf32>
    %238 = arith.divf %236, %237 : vector<2x384xf32>
    %239 = vector.extract_strided_slice %232 {offsets = [0, 384], sizes = [2, 128], strides = [1, 1]} : vector<2x512xf32> to vector<2x128xf32>
    %240 = math.tanh %239 : vector<2x128xf32>
    %241 = vector.extract_strided_slice %238 {offsets = [0, 0], sizes = [2, 128], strides = [1, 1]} : vector<2x384xf32> to vector<2x128xf32>
    %242 = vector.extract_strided_slice %238 {offsets = [0, 128], sizes = [2, 128], strides = [1, 1]} : vector<2x384xf32> to vector<2x128xf32>
    %243 = vector.extract_strided_slice %238 {offsets = [0, 256], sizes = [2, 128], strides = [1, 1]} : vector<2x384xf32> to vector<2x128xf32>
    %244 = arith.mulf %242, %203 : vector<2x128xf32>
    %245 = arith.mulf %241, %240 : vector<2x128xf32>
    %246 = arith.addf %244, %245 : vector<2x128xf32>
    %247 = math.tanh %246 : vector<2x128xf32>
    %248 = arith.mulf %243, %247 : vector<2x128xf32>
    %249 = tpu.concatenate %248, %225 in 1 : vector<2x128xf32>, vector<2x128xf32> -> vector<2x256xf32>
    %cst_50 = arith.constant dense<0.000000e+00> : vector<2x512xf32>
    %250 = tpu.matmul %249, %4, %cst_50 {dimension_numbers = #tpu.dot_dimension_numbers<[1], [0], [0], [1], [0, 0, 1, 1], [], []>} : vector<2x256xf32>, vector<256x512xf32>, vector<2x512xf32> -> vector<2x512xf32>
    %251 = vector.broadcast %6 : vector<1x512xf32> to vector<2x512xf32>
    %252 = arith.addf %250, %251 : vector<2x512xf32>
    %253 = vector.extract_strided_slice %252 {offsets = [0, 0], sizes = [2, 384], strides = [1, 1]} : vector<2x512xf32> to vector<2x384xf32>
    %254 = arith.negf %253 : vector<2x384xf32>
    %255 = math.exp %254 : vector<2x384xf32>
    %cst_51 = arith.constant 1.000000e+00 : f32
    %256 = vector.broadcast %cst_51 : f32 to vector<2x384xf32>
    %257 = arith.addf %256, %255 : vector<2x384xf32>
    %258 = arith.divf %256, %257 : vector<2x384xf32>
    %259 = vector.extract_strided_slice %252 {offsets = [0, 384], sizes = [2, 128], strides = [1, 1]} : vector<2x512xf32> to vector<2x128xf32>
    %260 = math.tanh %259 : vector<2x128xf32>
    %261 = vector.extract_strided_slice %258 {offsets = [0, 0], sizes = [2, 128], strides = [1, 1]} : vector<2x384xf32> to vector<2x128xf32>
    %262 = vector.extract_strided_slice %258 {offsets = [0, 128], sizes = [2, 128], strides = [1, 1]} : vector<2x384xf32> to vector<2x128xf32>
    %263 = vector.extract_strided_slice %258 {offsets = [0, 256], sizes = [2, 128], strides = [1, 1]} : vector<2x384xf32> to vector<2x128xf32>
    %264 = arith.mulf %262, %223 : vector<2x128xf32>
    %265 = arith.mulf %261, %260 : vector<2x128xf32>
    %266 = arith.addf %264, %265 : vector<2x128xf32>
    %267 = math.tanh %266 : vector<2x128xf32>
    %268 = arith.mulf %263, %267 : vector<2x128xf32>
    %c6_i32 = arith.constant 6 : i32
    %269 = arith.index_cast %c6_i32 : i32 to index
    %c0_52 = arith.constant 0 : index
    %c0_53 = arith.constant 0 : index
    %270 = vector.load %arg1[%269, %c0_52, %c0_53] : memref<8x2x128xf32, #tpu.memory_space<vmem>>, vector<1x2x128xf32>
    %271 = vector.shape_cast %270 : vector<1x2x128xf32> to vector<2x128xf32>
    %272 = tpu.concatenate %271, %248 in 1 : vector<2x128xf32>, vector<2x128xf32> -> vector<2x256xf32>
    %cst_54 = arith.constant dense<0.000000e+00> : vector<2x512xf32>
    %273 = tpu.matmul %272, %3, %cst_54 {dimension_numbers = #tpu.dot_dimension_numbers<[1], [0], [0], [1], [0, 0, 1, 1], [], []>} : vector<2x256xf32>, vector<256x512xf32>, vector<2x512xf32> -> vector<2x512xf32>
    %274 = vector.broadcast %5 : vector<1x512xf32> to vector<2x512xf32>
    %275 = arith.addf %273, %274 : vector<2x512xf32>
    %276 = vector.extract_strided_slice %275 {offsets = [0, 0], sizes = [2, 384], strides = [1, 1]} : vector<2x512xf32> to vector<2x384xf32>
    %277 = arith.negf %276 : vector<2x384xf32>
    %278 = math.exp %277 : vector<2x384xf32>
    %cst_55 = arith.constant 1.000000e+00 : f32
    %279 = vector.broadcast %cst_55 : f32 to vector<2x384xf32>
    %280 = arith.addf %279, %278 : vector<2x384xf32>
    %281 = arith.divf %279, %280 : vector<2x384xf32>
    %282 = vector.extract_strided_slice %275 {offsets = [0, 384], sizes = [2, 128], strides = [1, 1]} : vector<2x512xf32> to vector<2x128xf32>
    %283 = math.tanh %282 : vector<2x128xf32>
    %284 = vector.extract_strided_slice %281 {offsets = [0, 0], sizes = [2, 128], strides = [1, 1]} : vector<2x384xf32> to vector<2x128xf32>
    %285 = vector.extract_strided_slice %281 {offsets = [0, 128], sizes = [2, 128], strides = [1, 1]} : vector<2x384xf32> to vector<2x128xf32>
    %286 = vector.extract_strided_slice %281 {offsets = [0, 256], sizes = [2, 128], strides = [1, 1]} : vector<2x384xf32> to vector<2x128xf32>
    %287 = arith.mulf %285, %246 : vector<2x128xf32>
    %288 = arith.mulf %284, %283 : vector<2x128xf32>
    %289 = arith.addf %287, %288 : vector<2x128xf32>
    %290 = math.tanh %289 : vector<2x128xf32>
    %291 = arith.mulf %286, %290 : vector<2x128xf32>
    %292 = tpu.concatenate %291, %268 in 1 : vector<2x128xf32>, vector<2x128xf32> -> vector<2x256xf32>
    %cst_56 = arith.constant dense<0.000000e+00> : vector<2x512xf32>
    %293 = tpu.matmul %292, %4, %cst_56 {dimension_numbers = #tpu.dot_dimension_numbers<[1], [0], [0], [1], [0, 0, 1, 1], [], []>} : vector<2x256xf32>, vector<256x512xf32>, vector<2x512xf32> -> vector<2x512xf32>
    %294 = vector.broadcast %6 : vector<1x512xf32> to vector<2x512xf32>
    %295 = arith.addf %293, %294 : vector<2x512xf32>
    %296 = vector.extract_strided_slice %295 {offsets = [0, 0], sizes = [2, 384], strides = [1, 1]} : vector<2x512xf32> to vector<2x384xf32>
    %297 = arith.negf %296 : vector<2x384xf32>
    %298 = math.exp %297 : vector<2x384xf32>
    %cst_57 = arith.constant 1.000000e+00 : f32
    %299 = vector.broadcast %cst_57 : f32 to vector<2x384xf32>
    %300 = arith.addf %299, %298 : vector<2x384xf32>
    %301 = arith.divf %299, %300 : vector<2x384xf32>
    %302 = vector.extract_strided_slice %295 {offsets = [0, 384], sizes = [2, 128], strides = [1, 1]} : vector<2x512xf32> to vector<2x128xf32>
    %303 = math.tanh %302 : vector<2x128xf32>
    %304 = vector.extract_strided_slice %301 {offsets = [0, 0], sizes = [2, 128], strides = [1, 1]} : vector<2x384xf32> to vector<2x128xf32>
    %305 = vector.extract_strided_slice %301 {offsets = [0, 128], sizes = [2, 128], strides = [1, 1]} : vector<2x384xf32> to vector<2x128xf32>
    %306 = vector.extract_strided_slice %301 {offsets = [0, 256], sizes = [2, 128], strides = [1, 1]} : vector<2x384xf32> to vector<2x128xf32>
    %307 = arith.mulf %305, %266 : vector<2x128xf32>
    %308 = arith.mulf %304, %303 : vector<2x128xf32>
    %309 = arith.addf %307, %308 : vector<2x128xf32>
    %310 = math.tanh %309 : vector<2x128xf32>
    %311 = arith.mulf %306, %310 : vector<2x128xf32>
    %c7_i32 = arith.constant 7 : i32
    %312 = arith.index_cast %c7_i32 : i32 to index
    %c0_58 = arith.constant 0 : index
    %c0_59 = arith.constant 0 : index
    %313 = vector.load %arg1[%312, %c0_58, %c0_59] : memref<8x2x128xf32, #tpu.memory_space<vmem>>, vector<1x2x128xf32>
    %314 = vector.shape_cast %313 : vector<1x2x128xf32> to vector<2x128xf32>
    %315 = tpu.concatenate %314, %291 in 1 : vector<2x128xf32>, vector<2x128xf32> -> vector<2x256xf32>
    %cst_60 = arith.constant dense<0.000000e+00> : vector<2x512xf32>
    %316 = tpu.matmul %315, %3, %cst_60 {dimension_numbers = #tpu.dot_dimension_numbers<[1], [0], [0], [1], [0, 0, 1, 1], [], []>} : vector<2x256xf32>, vector<256x512xf32>, vector<2x512xf32> -> vector<2x512xf32>
    %317 = vector.broadcast %5 : vector<1x512xf32> to vector<2x512xf32>
    %318 = arith.addf %316, %317 : vector<2x512xf32>
    %319 = vector.extract_strided_slice %318 {offsets = [0, 0], sizes = [2, 384], strides = [1, 1]} : vector<2x512xf32> to vector<2x384xf32>
    %320 = arith.negf %319 : vector<2x384xf32>
    %321 = math.exp %320 : vector<2x384xf32>
    %cst_61 = arith.constant 1.000000e+00 : f32
    %322 = vector.broadcast %cst_61 : f32 to vector<2x384xf32>
    %323 = arith.addf %322, %321 : vector<2x384xf32>
    %324 = arith.divf %322, %323 : vector<2x384xf32>
    %325 = vector.extract_strided_slice %318 {offsets = [0, 384], sizes = [2, 128], strides = [1, 1]} : vector<2x512xf32> to vector<2x128xf32>
    %326 = math.tanh %325 : vector<2x128xf32>
    %327 = vector.extract_strided_slice %324 {offsets = [0, 0], sizes = [2, 128], strides = [1, 1]} : vector<2x384xf32> to vector<2x128xf32>
    %328 = vector.extract_strided_slice %324 {offsets = [0, 128], sizes = [2, 128], strides = [1, 1]} : vector<2x384xf32> to vector<2x128xf32>
    %329 = vector.extract_strided_slice %324 {offsets = [0, 256], sizes = [2, 128], strides = [1, 1]} : vector<2x384xf32> to vector<2x128xf32>
    %330 = arith.mulf %328, %289 : vector<2x128xf32>
    %331 = arith.mulf %327, %326 : vector<2x128xf32>
    %332 = arith.addf %330, %331 : vector<2x128xf32>
    %333 = math.tanh %332 : vector<2x128xf32>
    %334 = arith.mulf %329, %333 : vector<2x128xf32>
    %335 = tpu.concatenate %334, %311 in 1 : vector<2x128xf32>, vector<2x128xf32> -> vector<2x256xf32>
    %cst_62 = arith.constant dense<0.000000e+00> : vector<2x512xf32>
    %336 = tpu.matmul %335, %4, %cst_62 {dimension_numbers = #tpu.dot_dimension_numbers<[1], [0], [0], [1], [0, 0, 1, 1], [], []>} : vector<2x256xf32>, vector<256x512xf32>, vector<2x512xf32> -> vector<2x512xf32>
    %337 = vector.broadcast %6 : vector<1x512xf32> to vector<2x512xf32>
    %338 = arith.addf %336, %337 : vector<2x512xf32>
    %339 = vector.extract_strided_slice %338 {offsets = [0, 0], sizes = [2, 384], strides = [1, 1]} : vector<2x512xf32> to vector<2x384xf32>
    %340 = arith.negf %339 : vector<2x384xf32>
    %341 = math.exp %340 : vector<2x384xf32>
    %cst_63 = arith.constant 1.000000e+00 : f32
    %342 = vector.broadcast %cst_63 : f32 to vector<2x384xf32>
    %343 = arith.addf %342, %341 : vector<2x384xf32>
    %344 = arith.divf %342, %343 : vector<2x384xf32>
    %345 = vector.extract_strided_slice %338 {offsets = [0, 384], sizes = [2, 128], strides = [1, 1]} : vector<2x512xf32> to vector<2x128xf32>
    %346 = math.tanh %345 : vector<2x128xf32>
    %347 = vector.extract_strided_slice %344 {offsets = [0, 0], sizes = [2, 128], strides = [1, 1]} : vector<2x384xf32> to vector<2x128xf32>
    %348 = vector.extract_strided_slice %344 {offsets = [0, 128], sizes = [2, 128], strides = [1, 1]} : vector<2x384xf32> to vector<2x128xf32>
    %349 = vector.extract_strided_slice %344 {offsets = [0, 256], sizes = [2, 128], strides = [1, 1]} : vector<2x384xf32> to vector<2x128xf32>
    %350 = arith.mulf %348, %309 : vector<2x128xf32>
    %351 = arith.mulf %347, %346 : vector<2x128xf32>
    %352 = arith.addf %350, %351 : vector<2x128xf32>
    %353 = math.tanh %352 : vector<2x128xf32>
    %354 = arith.mulf %349, %353 : vector<2x128xf32>
    %c8_i32 = arith.constant 8 : i32
    %c0_64 = arith.constant 0 : index
    %c0_65 = arith.constant 0 : index
    %355 = vector.load %arg7[%c0_64, %c0_65] : memref<2x128xf32, #tpu.memory_space<vmem>>, vector<2x128xf32>
    tpu.vector_store %arg7[%c0_64, %c0_65], %334 {strides = array<i32>} : memref<2x128xf32, #tpu.memory_space<vmem>>, vector<2x128xf32>,
    %c0_66 = arith.constant 0 : index
    %c0_67 = arith.constant 0 : index
    %356 = vector.load %arg8[%c0_66, %c0_67] : memref<2x128xf32, #tpu.memory_space<vmem>>, vector<2x128xf32>
    tpu.vector_store %arg8[%c0_66, %c0_67], %332 {strides = array<i32>} : memref<2x128xf32, #tpu.memory_space<vmem>>, vector<2x128xf32>,
    %c0_68 = arith.constant 0 : index
    %c0_69 = arith.constant 0 : index
    %357 = vector.load %arg9[%c0_68, %c0_69] : memref<2x128xf32, #tpu.memory_space<vmem>>, vector<2x128xf32>
    tpu.vector_store %arg9[%c0_68, %c0_69], %354 {strides = array<i32>} : memref<2x128xf32, #tpu.memory_space<vmem>>, vector<2x128xf32>,
    %c0_70 = arith.constant 0 : index
    %c0_71 = arith.constant 0 : index
    %358 = vector.load %arg10[%c0_70, %c0_71] : memref<2x128xf32, #tpu.memory_space<vmem>>, vector<2x128xf32>
    tpu.vector_store %arg10[%c0_70, %c0_71], %352 {strides = array<i32>} : memref<2x128xf32, #tpu.memory_space<vmem>>, vector<2x128xf32>,
    %c0_72 = arith.constant 0 : index
    %c0_73 = arith.constant 0 : index
    %359 = vector.load %arg6[%c0_72, %c0_73] : memref<2x128xf32, #tpu.memory_space<vmem>>, vector<2x128xf32>
    tpu.vector_store %arg6[%c0_72, %c0_73], %354 {strides = array<i32>} : memref<2x128xf32, #tpu.memory_space<vmem>>, vector<2x128xf32>,
    return
  }
  func.func @transform_0(%arg0: i32) -> (i32, i32, i32) {
    %c0_i32 = arith.constant 0 : i32
    %c0_i32_0 = arith.constant 0 : i32
    %c0_i32_1 = arith.constant 0 : i32
    return %arg0, %c0_i32, %c0_i32_0 : i32, i32, i32
  }
  func.func @transform_1(%arg0: i32) -> (i32, i32) {
    %c0_i32 = arith.constant 0 : i32
    %c0_i32_0 = arith.constant 0 : i32
    %c0_i32_1 = arith.constant 0 : i32
    return %c0_i32, %c0_i32_0 : i32, i32
  }
  func.func @transform_2(%arg0: i32) -> (i32, i32) {
    %c0_i32 = arith.constant 0 : i32
    %c0_i32_0 = arith.constant 0 : i32
    %c0_i32_1 = arith.constant 0 : i32
    return %c0_i32, %c0_i32_0 : i32, i32
  }
  func.func @transform_3(%arg0: i32) -> (i32, i32) {
    %c0_i32 = arith.constant 0 : i32
    %c0_i32_0 = arith.constant 0 : i32
    %c0_i32_1 = arith.constant 0 : i32
    return %c0_i32, %c0_i32_0 : i32, i32
  }
  func.func @transform_4(%arg0: i32) -> (i32, i32) {
    %c0_i32 = arith.constant 0 : i32
    %c0_i32_0 = arith.constant 0 : i32
    %c0_i32_1 = arith.constant 0 : i32
    return %c0_i32, %c0_i32_0 : i32, i32
  }
  func.func @transform_5(%arg0: i32) -> (i32, i32) {
    %c0_i32 = arith.constant 0 : i32
    %c0_i32_0 = arith.constant 0 : i32
    %c0_i32_1 = arith.constant 0 : i32
    return %c0_i32, %c0_i32_0 : i32, i32
  }
}

</mosaic_0001>

<bundles_post_ra>
// kernel: lstm_backbone_forward.1
= control target key start
LH: loop header
LB: loop body
LE: loop exit
PB: predicated region body
PF: predicated region fallthrough
CT: control target
= control target key end

     0   :  { %v4191_v4 = vmov 0.0   ;;  %s11517_s0 = inlined_call_operand.vmem [shape: f32[8,2,128], index: 0, kind: input, shape index: {}]   ;;  %s11518_s1 = inlined_call_operand.vmem [shape: f32[256,512], index: 1, kind: input, shape index: {}]   ;;  %s11519_s2 = inlined_call_operand.vmem [shape: f32[1,512], index: 2, kind: input, shape index: {}]   ;;  %s11520_s3 = inlined_call_operand.vmem [shape: f32[256,512], index: 3, kind: input, shape index: {}]   ;;  %s11521_s4 = inlined_call_operand.vmem [shape: f32[1,512], index: 4, kind: input, shape index: {}]   ;;  %s11522_s5 = inlined_call_operand.hbm [shape: f32[2,128], index: 5, kind: output, shape index: {}]  }
   0x1   :  { %v90_v0 = vld [vmem:[%s11518_s1 + $0x1e8] sm:$0xff]  ;;  %v89_v1 = vld [vmem:[%s11518_s1 + $0x1e0] sm:$0xff]  ;;  %25 = vst [vmem:[#allocation2] sm:$0x3] %v4191_v4  ;;  %26 = vst [vmem:[#allocation3] sm:$0x3] %v4191_v4 }
   0x2   :  { %v86_v2 = vld [vmem:[%s11518_s1 + $0x1c8] sm:$0xff]  ;;  %313 = vmatprep.subr.mxu0 %v90_v0  ;;  %v85_v3 = vld [vmem:[%s11518_s1 + $0x1c0] sm:$0xff]  ;;  %28 = vst [vmem:[#allocation5] sm:$0x3] %v4191_v4  ;;  %27 = vst [vmem:[#allocation4] sm:$0x3] %v4191_v4 }
   0x3   :  { %314 = vmatpush1.msra.mxu0 %v89_v1  ;;  %v82_v5 = vld [vmem:[%s11518_s1 + $0x1a8] sm:$0xff]  ;;  %v81_v6 = vld [vmem:[%s11518_s1 + $0x1a0] sm:$0xff]  ;;  %v4250_v9 = vld [vmem:[%s11518_s1 + $0x1f8] sm:$0xff] }
   0x4   :  { %315 = vmatprep.subr.mxu0 %v86_v2  ;;  %v78_v7 = vld [vmem:[%s11518_s1 + $0x188] sm:$0xff]  ;;  %v77_v8 = vld [vmem:[%s11518_s1 + $0x180] sm:$0xff]  ;;  %384 = vmatprep.subr.mxu1 %v4250_v9  ;;  %v91_v11 = vld [vmem:[%s11518_s1 + $0x1f0] sm:$0xff] }
   0x5   :  { %316 = vmatpush1.msra.mxu0 %v85_v3  ;;  %v74_v10 = vld [vmem:[%s11518_s1 + $0x168] sm:$0xff]  ;;  %v73_v12 = vld [vmem:[%s11518_s1 + $0x160] sm:$0xff]  ;;  %385 = vmatpush1.msra.mxu1 %v91_v11  ;;  %v88_v13 = vld [vmem:[%s11518_s1 + $0x1d8] sm:$0xff] }
   0x6   :  { %317 = vmatprep.subr.mxu0 %v82_v5  ;;  %v87_v14 = vld [vmem:[%s11518_s1 + $0x1d0] sm:$0xff]  ;;  %v70_v15 = vld [vmem:[%s11518_s1 + $0x148] sm:$0xff]  ;;  %386 = vmatprep.subr.mxu1 %v88_v13  ;;  %v84_v16 = vld [vmem:[%s11518_s1 + $0x1b8] sm:$0xff] }
   0x7   :  { %318 = vmatpush1.msra.mxu0 %v81_v6  ;;  %v69_v17 = vld [vmem:[%s11518_s1 + $0x140] sm:$0xff]  ;;  %387 = vmatpush1.msra.mxu1 %v87_v14  ;;  %v83_v18 = vld [vmem:[%s11518_s1 + $0x1b0] sm:$0xff]  ;;  %v80_v19 = vld [vmem:[%s11518_s1 + $0x198] sm:$0xff] }
   0x8   :  { %319 = vmatprep.subr.mxu0 %v78_v7  ;;  %v66_v20 = vld [vmem:[%s11518_s1 + $0x128] sm:$0xff]  ;;  %388 = vmatprep.subr.mxu1 %v84_v16  ;;  %v79_v21 = vld [vmem:[%s11518_s1 + $0x190] sm:$0xff]  ;;  %v65_v22 = vld [vmem:[%s11518_s1 + $0x120] sm:$0xff] }
   0x9   :  { %320 = vmatpush1.msra.mxu0 %v77_v8  ;;  %389 = vmatpush1.msra.mxu1 %v83_v18  ;;  %v76_v23 = vld [vmem:[%s11518_s1 + $0x178] sm:$0xff]  ;;  %v62_v24 = vld [vmem:[%s11518_s1 + $0x108] sm:$0xff]  ;;  %v75_v25 = vld [vmem:[%s11518_s1 + $0x170] sm:$0xff] }
   0xa   :  { %321 = vmatprep.subr.mxu0 %v74_v10  ;;  %390 = vmatprep.subr.mxu1 %v80_v19  ;;  %v61_v26 = vld [vmem:[%s11518_s1 + $0x100] sm:$0xff]  ;;  %v72_v27 = vld [vmem:[%s11518_s1 + $0x158] sm:$0xff]  ;;  %v58_v28 = vld [vmem:[%s11518_s1 + $0xe8] sm:$0xff] }
   0xb   :  { %322 = vmatpush1.msra.mxu0 %v73_v12  ;;  %391 = vmatpush1.msra.mxu1 %v79_v21  ;;  %v71_v29 = vld [vmem:[%s11518_s1 + $0x150] sm:$0xff]  ;;  %v57_v30 = vld [vmem:[%s11518_s1 + $0xe0] sm:$0xff]  ;;  %v68_v31 = vld [vmem:[%s11518_s1 + $0x138] sm:$0xff] }
   0xc   :  { %323 = vmatprep.subr.mxu0 %v70_v15  ;;  %392 = vmatprep.subr.mxu1 %v76_v23  ;;  %v54_v32 = vld [vmem:[%s11518_s1 + $0xc8] sm:$0xff]  ;;  %v67_v33 = vld [vmem:[%s11518_s1 + $0x130] sm:$0xff]  ;;  %v53_v34 = vld [vmem:[%s11518_s1 + $0xc0] sm:$0xff] }
   0xd   :  { %324 = vmatpush1.msra.mxu0 %v69_v17  ;;  %393 = vmatpush1.msra.mxu1 %v75_v25  ;;  %v64_v35 = vld [vmem:[%s11518_s1 + $0x118] sm:$0xff]  ;;  %v50_v36 = vld [vmem:[%s11518_s1 + $0xa8] sm:$0xff]  ;;  %v63_v37 = vld [vmem:[%s11518_s1 + $0x110] sm:$0xff] }
   0xe   :  { %325 = vmatprep.subr.mxu0 %v66_v20  ;;  %394 = vmatprep.subr.mxu1 %v72_v27  ;;  %v49_v38 = vld [vmem:[%s11518_s1 + $0xa0] sm:$0xff]  ;;  %v60_v39 = vld [vmem:[%s11518_s1 + $0xf8] sm:$0xff]  ;;  %v46_v40 = vld [vmem:[%s11518_s1 + $0x88] sm:$0xff] }
   0xf   :  { %326 = vmatpush1.msra.mxu0 %v65_v22  ;;  %395 = vmatpush1.msra.mxu1 %v71_v29  ;;  %v59_v41 = vld [vmem:[%s11518_s1 + $0xf0] sm:$0xff]  ;;  %v45_v42 = vld [vmem:[%s11518_s1 + $0x80] sm:$0xff]  ;;  %v56_v43 = vld [vmem:[%s11518_s1 + $0xd8] sm:$0xff] }
  0x10   :  { %327 = vmatprep.subr.mxu0 %v62_v24  ;;  %396 = vmatprep.subr.mxu1 %v68_v31  ;;  %v42_v44 = vld [vmem:[%s11518_s1 + $0x68] sm:$0xff]  ;;  %v55_v45 = vld [vmem:[%s11518_s1 + $0xd0] sm:$0xff]  ;;  %v41_v46 = vld [vmem:[%s11518_s1 + $0x60] sm:$0xff] }
  0x11   :  { %328 = vmatpush1.msra.mxu0 %v61_v26  ;;  %397 = vmatpush1.msra.mxu1 %v67_v33  ;;  %v52_v47 = vld [vmem:[%s11518_s1 + $0xb8] sm:$0xff]  ;;  %v38_v48 = vld [vmem:[%s11518_s1 + $0x48] sm:$0xff]  ;;  %v51_v49 = vld [vmem:[%s11518_s1 + $0xb0] sm:$0xff] }
  0x12   :  { %329 = vmatprep.subr.mxu0 %v58_v28  ;;  %398 = vmatprep.subr.mxu1 %v64_v35  ;;  %v37_v50 = vld [vmem:[%s11518_s1 + $0x40] sm:$0xff]  ;;  %v48_v51 = vld [vmem:[%s11518_s1 + $0x98] sm:$0xff]  ;;  %v34_v52 = vld [vmem:[%s11518_s1 + $0x28] sm:$0xff] }
  0x13   :  { %330 = vmatpush1.msra.mxu0 %v57_v30  ;;  %399 = vmatpush1.msra.mxu1 %v63_v37  ;;  %v47_v53 = vld [vmem:[%s11518_s1 + $0x90] sm:$0xff]  ;;  %v33_v54 = vld [vmem:[%s11518_s1 + $0x20] sm:$0xff]  ;;  %v44_v55 = vld [vmem:[%s11518_s1 + $0x78] sm:$0xff] }
  0x14   :  { %331 = vmatprep.subr.mxu0 %v54_v32  ;;  %400 = vmatprep.subr.mxu1 %v60_v39  ;;  %v30_v56 = vld [vmem:[%s11518_s1 + $0x8] sm:$0xff]  ;;  %v43_v57 = vld [vmem:[%s11518_s1 + $0x70] sm:$0xff]  ;;  %v29_v58 = vld [vmem:[%s11518_s1] sm:$0xff] }
  0x15   :  { %332 = vmatpush1.msra.mxu0 %v53_v34  ;;  %401 = vmatpush1.msra.mxu1 %v59_v41  ;;  %v40_v59 = vld [vmem:[%s11518_s1 + $0x58] sm:$0xff]  ;;  %v154_v60 = vld [vmem:[%s11518_s1 + $0x3e8] sm:$0xff]  ;;  %v39_v61 = vld [vmem:[%s11518_s1 + $0x50] sm:$0xff] }
  0x16   :  { %333 = vmatprep.subr.mxu0 %v50_v36  ;;  %402 = vmatprep.subr.mxu1 %v56_v43  ;;  %v153_v62 = vld [vmem:[%s11518_s1 + $0x3e0] sm:$0xff]  ;;  %v36_v63 = vld [vmem:[%s11518_s1 + $0x38] sm:$0xff]  ;;  %v150_v0 = vld [vmem:[%s11518_s1 + $0x3c8] sm:$0xff] }
  0x17   :  { %334 = vmatpush1.msra.mxu0 %v49_v38  ;;  %403 = vmatpush1.msra.mxu1 %v55_v45  ;;  %v4421_v1 = vld [vmem:[%s11518_s1 + $0x30] sm:$0xff]  ;;  %v149_v2 = vld [vmem:[%s11518_s1 + $0x3c0] sm:$0xff]  ;;  %v4429_v3 = vld [vmem:[%s11518_s1 + $0x18] sm:$0xff] }
  0x18   :  { %335 = vmatprep.subr.mxu0 %v46_v40  ;;  %404 = vmatprep.subr.mxu1 %v52_v47  ;;  %v146_v4 = vld [vmem:[%s11518_s1 + $0x3a8] sm:$0xff]  ;;  %v4437_v5 = vld [vmem:[%s11518_s1 + $0x10] sm:$0xff]  ;;  %v4442_v6 = vld [vmem:[%s11518_s1 + $0x3a0] sm:$0xff] }
  0x19   :  { %336 = vmatpush1.msra.mxu0 %v45_v42  ;;  %405 = vmatpush1.msra.mxu1 %v51_v49  ;;  %v4448_v7 = vld [vmem:[%s11518_s1 + $0x3f8] sm:$0xff]  ;;  %v4453_v8 = vld [vmem:[%s11518_s1 + $0x388] sm:$0xff]  ;;  %v4459_v10 = vld [vmem:[%s11518_s1 + $0x3f0] sm:$0xff] }
  0x1a   :  { %337 = vmatprep.subr.mxu0 %v42_v44  ;;  %406 = vmatprep.subr.mxu1 %v48_v51  ;;  %v4464_v11 = vld [vmem:[%s11518_s1 + $0x380] sm:$0xff]  ;;  %v4470_v12 = vld [vmem:[%s11518_s1 + $0x3d8] sm:$0xff]  ;;  %v4476_v13 = vld [vmem:[%s11518_s1 + $0x368] sm:$0xff] }
  0x1b   :  { %338 = vmatpush1.msra.mxu0 %v41_v46  ;;  %407 = vmatpush1.msra.mxu1 %v47_v53  ;;  %v4482_v14 = vld [vmem:[%s11518_s1 + $0x3d0] sm:$0xff]  ;;  %v4488_v15 = vld [vmem:[%s11518_s1 + $0x360] sm:$0xff]  ;;  %v4494_v16 = vld [vmem:[%s11518_s1 + $0x3b8] sm:$0xff] }
  0x1c   :  { %339 = vmatprep.subr.mxu0 %v38_v48  ;;  %408 = vmatprep.subr.mxu1 %v44_v55  ;;  %v4500_v17 = vld [vmem:[%s11518_s1 + $0x348] sm:$0xff]  ;;  %v4506_v18 = vld [vmem:[%s11518_s1 + $0x3b0] sm:$0xff]  ;;  %v4512_v19 = vld [vmem:[%s11518_s1 + $0x340] sm:$0xff] }
  0x1d   :  { %340 = vmatpush1.msra.mxu0 %v37_v50  ;;  %409 = vmatpush1.msra.mxu1 %v43_v57  ;;  %v4518_v20 = vld [vmem:[%s11518_s1 + $0x398] sm:$0xff]  ;;  %v4524_v21 = vld [vmem:[%s11518_s1 + $0x328] sm:$0xff]  ;;  %v4530_v22 = vld [vmem:[%s11518_s1 + $0x390] sm:$0xff] }
  0x1e   :  { %341 = vmatprep.subr.mxu0 %v34_v52  ;;  %410 = vmatprep.subr.mxu1 %v40_v59  ;;  %v4536_v23 = vld [vmem:[%s11518_s1 + $0x320] sm:$0xff]  ;;  %v4542_v24 = vld [vmem:[%s11518_s1 + $0x378] sm:$0xff]  ;;  %v4548_v25 = vld [vmem:[%s11518_s1 + $0x308] sm:$0xff] }
  0x1f   :  { %342 = vmatpush1.msra.mxu0 %v33_v54  ;;  %411 = vmatpush1.msra.mxu1 %v39_v61  ;;  %v4554_v26 = vld [vmem:[%s11518_s1 + $0x370] sm:$0xff]  ;;  %v4560_v27 = vld [vmem:[%s11518_s1 + $0x300] sm:$0xff]  ;;  %v4566_v28 = vld [vmem:[%s11518_s1 + $0x358] sm:$0xff] }
  0x20   :  { %343 = vmatprep.subr.mxu0 %v30_v56  ;;  %412 = vmatprep.subr.mxu1 %v36_v63  ;;  %v4572_v29 = vld [vmem:[%s11518_s1 + $0x2e8] sm:$0xff]  ;;  %v4578_v30 = vld [vmem:[%s11518_s1 + $0x350] sm:$0xff]  ;;  %v4584_v31 = vld [vmem:[%s11518_s1 + $0x2e0] sm:$0xff] }
  0x21   :  { %344 = vmatpush1.msra.mxu0 %v29_v58  ;;  %413 = vmatpush1.msra.mxu1 %v4421_v1  ;;  %v4590_v32 = vld [vmem:[%s11518_s1 + $0x338] sm:$0xff]  ;;  %v4596_v33 = vld [vmem:[%s11518_s1 + $0x2c8] sm:$0xff]  ;;  %v4602_v34 = vld [vmem:[%s11518_s1 + $0x330] sm:$0xff] }
  0x22   :  { %345 = vmatprep.subr.mxu0 %v154_v60  ;;  %414 = vmatprep.subr.mxu1 %v4429_v3 }
  0x23   :  { %346 = vmatpush2.msra.mxu0 %v153_v62  ;;  %415 = vmatpush1.msra.mxu1 %v4437_v5 }
  0x24   :  { %347 = vmatprep.subr.mxu0 %v150_v0  ;;  %416 = vmatprep.subr.mxu1 %v4448_v7 }
  0x25   :  { %348 = vmatpush2.msra.mxu0 %v149_v2  ;;  %417 = vmatpush2.msra.mxu1 %v4459_v10 }
  0x26   :  { %349 = vmatprep.subr.mxu0 %v146_v4  ;;  %418 = vmatprep.subr.mxu1 %v4470_v12 }
  0x27   :  { %350 = vmatpush2.msra.mxu0 %v4442_v6  ;;  %419 = vmatpush2.msra.mxu1 %v4482_v14 }
  0x28   :  { %351 = vmatprep.subr.mxu0 %v4453_v8  ;;  %420 = vmatprep.subr.mxu1 %v4494_v16 }
  0x29   :  { %352 = vmatpush2.msra.mxu0 %v4464_v11  ;;  %421 = vmatpush2.msra.mxu1 %v4506_v18 }
  0x2a   :  { %353 = vmatprep.subr.mxu0 %v4476_v13  ;;  %422 = vmatprep.subr.mxu1 %v4518_v20 }
  0x2b   :  { %354 = vmatpush2.msra.mxu0 %v4488_v15  ;;  %423 = vmatpush2.msra.mxu1 %v4530_v22 }
  0x2c   :  { %355 = vmatprep.subr.mxu0 %v4500_v17  ;;  %424 = vmatprep.subr.mxu1 %v4542_v24 }
  0x2d   :  { %356 = vmatpush2.msra.mxu0 %v4512_v19  ;;  %425 = vmatpush2.msra.mxu1 %v4554_v26 }
  0x2e   :  { %357 = vmatprep.subr.mxu0 %v4524_v21  ;;  %426 = vmatprep.subr.mxu1 %v4566_v28 }
  0x2f   :  { %358 = vmatpush2.msra.mxu0 %v4536_v23 }
  0x30   :  { %359 = vmatprep.subr.mxu0 %v4548_v25 }
  0x31   :  { %360 = vmatpush2.msra.mxu0 %v4560_v27 }
  0x32   :  { %10 = vsyncpa [#allocation7], 0  ;;  %361 = vmatprep.subr.mxu0 %v4572_v29  ;;  %v4608_v35 = vld [vmem:[%s11518_s1 + $0x2c0] sm:$0xff]  ;;  %427 = vmatpush2.msra.mxu1 %v4578_v30  ;;  %v4614_v36 = vld [vmem:[%s11518_s1 + $0x318] sm:$0xff] }
  0x33   :  { %362 = vmatpush2.msra.mxu0 %v4584_v31  ;;  %v4620_v37 = vld [vmem:[%s11518_s1 + $0x2a8] sm:$0xff]  ;;  %428 = vmatprep.subr.mxu1 %v4590_v32  ;;  %v287_v38 = vld [vmem:[#allocation2] sm:$0x3]  ;;  %v4633_v40 = vld [vmem:[%s11518_s1 + $0x310] sm:$0xff] }
  0x34   :  { %363 = vmatprep.subr.mxu0 %v4596_v33  ;;  %v4627_v39 = vld [vmem:[%s11518_s1 + $0x2a0] sm:$0xff]  ;;  %429 = vmatpush2.msra.mxu1 %v4602_v34  ;;  %v4639_v41 = vld [vmem:[%s11518_s1 + $0x288] sm:$0xff]  ;;  %v4645_v42 = vld [vmem:[%s11518_s1 + $0x2f8] sm:$0xff] }
  0x35   :  { %364 = vmatpush2.msra.mxu0 %v4608_v35  ;;  %430 = vmatprep.subr.mxu1 %v4614_v36  ;;  %v4651_v43 = vld [vmem:[%s11518_s1 + $0x280] sm:$0xff]  ;;  %v4656_v44 = vld [vmem:[%s11518_s1 + $0x2f0] sm:$0xff]  ;;  %v4662_v45 = vld [vmem:[%s11518_s1 + $0x268] sm:$0xff] }
  0x36   :  { %365 = vmatprep.subr.mxu0 %v4620_v37  ;;  %377 = vmatprep.mubr.f32.mxu0 %v287_v38  ;;  %v4668_v46 = vld [vmem:[%s11518_s1 + $0x2d8] sm:$0xff]  ;;  %v4674_v47 = vld [vmem:[%s11518_s1 + $0x260] sm:$0xff]  ;;  %v4680_v48 = vld [vmem:[%s11518_s1 + $0x2d0] sm:$0xff] }
  0x37   :  { %366 = vmatpush2.msra.mxu0 %v4627_v39  ;;  %431 = vmatpush2.msra.mxu1 %v4633_v40  ;;  %12275 = vst [vmem:[#allocation9_spill] sm:$0xff] %v4674_v47  ;;  %v4686_v49 = vld [vmem:[%s11518_s1 + $0x248] sm:$0xff]  ;;  %v4692_v50 = vld [vmem:[%s11518_s1 + $0x2b8] sm:$0xff]  ;;  %v4698_v51 = vld [vmem:[%s11518_s1 + $0x240] sm:$0xff] }
  0x38   :  { %367 = vmatprep.subr.mxu0 %v4639_v41  ;;  %432 = vmatprep.subr.mxu1 %v4645_v42  ;;  %12276 = vst [vmem:[#allocation10_spill] sm:$0xff] %v4686_v49  ;;  %12277 = vst [vmem:[#allocation11_spill] sm:$0xff] %v4698_v51  ;;  %v4704_v52 = vld [vmem:[%s11518_s1 + $0x2b0] sm:$0xff]  ;;  %v4710_v53 = vld [vmem:[%s11518_s1 + $0x228] sm:$0xff] }
  0x39   :  { %368 = vmatpush2.msra.mxu0 %v4651_v43  ;;  %433 = vmatpush2.msra.mxu1 %v4656_v44  ;;  %12278 = vst [vmem:[#allocation12_spill] sm:$0xff] %v4710_v53  ;;  %v4716_v54 = vld [vmem:[%s11518_s1 + $0x298] sm:$0xff]  ;;  %v4722_v55 = vld [vmem:[%s11518_s1 + $0x220] sm:$0xff]  ;;  %v4728_v56 = vld [vmem:[%s11518_s1 + $0x290] sm:$0xff] }
  0x3a   :  { %369 = vmatprep.subr.mxu0 %v4662_v45  ;;  %434 = vmatprep.subr.mxu1 %v4668_v46  ;;  %12279 = vst [vmem:[#allocation13_spill] sm:$0xff] %v4722_v55  ;;  %12280 = vst [vmem:[#allocation14_spill] sm:$0xff] %v4728_v56  ;;  %v4734_v57 = vld [vmem:[%s11518_s1 + $0x208] sm:$0xff]  ;;  %v4740_v58 = vld [vmem:[%s11518_s1 + $0x278] sm:$0xff] }
  0x3b   :  { %370 = vmatpush2.msra.mxu0 %v4674_v47  ;;  %435 = vmatpush2.msra.mxu1 %v4680_v48  ;;  %12281 = vst [vmem:[#allocation15_spill] sm:$0xff] %v4734_v57  ;;  %12282 = vst [vmem:[#allocation16_spill] sm:$0xff] %v4740_v58  ;;  %v4746_v59 = vld [vmem:[%s11518_s1 + $0x200] sm:$0xff]  ;;  %v4752_v60 = vld [vmem:[%s11518_s1 + $0x270] sm:$0xff] }
  0x3c   :  { %371 = vmatprep.subr.mxu0 %v4686_v49  ;;  %436 = vmatprep.subr.mxu1 %v4692_v50  ;;  %12283 = vst [vmem:[#allocation17_spill] sm:$0xff] %v4746_v59  ;;  %12284 = vst [vmem:[#allocation18_spill] sm:$0xff] %v4752_v60  ;;  %v291_v61 = vld [vmem:[%s11517_s0] sm:$0x3]  ;;  %v4762_v62 = vld [vmem:[%s11518_s1 + $0x258] sm:$0xff] }
  0x3d   :  { %372 = vmatpush2.msra.mxu0 %v4698_v51  ;;  %437 = vmatpush2.msra.mxu1 %v4704_v52  ;;  %12285 = vst [vmem:[#allocation19_spill] sm:$0xff] %v4762_v62  ;;  %v4769_v63 = vld [vmem:[%s11518_s1 + $0x250] sm:$0xff]  ;;  %v4776_v0 = vld [vmem:[%s11518_s1 + $0x238] sm:$0xff]  ;;  %v4781_v2 = vld [vmem:[%s11520_s3 + $0x1e8] sm:$0xff] }
  0x3e   :  { %373 = vmatprep.subr.mxu0 %v4710_v53  ;;  %438 = vmatprep.subr.mxu1 %v4716_v54  ;;  %12286 = vst [vmem:[#allocation20_spill] sm:$0xff] %v4769_v63  ;;  %12287 = vst [vmem:[#allocation21_spill] sm:$0xff] %v4776_v0  ;;  %v4787_v4 = vld [vmem:[%s11518_s1 + $0x230] sm:$0xff] }
  0x3f   :  { %374 = vmatpush2.msra.mxu0 %v4722_v55  ;;  %439 = vmatpush2.msra.mxu1 %v4728_v56  ;;  %12288 = vst [vmem:[#allocation22_spill] sm:$0xff] %v4781_v2  ;;  %12289 = vst [vmem:[#allocation23_spill] sm:$0xff] %v4787_v4  ;;  %v4803_v55 = vld [vmem:[%s11520_s3 + $0x1c8] sm:$0xff] }
  0x40   :  { %375 = vmatprep.subr.mxu0 %v4734_v57  ;;  %440 = vmatprep.subr.mxu1 %v4740_v58  ;;  %v4798_v57 = vld [vmem:[%s11518_s1 + $0x218] sm:$0xff]  ;;  %12292 = vst [vmem:[#allocation26_spill] sm:$0xff] %v4803_v55 }
  0x41   :  { %376 = vmatpush2.msra.mxu0 %v4746_v59  ;;  %441 = vmatpush2.msra.mxu1 %v4752_v60  ;;  %v4792_v59 = vld [vmem:[%s11520_s3 + $0x1e0] sm:$0xff]  ;;  %12291 = vst [vmem:[#allocation25_spill] sm:$0xff] %v4798_v57 }
  0x42   :  { %378 = vmatmul.mubr.f32.vlgmr.msra.gmra.mxu0 %v291_v61  ;;  %442 = vmatprep.subr.mxu1 %v4762_v62  ;;  %12290 = vst [vmem:[#allocation24_spill] sm:$0xff] %v4792_v59  ;;  %v4809_v62 = vld [vmem:[%s11518_s1 + $0x210] sm:$0xff] }
  0x43   :  { %443 = vmatpush2.msra.mxu1 %v4769_v63  ;;  %448 = vmatprep.mubr.f32.mxu1 %v287_v38  ;;  %12293 = vst [vmem:[#allocation27_spill] sm:$0xff] %v4809_v62  ;;  %v4815_v63 = vld [vmem:[%s11520_s3 + $0x1c0] sm:$0xff]  ;;  %v4822_v38 = vld [vmem:[%s11520_s3 + $0x1f8] sm:$0xff] }
  0x44   :  { %444 = vmatprep.subr.mxu1 %v4776_v0  ;;  %500 = vmatprep.subr.mxu0 %v4781_v2  ;;  %12294 = vst [vmem:[#allocation28_spill] sm:$0xff] %v4815_v63  ;;  %12295 = vst [vmem:[#allocation29_spill] sm:$0xff] %v4822_v38  ;;  %v4829_v2 = vld [vmem:[%s11520_s3 + $0x1f0] sm:$0xff] }
  0x45   :  { %445 = vmatpush2.msra.mxu1 %v4787_v4  ;;  %501 = vmatpush1.msra.mxu0 %v4792_v59  ;;  %12296 = vst [vmem:[#allocation30_spill] sm:$0xff] %v4829_v2  ;;  %v4834_v4 = vld [vmem:[%s11520_s3 + $0x1a8] sm:$0xff]  ;;  %v4841_v59 = vld [vmem:[%s11520_s3 + $0x1d8] sm:$0xff] }
  0x46   :  { %446 = vmatprep.subr.mxu1 %v4798_v57  ;;  %502 = vmatprep.subr.mxu0 %v4803_v55  ;;  %12297 = vst [vmem:[#allocation31_spill] sm:$0xff] %v4834_v4  ;;  %12298 = vst [vmem:[#allocation32_spill] sm:$0xff] %v4841_v59  ;;  %v4846_v55 = vld [vmem:[%s11520_s3 + $0x1a0] sm:$0xff]  ;;  %v4852_v57 = vld [vmem:[%s11520_s3 + $0x1d0] sm:$0xff] }
  0x47   :  { %447 = vmatpush2.msra.mxu1 %v4809_v62  ;;  %503 = vmatpush1.msra.mxu0 %v4815_v63  ;;  %12299 = vst [vmem:[#allocation33_spill] sm:$0xff] %v4846_v55  ;;  %12300 = vst [vmem:[#allocation34_spill] sm:$0xff] %v4852_v57  ;;  %v4857_v63 = vld [vmem:[%s11520_s3 + $0x188] sm:$0xff]  ;;  %v289_v62 = vld [vmem:[#allocation4] sm:$0x3] }
  0x48   :  { %449 = vmatmul.mubr.f32.vlgmr.msra.gmra.mxu1 %v291_v61  ;;  %571 = vmatprep.subr.mxu1 %v4822_v38  ;;  %12301 = vst [vmem:[#allocation35_spill] sm:$0xff] %v4857_v63  ;;  %v4864_v61 = vld [vmem:[%s11520_s3 + $0x1b8] sm:$0xff]  ;;  %v4869_v38 = vld [vmem:[%s11520_s3 + $0x180] sm:$0xff] }
  0x49   :  { %572 = vmatpush1.msra.mxu1 %v4829_v2  ;;  %504 = vmatprep.subr.mxu0 %v4834_v4  ;;  %12302 = vst [vmem:[#allocation36_spill] sm:$0xff] %v4864_v61  ;;  %12303 = vst [vmem:[#allocation37_spill] sm:$0xff] %v4869_v38  ;;  %v4876_v2 = vld [vmem:[%s11520_s3 + $0x1b0] sm:$0xff]  ;;  %v4883_v4 = vld [vmem:[%s11520_s3 + $0x198] sm:$0xff] }
  0x4a   :  { %573 = vmatprep.subr.mxu1 %v4841_v59  ;;  %505 = vmatpush1.msra.mxu0 %v4846_v55  ;;  %12304 = vst [vmem:[#allocation38_spill] sm:$0xff] %v4876_v2  ;;  %12305 = vst [vmem:[#allocation39_spill] sm:$0xff] %v4883_v4  ;;  %v4892_v55 = vld [vmem:[%s11520_s3 + $0x168] sm:$0xff]  ;;  %v5457_v59 = vld [vmem:[%s11520_s3 + $0x298] sm:$0xff] }
  0x4b   :  { %574 = vmatpush1.msra.mxu1 %v4852_v57  ;;  %506 = vmatprep.subr.mxu0 %v4857_v63  ;;  %12306 = vst [vmem:[#allocation40_spill] sm:$0xff] %v4892_v55  ;;  %v4897_v63 = vld [vmem:[%s11520_s3 + $0x190] sm:$0xff]  ;;  %v5440_v57 = vld [vmem:[%s11520_s3 + $0x288] sm:$0xff]  ;;  %12401 = vst [vmem:[#allocation135_spill] sm:$0xff] %v5457_v59 }
  0x4c   :  { %575 = vmatprep.subr.mxu1 %v4864_v61  ;;  %507 = vmatpush1.msra.mxu0 %v4869_v38  ;;  %12307 = vst [vmem:[#allocation41_spill] sm:$0xff] %v4897_v63  ;;  %v4904_v38 = vld [vmem:[%s11520_s3 + $0x160] sm:$0xff]  ;;  %v5423_v61 = vld [vmem:[%s11520_s3 + $0x2d0] sm:$0xff]  ;;  %12398 = vst [vmem:[#allocation132_spill] sm:$0xff] %v5440_v57 }
  0x4d   :  { %576 = vmatpush1.msra.mxu1 %v4876_v2  ;;  %508 = vmatprep.subr.mxu0 %v4892_v55  ;;  %12308 = vst [vmem:[#allocation42_spill] sm:$0xff] %v4904_v38  ;;  %v4916_v55 = vld [vmem:[%s11520_s3 + $0x148] sm:$0xff]  ;;  %v5406_v2 = vld [vmem:[%s11520_s3 + $0x2c0] sm:$0xff]  ;;  %12395 = vst [vmem:[#allocation129_spill] sm:$0xff] %v5423_v61 }
  0x4e   :  { %577 = vmatprep.subr.mxu1 %v4883_v4  ;;  %v4909_v4 = vld [vmem:[%s11520_s3 + $0x178] sm:$0xff]  ;;  %509 = vmatpush1.msra.mxu0 %v4904_v38  ;;  %12310 = vst [vmem:[#allocation44_spill] sm:$0xff] %v4916_v55  ;;  %v4928_v38 = vld [vmem:[%s11520_s3 + $0x140] sm:$0xff]  ;;  %12392 = vst [vmem:[#allocation126_spill] sm:$0xff] %v5406_v2 }
  0x4f   :  { %578 = vmatpush1.msra.mxu1 %v4897_v63  ;;  %12309 = vst [vmem:[#allocation43_spill] sm:$0xff] %v4909_v4  ;;  %v4921_v63 = vld [vmem:[%s11520_s3 + $0x170] sm:$0xff]  ;;  %510 = vmatprep.subr.mxu0 %v4916_v55  ;;  %12312 = vst [vmem:[#allocation46_spill] sm:$0xff] %v4928_v38  ;;  %v4940_v55 = vld [vmem:[%s11520_s3 + $0x128] sm:$0xff] }
  0x50   :  { %579 = vmatprep.subr.mxu1 %v4909_v4  ;;  %12311 = vst [vmem:[#allocation45_spill] sm:$0xff] %v4921_v63  ;;  %v4933_v4 = vld [vmem:[%s11520_s3 + $0x158] sm:$0xff]  ;;  %511 = vmatpush1.msra.mxu0 %v4928_v38  ;;  %12314 = vst [vmem:[#allocation48_spill] sm:$0xff] %v4940_v55  ;;  %v4952_v38 = vld [vmem:[%s11520_s3 + $0x120] sm:$0xff] }
  0x51   :  { %580 = vmatpush1.msra.mxu1 %v4921_v63  ;;  %12313 = vst [vmem:[#allocation47_spill] sm:$0xff] %v4933_v4  ;;  %v4945_v63 = vld [vmem:[%s11520_s3 + $0x150] sm:$0xff]  ;;  %512 = vmatprep.subr.mxu0 %v4940_v55  ;;  %12316 = vst [vmem:[#allocation50_spill] sm:$0xff] %v4952_v38  ;;  %v4964_v55 = vld [vmem:[%s11520_s3 + $0x108] sm:$0xff] }
  0x52   :  { %581 = vmatprep.subr.mxu1 %v4933_v4  ;;  %12315 = vst [vmem:[#allocation49_spill] sm:$0xff] %v4945_v63  ;;  %v4957_v4 = vld [vmem:[%s11520_s3 + $0x138] sm:$0xff]  ;;  %513 = vmatpush1.msra.mxu0 %v4952_v38  ;;  %12318 = vst [vmem:[#allocation52_spill] sm:$0xff] %v4964_v55  ;;  %v4976_v38 = vld [vmem:[%s11520_s3 + $0x100] sm:$0xff] }
  0x53   :  { %582 = vmatpush1.msra.mxu1 %v4945_v63  ;;  %12317 = vst [vmem:[#allocation51_spill] sm:$0xff] %v4957_v4  ;;  %v4969_v63 = vld [vmem:[%s11520_s3 + $0x130] sm:$0xff]  ;;  %514 = vmatprep.subr.mxu0 %v4964_v55  ;;  %12320 = vst [vmem:[#allocation54_spill] sm:$0xff] %v4976_v38  ;;  %v4988_v55 = vld [vmem:[%s11520_s3 + $0xe8] sm:$0xff] }
  0x54   :  { %583 = vmatprep.subr.mxu1 %v4957_v4  ;;  %12319 = vst [vmem:[#allocation53_spill] sm:$0xff] %v4969_v63  ;;  %v4981_v4 = vld [vmem:[%s11520_s3 + $0x118] sm:$0xff]  ;;  %515 = vmatpush1.msra.mxu0 %v4976_v38  ;;  %12322 = vst [vmem:[#allocation56_spill] sm:$0xff] %v4988_v55  ;;  %v5000_v38 = vld [vmem:[%s11520_s3 + $0xe0] sm:$0xff] }
  0x55   :  { %584 = vmatpush1.msra.mxu1 %v4969_v63  ;;  %12321 = vst [vmem:[#allocation55_spill] sm:$0xff] %v4981_v4  ;;  %v4993_v63 = vld [vmem:[%s11520_s3 + $0x110] sm:$0xff]  ;;  %516 = vmatprep.subr.mxu0 %v4988_v55  ;;  %12324 = vst [vmem:[#allocation58_spill] sm:$0xff] %v5000_v38  ;;  %v5012_v55 = vld [vmem:[%s11520_s3 + $0xc8] sm:$0xff] }
  0x56   :  { %585 = vmatprep.subr.mxu1 %v4981_v4  ;;  %12323 = vst [vmem:[#allocation57_spill] sm:$0xff] %v4993_v63  ;;  %v5005_v4 = vld [vmem:[%s11520_s3 + $0xf8] sm:$0xff]  ;;  %517 = vmatpush1.msra.mxu0 %v5000_v38  ;;  %12326 = vst [vmem:[#allocation60_spill] sm:$0xff] %v5012_v55  ;;  %v5024_v38 = vld [vmem:[%s11520_s3 + $0xc0] sm:$0xff] }
  0x57   :  { %586 = vmatpush1.msra.mxu1 %v4993_v63  ;;  %12325 = vst [vmem:[#allocation59_spill] sm:$0xff] %v5005_v4  ;;  %v5017_v63 = vld [vmem:[%s11520_s3 + $0xf0] sm:$0xff]  ;;  %518 = vmatprep.subr.mxu0 %v5012_v55  ;;  %12328 = vst [vmem:[#allocation62_spill] sm:$0xff] %v5024_v38  ;;  %v5036_v55 = vld [vmem:[%s11520_s3 + $0xa8] sm:$0xff] }
  0x58   :  { %587 = vmatprep.subr.mxu1 %v5005_v4  ;;  %12327 = vst [vmem:[#allocation61_spill] sm:$0xff] %v5017_v63  ;;  %v5029_v4 = vld [vmem:[%s11520_s3 + $0xd8] sm:$0xff]  ;;  %519 = vmatpush1.msra.mxu0 %v5024_v38  ;;  %12330 = vst [vmem:[#allocation64_spill] sm:$0xff] %v5036_v55  ;;  %v5048_v38 = vld [vmem:[%s11520_s3 + $0xa0] sm:$0xff] }
  0x59   :  { %588 = vmatpush1.msra.mxu1 %v5017_v63  ;;  %12329 = vst [vmem:[#allocation63_spill] sm:$0xff] %v5029_v4  ;;  %v5041_v63 = vld [vmem:[%s11520_s3 + $0xd0] sm:$0xff]  ;;  %520 = vmatprep.subr.mxu0 %v5036_v55  ;;  %12332 = vst [vmem:[#allocation66_spill] sm:$0xff] %v5048_v38  ;;  %v5060_v55 = vld [vmem:[%s11520_s3 + $0x88] sm:$0xff] }
  0x5a   :  { %589 = vmatprep.subr.mxu1 %v5029_v4  ;;  %12331 = vst [vmem:[#allocation65_spill] sm:$0xff] %v5041_v63  ;;  %v5053_v4 = vld [vmem:[%s11520_s3 + $0xb8] sm:$0xff]  ;;  %521 = vmatpush1.msra.mxu0 %v5048_v38  ;;  %12334 = vst [vmem:[#allocation68_spill] sm:$0xff] %v5060_v55  ;;  %v5072_v38 = vld [vmem:[%s11520_s3 + $0x80] sm:$0xff] }
  0x5b   :  { %590 = vmatpush1.msra.mxu1 %v5041_v63  ;;  %12333 = vst [vmem:[#allocation67_spill] sm:$0xff] %v5053_v4  ;;  %v5065_v63 = vld [vmem:[%s11520_s3 + $0xb0] sm:$0xff]  ;;  %522 = vmatprep.subr.mxu0 %v5060_v55  ;;  %12336 = vst [vmem:[#allocation70_spill] sm:$0xff] %v5072_v38  ;;  %v5084_v55 = vld [vmem:[%s11520_s3 + $0x68] sm:$0xff] }
  0x5c   :  { %591 = vmatprep.subr.mxu1 %v5053_v4  ;;  %12335 = vst [vmem:[#allocation69_spill] sm:$0xff] %v5065_v63  ;;  %v5077_v4 = vld [vmem:[%s11520_s3 + $0x98] sm:$0xff]  ;;  %523 = vmatpush1.msra.mxu0 %v5072_v38  ;;  %12338 = vst [vmem:[#allocation72_spill] sm:$0xff] %v5084_v55  ;;  %v5096_v38 = vld [vmem:[%s11520_s3 + $0x60] sm:$0xff] }
  0x5d   :  { %592 = vmatpush1.msra.mxu1 %v5065_v63  ;;  %12337 = vst [vmem:[#allocation71_spill] sm:$0xff] %v5077_v4  ;;  %v5089_v63 = vld [vmem:[%s11520_s3 + $0x90] sm:$0xff]  ;;  %524 = vmatprep.subr.mxu0 %v5084_v55  ;;  %12340 = vst [vmem:[#allocation74_spill] sm:$0xff] %v5096_v38  ;;  %v5108_v55 = vld [vmem:[%s11520_s3 + $0x48] sm:$0xff] }
  0x5e   :  { %593 = vmatprep.subr.mxu1 %v5077_v4  ;;  %12339 = vst [vmem:[#allocation73_spill] sm:$0xff] %v5089_v63  ;;  %v5101_v4 = vld [vmem:[%s11520_s3 + $0x78] sm:$0xff]  ;;  %525 = vmatpush1.msra.mxu0 %v5096_v38  ;;  %12342 = vst [vmem:[#allocation76_spill] sm:$0xff] %v5108_v55  ;;  %v5120_v38 = vld [vmem:[%s11520_s3 + $0x40] sm:$0xff] }
  0x5f   :  { %594 = vmatpush1.msra.mxu1 %v5089_v63  ;;  %12341 = vst [vmem:[#allocation75_spill] sm:$0xff] %v5101_v4  ;;  %v5113_v63 = vld [vmem:[%s11520_s3 + $0x70] sm:$0xff]  ;;  %526 = vmatprep.subr.mxu0 %v5108_v55  ;;  %12344 = vst [vmem:[#allocation78_spill] sm:$0xff] %v5120_v38  ;;  %v5132_v55 = vld [vmem:[%s11520_s3 + $0x28] sm:$0xff] }
  0x60   :  { %595 = vmatprep.subr.mxu1 %v5101_v4  ;;  %12343 = vst [vmem:[#allocation77_spill] sm:$0xff] %v5113_v63  ;;  %v5125_v4 = vld [vmem:[%s11520_s3 + $0x58] sm:$0xff]  ;;  %527 = vmatpush1.msra.mxu0 %v5120_v38  ;;  %12346 = vst [vmem:[#allocation80_spill] sm:$0xff] %v5132_v55  ;;  %v5144_v38 = vld [vmem:[%s11520_s3 + $0x20] sm:$0xff] }
  0x61   :  { %596 = vmatpush1.msra.mxu1 %v5113_v63  ;;  %12345 = vst [vmem:[#allocation79_spill] sm:$0xff] %v5125_v4  ;;  %v5137_v63 = vld [vmem:[%s11520_s3 + $0x50] sm:$0xff]  ;;  %528 = vmatprep.subr.mxu0 %v5132_v55  ;;  %12348 = vst [vmem:[#allocation82_spill] sm:$0xff] %v5144_v38  ;;  %v5156_v55 = vld [vmem:[%s11520_s3 + $0x8] sm:$0xff] }
  0x62   :  { %597 = vmatprep.subr.mxu1 %v5125_v4  ;;  %12347 = vst [vmem:[#allocation81_spill] sm:$0xff] %v5137_v63  ;;  %v5149_v4 = vld [vmem:[%s11520_s3 + $0x38] sm:$0xff]  ;;  %529 = vmatpush1.msra.mxu0 %v5144_v38  ;;  %12350 = vst [vmem:[#allocation84_spill] sm:$0xff] %v5156_v55  ;;  %v5168_v38 = vld [vmem:[%s11520_s3] sm:$0xff] }
  0x63   :  { %598 = vmatpush1.msra.mxu1 %v5137_v63  ;;  %12349 = vst [vmem:[#allocation83_spill] sm:$0xff] %v5149_v4  ;;  %v5161_v63 = vld [vmem:[%s11520_s3 + $0x30] sm:$0xff]  ;;  %530 = vmatprep.subr.mxu0 %v5156_v55  ;;  %12352 = vst [vmem:[#allocation86_spill] sm:$0xff] %v5168_v38  ;;  %v5180_v55 = vld [vmem:[%s11520_s3 + $0x3e8] sm:$0xff] }
  0x64   :  { %599 = vmatprep.subr.mxu1 %v5149_v4  ;;  %12351 = vst [vmem:[#allocation85_spill] sm:$0xff] %v5161_v63  ;;  %v5173_v4 = vld [vmem:[%s11520_s3 + $0x18] sm:$0xff]  ;;  %531 = vmatpush1.msra.mxu0 %v5168_v38  ;;  %12354 = vst [vmem:[#allocation88_spill] sm:$0xff] %v5180_v55  ;;  %v5192_v38 = vld [vmem:[%s11520_s3 + $0x3e0] sm:$0xff] }
  0x65   :  { %600 = vmatpush1.msra.mxu1 %v5161_v63  ;;  %12353 = vst [vmem:[#allocation87_spill] sm:$0xff] %v5173_v4  ;;  %v5185_v63 = vld [vmem:[%s11520_s3 + $0x10] sm:$0xff]  ;;  %532 = vmatprep.subr.mxu0 %v5180_v55  ;;  %12356 = vst [vmem:[#allocation90_spill] sm:$0xff] %v5192_v38  ;;  %v5204_v55 = vld [vmem:[%s11520_s3 + $0x3c8] sm:$0xff] }
  0x66   :  { %601 = vmatprep.subr.mxu1 %v5173_v4  ;;  %12355 = vst [vmem:[#allocation89_spill] sm:$0xff] %v5185_v63  ;;  %v5197_v4 = vld [vmem:[%s11520_s3 + $0x3f8] sm:$0xff]  ;;  %533 = vmatpush2.msra.mxu0 %v5192_v38  ;;  %12358 = vst [vmem:[#allocation92_spill] sm:$0xff] %v5204_v55  ;;  %v5216_v38 = vld [vmem:[%s11520_s3 + $0x3c0] sm:$0xff] }
  0x67   :  { %602 = vmatpush1.msra.mxu1 %v5185_v63  ;;  %12357 = vst [vmem:[#allocation91_spill] sm:$0xff] %v5197_v4  ;;  %v5209_v63 = vld [vmem:[%s11520_s3 + $0x3f0] sm:$0xff]  ;;  %534 = vmatprep.subr.mxu0 %v5204_v55  ;;  %12360 = vst [vmem:[#allocation94_spill] sm:$0xff] %v5216_v38  ;;  %v5228_v55 = vld [vmem:[%s11520_s3 + $0x3a8] sm:$0xff] }
  0x68   :  { %603 = vmatprep.subr.mxu1 %v5197_v4  ;;  %12359 = vst [vmem:[#allocation93_spill] sm:$0xff] %v5209_v63  ;;  %v5221_v4 = vld [vmem:[%s11520_s3 + $0x3d8] sm:$0xff]  ;;  %535 = vmatpush2.msra.mxu0 %v5216_v38  ;;  %12362 = vst [vmem:[#allocation96_spill] sm:$0xff] %v5228_v55  ;;  %v5240_v38 = vld [vmem:[%s11520_s3 + $0x3a0] sm:$0xff] }
  0x69   :  { %604 = vmatpush2.msra.mxu1 %v5209_v63  ;;  %12361 = vst [vmem:[#allocation95_spill] sm:$0xff] %v5221_v4  ;;  %v5233_v63 = vld [vmem:[%s11520_s3 + $0x3d0] sm:$0xff]  ;;  %536 = vmatprep.subr.mxu0 %v5228_v55  ;;  %12364 = vst [vmem:[#allocation98_spill] sm:$0xff] %v5240_v38  ;;  %v5252_v55 = vld [vmem:[%s11520_s3 + $0x388] sm:$0xff] }
  0x6a   :  { %605 = vmatprep.subr.mxu1 %v5221_v4  ;;  %12363 = vst [vmem:[#allocation97_spill] sm:$0xff] %v5233_v63  ;;  %v5245_v4 = vld [vmem:[%s11520_s3 + $0x3b8] sm:$0xff]  ;;  %537 = vmatpush2.msra.mxu0 %v5240_v38  ;;  %12366 = vst [vmem:[#allocation100_spill] sm:$0xff] %v5252_v55  ;;  %v5264_v38 = vld [vmem:[%s11520_s3 + $0x380] sm:$0xff] }
  0x6b   :  { %606 = vmatpush2.msra.mxu1 %v5233_v63  ;;  %12365 = vst [vmem:[#allocation99_spill] sm:$0xff] %v5245_v4  ;;  %v5257_v63 = vld [vmem:[%s11520_s3 + $0x3b0] sm:$0xff]  ;;  %538 = vmatprep.subr.mxu0 %v5252_v55  ;;  %12368 = vst [vmem:[#allocation102_spill] sm:$0xff] %v5264_v38  ;;  %v5276_v55 = vld [vmem:[%s11520_s3 + $0x368] sm:$0xff] }
  0x6c   :  { %607 = vmatprep.subr.mxu1 %v5245_v4  ;;  %12367 = vst [vmem:[#allocation101_spill] sm:$0xff] %v5257_v63  ;;  %v5269_v4 = vld [vmem:[%s11520_s3 + $0x398] sm:$0xff]  ;;  %539 = vmatpush2.msra.mxu0 %v5264_v38  ;;  %12370 = vst [vmem:[#allocation104_spill] sm:$0xff] %v5276_v55  ;;  %v5288_v38 = vld [vmem:[%s11520_s3 + $0x360] sm:$0xff] }
  0x6d   :  { %608 = vmatpush2.msra.mxu1 %v5257_v63  ;;  %12369 = vst [vmem:[#allocation103_spill] sm:$0xff] %v5269_v4  ;;  %v5281_v63 = vld [vmem:[%s11520_s3 + $0x390] sm:$0xff]  ;;  %540 = vmatprep.subr.mxu0 %v5276_v55  ;;  %12372 = vst [vmem:[#allocation106_spill] sm:$0xff] %v5288_v38  ;;  %v5300_v55 = vld [vmem:[%s11520_s3 + $0x348] sm:$0xff] }
  0x6e   :  { %609 = vmatprep.subr.mxu1 %v5269_v4  ;;  %12371 = vst [vmem:[#allocation105_spill] sm:$0xff] %v5281_v63  ;;  %v5293_v4 = vld [vmem:[%s11520_s3 + $0x378] sm:$0xff]  ;;  %541 = vmatpush2.msra.mxu0 %v5288_v38  ;;  %12374 = vst [vmem:[#allocation108_spill] sm:$0xff] %v5300_v55  ;;  %v5312_v38 = vld [vmem:[%s11520_s3 + $0x340] sm:$0xff] }
  0x6f   :  { %610 = vmatpush2.msra.mxu1 %v5281_v63  ;;  %12373 = vst [vmem:[#allocation107_spill] sm:$0xff] %v5293_v4  ;;  %v5305_v63 = vld [vmem:[%s11520_s3 + $0x370] sm:$0xff]  ;;  %542 = vmatprep.subr.mxu0 %v5300_v55  ;;  %12376 = vst [vmem:[#allocation110_spill] sm:$0xff] %v5312_v38  ;;  %v5324_v55 = vld [vmem:[%s11520_s3 + $0x328] sm:$0xff] }
  0x70   :  { %611 = vmatprep.subr.mxu1 %v5293_v4  ;;  %12375 = vst [vmem:[#allocation109_spill] sm:$0xff] %v5305_v63  ;;  %v5317_v4 = vld [vmem:[%s11520_s3 + $0x358] sm:$0xff]  ;;  %543 = vmatpush2.msra.mxu0 %v5312_v38  ;;  %12378 = vst [vmem:[#allocation112_spill] sm:$0xff] %v5324_v55  ;;  %v5336_v38 = vld [vmem:[%s11520_s3 + $0x320] sm:$0xff] }
  0x71   :  { %612 = vmatpush2.msra.mxu1 %v5305_v63  ;;  %12377 = vst [vmem:[#allocation111_spill] sm:$0xff] %v5317_v4  ;;  %v5329_v63 = vld [vmem:[%s11520_s3 + $0x350] sm:$0xff]  ;;  %544 = vmatprep.subr.mxu0 %v5324_v55  ;;  %12380 = vst [vmem:[#allocation114_spill] sm:$0xff] %v5336_v38  ;;  %v5348_v55 = vld [vmem:[%s11520_s3 + $0x308] sm:$0xff] }
  0x72   :  { %613 = vmatprep.subr.mxu1 %v5317_v4  ;;  %12379 = vst [vmem:[#allocation113_spill] sm:$0xff] %v5329_v63  ;;  %v5341_v4 = vld [vmem:[%s11520_s3 + $0x338] sm:$0xff]  ;;  %545 = vmatpush2.msra.mxu0 %v5336_v38  ;;  %12382 = vst [vmem:[#allocation116_spill] sm:$0xff] %v5348_v55  ;;  %v5360_v38 = vld [vmem:[%s11520_s3 + $0x300] sm:$0xff] }
  0x73   :  { %614 = vmatpush2.msra.mxu1 %v5329_v63  ;;  %12381 = vst [vmem:[#allocation115_spill] sm:$0xff] %v5341_v4  ;;  %v5353_v63 = vld [vmem:[%s11520_s3 + $0x330] sm:$0xff]  ;;  %546 = vmatprep.subr.mxu0 %v5348_v55  ;;  %12384 = vst [vmem:[#allocation118_spill] sm:$0xff] %v5360_v38  ;;  %v5372_v55 = vld [vmem:[%s11520_s3 + $0x2e8] sm:$0xff] }
  0x74   :  { %615 = vmatprep.subr.mxu1 %v5341_v4  ;;  %12383 = vst [vmem:[#allocation117_spill] sm:$0xff] %v5353_v63  ;;  %v5365_v4 = vld [vmem:[%s11520_s3 + $0x318] sm:$0xff]  ;;  %547 = vmatpush2.msra.mxu0 %v5360_v38  ;;  %12386 = vst [vmem:[#allocation120_spill] sm:$0xff] %v5372_v55  ;;  %v5384_v38 = vld [vmem:[%s11520_s3 + $0x2e0] sm:$0xff] }
  0x75   :  { %616 = vmatpush2.msra.mxu1 %v5353_v63  ;;  %12385 = vst [vmem:[#allocation119_spill] sm:$0xff] %v5365_v4  ;;  %v5377_v63 = vld [vmem:[%s11520_s3 + $0x310] sm:$0xff]  ;;  %548 = vmatprep.subr.mxu0 %v5372_v55  ;;  %12388 = vst [vmem:[#allocation122_spill] sm:$0xff] %v5384_v38  ;;  %v5396_v55 = vld [vmem:[%s11520_s3 + $0x2c8] sm:$0xff] }
  0x76   :  { %617 = vmatprep.subr.mxu1 %v5365_v4  ;;  %12387 = vst [vmem:[#allocation121_spill] sm:$0xff] %v5377_v63  ;;  %v5389_v4 = vld [vmem:[%s11520_s3 + $0x2f8] sm:$0xff]  ;;  %549 = vmatpush2.msra.mxu0 %v5384_v38  ;;  %12390 = vst [vmem:[#allocation124_spill] sm:$0xff] %v5396_v55  ;;  %v5418_v38 = vld [vmem:[%s11520_s3 + $0x2a8] sm:$0xff] }
  0x77   :  { %618 = vmatpush2.msra.mxu1 %v5377_v63  ;;  %12389 = vst [vmem:[#allocation123_spill] sm:$0xff] %v5389_v4  ;;  %v5401_v63 = vld [vmem:[%s11520_s3 + $0x2f0] sm:$0xff]  ;;  %550 = vmatprep.subr.mxu0 %v5396_v55  ;;  %12394 = vst [vmem:[#allocation128_spill] sm:$0xff] %v5418_v38  ;;  %v5435_v55 = vld [vmem:[%s11520_s3 + $0x2b8] sm:$0xff] }
  0x78   :  { %619 = vmatprep.subr.mxu1 %v5389_v4  ;;  %12391 = vst [vmem:[#allocation125_spill] sm:$0xff] %v5401_v63  ;;  %v5413_v4 = vld [vmem:[%s11520_s3 + $0x2d8] sm:$0xff]  ;;  %551 = vmatpush2.msra.mxu0 %v5406_v2  ;;  %12397 = vst [vmem:[#allocation131_spill] sm:$0xff] %v5435_v55  ;;  %v5452_v2 = vld [vmem:[%s11520_s3 + $0x280] sm:$0xff] }
  0x79   :  { %620 = vmatpush2.msra.mxu1 %v5401_v63  ;;  %12393 = vst [vmem:[#allocation127_spill] sm:$0xff] %v5413_v4  ;;  %v5430_v63 = vld [vmem:[%s11520_s3 + $0x2a0] sm:$0xff]  ;;  %552 = vmatprep.subr.mxu0 %v5418_v38  ;;  %12400 = vst [vmem:[#allocation134_spill] sm:$0xff] %v5452_v2  ;;  %v5469_v38 = vld [vmem:[%s11520_s3 + $0x290] sm:$0xff] }
  0x7a   :  { %621 = vmatprep.subr.mxu1 %v5413_v4  ;;  %12396 = vst [vmem:[#allocation130_spill] sm:$0xff] %v5430_v63  ;;  %v5447_v4 = vld [vmem:[%s11520_s3 + $0x2b0] sm:$0xff]  ;;  %553 = vmatpush2.msra.mxu0 %v5430_v63  ;;  %12403 = vst [vmem:[#allocation137_spill] sm:$0xff] %v5469_v38  ;;  %v5476_v63 = vld [vmem:[%s11520_s3 + $0x260] sm:$0xff] }
  0x7b   :  { %622 = vmatpush2.msra.mxu1 %v5423_v61  ;;  %12399 = vst [vmem:[#allocation133_spill] sm:$0xff] %v5447_v4  ;;  %v5464_v61 = vld [vmem:[%s11520_s3 + $0x268] sm:$0xff]  ;;  %554 = vmatprep.subr.mxu0 %v5440_v57  ;;  %12404 = vst [vmem:[#allocation138_spill] sm:$0xff] %v5476_v63 }
  0x7c   :  { %623 = vmatprep.subr.mxu1 %v5435_v55  ;;  %12402 = vst [vmem:[#allocation136_spill] sm:$0xff] %v5464_v61  ;;  %v5481_v55 = vld [vmem:[%s11520_s3 + $0x278] sm:$0xff]  ;;  %555 = vmatpush2.msra.mxu0 %v5452_v2  ;;  %v5488_v57 = vld [vmem:[%s11520_s3 + $0x248] sm:$0xff]  ;;  %v5500_v2 = vld [vmem:[%s11520_s3 + $0x240] sm:$0xff] }
  0x7d   :  { %624 = vmatpush2.msra.mxu1 %v5447_v4  ;;  %12405 = vst [vmem:[#allocation139_spill] sm:$0xff] %v5481_v55  ;;  %12406 = vst [vmem:[#allocation140_spill] sm:$0xff] %v5488_v57  ;;  %v5493_v4 = vld [vmem:[%s11520_s3 + $0x270] sm:$0xff]  ;;  %556 = vmatprep.subr.mxu0 %v5464_v61  ;;  %v5512_v61 = vld [vmem:[%s11520_s3 + $0x228] sm:$0xff] }
  0x7e   :  { %625 = vmatprep.subr.mxu1 %v5457_v59  ;;  %12407 = vst [vmem:[#allocation141_spill] sm:$0xff] %v5493_v4  ;;  %12408 = vst [vmem:[#allocation142_spill] sm:$0xff] %v5500_v2  ;;  %v5505_v59 = vld [vmem:[%s11520_s3 + $0x258] sm:$0xff]  ;;  %557 = vmatpush2.msra.mxu0 %v5476_v63  ;;  %v5524_v63 = vld [vmem:[%s11520_s3 + $0x220] sm:$0xff] }
  0x7f   :  { %626 = vmatpush2.msra.mxu1 %v5469_v38  ;;  %12409 = vst [vmem:[#allocation143_spill] sm:$0xff] %v5505_v59  ;;  %12410 = vst [vmem:[#allocation144_spill] sm:$0xff] %v5512_v61  ;;  %v5517_v38 = vld [vmem:[%s11520_s3 + $0x250] sm:$0xff]  ;;  %558 = vmatprep.subr.mxu0 %v5488_v57  ;;  %v5536_v57 = vld [vmem:[%s11520_s3 + $0x208] sm:$0xff] }
  0x80   :  { %627 = vmatprep.subr.mxu1 %v5481_v55  ;;  %12411 = vst [vmem:[#allocation145_spill] sm:$0xff] %v5517_v38  ;;  %12412 = vst [vmem:[#allocation146_spill] sm:$0xff] %v5524_v63  ;;  %v5529_v55 = vld [vmem:[%s11520_s3 + $0x238] sm:$0xff]  ;;  %559 = vmatpush2.msra.mxu0 %v5500_v2  ;;  %v5548_v2 = vld [vmem:[%s11520_s3 + $0x200] sm:$0xff] }
  0x81   :  { %628 = vmatpush2.msra.mxu1 %v5493_v4  ;;  %12413 = vst [vmem:[#allocation147_spill] sm:$0xff] %v5529_v55  ;;  %12414 = vst [vmem:[#allocation148_spill] sm:$0xff] %v5536_v57  ;;  %v5541_v4 = vld [vmem:[%s11520_s3 + $0x230] sm:$0xff]  ;;  %560 = vmatprep.subr.mxu0 %v5512_v61 }
  0x82   :  { %629 = vmatprep.subr.mxu1 %v5505_v59  ;;  %12415 = vst [vmem:[#allocation149_spill] sm:$0xff] %v5541_v4  ;;  %12416 = vst [vmem:[#allocation150_spill] sm:$0xff] %v5548_v2  ;;  %v5553_v59 = vld [vmem:[%s11520_s3 + $0x218] sm:$0xff]  ;;  %561 = vmatpush2.msra.mxu0 %v5524_v63  ;;  %v5560_v61 = vld [vmem:[%s11520_s3 + $0x210] sm:$0xff] }
  0x83   :  { %630 = vmatpush2.msra.mxu1 %v5517_v38  ;;  %12417 = vst [vmem:[#allocation151_spill] sm:$0xff] %v5553_v59  ;;  %12418 = vst [vmem:[#allocation152_spill] sm:$0xff] %v5560_v61  ;;  %562 = vmatprep.subr.mxu0 %v5536_v57  ;;  %v293_v57 = vlaneseq }
  0x84   :  { %631 = vmatprep.subr.mxu1 %v5529_v55  ;;  %563 = vmatpush2.msra.mxu0 %v5548_v2  ;;  %v5570_v55 = vld [vmem:[%s11518_s1 + $0x1e8] sm:$0xff] }
  0x85   :  { %632 = vmatpush2.msra.mxu1 %v5541_v4  ;;  %564 = vmatprep.mubr.f32.mxu0 %v289_v62  ;;  %12419 = vst [vmem:[#allocation153_spill] sm:$0xff] %v5570_v55  ;;  %v5574_v63 = vshrl.u32 %v293_v57, 7 }
  0x86   :  { %633 = vmatprep.subr.mxu1 %v5553_v59  ;;  %635 = vmatprep.mubr.f32.mxu1 %v289_v62  ;;  %v285_v59 = vld [vmem:[%s11519_s2] sm:$0xf] }
  0x87   :  { %634 = vmatpush2.msra.mxu1 %v5560_v61  ;;  %668 = vmatprep.subr.mxu0 %v5570_v55  ;;  %12420 = vst [vmem:[#allocation154_spill] sm:$0xff] %v5574_v63  ;;  %v11663_v2 = vsub.s32 0, %v5574_v63  ;;  %v11665_v62 = vsub.s32 1, %v5574_v63  ;;  %v11669_v53 = vsub.s32 2, %v5574_v63  ;;  %v11678_v51 = vsub.s32 3, %v5574_v63 }
  0x88   :  { %739 = vmatprep.subr.mxu1 %v4250_v9 }
  0x89   :  { %v5583_v61 = vrot.slane %v285_v59, %v11663_v2  ;;  %v5587_v55 = vrot.slane %v285_v59, %v11665_v62  ;;  %v5594_v2 = vrot.slane %v285_v59, %v11669_v53 }
  0x8b   :  { %12421 = vst [vmem:[#allocation155_spill] sm:$0xff] %v5583_v61  ;;  %12422 = vst [vmem:[#allocation156_spill] sm:$0xff] %v5587_v55 }
  0x8c   :  { %12423 = vst [vmem:[#allocation157_spill] sm:$0xff] %v5594_v2 }
 0x102   :  { %v379_v9 = vpop.f32.mrf.mxu0 }
 0x103   :  { %v380_v57 = vadd.f32 %v379_v9, %v5583_v61  ;;  %v5600_v9 = vrot.slane %v285_v59, %v11678_v51 }
 0x104   :  { %v381_v4 = vpop.f32.mrf.mxu0 }
 0x105   :  { %v3023_v38 = vmul.f32 -1.442695, %v380_v57  ;;  %v382_v0 = vadd.f32 %v381_v4, %v5587_v55 }
 0x107   :  { %3080 = vpow2.f32 %v3023_v38  ;;  %v3024_v60 = vmul.f32 -1.442695, %v382_v0 }
 0x108   :  { %v450_v62 = vpop.f32.mrf.mxu1 }
 0x109   :  { %3082 = vpow2.f32 %v3024_v60  ;;  %v451_v58 = vadd.f32 %v450_v62, %v5594_v2  ;;  %v288_v62 = vld [vmem:[#allocation3] sm:$0x3] }
 0x10a   :  { %v452_v57 = vpop.f32.mrf.mxu1 }
 0x10b   :  { %v3025_v4 = vmul.f32 -1.442695, %v451_v58  ;;  %v453_v55 = vadd.f32 %v452_v57, %v5600_v9 }
 0x10d   :  { %3084 = vpow2.f32 %v3025_v4 }
 0x10e   :  { %3086 = vtanh.f32 %v453_v55  ;;  %v5627_v55 = vld [vmem:[%s11518_s1 + $0x1f0] sm:$0xff] }
 0x114   :  { %v3081_v38 = vpop.eup %3080 }
 0x115   :  { %v464_v0 = vadd.f32 1.0, %v3081_v38  ;;  %v5657_v38 = vld [vmem:[%s11518_s1 + $0x188] sm:$0xff] }
 0x116   :  { %v3083_v60 = vpop.eup %3082 }
 0x117   :  { %3088 = vrcp.f32 %v464_v0  ;;  %v465_v53 = vadd.f32 1.0, %v3083_v60  ;;  %v5663_v0 = vld [vmem:[%s11518_s1 + $0x1b8] sm:$0xff]  ;;  %v5669_v60 = vld [vmem:[%s11518_s1 + $0x180] sm:$0xff] }
 0x119   :  { %3090 = vrcp.f32 %v465_v53  ;;  %v5609_v53 = vld [vmem:[%s11518_s1 + $0x1e0] sm:$0xff] }
 0x11a   :  { %v3085_v61 = vpop.eup %3084 }
 0x11b   :  { %v3087_v49 = vpop.eup %3086  ;;  %v466_v63 = vadd.f32 1.0, %v3085_v61  ;;  %v5651_v61 = vld [vmem:[%s11518_s1 + $0x1d0] sm:$0xff] }
 0x11d   :  { %3092 = vrcp.f32 %v466_v63  ;;  %v5639_v63 = vld [vmem:[%s11518_s1 + $0x1d8] sm:$0xff] }
 0x124   :  { %v3089_v56 = vpop.eup %3088 }
 0x125   :  { %v475_v51 = vmul.f32 %v3089_v56, %v3087_v49  ;;  %v5615_v49 = vld [vmem:[%s11518_s1 + $0x1c8] sm:$0xff] }
 0x126   :  { %v3091_v2 = vpop.eup %3090  ;;  %v5633_v56 = vld [vmem:[%s11518_s1 + $0x1a8] sm:$0xff] }
 0x127   :  { %v474_v59 = vmul.f32 %v3091_v2, %v288_v62  ;;  %v5645_v2 = vld [vmem:[%s11518_s1 + $0x1a0] sm:$0xff]  ;;  %v5675_v62 = vld [vmem:[%s11518_s1 + $0x1b0] sm:$0xff] }
 0x129   :  { %v5603_v47 = vadd.f32 %v475_v51, %v474_v59  ;;  %v5621_v51 = vld [vmem:[%s11518_s1 + $0x1c0] sm:$0xff]  ;;  %v5681_v59 = vld [vmem:[%s11518_s1 + $0x168] sm:$0xff] }
 0x12a   :  { %v3093_v58 = vpop.eup %3092  ;;  %12424 = vst [vmem:[#allocation158_spill] sm:$0xff] %v5681_v59 }
 0x12b   :  { %3094 = vtanh.f32 %v5603_v47 }
 0x138   :  { %v3095_v57 = vpop.eup %3094 }
 0x139   :  { %v478_v4 = vmul.f32 %v3095_v57, %v3093_v58  ;;  %v5687_v58 = vld [vmem:[%s11518_s1 + $0x198] sm:$0xff]  ;;  %v5693_v57 = vld [vmem:[%s11518_s1 + $0x160] sm:$0xff] }
 0x13a   :  { %12425 = vst [vmem:[#allocation159_spill] sm:$0xff] %v5687_v58  ;;  %12426 = vst [vmem:[#allocation160_spill] sm:$0xff] %v5693_v57 }
 0x13b   :  { %565 = vmatmul.mubr.f32.vlgmr.msra.gmra.mxu0 %v478_v4  ;;  %636 = vmatmul.mubr.f32.vlgmr.msra.gmra.mxu1 %v478_v4 }
 0x13c   :  { %669 = vmatpush1.msra.mxu0 %v5609_v53  ;;  %732 = vmatprep.mubr.f32.mxu0 %v478_v4 }
 0x13d   :  { %670 = vmatprep.subr.mxu0 %v5615_v49  ;;  %803 = vmatprep.mubr.f32.mxu1 %v478_v4  ;;  %v5699_v4 = vld [vmem:[%s11518_s1 + $0x190] sm:$0xff] }
 0x13e   :  { %671 = vmatpush1.msra.mxu0 %v5621_v51  ;;  %740 = vmatpush1.msra.mxu1 %v5627_v55  ;;  %12427 = vst [vmem:[#allocation161_spill] sm:$0xff] %v5699_v4 }
 0x13f   :  { %672 = vmatprep.subr.mxu0 %v5633_v56  ;;  %741 = vmatprep.subr.mxu1 %v5639_v63 }
 0x140   :  { %673 = vmatpush1.msra.mxu0 %v5645_v2  ;;  %742 = vmatpush1.msra.mxu1 %v5651_v61 }
 0x141   :  { %674 = vmatprep.subr.mxu0 %v5657_v38  ;;  %743 = vmatprep.subr.mxu1 %v5663_v0 }
 0x142   :  { %675 = vmatpush1.msra.mxu0 %v5669_v60  ;;  %744 = vmatpush1.msra.mxu1 %v5675_v62 }
 0x143   :  { %676 = vmatprep.subr.mxu0 %v5681_v59  ;;  %745 = vmatprep.subr.mxu1 %v5687_v58  ;;  %v5705_v59 = vld [vmem:[%s11518_s1 + $0x148] sm:$0xff]  ;;  %v5711_v58 = vld [vmem:[%s11518_s1 + $0x178] sm:$0xff] }
 0x144   :  { %677 = vmatpush1.msra.mxu0 %v5693_v57  ;;  %746 = vmatpush1.msra.mxu1 %v5699_v4  ;;  %12428 = vst [vmem:[#allocation162_spill] sm:$0xff] %v5705_v59  ;;  %12429 = vst [vmem:[#allocation163_spill] sm:$0xff] %v5711_v58  ;;  %v5717_v57 = vld [vmem:[%s11518_s1 + $0x140] sm:$0xff]  ;;  %v5723_v4 = vld [vmem:[%s11518_s1 + $0x170] sm:$0xff] }
 0x145   :  { %678 = vmatprep.subr.mxu0 %v5705_v59  ;;  %747 = vmatprep.subr.mxu1 %v5711_v58  ;;  %12430 = vst [vmem:[#allocation164_spill] sm:$0xff] %v5717_v57  ;;  %12431 = vst [vmem:[#allocation165_spill] sm:$0xff] %v5723_v4  ;;  %v5729_v59 = vld [vmem:[%s11518_s1 + $0x128] sm:$0xff]  ;;  %v5735_v58 = vld [vmem:[%s11518_s1 + $0x158] sm:$0xff] }
 0x146   :  { %679 = vmatpush1.msra.mxu0 %v5717_v57  ;;  %748 = vmatpush1.msra.mxu1 %v5723_v4  ;;  %12432 = vst [vmem:[#allocation166_spill] sm:$0xff] %v5729_v59  ;;  %12433 = vst [vmem:[#allocation167_spill] sm:$0xff] %v5735_v58  ;;  %v5741_v57 = vld [vmem:[%s11518_s1 + $0x120] sm:$0xff]  ;;  %v5747_v4 = vld [vmem:[%s11518_s1 + $0x150] sm:$0xff] }
 0x147   :  { %680 = vmatprep.subr.mxu0 %v5729_v59  ;;  %749 = vmatprep.subr.mxu1 %v5735_v58  ;;  %12434 = vst [vmem:[#allocation168_spill] sm:$0xff] %v5741_v57  ;;  %12435 = vst [vmem:[#allocation169_spill] sm:$0xff] %v5747_v4  ;;  %v5753_v59 = vld [vmem:[%s11518_s1 + $0x108] sm:$0xff]  ;;  %v5759_v58 = vld [vmem:[%s11518_s1 + $0x138] sm:$0xff] }
 0x148   :  { %681 = vmatpush1.msra.mxu0 %v5741_v57  ;;  %750 = vmatpush1.msra.mxu1 %v5747_v4  ;;  %12436 = vst [vmem:[#allocation170_spill] sm:$0xff] %v5753_v59  ;;  %12437 = vst [vmem:[#allocation171_spill] sm:$0xff] %v5759_v58  ;;  %v5765_v57 = vld [vmem:[%s11518_s1 + $0x100] sm:$0xff]  ;;  %v5771_v4 = vld [vmem:[%s11518_s1 + $0x130] sm:$0xff] }
 0x149   :  { %682 = vmatprep.subr.mxu0 %v5753_v59  ;;  %751 = vmatprep.subr.mxu1 %v5759_v58  ;;  %12438 = vst [vmem:[#allocation172_spill] sm:$0xff] %v5765_v57  ;;  %12439 = vst [vmem:[#allocation173_spill] sm:$0xff] %v5771_v4  ;;  %v5777_v59 = vld [vmem:[%s11518_s1 + $0xe8] sm:$0xff]  ;;  %v5783_v58 = vld [vmem:[%s11518_s1 + $0x118] sm:$0xff] }
 0x14a   :  { %683 = vmatpush1.msra.mxu0 %v5765_v57  ;;  %752 = vmatpush1.msra.mxu1 %v5771_v4  ;;  %12440 = vst [vmem:[#allocation174_spill] sm:$0xff] %v5777_v59  ;;  %12441 = vst [vmem:[#allocation175_spill] sm:$0xff] %v5783_v58  ;;  %v5789_v57 = vld [vmem:[%s11518_s1 + $0xe0] sm:$0xff]  ;;  %v5795_v4 = vld [vmem:[%s11518_s1 + $0x110] sm:$0xff] }
 0x14b   :  { %684 = vmatprep.subr.mxu0 %v5777_v59  ;;  %753 = vmatprep.subr.mxu1 %v5783_v58  ;;  %12442 = vst [vmem:[#allocation176_spill] sm:$0xff] %v5789_v57  ;;  %12443 = vst [vmem:[#allocation177_spill] sm:$0xff] %v5795_v4  ;;  %v5801_v59 = vld [vmem:[%s11518_s1 + $0xc8] sm:$0xff]  ;;  %v5807_v58 = vld [vmem:[%s11518_s1 + $0xf8] sm:$0xff] }
 0x14c   :  { %685 = vmatpush1.msra.mxu0 %v5789_v57  ;;  %754 = vmatpush1.msra.mxu1 %v5795_v4  ;;  %12444 = vst [vmem:[#allocation178_spill] sm:$0xff] %v5801_v59  ;;  %12445 = vst [vmem:[#allocation179_spill] sm:$0xff] %v5807_v58  ;;  %v5813_v57 = vld [vmem:[%s11518_s1 + $0xc0] sm:$0xff]  ;;  %v5819_v4 = vld [vmem:[%s11518_s1 + $0xf0] sm:$0xff] }
 0x14d   :  { %686 = vmatprep.subr.mxu0 %v5801_v59  ;;  %755 = vmatprep.subr.mxu1 %v5807_v58  ;;  %12446 = vst [vmem:[#allocation180_spill] sm:$0xff] %v5813_v57  ;;  %12447 = vst [vmem:[#allocation181_spill] sm:$0xff] %v5819_v4  ;;  %v5825_v59 = vld [vmem:[%s11518_s1 + $0xa8] sm:$0xff]  ;;  %v5831_v58 = vld [vmem:[%s11518_s1 + $0xd8] sm:$0xff] }
 0x14e   :  { %687 = vmatpush1.msra.mxu0 %v5813_v57  ;;  %756 = vmatpush1.msra.mxu1 %v5819_v4  ;;  %12448 = vst [vmem:[#allocation182_spill] sm:$0xff] %v5825_v59  ;;  %12449 = vst [vmem:[#allocation183_spill] sm:$0xff] %v5831_v58  ;;  %v5837_v57 = vld [vmem:[%s11518_s1 + $0xa0] sm:$0xff]  ;;  %v5843_v4 = vld [vmem:[%s11518_s1 + $0xd0] sm:$0xff] }
 0x14f   :  { %688 = vmatprep.subr.mxu0 %v5825_v59  ;;  %757 = vmatprep.subr.mxu1 %v5831_v58  ;;  %12450 = vst [vmem:[#allocation184_spill] sm:$0xff] %v5837_v57  ;;  %12451 = vst [vmem:[#allocation185_spill] sm:$0xff] %v5843_v4  ;;  %v5849_v59 = vld [vmem:[%s11518_s1 + $0x88] sm:$0xff]  ;;  %v5855_v58 = vld [vmem:[%s11518_s1 + $0xb8] sm:$0xff] }
 0x150   :  { %689 = vmatpush1.msra.mxu0 %v5837_v57  ;;  %758 = vmatpush1.msra.mxu1 %v5843_v4  ;;  %12452 = vst [vmem:[#allocation186_spill] sm:$0xff] %v5849_v59  ;;  %12453 = vst [vmem:[#allocation187_spill] sm:$0xff] %v5855_v58  ;;  %v5861_v57 = vld [vmem:[%s11518_s1 + $0x80] sm:$0xff]  ;;  %v5867_v4 = vld [vmem:[%s11518_s1 + $0xb0] sm:$0xff] }
 0x151   :  { %690 = vmatprep.subr.mxu0 %v5849_v59  ;;  %759 = vmatprep.subr.mxu1 %v5855_v58  ;;  %12454 = vst [vmem:[#allocation188_spill] sm:$0xff] %v5861_v57  ;;  %12455 = vst [vmem:[#allocation189_spill] sm:$0xff] %v5867_v4  ;;  %v5873_v59 = vld [vmem:[%s11518_s1 + $0x68] sm:$0xff]  ;;  %v5879_v58 = vld [vmem:[%s11518_s1 + $0x98] sm:$0xff] }
 0x152   :  { %691 = vmatpush1.msra.mxu0 %v5861_v57  ;;  %760 = vmatpush1.msra.mxu1 %v5867_v4  ;;  %12456 = vst [vmem:[#allocation190_spill] sm:$0xff] %v5873_v59  ;;  %12457 = vst [vmem:[#allocation191_spill] sm:$0xff] %v5879_v58  ;;  %v5885_v57 = vld [vmem:[%s11518_s1 + $0x60] sm:$0xff]  ;;  %v5891_v4 = vld [vmem:[%s11518_s1 + $0x90] sm:$0xff] }
 0x153   :  { %692 = vmatprep.subr.mxu0 %v5873_v59  ;;  %761 = vmatprep.subr.mxu1 %v5879_v58  ;;  %12458 = vst [vmem:[#allocation192_spill] sm:$0xff] %v5885_v57  ;;  %12459 = vst [vmem:[#allocation193_spill] sm:$0xff] %v5891_v4  ;;  %v5897_v59 = vld [vmem:[%s11518_s1 + $0x48] sm:$0xff]  ;;  %v5903_v58 = vld [vmem:[%s11518_s1 + $0x78] sm:$0xff] }
 0x154   :  { %693 = vmatpush1.msra.mxu0 %v5885_v57  ;;  %762 = vmatpush1.msra.mxu1 %v5891_v4  ;;  %12460 = vst [vmem:[#allocation194_spill] sm:$0xff] %v5897_v59  ;;  %12461 = vst [vmem:[#allocation195_spill] sm:$0xff] %v5903_v58  ;;  %v5909_v57 = vld [vmem:[%s11518_s1 + $0x40] sm:$0xff]  ;;  %v5915_v4 = vld [vmem:[%s11518_s1 + $0x70] sm:$0xff] }
 0x155   :  { %694 = vmatprep.subr.mxu0 %v5897_v59  ;;  %763 = vmatprep.subr.mxu1 %v5903_v58  ;;  %12462 = vst [vmem:[#allocation196_spill] sm:$0xff] %v5909_v57  ;;  %12463 = vst [vmem:[#allocation197_spill] sm:$0xff] %v5915_v4  ;;  %v5921_v59 = vld [vmem:[%s11518_s1 + $0x28] sm:$0xff]  ;;  %v5927_v58 = vld [vmem:[%s11518_s1 + $0x58] sm:$0xff] }
 0x156   :  { %695 = vmatpush1.msra.mxu0 %v5909_v57  ;;  %764 = vmatpush1.msra.mxu1 %v5915_v4  ;;  %12464 = vst [vmem:[#allocation198_spill] sm:$0xff] %v5921_v59  ;;  %12465 = vst [vmem:[#allocation199_spill] sm:$0xff] %v5927_v58  ;;  %v5933_v57 = vld [vmem:[%s11518_s1 + $0x20] sm:$0xff]  ;;  %v5939_v4 = vld [vmem:[%s11518_s1 + $0x50] sm:$0xff] }
 0x157   :  { %696 = vmatprep.subr.mxu0 %v5921_v59  ;;  %765 = vmatprep.subr.mxu1 %v5927_v58  ;;  %12466 = vst [vmem:[#allocation200_spill] sm:$0xff] %v5933_v57  ;;  %v5945_v59 = vld [vmem:[%s11518_s1 + $0x8] sm:$0xff]  ;;  %v5951_v58 = vld [vmem:[%s11518_s1 + $0x38] sm:$0xff] }
 0x158   :  { %697 = vmatpush1.msra.mxu0 %v5933_v57  ;;  %766 = vmatpush1.msra.mxu1 %v5939_v4  ;;  %12467 = vst [vmem:[#allocation201_spill] sm:$0xff] %v5945_v59  ;;  %12468 = vst [vmem:[#allocation202_spill] sm:$0xff] %v5951_v58  ;;  %v5957_v57 = vld [vmem:[%s11518_s1] sm:$0xff] }
 0x159   :  { %698 = vmatprep.subr.mxu0 %v5945_v59  ;;  %767 = vmatprep.subr.mxu1 %v5951_v58  ;;  %v5964_v59 = vld [vmem:[%s11518_s1 + $0x3e8] sm:$0xff]  ;;  %v5971_v58 = vld [vmem:[%s11518_s1 + $0x3e0] sm:$0xff] }
 0x15a   :  { %699 = vmatpush1.msra.mxu0 %v5957_v57  ;;  %768 = vmatpush1.msra.mxu1 %v4421_v1  ;;  %v5978_v1 = vld [vmem:[%s11518_s1 + $0x3c8] sm:$0xff] }
 0x15b   :  { %700 = vmatprep.subr.mxu0 %v5964_v59  ;;  %769 = vmatprep.subr.mxu1 %v4429_v3  ;;  %v5985_v3 = vld [vmem:[%s11518_s1 + $0x3c0] sm:$0xff] }
 0x15c   :  { %701 = vmatpush2.msra.mxu0 %v5971_v58  ;;  %770 = vmatpush1.msra.mxu1 %v4437_v5  ;;  %v5992_v5 = vld [vmem:[%s11518_s1 + $0x3a8] sm:$0xff] }
 0x15d   :  { %702 = vmatprep.subr.mxu0 %v5978_v1  ;;  %771 = vmatprep.subr.mxu1 %v4448_v7  ;;  %v12470_v7 = vld [vmem:[#allocation14_spill] sm:$0xff] }
 0x15e   :  { %703 = vmatpush2.msra.mxu0 %v5985_v3  ;;  %772 = vmatpush2.msra.mxu1 %v4459_v10  ;;  %v12472_v10 = vld [vmem:[#allocation16_spill] sm:$0xff] }
 0x15f   :  { %704 = vmatprep.subr.mxu0 %v5992_v5  ;;  %773 = vmatprep.subr.mxu1 %v4470_v12  ;;  %v12474_v12 = vld [vmem:[#allocation18_spill] sm:$0xff] }
 0x160   :  { %705 = vmatpush2.msra.mxu0 %v4442_v6  ;;  %774 = vmatpush2.msra.mxu1 %v4482_v14  ;;  %v12469_v6 = vld [vmem:[#allocation9_spill] sm:$0xff]  ;;  %v12476_v14 = vld [vmem:[#allocation19_spill] sm:$0xff] }
 0x161   :  { %706 = vmatprep.subr.mxu0 %v4453_v8  ;;  %775 = vmatprep.subr.mxu1 %v4494_v16  ;;  %v12471_v8 = vld [vmem:[#allocation10_spill] sm:$0xff]  ;;  %v3029_v16 = vld [vmem:[%s11517_s0 + $0x2] sm:$0x3] }
 0x162   :  { %707 = vmatpush2.msra.mxu0 %v4464_v11  ;;  %776 = vmatpush2.msra.mxu1 %v4506_v18  ;;  %v12473_v11 = vld [vmem:[#allocation11_spill] sm:$0xff] }
 0x163   :  { %708 = vmatprep.subr.mxu0 %v4476_v13  ;;  %777 = vmatprep.subr.mxu1 %v4518_v20  ;;  %v12475_v13 = vld [vmem:[#allocation12_spill] sm:$0xff]  ;;  %v12479_v18 = vld [vmem:[#allocation15_spill] sm:$0xff]  ;;  %v12481_v20 = vld [vmem:[#allocation17_spill] sm:$0xff] }
 0x164   :  { %709 = vmatpush2.msra.mxu0 %v4488_v15  ;;  %778 = vmatpush2.msra.mxu1 %v4530_v22  ;;  %v12477_v15 = vld [vmem:[#allocation13_spill] sm:$0xff] }
 0x165   :  { %710 = vmatprep.subr.mxu0 %v4500_v17  ;;  %779 = vmatprep.subr.mxu1 %v4542_v24  ;;  %v12478_v17 = vld [vmem:[#allocation20_spill] sm:$0xff]  ;;  %v12483_v22 = vld [vmem:[#allocation25_spill] sm:$0xff]  ;;  %v12485_v24 = vld [vmem:[#allocation22_spill] sm:$0xff] }
 0x166   :  { %711 = vmatpush2.msra.mxu0 %v4512_v19  ;;  %780 = vmatpush2.msra.mxu1 %v4554_v26  ;;  %v12480_v19 = vld [vmem:[#allocation21_spill] sm:$0xff] }
 0x167   :  { %712 = vmatprep.subr.mxu0 %v4524_v21  ;;  %781 = vmatprep.subr.mxu1 %v4566_v28  ;;  %v12482_v21 = vld [vmem:[#allocation23_spill] sm:$0xff]  ;;  %v12487_v26 = vld [vmem:[#allocation29_spill] sm:$0xff]  ;;  %v12489_v28 = vld [vmem:[#allocation30_spill] sm:$0xff] }
 0x168   :  { %713 = vmatpush2.msra.mxu0 %v4536_v23  ;;  %782 = vmatpush2.msra.mxu1 %v4578_v30  ;;  %v12484_v23 = vld [vmem:[#allocation27_spill] sm:$0xff]  ;;  %v12491_v30 = vld [vmem:[#allocation32_spill] sm:$0xff] }
 0x169   :  { %714 = vmatprep.subr.mxu0 %v4548_v25  ;;  %783 = vmatprep.subr.mxu1 %v4590_v32  ;;  %v12486_v25 = vld [vmem:[#allocation24_spill] sm:$0xff]  ;;  %v12493_v32 = vld [vmem:[#allocation34_spill] sm:$0xff] }
 0x16a   :  { %715 = vmatpush2.msra.mxu0 %v4560_v27  ;;  %784 = vmatpush2.msra.mxu1 %v4602_v34  ;;  %v12488_v27 = vld [vmem:[#allocation26_spill] sm:$0xff]  ;;  %v12495_v34 = vld [vmem:[#allocation36_spill] sm:$0xff] }
 0x16b   :  { %716 = vmatprep.subr.mxu0 %v4572_v29  ;;  %785 = vmatprep.subr.mxu1 %v4614_v36  ;;  %v12490_v29 = vld [vmem:[#allocation28_spill] sm:$0xff]  ;;  %v12497_v36 = vld [vmem:[#allocation38_spill] sm:$0xff] }
 0x16c   :  { %717 = vmatpush2.msra.mxu0 %v4584_v31  ;;  %786 = vmatpush2.msra.mxu1 %v4633_v40  ;;  %v12492_v31 = vld [vmem:[#allocation31_spill] sm:$0xff]  ;;  %v12500_v40 = vld [vmem:[#allocation40_spill] sm:$0xff] }
 0x16d   :  { %718 = vmatprep.subr.mxu0 %v4596_v33  ;;  %787 = vmatprep.subr.mxu1 %v4645_v42  ;;  %v12494_v33 = vld [vmem:[#allocation33_spill] sm:$0xff]  ;;  %v12502_v42 = vld [vmem:[#allocation42_spill] sm:$0xff] }
 0x16e   :  { %719 = vmatpush2.msra.mxu0 %v4608_v35  ;;  %788 = vmatpush2.msra.mxu1 %v4656_v44  ;;  %v12496_v35 = vld [vmem:[#allocation35_spill] sm:$0xff]  ;;  %v12504_v44 = vld [vmem:[#allocation44_spill] sm:$0xff] }
 0x16f   :  { %720 = vmatprep.subr.mxu0 %v4620_v37  ;;  %789 = vmatprep.subr.mxu1 %v4668_v46  ;;  %v12498_v37 = vld [vmem:[#allocation37_spill] sm:$0xff]  ;;  %v12506_v46 = vld [vmem:[#allocation46_spill] sm:$0xff] }
 0x170   :  { %721 = vmatpush2.msra.mxu0 %v4627_v39  ;;  %790 = vmatpush2.msra.mxu1 %v4680_v48  ;;  %v12499_v39 = vld [vmem:[#allocation39_spill] sm:$0xff] }
 0x171   :  { %722 = vmatprep.subr.mxu0 %v4639_v41  ;;  %791 = vmatprep.subr.mxu1 %v4692_v50  ;;  %v12501_v41 = vld [vmem:[#allocation41_spill] sm:$0xff]  ;;  %v12507_v48 = vld [vmem:[#allocation47_spill] sm:$0xff]  ;;  %v12508_v50 = vld [vmem:[#allocation48_spill] sm:$0xff] }
 0x172   :  { %723 = vmatpush2.msra.mxu0 %v4651_v43  ;;  %792 = vmatpush2.msra.mxu1 %v4704_v52  ;;  %v12503_v43 = vld [vmem:[#allocation43_spill] sm:$0xff]  ;;  %v12509_v52 = vld [vmem:[#allocation49_spill] sm:$0xff] }
 0x173   :  { %724 = vmatprep.subr.mxu0 %v4662_v45  ;;  %793 = vmatprep.subr.mxu1 %v4716_v54  ;;  %v12505_v45 = vld [vmem:[#allocation45_spill] sm:$0xff]  ;;  %v12510_v54 = vld [vmem:[#allocation50_spill] sm:$0xff] }
 0x174   :  { %725 = vmatpush2.msra.mxu0 %v12469_v6  ;;  %794 = vmatpush2.msra.mxu1 %v12470_v7  ;;  %v12511_v6 = vld [vmem:[#allocation51_spill] sm:$0xff]  ;;  %v12512_v7 = vld [vmem:[#allocation52_spill] sm:$0xff] }
 0x175   :  { %726 = vmatprep.subr.mxu0 %v12471_v8  ;;  %795 = vmatprep.subr.mxu1 %v12472_v10  ;;  %v12513_v8 = vld [vmem:[#allocation53_spill] sm:$0xff]  ;;  %v12514_v10 = vld [vmem:[#allocation54_spill] sm:$0xff] }
 0x176   :  { %727 = vmatpush2.msra.mxu0 %v12473_v11  ;;  %796 = vmatpush2.msra.mxu1 %v12474_v12  ;;  %v12515_v11 = vld [vmem:[#allocation55_spill] sm:$0xff]  ;;  %v12516_v12 = vld [vmem:[#allocation56_spill] sm:$0xff] }
 0x177   :  { %728 = vmatprep.subr.mxu0 %v12475_v13  ;;  %797 = vmatprep.subr.mxu1 %v12476_v14  ;;  %v12517_v13 = vld [vmem:[#allocation57_spill] sm:$0xff]  ;;  %v12518_v14 = vld [vmem:[#allocation58_spill] sm:$0xff] }
 0x178   :  { %729 = vmatpush2.msra.mxu0 %v12477_v15  ;;  %798 = vmatpush2.msra.mxu1 %v12478_v17  ;;  %v12519_v15 = vld [vmem:[#allocation59_spill] sm:$0xff]  ;;  %v12521_v17 = vld [vmem:[#allocation61_spill] sm:$0xff] }
 0x179   :  { %730 = vmatprep.subr.mxu0 %v12479_v18  ;;  %799 = vmatprep.subr.mxu1 %v12480_v19  ;;  %v12522_v18 = vld [vmem:[#allocation62_spill] sm:$0xff]  ;;  %v12523_v19 = vld [vmem:[#allocation63_spill] sm:$0xff] }
 0x17a   :  { %731 = vmatpush2.msra.mxu0 %v12481_v20  ;;  %800 = vmatpush2.msra.mxu1 %v12482_v21  ;;  %v12524_v20 = vld [vmem:[#allocation64_spill] sm:$0xff]  ;;  %v12525_v21 = vld [vmem:[#allocation65_spill] sm:$0xff] }
 0x17b   :  { %733 = vmatmul.mubr.f32.vlgmr.msra.gmra.mxu0 %v3029_v16  ;;  %801 = vmatprep.subr.mxu1 %v12483_v22  ;;  %v12526_v22 = vld [vmem:[#allocation66_spill] sm:$0xff] }
 0x17c   :  { %802 = vmatpush2.msra.mxu1 %v12484_v23  ;;  %834 = vmatprep.subr.mxu0 %v12485_v24  ;;  %v12527_v23 = vld [vmem:[#allocation67_spill] sm:$0xff]  ;;  %v12528_v24 = vld [vmem:[#allocation68_spill] sm:$0xff] }
 0x17d   :  { %804 = vmatmul.mubr.f32.vlgmr.msra.gmra.mxu1 %v3029_v16  ;;  %835 = vmatpush1.msra.mxu0 %v12486_v25  ;;  %v12520_v16 = vld [vmem:[#allocation60_spill] sm:$0xff]  ;;  %v12529_v25 = vld [vmem:[#allocation69_spill] sm:$0xff] }
 0x17e   :  { %905 = vmatprep.subr.mxu1 %v12487_v26  ;;  %836 = vmatprep.subr.mxu0 %v12488_v27  ;;  %v12530_v26 = vld [vmem:[#allocation70_spill] sm:$0xff]  ;;  %v12531_v27 = vld [vmem:[#allocation71_spill] sm:$0xff] }
 0x17f   :  { %906 = vmatpush1.msra.mxu1 %v12489_v28  ;;  %837 = vmatpush1.msra.mxu0 %v12490_v29  ;;  %v12532_v28 = vld [vmem:[#allocation72_spill] sm:$0xff]  ;;  %v12533_v29 = vld [vmem:[#allocation73_spill] sm:$0xff] }
 0x180   :  { %907 = vmatprep.subr.mxu1 %v12491_v30  ;;  %838 = vmatprep.subr.mxu0 %v12492_v31  ;;  %v12534_v30 = vld [vmem:[#allocation74_spill] sm:$0xff]  ;;  %v12535_v31 = vld [vmem:[#allocation75_spill] sm:$0xff] }
 0x181   :  { %908 = vmatpush1.msra.mxu1 %v12493_v32  ;;  %839 = vmatpush1.msra.mxu0 %v12494_v33  ;;  %v12536_v32 = vld [vmem:[#allocation76_spill] sm:$0xff]  ;;  %v12537_v33 = vld [vmem:[#allocation77_spill] sm:$0xff] }
 0x182   :  { %909 = vmatprep.subr.mxu1 %v12495_v34  ;;  %840 = vmatprep.subr.mxu0 %v12496_v35  ;;  %v12538_v34 = vld [vmem:[#allocation78_spill] sm:$0xff]  ;;  %v12539_v35 = vld [vmem:[#allocation79_spill] sm:$0xff] }
 0x183   :  { %910 = vmatpush1.msra.mxu1 %v12497_v36  ;;  %841 = vmatpush1.msra.mxu0 %v12498_v37  ;;  %v12540_v36 = vld [vmem:[#allocation80_spill] sm:$0xff]  ;;  %v12541_v37 = vld [vmem:[#allocation81_spill] sm:$0xff] }
 0x184   :  { %911 = vmatprep.subr.mxu1 %v12499_v39  ;;  %842 = vmatprep.subr.mxu0 %v12500_v40  ;;  %v12542_v39 = vld [vmem:[#allocation82_spill] sm:$0xff]  ;;  %v12543_v40 = vld [vmem:[#allocation83_spill] sm:$0xff] }
 0x185   :  { %912 = vmatpush1.msra.mxu1 %v12501_v41  ;;  %843 = vmatpush1.msra.mxu0 %v12502_v42  ;;  %v12544_v41 = vld [vmem:[#allocation84_spill] sm:$0xff]  ;;  %v12545_v42 = vld [vmem:[#allocation85_spill] sm:$0xff] }
 0x186   :  { %913 = vmatprep.subr.mxu1 %v12503_v43  ;;  %844 = vmatprep.subr.mxu0 %v12504_v44  ;;  %v12546_v43 = vld [vmem:[#allocation86_spill] sm:$0xff]  ;;  %v12547_v44 = vld [vmem:[#allocation87_spill] sm:$0xff] }
 0x187   :  { %914 = vmatpush1.msra.mxu1 %v12505_v45  ;;  %845 = vmatpush1.msra.mxu0 %v12506_v46  ;;  %v12548_v45 = vld [vmem:[#allocation88_spill] sm:$0xff]  ;;  %v12549_v46 = vld [vmem:[#allocation89_spill] sm:$0xff] }
 0x188   :  { %915 = vmatprep.subr.mxu1 %v12507_v48  ;;  %846 = vmatprep.subr.mxu0 %v12508_v50  ;;  %v12550_v48 = vld [vmem:[#allocation90_spill] sm:$0xff]  ;;  %v12551_v50 = vld [vmem:[#allocation91_spill] sm:$0xff] }
 0x189   :  { %916 = vmatpush1.msra.mxu1 %v12509_v52  ;;  %847 = vmatpush1.msra.mxu0 %v12510_v54  ;;  %v12552_v52 = vld [vmem:[#allocation92_spill] sm:$0xff]  ;;  %v12553_v54 = vld [vmem:[#allocation93_spill] sm:$0xff] }
 0x18a   :  { %917 = vmatprep.subr.mxu1 %v12511_v6  ;;  %848 = vmatprep.subr.mxu0 %v12512_v7  ;;  %v12554_v6 = vld [vmem:[#allocation94_spill] sm:$0xff]  ;;  %v12555_v7 = vld [vmem:[#allocation95_spill] sm:$0xff] }
 0x18b   :  { %918 = vmatpush1.msra.mxu1 %v12513_v8  ;;  %849 = vmatpush1.msra.mxu0 %v12514_v10  ;;  %v12556_v8 = vld [vmem:[#allocation96_spill] sm:$0xff]  ;;  %v12557_v10 = vld [vmem:[#allocation97_spill] sm:$0xff] }
 0x18c   :  { %919 = vmatprep.subr.mxu1 %v12515_v11  ;;  %850 = vmatprep.subr.mxu0 %v12516_v12  ;;  %v12558_v11 = vld [vmem:[#allocation98_spill] sm:$0xff]  ;;  %v12559_v12 = vld [vmem:[#allocation99_spill] sm:$0xff] }
 0x18d   :  { %920 = vmatpush1.msra.mxu1 %v12517_v13  ;;  %851 = vmatpush1.msra.mxu0 %v12518_v14  ;;  %v12560_v13 = vld [vmem:[#allocation100_spill] sm:$0xff]  ;;  %v12561_v14 = vld [vmem:[#allocation101_spill] sm:$0xff] }
 0x18e   :  { %921 = vmatprep.subr.mxu1 %v12519_v15  ;;  %852 = vmatprep.subr.mxu0 %v12520_v16  ;;  %v12562_v15 = vld [vmem:[#allocation102_spill] sm:$0xff]  ;;  %v12563_v16 = vld [vmem:[#allocation103_spill] sm:$0xff] }
 0x18f   :  { %922 = vmatpush1.msra.mxu1 %v12521_v17  ;;  %853 = vmatpush1.msra.mxu0 %v12522_v18  ;;  %v12564_v17 = vld [vmem:[#allocation104_spill] sm:$0xff]  ;;  %v12565_v18 = vld [vmem:[#allocation105_spill] sm:$0xff] }
 0x190   :  { %923 = vmatprep.subr.mxu1 %v12523_v19  ;;  %854 = vmatprep.subr.mxu0 %v12524_v20  ;;  %v12566_v19 = vld [vmem:[#allocation106_spill] sm:$0xff]  ;;  %v12567_v20 = vld [vmem:[#allocation107_spill] sm:$0xff] }
 0x191   :  { %924 = vmatpush1.msra.mxu1 %v12525_v21  ;;  %855 = vmatpush1.msra.mxu0 %v12526_v22  ;;  %v12568_v21 = vld [vmem:[#allocation108_spill] sm:$0xff]  ;;  %v12569_v22 = vld [vmem:[#allocation109_spill] sm:$0xff] }
 0x192   :  { %925 = vmatprep.subr.mxu1 %v12527_v23  ;;  %856 = vmatprep.subr.mxu0 %v12528_v24  ;;  %v12570_v23 = vld [vmem:[#allocation110_spill] sm:$0xff]  ;;  %v12571_v24 = vld [vmem:[#allocation111_spill] sm:$0xff] }
 0x193   :  { %926 = vmatpush1.msra.mxu1 %v12529_v25  ;;  %857 = vmatpush1.msra.mxu0 %v12530_v26  ;;  %v12572_v25 = vld [vmem:[#allocation112_spill] sm:$0xff]  ;;  %v12573_v26 = vld [vmem:[#allocation113_spill] sm:$0xff] }
 0x194   :  { %927 = vmatprep.subr.mxu1 %v12531_v27  ;;  %858 = vmatprep.subr.mxu0 %v12532_v28  ;;  %v12574_v27 = vld [vmem:[#allocation114_spill] sm:$0xff]  ;;  %v12575_v28 = vld [vmem:[#allocation115_spill] sm:$0xff] }
 0x195   :  { %928 = vmatpush1.msra.mxu1 %v12533_v29  ;;  %859 = vmatpush1.msra.mxu0 %v12534_v30  ;;  %v12576_v29 = vld [vmem:[#allocation116_spill] sm:$0xff]  ;;  %v12577_v30 = vld [vmem:[#allocation117_spill] sm:$0xff] }
 0x196   :  { %929 = vmatprep.subr.mxu1 %v12535_v31  ;;  %860 = vmatprep.subr.mxu0 %v12536_v32  ;;  %v12578_v31 = vld [vmem:[#allocation118_spill] sm:$0xff]  ;;  %v12579_v32 = vld [vmem:[#allocation119_spill] sm:$0xff] }
 0x197   :  { %930 = vmatpush1.msra.mxu1 %v12537_v33  ;;  %861 = vmatpush1.msra.mxu0 %v12538_v34  ;;  %v12580_v33 = vld [vmem:[#allocation120_spill] sm:$0xff]  ;;  %v12581_v34 = vld [vmem:[#allocation121_spill] sm:$0xff] }
 0x198   :  { %931 = vmatprep.subr.mxu1 %v12539_v35  ;;  %862 = vmatprep.subr.mxu0 %v12540_v36  ;;  %v12582_v35 = vld [vmem:[#allocation122_spill] sm:$0xff]  ;;  %v12583_v36 = vld [vmem:[#allocation123_spill] sm:$0xff] }
 0x199   :  { %932 = vmatpush1.msra.mxu1 %v12541_v37  ;;  %863 = vmatpush1.msra.mxu0 %v12542_v39  ;;  %v12584_v37 = vld [vmem:[#allocation124_spill] sm:$0xff]  ;;  %v12585_v39 = vld [vmem:[#allocation125_spill] sm:$0xff] }
 0x19a   :  { %933 = vmatprep.subr.mxu1 %v12543_v40  ;;  %864 = vmatprep.subr.mxu0 %v12544_v41  ;;  %v12586_v40 = vld [vmem:[#allocation126_spill] sm:$0xff]  ;;  %v12587_v41 = vld [vmem:[#allocation127_spill] sm:$0xff] }
 0x19b   :  { %934 = vmatpush1.msra.mxu1 %v12545_v42  ;;  %865 = vmatpush1.msra.mxu0 %v12546_v43  ;;  %v12588_v42 = vld [vmem:[#allocation128_spill] sm:$0xff]  ;;  %v12589_v43 = vld [vmem:[#allocation129_spill] sm:$0xff] }
 0x19c   :  { %935 = vmatprep.subr.mxu1 %v12547_v44  ;;  %866 = vmatprep.subr.mxu0 %v12548_v45  ;;  %v12590_v44 = vld [vmem:[#allocation130_spill] sm:$0xff]  ;;  %v12591_v45 = vld [vmem:[#allocation131_spill] sm:$0xff] }
 0x19d   :  { %936 = vmatpush1.msra.mxu1 %v12549_v46  ;;  %867 = vmatpush2.msra.mxu0 %v12550_v48  ;;  %v12592_v46 = vld [vmem:[#allocation132_spill] sm:$0xff]  ;;  %v12593_v48 = vld [vmem:[#allocation133_spill] sm:$0xff] }
 0x19e   :  { %937 = vmatprep.subr.mxu1 %v12551_v50  ;;  %868 = vmatprep.subr.mxu0 %v12552_v52  ;;  %v12594_v50 = vld [vmem:[#allocation134_spill] sm:$0xff]  ;;  %v12595_v52 = vld [vmem:[#allocation135_spill] sm:$0xff] }
 0x19f   :  { %938 = vmatpush2.msra.mxu1 %v12553_v54  ;;  %869 = vmatpush2.msra.mxu0 %v12554_v6  ;;  %v12596_v54 = vld [vmem:[#allocation136_spill] sm:$0xff]  ;;  %v12597_v6 = vld [vmem:[#allocation137_spill] sm:$0xff] }
 0x1a0   :  { %939 = vmatprep.subr.mxu1 %v12555_v7  ;;  %870 = vmatprep.subr.mxu0 %v12556_v8  ;;  %v12598_v7 = vld [vmem:[#allocation138_spill] sm:$0xff]  ;;  %v12599_v8 = vld [vmem:[#allocation139_spill] sm:$0xff] }
 0x1a1   :  { %940 = vmatpush2.msra.mxu1 %v12557_v10  ;;  %871 = vmatpush2.msra.mxu0 %v12558_v11  ;;  %v12600_v10 = vld [vmem:[#allocation140_spill] sm:$0xff]  ;;  %v12601_v11 = vld [vmem:[#allocation141_spill] sm:$0xff] }
 0x1a2   :  { %941 = vmatprep.subr.mxu1 %v12559_v12  ;;  %872 = vmatprep.subr.mxu0 %v12560_v13  ;;  %v12602_v12 = vld [vmem:[#allocation142_spill] sm:$0xff]  ;;  %v12603_v13 = vld [vmem:[#allocation143_spill] sm:$0xff] }
 0x1a3   :  { %942 = vmatpush2.msra.mxu1 %v12561_v14  ;;  %873 = vmatpush2.msra.mxu0 %v12562_v15  ;;  %v12604_v14 = vld [vmem:[#allocation144_spill] sm:$0xff]  ;;  %v12605_v15 = vld [vmem:[#allocation145_spill] sm:$0xff] }
 0x1a4   :  { %943 = vmatprep.subr.mxu1 %v12563_v16  ;;  %874 = vmatprep.subr.mxu0 %v12564_v17  ;;  %v12606_v16 = vld [vmem:[#allocation146_spill] sm:$0xff]  ;;  %v12607_v17 = vld [vmem:[#allocation147_spill] sm:$0xff] }
 0x1a5   :  { %944 = vmatpush2.msra.mxu1 %v12565_v18  ;;  %875 = vmatpush2.msra.mxu0 %v12566_v19  ;;  %v12608_v18 = vld [vmem:[#allocation148_spill] sm:$0xff]  ;;  %v12609_v19 = vld [vmem:[#allocation149_spill] sm:$0xff] }
 0x1a6   :  { %945 = vmatprep.subr.mxu1 %v12567_v20  ;;  %876 = vmatprep.subr.mxu0 %v12568_v21  ;;  %v12610_v20 = vld [vmem:[#allocation150_spill] sm:$0xff]  ;;  %v12611_v21 = vld [vmem:[#allocation151_spill] sm:$0xff] }
 0x1a7   :  { %946 = vmatpush2.msra.mxu1 %v12569_v22  ;;  %877 = vmatpush2.msra.mxu0 %v12570_v23  ;;  %v12612_v22 = vld [vmem:[#allocation153_spill] sm:$0xff]  ;;  %v12613_v23 = vld [vmem:[#allocation152_spill] sm:$0xff] }
 0x1a8   :  { %947 = vmatprep.subr.mxu1 %v12571_v24  ;;  %878 = vmatprep.subr.mxu0 %v12572_v25  ;;  %v6187_v24 = vld [vmem:[%s11518_s1 + $0x1f8] sm:$0xff]  ;;  %v286_v25 = vld [vmem:[%s11521_s4] sm:$0xf] }
 0x1a9   :  { %948 = vmatpush2.msra.mxu1 %v12573_v26  ;;  %879 = vmatpush2.msra.mxu0 %v12574_v27  ;;  %v12614_v26 = vld [vmem:[#allocation154_spill] sm:$0xff] }
 0x1aa   :  { %949 = vmatprep.subr.mxu1 %v12575_v28  ;;  %880 = vmatprep.subr.mxu0 %v12576_v29  ;;  %v12615_v27 = vsub.s32 0, %v12614_v26  ;;  %v12616_v29 = vsub.s32 1, %v12614_v26 }
 0x1ab   :  { %950 = vmatpush2.msra.mxu1 %v12577_v30  ;;  %881 = vmatpush2.msra.mxu0 %v12578_v31 }
 0x1ac   :  { %951 = vmatprep.subr.mxu1 %v12579_v32  ;;  %882 = vmatprep.subr.mxu0 %v12580_v33  ;;  %v6195_v28 = vrot.slane %v286_v25, %v12615_v27  ;;  %v6199_v30 = vrot.slane %v286_v25, %v12616_v29 }
 0x1ad   :  { %952 = vmatpush2.msra.mxu1 %v12581_v34  ;;  %883 = vmatpush2.msra.mxu0 %v12582_v35 }
 0x1ae   :  { %953 = vmatprep.subr.mxu1 %v12583_v36  ;;  %884 = vmatprep.subr.mxu0 %v12584_v37  ;;  %12617 = vst [vmem:[#allocation9_spill] sm:$0xff] %v6199_v30  ;;  %v12618_v37 = vsub.s32 2, %v12614_v26 }
 0x1af   :  { %954 = vmatpush2.msra.mxu1 %v12585_v39  ;;  %885 = vmatpush2.msra.mxu0 %v12586_v40 }
 0x1b0   :  { %955 = vmatprep.subr.mxu1 %v12587_v41  ;;  %886 = vmatprep.subr.mxu0 %v12588_v42  ;;  %v6205_v39 = vrot.slane %v286_v25, %v12618_v37  ;;  %v12620_v42 = vsub.s32 3, %v12614_v26 }
 0x1b1   :  { %956 = vmatpush2.msra.mxu1 %v12589_v43  ;;  %887 = vmatpush2.msra.mxu0 %v12590_v44 }
 0x1b2   :  { %957 = vmatprep.subr.mxu1 %v12591_v45  ;;  %888 = vmatprep.subr.mxu0 %v12592_v46  ;;  %12619 = vst [vmem:[#allocation14_spill] sm:$0xff] %v6205_v39  ;;  %v6210_v43 = vrot.slane %v286_v25, %v12620_v42  ;;  %v12622_v25 = vld [vmem:[#allocation156_spill] sm:$0xff] }
 0x1b3   :  { %958 = vmatpush2.msra.mxu1 %v12593_v48  ;;  %889 = vmatpush2.msra.mxu0 %v12594_v50 }
 0x1b4   :  { %959 = vmatprep.subr.mxu1 %v12595_v52  ;;  %890 = vmatprep.subr.mxu0 %v12596_v54 }
 0x1b5   :  { %960 = vmatpush2.msra.mxu1 %v12597_v6  ;;  %891 = vmatpush2.msra.mxu0 %v12598_v7 }
 0x1b6   :  { %961 = vmatprep.subr.mxu1 %v12599_v8  ;;  %892 = vmatprep.subr.mxu0 %v12600_v10  ;;  %v290_v8 = vld [vmem:[#allocation5] sm:$0x3] }
 0x1b7   :  { %962 = vmatpush2.msra.mxu1 %v12601_v11  ;;  %893 = vmatpush2.msra.mxu0 %v12602_v12 }
 0x1b8   :  { %963 = vmatprep.subr.mxu1 %v12603_v13  ;;  %894 = vmatprep.subr.mxu0 %v12604_v14 }
 0x1b9   :  { %964 = vmatpush2.msra.mxu1 %v12605_v15  ;;  %895 = vmatpush2.msra.mxu0 %v12606_v16 }
 0x1ba   :  { %965 = vmatprep.subr.mxu1 %v12607_v17  ;;  %896 = vmatprep.subr.mxu0 %v12608_v18 }
 0x1bb   :  { %966 = vmatpush2.msra.mxu1 %v12609_v19  ;;  %897 = vmatpush2.msra.mxu0 %v12610_v20  ;;  %v12621_v20 = vld [vmem:[#allocation155_spill] sm:$0xff] }
 0x1bc   :  { %967 = vmatprep.subr.mxu1 %v12611_v21  ;;  %1002 = vmatprep.subr.mxu0 %v12612_v22 }
 0x1bd   :  { %968 = vmatpush2.msra.mxu1 %v12613_v23 }
 0x1be   :  { %1073 = vmatprep.subr.mxu1 %v6187_v24 }
 0x1fb   :  { %v566_v31 = vpop.f32.mrf.mxu0  ;;  %v637_v40 = vpop.f32.mrf.mxu1 }
 0x1fc   :  { %v567_v32 = vadd.f32 %v566_v31, %v6195_v28  ;;  %v638_v41 = vadd.f32 %v637_v40, %v6205_v39  ;;  %v12623_v31 = vld [vmem:[#allocation157_spill] sm:$0xff] }
 0x1fd   :  { %v568_v33 = vpop.f32.mrf.mxu0  ;;  %v639_v44 = vpop.f32.mrf.mxu1 }
 0x1fe   :  { %v3026_v34 = vmul.f32 -1.442695, %v567_v32  ;;  %v569_v35 = vadd.f32 %v568_v33, %v6199_v30  ;;  %v3028_v45 = vmul.f32 -1.442695, %v638_v41  ;;  %v640_v48 = vadd.f32 %v639_v44, %v6210_v43 }
 0x200   :  { %3096 = vpow2.f32 %v3026_v34  ;;  %v3027_v36 = vmul.f32 -1.442695, %v569_v35 }
 0x202   :  { %3098 = vpow2.f32 %v3027_v36 }
 0x203   :  { %3100 = vpow2.f32 %v3028_v45 }
 0x20d   :  { %v3097_v46 = vpop.eup %3096 }
 0x20e   :  { %v651_v50 = vadd.f32 1.0, %v3097_v46 }
 0x20f   :  { %v3099_v52 = vpop.eup %3098 }
 0x210   :  { %3102 = vrcp.f32 %v651_v50  ;;  %v652_v54 = vadd.f32 1.0, %v3099_v52  ;;  %v3101_v6 = vpop.eup %3100 }
 0x211   :  { %3104 = vtanh.f32 %v640_v48  ;;  %v653_v12 = vadd.f32 1.0, %v3101_v6 }
 0x212   :  { %3106 = vrcp.f32 %v652_v54 }
 0x213   :  { %3108 = vrcp.f32 %v653_v12  ;;  %v12639_v12 = vld [vmem:[#allocation173_spill] sm:$0xff] }
 0x21d   :  { %v3103_v7 = vpop.eup %3102 }
 0x21e   :  { %v3105_v10 = vpop.eup %3104 }
 0x21f   :  { %v3107_v11 = vpop.eup %3106  ;;  %v662_v14 = vmul.f32 %v3105_v10, %v3103_v7  ;;  %v12637_v10 = vld [vmem:[#allocation171_spill] sm:$0xff] }
 0x220   :  { %v661_v13 = vmul.f32 %v3107_v11, %v290_v8  ;;  %v3109_v16 = vpop.eup %3108  ;;  %v12638_v11 = vld [vmem:[#allocation172_spill] sm:$0xff] }
 0x222   :  { %v6213_v15 = vadd.f32 %v662_v14, %v661_v13  ;;  %v12640_v13 = vld [vmem:[#allocation174_spill] sm:$0xff]  ;;  %v12641_v14 = vld [vmem:[#allocation175_spill] sm:$0xff] }
 0x224   :  { %3110 = vtanh.f32 %v6213_v15 }
 0x231   :  { %v3111_v17 = vpop.eup %3110 }
 0x232   :  { %v665_v18 = vmul.f32 %v3111_v17, %v3109_v16  ;;  %v12642_v16 = vld [vmem:[#allocation176_spill] sm:$0xff]  ;;  %v12643_v17 = vld [vmem:[#allocation177_spill] sm:$0xff] }
 0x234   :  { %898 = vmatprep.mubr.f32.mxu0 %v665_v18  ;;  %969 = vmatprep.mubr.f32.mxu1 %v665_v18  ;;  %v12644_v18 = vld [vmem:[#allocation178_spill] sm:$0xff] }
 0x23b   :  { %v734_v19 = vpop.f32.mrf.mxu0 }
 0x23c   :  { %v735_v21 = vadd.f32 %v734_v19, %v12621_v20  ;;  %v12645_v19 = vld [vmem:[#allocation179_spill] sm:$0xff] }
 0x23d   :  { %v736_v22 = vpop.f32.mrf.mxu0  ;;  %v805_v29 = vpop.f32.mrf.mxu1 }
 0x23e   :  { %v3030_v23 = vmul.f32 -1.442695, %v735_v21  ;;  %v737_v26 = vadd.f32 %v736_v22, %v12622_v25  ;;  %v806_v32 = vadd.f32 %v805_v29, %v12623_v31  ;;  %v12646_v21 = vld [vmem:[#allocation180_spill] sm:$0xff]  ;;  %v12647_v22 = vld [vmem:[#allocation181_spill] sm:$0xff] }
 0x23f   :  { %v807_v33 = vpop.f32.mrf.mxu1  ;;  %v12651_v29 = vld [vmem:[#allocation185_spill] sm:$0xff] }
 0x240   :  { %3112 = vpow2.f32 %v3030_v23  ;;  %v3031_v27 = vmul.f32 -1.442695, %v737_v26  ;;  %v3032_v34 = vmul.f32 -1.442695, %v806_v32  ;;  %v808_v35 = vadd.f32 %v807_v33, %v5600_v9  ;;  %v12648_v23 = vld [vmem:[#allocation182_spill] sm:$0xff]  ;;  %v12649_v26 = vld [vmem:[#allocation183_spill] sm:$0xff] }
 0x241   :  { %v12652_v32 = vld [vmem:[#allocation186_spill] sm:$0xff]  ;;  %v12653_v33 = vld [vmem:[#allocation187_spill] sm:$0xff] }
 0x242   :  { %3114 = vpow2.f32 %v3031_v27  ;;  %v12650_v27 = vld [vmem:[#allocation184_spill] sm:$0xff] }
 0x243   :  { %3116 = vpow2.f32 %v3032_v34  ;;  %v12654_v34 = vld [vmem:[#allocation188_spill] sm:$0xff] }
 0x244   :  { %3118 = vtanh.f32 %v808_v35  ;;  %v12655_v35 = vld [vmem:[#allocation189_spill] sm:$0xff] }
 0x24d   :  { %v3113_v36 = vpop.eup %3112 }
 0x24e   :  { %v819_v37 = vadd.f32 1.0, %v3113_v36  ;;  %v12656_v36 = vld [vmem:[#allocation190_spill] sm:$0xff] }
 0x24f   :  { %v3115_v40 = vpop.eup %3114 }
 0x250   :  { %3120 = vrcp.f32 %v819_v37  ;;  %v820_v41 = vadd.f32 1.0, %v3115_v40  ;;  %v3117_v42 = vpop.eup %3116  ;;  %v12657_v37 = vld [vmem:[#allocation191_spill] sm:$0xff]  ;;  %v12658_v40 = vld [vmem:[#allocation192_spill] sm:$0xff] }
 0x251   :  { %v3119_v44 = vpop.eup %3118  ;;  %v821_v48 = vadd.f32 1.0, %v3117_v42  ;;  %v12660_v42 = vld [vmem:[#allocation194_spill] sm:$0xff] }
 0x252   :  { %3122 = vrcp.f32 %v820_v41  ;;  %v12659_v41 = vld [vmem:[#allocation193_spill] sm:$0xff] }
 0x253   :  { %3124 = vrcp.f32 %v821_v48  ;;  %v12664_v48 = vld [vmem:[#allocation198_spill] sm:$0xff] }
 0x25d   :  { %v3121_v45 = vpop.eup %3120 }
 0x25e   :  { %v830_v52 = vmul.f32 %v3121_v45, %v3119_v44  ;;  %v12661_v44 = vld [vmem:[#allocation195_spill] sm:$0xff]  ;;  %v12662_v45 = vld [vmem:[#allocation196_spill] sm:$0xff] }
 0x25f   :  { %v3123_v46 = vpop.eup %3122 }
 0x260   :  { %v829_v50 = vmul.f32 %v3123_v46, %v5603_v47  ;;  %v3125_v6 = vpop.eup %3124  ;;  %v12624_v47 = vld [vmem:[#allocation158_spill] sm:$0xff]  ;;  %v12663_v46 = vld [vmem:[#allocation197_spill] sm:$0xff] }
 0x262   :  { %v6221_v54 = vadd.f32 %v830_v52, %v829_v50  ;;  %v12665_v50 = vld [vmem:[#allocation199_spill] sm:$0xff]  ;;  %v12666_v52 = vld [vmem:[#allocation200_spill] sm:$0xff] }
 0x264   :  { %3126 = vtanh.f32 %v6221_v54 }
 0x271   :  { %v3127_v7 = vpop.eup %3126 }
 0x272   :  { %v833_v8 = vmul.f32 %v3127_v7, %v3125_v6  ;;  %v12667_v6 = vld [vmem:[#allocation201_spill] sm:$0xff]  ;;  %v12668_v7 = vld [vmem:[#allocation202_spill] sm:$0xff] }
 0x274   :  { %899 = vmatmul.mubr.f32.vlgmr.msra.gmra.mxu0 %v833_v8  ;;  %970 = vmatmul.mubr.f32.vlgmr.msra.gmra.mxu1 %v833_v8 }
 0x275   :  { %1003 = vmatpush1.msra.mxu0 %v5609_v53  ;;  %1066 = vmatprep.mubr.f32.mxu0 %v833_v8  ;;  %v12625_v53 = vld [vmem:[#allocation159_spill] sm:$0xff] }
 0x276   :  { %1004 = vmatprep.subr.mxu0 %v5615_v49  ;;  %1137 = vmatprep.mubr.f32.mxu1 %v833_v8  ;;  %v12626_v49 = vld [vmem:[#allocation160_spill] sm:$0xff]  ;;  %v6286_v8 = vld [vmem:[%s11518_s1 + $0x30] sm:$0xff] }
 0x277   :  { %1005 = vmatpush1.msra.mxu0 %v5621_v51  ;;  %1074 = vmatpush1.msra.mxu1 %v5627_v55  ;;  %v12627_v51 = vld [vmem:[#allocation161_spill] sm:$0xff]  ;;  %v12628_v55 = vld [vmem:[#allocation162_spill] sm:$0xff] }
 0x278   :  { %1006 = vmatprep.subr.mxu0 %v5633_v56  ;;  %1075 = vmatprep.subr.mxu1 %v5639_v63  ;;  %v12629_v56 = vld [vmem:[#allocation163_spill] sm:$0xff]  ;;  %v12630_v63 = vld [vmem:[#allocation164_spill] sm:$0xff] }
 0x279   :  { %1007 = vmatpush1.msra.mxu0 %v5645_v2  ;;  %1076 = vmatpush1.msra.mxu1 %v5651_v61  ;;  %v12631_v2 = vld [vmem:[#allocation165_spill] sm:$0xff]  ;;  %v12632_v61 = vld [vmem:[#allocation166_spill] sm:$0xff] }
 0x27a   :  { %1008 = vmatprep.subr.mxu0 %v5657_v38  ;;  %1077 = vmatprep.subr.mxu1 %v5663_v0  ;;  %v12633_v38 = vld [vmem:[#allocation167_spill] sm:$0xff]  ;;  %v12634_v0 = vld [vmem:[#allocation168_spill] sm:$0xff] }
 0x27b   :  { %1009 = vmatpush1.msra.mxu0 %v5669_v60  ;;  %1078 = vmatpush1.msra.mxu1 %v5675_v62  ;;  %v12635_v60 = vld [vmem:[#allocation169_spill] sm:$0xff]  ;;  %v12636_v62 = vld [vmem:[#allocation170_spill] sm:$0xff] }
 0x27c   :  { %1010 = vmatprep.subr.mxu0 %v12624_v47  ;;  %1079 = vmatprep.subr.mxu1 %v12625_v53  ;;  %v6293_v47 = vld [vmem:[%s11518_s1 + $0x18] sm:$0xff] }
 0x27d   :  { %1011 = vmatpush1.msra.mxu0 %v12626_v49  ;;  %1080 = vmatpush1.msra.mxu1 %v12627_v51  ;;  %v6345_v53 = vld [vmem:[%s11518_s1 + $0x3b8] sm:$0xff]  ;;  %v6351_v49 = vld [vmem:[%s11518_s1 + $0x380] sm:$0xff]  ;;  %v6357_v51 = vld [vmem:[%s11518_s1 + $0x3b0] sm:$0xff] }
 0x27e   :  { %1012 = vmatprep.subr.mxu0 %v12628_v55  ;;  %1081 = vmatprep.subr.mxu1 %v12629_v56  ;;  %v6363_v55 = vld [vmem:[%s11518_s1 + $0x368] sm:$0xff]  ;;  %v6369_v56 = vld [vmem:[%s11518_s1 + $0x398] sm:$0xff] }
 0x27f   :  { %1013 = vmatpush1.msra.mxu0 %v12630_v63  ;;  %1082 = vmatpush1.msra.mxu1 %v12631_v2  ;;  %v6375_v63 = vld [vmem:[%s11518_s1 + $0x360] sm:$0xff]  ;;  %v6381_v2 = vld [vmem:[%s11518_s1 + $0x390] sm:$0xff] }
 0x280   :  { %1014 = vmatprep.subr.mxu0 %v12632_v61  ;;  %1083 = vmatprep.subr.mxu1 %v12633_v38  ;;  %v6387_v61 = vld [vmem:[%s11518_s1 + $0x348] sm:$0xff]  ;;  %v6393_v38 = vld [vmem:[%s11518_s1 + $0x378] sm:$0xff] }
 0x281   :  { %1015 = vmatpush1.msra.mxu0 %v12634_v0  ;;  %1084 = vmatpush1.msra.mxu1 %v12635_v60  ;;  %v6399_v0 = vld [vmem:[%s11518_s1 + $0x340] sm:$0xff]  ;;  %v6405_v60 = vld [vmem:[%s11518_s1 + $0x370] sm:$0xff] }
 0x282   :  { %1016 = vmatprep.subr.mxu0 %v12636_v62  ;;  %1085 = vmatprep.subr.mxu1 %v12637_v10  ;;  %v6411_v62 = vld [vmem:[%s11518_s1 + $0x328] sm:$0xff]  ;;  %v6417_v10 = vld [vmem:[%s11518_s1 + $0x358] sm:$0xff] }
 0x283   :  { %1017 = vmatpush1.msra.mxu0 %v12638_v11  ;;  %1086 = vmatpush1.msra.mxu1 %v12639_v12  ;;  %v6423_v11 = vld [vmem:[%s11518_s1 + $0x320] sm:$0xff]  ;;  %v6429_v12 = vld [vmem:[%s11518_s1 + $0x350] sm:$0xff] }
 0x284   :  { %1018 = vmatprep.subr.mxu0 %v12640_v13  ;;  %1087 = vmatprep.subr.mxu1 %v12641_v14  ;;  %v6435_v13 = vld [vmem:[%s11518_s1 + $0x308] sm:$0xff]  ;;  %v6441_v14 = vld [vmem:[%s11518_s1 + $0x338] sm:$0xff] }
 0x285   :  { %1019 = vmatpush1.msra.mxu0 %v12642_v16  ;;  %1088 = vmatpush1.msra.mxu1 %v12643_v17  ;;  %v6447_v16 = vld [vmem:[%s11518_s1 + $0x300] sm:$0xff]  ;;  %v6453_v17 = vld [vmem:[%s11518_s1 + $0x330] sm:$0xff] }
 0x286   :  { %1020 = vmatprep.subr.mxu0 %v12644_v18  ;;  %1089 = vmatprep.subr.mxu1 %v12645_v19  ;;  %v6459_v18 = vld [vmem:[%s11518_s1 + $0x2e8] sm:$0xff]  ;;  %v6465_v19 = vld [vmem:[%s11518_s1 + $0x318] sm:$0xff] }
 0x287   :  { %1021 = vmatpush1.msra.mxu0 %v12646_v21  ;;  %1090 = vmatpush1.msra.mxu1 %v12647_v22  ;;  %v6471_v21 = vld [vmem:[%s11518_s1 + $0x2e0] sm:$0xff]  ;;  %v6477_v22 = vld [vmem:[%s11518_s1 + $0x310] sm:$0xff] }
 0x288   :  { %1022 = vmatprep.subr.mxu0 %v12648_v23  ;;  %1091 = vmatprep.subr.mxu1 %v12649_v26  ;;  %v6483_v23 = vld [vmem:[%s11518_s1 + $0x2c8] sm:$0xff]  ;;  %v6489_v26 = vld [vmem:[%s11518_s1 + $0x2f8] sm:$0xff] }
 0x289   :  { %1023 = vmatpush1.msra.mxu0 %v12650_v27  ;;  %1092 = vmatpush1.msra.mxu1 %v12651_v29  ;;  %v6495_v27 = vld [vmem:[%s11518_s1 + $0x2c0] sm:$0xff]  ;;  %v6501_v29 = vld [vmem:[%s11518_s1 + $0x2f0] sm:$0xff] }
 0x28a   :  { %1024 = vmatprep.subr.mxu0 %v12652_v32  ;;  %1093 = vmatprep.subr.mxu1 %v12653_v33  ;;  %v6507_v32 = vld [vmem:[%s11518_s1 + $0x2a8] sm:$0xff]  ;;  %v6513_v33 = vld [vmem:[%s11518_s1 + $0x2d8] sm:$0xff] }
 0x28b   :  { %1025 = vmatpush1.msra.mxu0 %v12654_v34  ;;  %1094 = vmatpush1.msra.mxu1 %v12655_v35  ;;  %v6519_v34 = vld [vmem:[%s11518_s1 + $0x2a0] sm:$0xff]  ;;  %v6525_v35 = vld [vmem:[%s11518_s1 + $0x2d0] sm:$0xff] }
 0x28c   :  { %1026 = vmatprep.subr.mxu0 %v12656_v36  ;;  %1095 = vmatprep.subr.mxu1 %v12657_v37  ;;  %v6531_v36 = vld [vmem:[%s11518_s1 + $0x288] sm:$0xff]  ;;  %v6537_v37 = vld [vmem:[%s11518_s1 + $0x2b8] sm:$0xff] }
 0x28d   :  { %1027 = vmatpush1.msra.mxu0 %v12658_v40  ;;  %1096 = vmatpush1.msra.mxu1 %v12659_v41  ;;  %12669 = vst [vmem:[#allocation10_spill] sm:$0xff] %v6531_v36  ;;  %12670 = vst [vmem:[#allocation16_spill] sm:$0xff] %v6537_v37  ;;  %v6543_v40 = vld [vmem:[%s11518_s1 + $0x280] sm:$0xff]  ;;  %v6549_v41 = vld [vmem:[%s11518_s1 + $0x2b0] sm:$0xff] }
 0x28e   :  { %1028 = vmatprep.subr.mxu0 %v12660_v42  ;;  %1097 = vmatprep.subr.mxu1 %v12661_v44  ;;  %12671 = vst [vmem:[#allocation11_spill] sm:$0xff] %v6543_v40  ;;  %12672 = vst [vmem:[#allocation18_spill] sm:$0xff] %v6549_v41  ;;  %v6555_v42 = vld [vmem:[%s11518_s1 + $0x268] sm:$0xff]  ;;  %v6561_v44 = vld [vmem:[%s11518_s1 + $0x298] sm:$0xff] }
 0x28f   :  { %1029 = vmatpush1.msra.mxu0 %v12662_v45  ;;  %1098 = vmatpush1.msra.mxu1 %v12663_v46  ;;  %12673 = vst [vmem:[#allocation12_spill] sm:$0xff] %v6555_v42  ;;  %12674 = vst [vmem:[#allocation19_spill] sm:$0xff] %v6561_v44  ;;  %v6567_v45 = vld [vmem:[%s11518_s1 + $0x260] sm:$0xff]  ;;  %v6573_v46 = vld [vmem:[%s11518_s1 + $0x290] sm:$0xff] }
 0x290   :  { %1030 = vmatprep.subr.mxu0 %v12664_v48  ;;  %1099 = vmatprep.subr.mxu1 %v12665_v50  ;;  %12675 = vst [vmem:[#allocation13_spill] sm:$0xff] %v6567_v45  ;;  %12676 = vst [vmem:[#allocation20_spill] sm:$0xff] %v6573_v46  ;;  %v6579_v48 = vld [vmem:[%s11518_s1 + $0x248] sm:$0xff]  ;;  %v6585_v50 = vld [vmem:[%s11518_s1 + $0x278] sm:$0xff] }
 0x291   :  { %1031 = vmatpush1.msra.mxu0 %v12666_v52  ;;  %1100 = vmatpush1.msra.mxu1 %v5939_v4  ;;  %v6321_v4 = vld [vmem:[%s11518_s1 + $0x3d8] sm:$0xff]  ;;  %12677 = vst [vmem:[#allocation15_spill] sm:$0xff] %v6579_v48  ;;  %12678 = vst [vmem:[#allocation21_spill] sm:$0xff] %v6585_v50  ;;  %v6591_v52 = vld [vmem:[%s11518_s1 + $0x240] sm:$0xff] }
 0x292   :  { %1032 = vmatprep.subr.mxu0 %v12667_v6  ;;  %1101 = vmatprep.subr.mxu1 %v12668_v7  ;;  %12679 = vst [vmem:[#allocation17_spill] sm:$0xff] %v6591_v52  ;;  %v6597_v6 = vld [vmem:[%s11518_s1 + $0x270] sm:$0xff]  ;;  %v6603_v7 = vld [vmem:[%s11518_s1 + $0x228] sm:$0xff] }
 0x293   :  { %1033 = vmatpush1.msra.mxu0 %v5957_v57  ;;  %1102 = vmatpush1.msra.mxu1 %v6286_v8  ;;  %v6300_v57 = vld [vmem:[%s11518_s1 + $0x10] sm:$0xff]  ;;  %12680 = vst [vmem:[#allocation23_spill] sm:$0xff] %v6597_v6  ;;  %12681 = vst [vmem:[#allocation25_spill] sm:$0xff] %v6603_v7 }
 0x294   :  { %1034 = vmatprep.subr.mxu0 %v5964_v59  ;;  %1103 = vmatprep.subr.mxu1 %v6293_v47  ;;  %v6307_v59 = vld [vmem:[%s11518_s1 + $0x3f8] sm:$0xff] }
 0x295   :  { %1035 = vmatpush2.msra.mxu0 %v5971_v58  ;;  %1104 = vmatpush1.msra.mxu1 %v6300_v57  ;;  %v6314_v58 = vld [vmem:[%s11518_s1 + $0x3f0] sm:$0xff] }
 0x296   :  { %1036 = vmatprep.subr.mxu0 %v5978_v1  ;;  %1105 = vmatprep.subr.mxu1 %v6307_v59  ;;  %v6327_v1 = vld [vmem:[%s11518_s1 + $0x3a0] sm:$0xff] }
 0x297   :  { %1037 = vmatpush2.msra.mxu0 %v5985_v3  ;;  %1106 = vmatpush2.msra.mxu1 %v6314_v58  ;;  %v6333_v3 = vld [vmem:[%s11518_s1 + $0x3d0] sm:$0xff] }
 0x298   :  { %1038 = vmatprep.subr.mxu0 %v5992_v5  ;;  %1107 = vmatprep.subr.mxu1 %v6321_v4  ;;  %v6339_v5 = vld [vmem:[%s11518_s1 + $0x388] sm:$0xff] }
 0x299   :  { %1039 = vmatpush2.msra.mxu0 %v6327_v1  ;;  %1108 = vmatpush2.msra.mxu1 %v6333_v3 }
 0x29a   :  { %1040 = vmatprep.subr.mxu0 %v6339_v5  ;;  %1109 = vmatprep.subr.mxu1 %v6345_v53 }
 0x29b   :  { %1041 = vmatpush2.msra.mxu0 %v6351_v49  ;;  %1110 = vmatpush2.msra.mxu1 %v6357_v51 }
 0x29c   :  { %1042 = vmatprep.subr.mxu0 %v6363_v55  ;;  %1111 = vmatprep.subr.mxu1 %v6369_v56 }
 0x29d   :  { %1043 = vmatpush2.msra.mxu0 %v6375_v63  ;;  %1112 = vmatpush2.msra.mxu1 %v6381_v2 }
 0x29e   :  { %1044 = vmatprep.subr.mxu0 %v6387_v61  ;;  %1113 = vmatprep.subr.mxu1 %v6393_v38 }
 0x29f   :  { %1045 = vmatpush2.msra.mxu0 %v6399_v0  ;;  %1114 = vmatpush2.msra.mxu1 %v6405_v60 }
 0x2a0   :  { %1046 = vmatprep.subr.mxu0 %v6411_v62  ;;  %1115 = vmatprep.subr.mxu1 %v6417_v10 }
 0x2a1   :  { %1047 = vmatpush2.msra.mxu0 %v6423_v11  ;;  %1116 = vmatpush2.msra.mxu1 %v6429_v12 }
 0x2a2   :  { %1048 = vmatprep.subr.mxu0 %v6435_v13  ;;  %1117 = vmatprep.subr.mxu1 %v6441_v14 }
 0x2a3   :  { %1049 = vmatpush2.msra.mxu0 %v6447_v16  ;;  %1118 = vmatpush2.msra.mxu1 %v6453_v17 }
 0x2a4   :  { %1050 = vmatprep.subr.mxu0 %v6459_v18  ;;  %1119 = vmatprep.subr.mxu1 %v6465_v19 }
 0x2a5   :  { %1051 = vmatpush2.msra.mxu0 %v6471_v21  ;;  %1120 = vmatpush2.msra.mxu1 %v6477_v22 }
 0x2a6   :  { %1052 = vmatprep.subr.mxu0 %v6483_v23  ;;  %1121 = vmatprep.subr.mxu1 %v6489_v26 }
 0x2a7   :  { %1053 = vmatpush2.msra.mxu0 %v6495_v27  ;;  %1122 = vmatpush2.msra.mxu1 %v6501_v29 }
 0x2a8   :  { %1054 = vmatprep.subr.mxu0 %v6507_v32  ;;  %1123 = vmatprep.subr.mxu1 %v6513_v33 }
 0x2a9   :  { %1055 = vmatpush2.msra.mxu0 %v6519_v34  ;;  %1124 = vmatpush2.msra.mxu1 %v6525_v35 }
 0x2aa   :  { %1056 = vmatprep.subr.mxu0 %v6531_v36  ;;  %1125 = vmatprep.subr.mxu1 %v6537_v37 }
 0x2ab   :  { %1057 = vmatpush2.msra.mxu0 %v6543_v40  ;;  %1126 = vmatpush2.msra.mxu1 %v6549_v41 }
 0x2ac   :  { %1058 = vmatprep.subr.mxu0 %v6555_v42  ;;  %1127 = vmatprep.subr.mxu1 %v6561_v44 }
 0x2ad   :  { %1059 = vmatpush2.msra.mxu0 %v6567_v45  ;;  %1128 = vmatpush2.msra.mxu1 %v6573_v46 }
 0x2ae   :  { %1060 = vmatprep.subr.mxu0 %v6579_v48  ;;  %1129 = vmatprep.subr.mxu1 %v6585_v50  ;;  %v6609_v50 = vld [vmem:[%s11518_s1 + $0x258] sm:$0xff]  ;;  %v6642_v48 = vld [vmem:[%s11518_s1 + $0x200] sm:$0xff] }
 0x2af   :  { %1061 = vmatpush2.msra.mxu0 %v6591_v52  ;;  %1130 = vmatpush2.msra.mxu1 %v6597_v6  ;;  %12682 = vst [vmem:[#allocation27_spill] sm:$0xff] %v6609_v50  ;;  %v6615_v52 = vld [vmem:[%s11518_s1 + $0x220] sm:$0xff]  ;;  %12687 = vst [vmem:[#allocation30_spill] sm:$0xff] %v6642_v48 }
 0x2b0   :  { %1062 = vmatprep.subr.mxu0 %v6603_v7  ;;  %1131 = vmatprep.subr.mxu1 %v6609_v50  ;;  %12683 = vst [vmem:[#allocation22_spill] sm:$0xff] %v6615_v52  ;;  %v3036_v6 = vld [vmem:[%s11517_s0 + $0x4] sm:$0x3]  ;;  %v6624_v7 = vld [vmem:[%s11518_s1 + $0x250] sm:$0xff]  ;;  %v6630_v50 = vld [vmem:[%s11518_s1 + $0x208] sm:$0xff] }
 0x2b1   :  { %1063 = vmatpush2.msra.mxu0 %v6615_v52  ;;  %12684 = vst [vmem:[#allocation24_spill] sm:$0xff] %v6624_v7  ;;  %1132 = vmatpush2.msra.mxu1 %v6624_v7  ;;  %12685 = vst [vmem:[#allocation29_spill] sm:$0xff] %v6630_v50  ;;  %v6636_v52 = vld [vmem:[%s11518_s1 + $0x238] sm:$0xff]  ;;  %v6648_v7 = vld [vmem:[%s11518_s1 + $0x230] sm:$0xff] }
 0x2b2   :  { %1064 = vmatprep.subr.mxu0 %v6630_v50  ;;  %12686 = vst [vmem:[#allocation26_spill] sm:$0xff] %v6636_v52  ;;  %1133 = vmatprep.subr.mxu1 %v6636_v52  ;;  %12688 = vst [vmem:[#allocation28_spill] sm:$0xff] %v6648_v7  ;;  %v6654_v50 = vld [vmem:[%s11518_s1 + $0x218] sm:$0xff]  ;;  %v6660_v52 = vld [vmem:[%s11518_s1 + $0x210] sm:$0xff] }
 0x2b3   :  { %1065 = vmatpush2.msra.mxu0 %v6642_v48  ;;  %1134 = vmatpush2.msra.mxu1 %v6648_v7  ;;  %12689 = vst [vmem:[#allocation32_spill] sm:$0xff] %v6654_v50  ;;  %12690 = vst [vmem:[#allocation31_spill] sm:$0xff] %v6660_v52  ;;  %v6666_v48 = vld [vmem:[%s11520_s3 + $0x1e8] sm:$0xff]  ;;  %v6672_v7 = vld [vmem:[%s11520_s3 + $0x1e0] sm:$0xff] }
 0x2b4   :  { %1067 = vmatmul.mubr.f32.vlgmr.msra.gmra.mxu0 %v3036_v6  ;;  %1135 = vmatprep.subr.mxu1 %v6654_v50  ;;  %12691 = vst [vmem:[#allocation34_spill] sm:$0xff] %v6666_v48  ;;  %12692 = vst [vmem:[#allocation33_spill] sm:$0xff] %v6672_v7  ;;  %v6678_v50 = vld [vmem:[%s11520_s3 + $0x1f8] sm:$0xff] }
 0x2b5   :  { %1136 = vmatpush2.msra.mxu1 %v6660_v52  ;;  %1168 = vmatprep.subr.mxu0 %v6666_v48  ;;  %12693 = vst [vmem:[#allocation36_spill] sm:$0xff] %v6678_v50  ;;  %v6684_v52 = vld [vmem:[%s11520_s3 + $0x1c8] sm:$0xff] }
 0x2b6   :  { %1138 = vmatmul.mubr.f32.vlgmr.msra.gmra.mxu1 %v3036_v6  ;;  %1169 = vmatpush1.msra.mxu0 %v6672_v7  ;;  %12694 = vst [vmem:[#allocation35_spill] sm:$0xff] %v6684_v52  ;;  %v6690_v6 = vld [vmem:[%s11520_s3 + $0x1f0] sm:$0xff]  ;;  %v6696_v7 = vld [vmem:[%s11520_s3 + $0x1c0] sm:$0xff] }
 0x2b7   :  { %1239 = vmatprep.subr.mxu1 %v6678_v50  ;;  %1170 = vmatprep.subr.mxu0 %v6684_v52  ;;  %12695 = vst [vmem:[#allocation38_spill] sm:$0xff] %v6690_v6  ;;  %12696 = vst [vmem:[#allocation37_spill] sm:$0xff] %v6696_v7  ;;  %v6702_v50 = vld [vmem:[%s11520_s3 + $0x1d8] sm:$0xff]  ;;  %v6708_v52 = vld [vmem:[%s11520_s3 + $0x1a8] sm:$0xff] }
 0x2b8   :  { %1240 = vmatpush1.msra.mxu1 %v6690_v6  ;;  %1171 = vmatpush1.msra.mxu0 %v6696_v7  ;;  %12697 = vst [vmem:[#allocation39_spill] sm:$0xff] %v6702_v50  ;;  %12698 = vst [vmem:[#allocation40_spill] sm:$0xff] %v6708_v52  ;;  %v6714_v6 = vld [vmem:[%s11520_s3 + $0x1d0] sm:$0xff]  ;;  %v6720_v7 = vld [vmem:[%s11520_s3 + $0x1a0] sm:$0xff] }
 0x2b9   :  { %1241 = vmatprep.subr.mxu1 %v6702_v50  ;;  %1172 = vmatprep.subr.mxu0 %v6708_v52  ;;  %12699 = vst [vmem:[#allocation41_spill] sm:$0xff] %v6714_v6  ;;  %12700 = vst [vmem:[#allocation42_spill] sm:$0xff] %v6720_v7  ;;  %v6726_v50 = vld [vmem:[%s11520_s3 + $0x1b8] sm:$0xff]  ;;  %v6732_v52 = vld [vmem:[%s11520_s3 + $0x188] sm:$0xff] }
 0x2ba   :  { %1242 = vmatpush1.msra.mxu1 %v6714_v6  ;;  %1173 = vmatpush1.msra.mxu0 %v6720_v7  ;;  %12701 = vst [vmem:[#allocation43_spill] sm:$0xff] %v6726_v50  ;;  %12702 = vst [vmem:[#allocation44_spill] sm:$0xff] %v6732_v52  ;;  %v6738_v6 = vld [vmem:[%s11520_s3 + $0x1b0] sm:$0xff]  ;;  %v6744_v7 = vld [vmem:[%s11520_s3 + $0x180] sm:$0xff] }
 0x2bb   :  { %1243 = vmatprep.subr.mxu1 %v6726_v50  ;;  %1174 = vmatprep.subr.mxu0 %v6732_v52  ;;  %12703 = vst [vmem:[#allocation45_spill] sm:$0xff] %v6738_v6  ;;  %12704 = vst [vmem:[#allocation46_spill] sm:$0xff] %v6744_v7  ;;  %v6750_v50 = vld [vmem:[%s11520_s3 + $0x198] sm:$0xff]  ;;  %v6756_v52 = vld [vmem:[%s11520_s3 + $0x168] sm:$0xff] }
 0x2bc   :  { %1244 = vmatpush1.msra.mxu1 %v6738_v6  ;;  %1175 = vmatpush1.msra.mxu0 %v6744_v7  ;;  %12705 = vst [vmem:[#allocation47_spill] sm:$0xff] %v6750_v50  ;;  %12706 = vst [vmem:[#allocation48_spill] sm:$0xff] %v6756_v52  ;;  %v6762_v6 = vld [vmem:[%s11520_s3 + $0x190] sm:$0xff]  ;;  %v6768_v7 = vld [vmem:[%s11520_s3 + $0x160] sm:$0xff] }
 0x2bd   :  { %1245 = vmatprep.subr.mxu1 %v6750_v50  ;;  %1176 = vmatprep.subr.mxu0 %v6756_v52  ;;  %12707 = vst [vmem:[#allocation49_spill] sm:$0xff] %v6762_v6  ;;  %12708 = vst [vmem:[#allocation50_spill] sm:$0xff] %v6768_v7  ;;  %v6774_v50 = vld [vmem:[%s11520_s3 + $0x178] sm:$0xff]  ;;  %v6780_v52 = vld [vmem:[%s11520_s3 + $0x148] sm:$0xff] }
 0x2be   :  { %1246 = vmatpush1.msra.mxu1 %v6762_v6  ;;  %1177 = vmatpush1.msra.mxu0 %v6768_v7  ;;  %12709 = vst [vmem:[#allocation51_spill] sm:$0xff] %v6774_v50  ;;  %12710 = vst [vmem:[#allocation52_spill] sm:$0xff] %v6780_v52  ;;  %v6786_v6 = vld [vmem:[%s11520_s3 + $0x170] sm:$0xff]  ;;  %v6792_v7 = vld [vmem:[%s11520_s3 + $0x140] sm:$0xff] }
 0x2bf   :  { %1247 = vmatprep.subr.mxu1 %v6774_v50  ;;  %1178 = vmatprep.subr.mxu0 %v6780_v52  ;;  %12711 = vst [vmem:[#allocation53_spill] sm:$0xff] %v6786_v6  ;;  %12712 = vst [vmem:[#allocation54_spill] sm:$0xff] %v6792_v7  ;;  %v6798_v50 = vld [vmem:[%s11520_s3 + $0x158] sm:$0xff]  ;;  %v6804_v52 = vld [vmem:[%s11520_s3 + $0x128] sm:$0xff] }
 0x2c0   :  { %1248 = vmatpush1.msra.mxu1 %v6786_v6  ;;  %1179 = vmatpush1.msra.mxu0 %v6792_v7  ;;  %12713 = vst [vmem:[#allocation55_spill] sm:$0xff] %v6798_v50  ;;  %12714 = vst [vmem:[#allocation56_spill] sm:$0xff] %v6804_v52  ;;  %v6810_v6 = vld [vmem:[%s11520_s3 + $0x150] sm:$0xff]  ;;  %v6816_v7 = vld [vmem:[%s11520_s3 + $0x120] sm:$0xff] }
 0x2c1   :  { %1249 = vmatprep.subr.mxu1 %v6798_v50  ;;  %1180 = vmatprep.subr.mxu0 %v6804_v52  ;;  %12715 = vst [vmem:[#allocation57_spill] sm:$0xff] %v6810_v6  ;;  %12716 = vst [vmem:[#allocation58_spill] sm:$0xff] %v6816_v7  ;;  %v6822_v50 = vld [vmem:[%s11520_s3 + $0x138] sm:$0xff]  ;;  %v6828_v52 = vld [vmem:[%s11520_s3 + $0x108] sm:$0xff] }
 0x2c2   :  { %1250 = vmatpush1.msra.mxu1 %v6810_v6  ;;  %1181 = vmatpush1.msra.mxu0 %v6816_v7  ;;  %12717 = vst [vmem:[#allocation59_spill] sm:$0xff] %v6822_v50  ;;  %12718 = vst [vmem:[#allocation60_spill] sm:$0xff] %v6828_v52  ;;  %v6834_v6 = vld [vmem:[%s11520_s3 + $0x130] sm:$0xff]  ;;  %v6840_v7 = vld [vmem:[%s11520_s3 + $0x100] sm:$0xff] }
 0x2c3   :  { %1251 = vmatprep.subr.mxu1 %v6822_v50  ;;  %1182 = vmatprep.subr.mxu0 %v6828_v52  ;;  %12719 = vst [vmem:[#allocation61_spill] sm:$0xff] %v6834_v6  ;;  %12720 = vst [vmem:[#allocation62_spill] sm:$0xff] %v6840_v7  ;;  %v6846_v50 = vld [vmem:[%s11520_s3 + $0x118] sm:$0xff]  ;;  %v6852_v52 = vld [vmem:[%s11520_s3 + $0xe8] sm:$0xff] }
 0x2c4   :  { %1252 = vmatpush1.msra.mxu1 %v6834_v6  ;;  %1183 = vmatpush1.msra.mxu0 %v6840_v7  ;;  %12721 = vst [vmem:[#allocation63_spill] sm:$0xff] %v6846_v50  ;;  %12722 = vst [vmem:[#allocation64_spill] sm:$0xff] %v6852_v52  ;;  %v6858_v6 = vld [vmem:[%s11520_s3 + $0x110] sm:$0xff]  ;;  %v6864_v7 = vld [vmem:[%s11520_s3 + $0xe0] sm:$0xff] }
 0x2c5   :  { %1253 = vmatprep.subr.mxu1 %v6846_v50  ;;  %1184 = vmatprep.subr.mxu0 %v6852_v52  ;;  %12723 = vst [vmem:[#allocation65_spill] sm:$0xff] %v6858_v6  ;;  %12724 = vst [vmem:[#allocation66_spill] sm:$0xff] %v6864_v7  ;;  %v6870_v50 = vld [vmem:[%s11520_s3 + $0xf8] sm:$0xff]  ;;  %v6876_v52 = vld [vmem:[%s11520_s3 + $0xc8] sm:$0xff] }
 0x2c6   :  { %1254 = vmatpush1.msra.mxu1 %v6858_v6  ;;  %1185 = vmatpush1.msra.mxu0 %v6864_v7  ;;  %12725 = vst [vmem:[#allocation67_spill] sm:$0xff] %v6870_v50  ;;  %12726 = vst [vmem:[#allocation68_spill] sm:$0xff] %v6876_v52  ;;  %v6882_v6 = vld [vmem:[%s11520_s3 + $0xf0] sm:$0xff]  ;;  %v6888_v7 = vld [vmem:[%s11520_s3 + $0xc0] sm:$0xff] }
 0x2c7   :  { %1255 = vmatprep.subr.mxu1 %v6870_v50  ;;  %1186 = vmatprep.subr.mxu0 %v6876_v52  ;;  %12727 = vst [vmem:[#allocation69_spill] sm:$0xff] %v6882_v6  ;;  %12728 = vst [vmem:[#allocation70_spill] sm:$0xff] %v6888_v7  ;;  %v6894_v50 = vld [vmem:[%s11520_s3 + $0xd8] sm:$0xff]  ;;  %v6900_v52 = vld [vmem:[%s11520_s3 + $0xa8] sm:$0xff] }
 0x2c8   :  { %1256 = vmatpush1.msra.mxu1 %v6882_v6  ;;  %1187 = vmatpush1.msra.mxu0 %v6888_v7  ;;  %12729 = vst [vmem:[#allocation71_spill] sm:$0xff] %v6894_v50  ;;  %12730 = vst [vmem:[#allocation72_spill] sm:$0xff] %v6900_v52  ;;  %v6906_v6 = vld [vmem:[%s11520_s3 + $0xd0] sm:$0xff]  ;;  %v6912_v7 = vld [vmem:[%s11520_s3 + $0xa0] sm:$0xff] }
 0x2c9   :  { %1257 = vmatprep.subr.mxu1 %v6894_v50  ;;  %1188 = vmatprep.subr.mxu0 %v6900_v52  ;;  %12731 = vst [vmem:[#allocation73_spill] sm:$0xff] %v6906_v6  ;;  %12732 = vst [vmem:[#allocation74_spill] sm:$0xff] %v6912_v7  ;;  %v6918_v50 = vld [vmem:[%s11520_s3 + $0xb8] sm:$0xff]  ;;  %v6924_v52 = vld [vmem:[%s11520_s3 + $0x88] sm:$0xff] }
 0x2ca   :  { %1258 = vmatpush1.msra.mxu1 %v6906_v6  ;;  %1189 = vmatpush1.msra.mxu0 %v6912_v7  ;;  %12733 = vst [vmem:[#allocation75_spill] sm:$0xff] %v6918_v50  ;;  %12734 = vst [vmem:[#allocation76_spill] sm:$0xff] %v6924_v52  ;;  %v6930_v6 = vld [vmem:[%s11520_s3 + $0xb0] sm:$0xff]  ;;  %v6936_v7 = vld [vmem:[%s11520_s3 + $0x80] sm:$0xff] }
 0x2cb   :  { %1259 = vmatprep.subr.mxu1 %v6918_v50  ;;  %1190 = vmatprep.subr.mxu0 %v6924_v52  ;;  %12735 = vst [vmem:[#allocation77_spill] sm:$0xff] %v6930_v6  ;;  %12736 = vst [vmem:[#allocation78_spill] sm:$0xff] %v6936_v7  ;;  %v6942_v50 = vld [vmem:[%s11520_s3 + $0x98] sm:$0xff]  ;;  %v6948_v52 = vld [vmem:[%s11520_s3 + $0x68] sm:$0xff] }
 0x2cc   :  { %1260 = vmatpush1.msra.mxu1 %v6930_v6  ;;  %1191 = vmatpush1.msra.mxu0 %v6936_v7  ;;  %12737 = vst [vmem:[#allocation79_spill] sm:$0xff] %v6942_v50  ;;  %12738 = vst [vmem:[#allocation80_spill] sm:$0xff] %v6948_v52  ;;  %v6954_v6 = vld [vmem:[%s11520_s3 + $0x90] sm:$0xff]  ;;  %v6960_v7 = vld [vmem:[%s11520_s3 + $0x60] sm:$0xff] }
 0x2cd   :  { %1261 = vmatprep.subr.mxu1 %v6942_v50  ;;  %1192 = vmatprep.subr.mxu0 %v6948_v52  ;;  %12739 = vst [vmem:[#allocation81_spill] sm:$0xff] %v6954_v6  ;;  %12740 = vst [vmem:[#allocation82_spill] sm:$0xff] %v6960_v7  ;;  %v6966_v50 = vld [vmem:[%s11520_s3 + $0x78] sm:$0xff]  ;;  %v6972_v52 = vld [vmem:[%s11520_s3 + $0x48] sm:$0xff] }
 0x2ce   :  { %1262 = vmatpush1.msra.mxu1 %v6954_v6  ;;  %1193 = vmatpush1.msra.mxu0 %v6960_v7  ;;  %12741 = vst [vmem:[#allocation83_spill] sm:$0xff] %v6966_v50  ;;  %12742 = vst [vmem:[#allocation84_spill] sm:$0xff] %v6972_v52  ;;  %v6978_v6 = vld [vmem:[%s11520_s3 + $0x70] sm:$0xff]  ;;  %v6984_v7 = vld [vmem:[%s11520_s3 + $0x40] sm:$0xff] }
 0x2cf   :  { %1263 = vmatprep.subr.mxu1 %v6966_v50  ;;  %1194 = vmatprep.subr.mxu0 %v6972_v52  ;;  %12743 = vst [vmem:[#allocation85_spill] sm:$0xff] %v6978_v6  ;;  %12744 = vst [vmem:[#allocation86_spill] sm:$0xff] %v6984_v7  ;;  %v6990_v50 = vld [vmem:[%s11520_s3 + $0x58] sm:$0xff]  ;;  %v6996_v52 = vld [vmem:[%s11520_s3 + $0x28] sm:$0xff] }
 0x2d0   :  { %1264 = vmatpush1.msra.mxu1 %v6978_v6  ;;  %1195 = vmatpush1.msra.mxu0 %v6984_v7  ;;  %12745 = vst [vmem:[#allocation87_spill] sm:$0xff] %v6990_v50  ;;  %12746 = vst [vmem:[#allocation88_spill] sm:$0xff] %v6996_v52  ;;  %v7002_v6 = vld [vmem:[%s11520_s3 + $0x50] sm:$0xff]  ;;  %v7008_v7 = vld [vmem:[%s11520_s3 + $0x20] sm:$0xff] }
 0x2d1   :  { %1265 = vmatprep.subr.mxu1 %v6990_v50  ;;  %1196 = vmatprep.subr.mxu0 %v6996_v52  ;;  %12747 = vst [vmem:[#allocation89_spill] sm:$0xff] %v7002_v6  ;;  %12748 = vst [vmem:[#allocation90_spill] sm:$0xff] %v7008_v7  ;;  %v7014_v50 = vld [vmem:[%s11520_s3 + $0x38] sm:$0xff]  ;;  %v7020_v52 = vld [vmem:[%s11520_s3 + $0x8] sm:$0xff] }
 0x2d2   :  { %1266 = vmatpush1.msra.mxu1 %v7002_v6  ;;  %1197 = vmatpush1.msra.mxu0 %v7008_v7  ;;  %12749 = vst [vmem:[#allocation91_spill] sm:$0xff] %v7014_v50  ;;  %12750 = vst [vmem:[#allocation92_spill] sm:$0xff] %v7020_v52  ;;  %v7026_v6 = vld [vmem:[%s11520_s3 + $0x30] sm:$0xff]  ;;  %v7032_v7 = vld [vmem:[%s11520_s3] sm:$0xff] }
 0x2d3   :  { %1267 = vmatprep.subr.mxu1 %v7014_v50  ;;  %1198 = vmatprep.subr.mxu0 %v7020_v52  ;;  %12751 = vst [vmem:[#allocation93_spill] sm:$0xff] %v7026_v6  ;;  %12752 = vst [vmem:[#allocation94_spill] sm:$0xff] %v7032_v7  ;;  %v7038_v50 = vld [vmem:[%s11520_s3 + $0x18] sm:$0xff]  ;;  %v7044_v52 = vld [vmem:[%s11520_s3 + $0x3e8] sm:$0xff] }
 0x2d4   :  { %1268 = vmatpush1.msra.mxu1 %v7026_v6  ;;  %1199 = vmatpush1.msra.mxu0 %v7032_v7  ;;  %12753 = vst [vmem:[#allocation95_spill] sm:$0xff] %v7038_v50  ;;  %12754 = vst [vmem:[#allocation96_spill] sm:$0xff] %v7044_v52  ;;  %v7050_v6 = vld [vmem:[%s11520_s3 + $0x10] sm:$0xff]  ;;  %v7056_v7 = vld [vmem:[%s11520_s3 + $0x3e0] sm:$0xff] }
 0x2d5   :  { %1269 = vmatprep.subr.mxu1 %v7038_v50  ;;  %1200 = vmatprep.subr.mxu0 %v7044_v52  ;;  %12755 = vst [vmem:[#allocation97_spill] sm:$0xff] %v7050_v6  ;;  %12756 = vst [vmem:[#allocation98_spill] sm:$0xff] %v7056_v7  ;;  %v7062_v50 = vld [vmem:[%s11520_s3 + $0x3f8] sm:$0xff]  ;;  %v7068_v52 = vld [vmem:[%s11520_s3 + $0x3c8] sm:$0xff] }
 0x2d6   :  { %1270 = vmatpush1.msra.mxu1 %v7050_v6  ;;  %1201 = vmatpush2.msra.mxu0 %v7056_v7  ;;  %12757 = vst [vmem:[#allocation99_spill] sm:$0xff] %v7062_v50  ;;  %12758 = vst [vmem:[#allocation100_spill] sm:$0xff] %v7068_v52  ;;  %v7074_v6 = vld [vmem:[%s11520_s3 + $0x3f0] sm:$0xff]  ;;  %v7080_v7 = vld [vmem:[%s11520_s3 + $0x3c0] sm:$0xff] }
 0x2d7   :  { %1271 = vmatprep.subr.mxu1 %v7062_v50  ;;  %1202 = vmatprep.subr.mxu0 %v7068_v52  ;;  %12759 = vst [vmem:[#allocation101_spill] sm:$0xff] %v7074_v6  ;;  %12760 = vst [vmem:[#allocation102_spill] sm:$0xff] %v7080_v7  ;;  %v7086_v50 = vld [vmem:[%s11520_s3 + $0x3d8] sm:$0xff]  ;;  %v7092_v52 = vld [vmem:[%s11520_s3 + $0x3a8] sm:$0xff] }
 0x2d8   :  { %1272 = vmatpush2.msra.mxu1 %v7074_v6  ;;  %1203 = vmatpush2.msra.mxu0 %v7080_v7  ;;  %12761 = vst [vmem:[#allocation103_spill] sm:$0xff] %v7086_v50  ;;  %12762 = vst [vmem:[#allocation104_spill] sm:$0xff] %v7092_v52  ;;  %v7098_v6 = vld [vmem:[%s11520_s3 + $0x3d0] sm:$0xff]  ;;  %v7104_v7 = vld [vmem:[%s11520_s3 + $0x3a0] sm:$0xff] }
 0x2d9   :  { %1273 = vmatprep.subr.mxu1 %v7086_v50  ;;  %1204 = vmatprep.subr.mxu0 %v7092_v52  ;;  %12763 = vst [vmem:[#allocation105_spill] sm:$0xff] %v7098_v6  ;;  %12764 = vst [vmem:[#allocation106_spill] sm:$0xff] %v7104_v7  ;;  %v7110_v50 = vld [vmem:[%s11520_s3 + $0x3b8] sm:$0xff]  ;;  %v7116_v52 = vld [vmem:[%s11520_s3 + $0x388] sm:$0xff] }
 0x2da   :  { %1274 = vmatpush2.msra.mxu1 %v7098_v6  ;;  %1205 = vmatpush2.msra.mxu0 %v7104_v7  ;;  %12765 = vst [vmem:[#allocation107_spill] sm:$0xff] %v7110_v50  ;;  %12766 = vst [vmem:[#allocation108_spill] sm:$0xff] %v7116_v52  ;;  %v7122_v6 = vld [vmem:[%s11520_s3 + $0x3b0] sm:$0xff]  ;;  %v7128_v7 = vld [vmem:[%s11520_s3 + $0x380] sm:$0xff] }
 0x2db   :  { %1275 = vmatprep.subr.mxu1 %v7110_v50  ;;  %1206 = vmatprep.subr.mxu0 %v7116_v52  ;;  %12767 = vst [vmem:[#allocation109_spill] sm:$0xff] %v7122_v6  ;;  %12768 = vst [vmem:[#allocation110_spill] sm:$0xff] %v7128_v7  ;;  %v7134_v50 = vld [vmem:[%s11520_s3 + $0x398] sm:$0xff]  ;;  %v7140_v52 = vld [vmem:[%s11520_s3 + $0x368] sm:$0xff] }
 0x2dc   :  { %1276 = vmatpush2.msra.mxu1 %v7122_v6  ;;  %1207 = vmatpush2.msra.mxu0 %v7128_v7  ;;  %12769 = vst [vmem:[#allocation111_spill] sm:$0xff] %v7134_v50  ;;  %12770 = vst [vmem:[#allocation112_spill] sm:$0xff] %v7140_v52  ;;  %v7146_v6 = vld [vmem:[%s11520_s3 + $0x390] sm:$0xff]  ;;  %v7152_v7 = vld [vmem:[%s11520_s3 + $0x360] sm:$0xff] }
 0x2dd   :  { %1277 = vmatprep.subr.mxu1 %v7134_v50  ;;  %1208 = vmatprep.subr.mxu0 %v7140_v52  ;;  %12771 = vst [vmem:[#allocation113_spill] sm:$0xff] %v7146_v6  ;;  %12772 = vst [vmem:[#allocation114_spill] sm:$0xff] %v7152_v7  ;;  %v7158_v50 = vld [vmem:[%s11520_s3 + $0x378] sm:$0xff]  ;;  %v7164_v52 = vld [vmem:[%s11520_s3 + $0x348] sm:$0xff] }
 0x2de   :  { %1278 = vmatpush2.msra.mxu1 %v7146_v6  ;;  %1209 = vmatpush2.msra.mxu0 %v7152_v7  ;;  %12773 = vst [vmem:[#allocation115_spill] sm:$0xff] %v7158_v50  ;;  %12774 = vst [vmem:[#allocation116_spill] sm:$0xff] %v7164_v52  ;;  %v7170_v6 = vld [vmem:[%s11520_s3 + $0x370] sm:$0xff]  ;;  %v7176_v7 = vld [vmem:[%s11520_s3 + $0x340] sm:$0xff] }
 0x2df   :  { %1279 = vmatprep.subr.mxu1 %v7158_v50  ;;  %1210 = vmatprep.subr.mxu0 %v7164_v52  ;;  %12775 = vst [vmem:[#allocation117_spill] sm:$0xff] %v7170_v6  ;;  %12776 = vst [vmem:[#allocation118_spill] sm:$0xff] %v7176_v7  ;;  %v7182_v50 = vld [vmem:[%s11520_s3 + $0x358] sm:$0xff]  ;;  %v7188_v52 = vld [vmem:[%s11520_s3 + $0x328] sm:$0xff] }
 0x2e0   :  { %1280 = vmatpush2.msra.mxu1 %v7170_v6  ;;  %1211 = vmatpush2.msra.mxu0 %v7176_v7  ;;  %12777 = vst [vmem:[#allocation119_spill] sm:$0xff] %v7182_v50  ;;  %12778 = vst [vmem:[#allocation120_spill] sm:$0xff] %v7188_v52  ;;  %v7194_v6 = vld [vmem:[%s11520_s3 + $0x350] sm:$0xff]  ;;  %v7200_v7 = vld [vmem:[%s11520_s3 + $0x320] sm:$0xff] }
 0x2e1   :  { %1281 = vmatprep.subr.mxu1 %v7182_v50  ;;  %1212 = vmatprep.subr.mxu0 %v7188_v52  ;;  %12779 = vst [vmem:[#allocation121_spill] sm:$0xff] %v7194_v6  ;;  %12780 = vst [vmem:[#allocation122_spill] sm:$0xff] %v7200_v7  ;;  %v7206_v50 = vld [vmem:[%s11520_s3 + $0x338] sm:$0xff]  ;;  %v7212_v52 = vld [vmem:[%s11520_s3 + $0x308] sm:$0xff] }
 0x2e2   :  { %1282 = vmatpush2.msra.mxu1 %v7194_v6  ;;  %1213 = vmatpush2.msra.mxu0 %v7200_v7  ;;  %12781 = vst [vmem:[#allocation123_spill] sm:$0xff] %v7206_v50  ;;  %12782 = vst [vmem:[#allocation124_spill] sm:$0xff] %v7212_v52  ;;  %v7218_v6 = vld [vmem:[%s11520_s3 + $0x330] sm:$0xff]  ;;  %v7224_v7 = vld [vmem:[%s11520_s3 + $0x300] sm:$0xff] }
 0x2e3   :  { %1283 = vmatprep.subr.mxu1 %v7206_v50  ;;  %1214 = vmatprep.subr.mxu0 %v7212_v52  ;;  %12783 = vst [vmem:[#allocation125_spill] sm:$0xff] %v7218_v6  ;;  %12784 = vst [vmem:[#allocation126_spill] sm:$0xff] %v7224_v7  ;;  %v7230_v50 = vld [vmem:[%s11520_s3 + $0x318] sm:$0xff]  ;;  %v7236_v52 = vld [vmem:[%s11520_s3 + $0x2e8] sm:$0xff] }
 0x2e4   :  { %1284 = vmatpush2.msra.mxu1 %v7218_v6  ;;  %1215 = vmatpush2.msra.mxu0 %v7224_v7  ;;  %12785 = vst [vmem:[#allocation127_spill] sm:$0xff] %v7230_v50  ;;  %12786 = vst [vmem:[#allocation128_spill] sm:$0xff] %v7236_v52  ;;  %v7242_v6 = vld [vmem:[%s11520_s3 + $0x310] sm:$0xff]  ;;  %v7248_v7 = vld [vmem:[%s11520_s3 + $0x2e0] sm:$0xff] }
 0x2e5   :  { %1285 = vmatprep.subr.mxu1 %v7230_v50  ;;  %1216 = vmatprep.subr.mxu0 %v7236_v52  ;;  %12787 = vst [vmem:[#allocation129_spill] sm:$0xff] %v7242_v6  ;;  %12788 = vst [vmem:[#allocation130_spill] sm:$0xff] %v7248_v7  ;;  %v7254_v50 = vld [vmem:[%s11520_s3 + $0x2f8] sm:$0xff]  ;;  %v7260_v52 = vld [vmem:[%s11520_s3 + $0x2c8] sm:$0xff] }
 0x2e6   :  { %1286 = vmatpush2.msra.mxu1 %v7242_v6  ;;  %1217 = vmatpush2.msra.mxu0 %v7248_v7  ;;  %12789 = vst [vmem:[#allocation131_spill] sm:$0xff] %v7254_v50  ;;  %12790 = vst [vmem:[#allocation132_spill] sm:$0xff] %v7260_v52  ;;  %v7266_v6 = vld [vmem:[%s11520_s3 + $0x2f0] sm:$0xff]  ;;  %v7272_v7 = vld [vmem:[%s11520_s3 + $0x2c0] sm:$0xff] }
 0x2e7   :  { %1287 = vmatprep.subr.mxu1 %v7254_v50  ;;  %1218 = vmatprep.subr.mxu0 %v7260_v52  ;;  %12791 = vst [vmem:[#allocation133_spill] sm:$0xff] %v7266_v6  ;;  %12792 = vst [vmem:[#allocation134_spill] sm:$0xff] %v7272_v7  ;;  %v7278_v50 = vld [vmem:[%s11520_s3 + $0x2d8] sm:$0xff]  ;;  %v7284_v52 = vld [vmem:[%s11520_s3 + $0x2a8] sm:$0xff] }
 0x2e8   :  { %1288 = vmatpush2.msra.mxu1 %v7266_v6  ;;  %1219 = vmatpush2.msra.mxu0 %v7272_v7  ;;  %12793 = vst [vmem:[#allocation135_spill] sm:$0xff] %v7278_v50  ;;  %12794 = vst [vmem:[#allocation136_spill] sm:$0xff] %v7284_v52  ;;  %v7290_v6 = vld [vmem:[%s11520_s3 + $0x2d0] sm:$0xff]  ;;  %v7296_v7 = vld [vmem:[%s11520_s3 + $0x2a0] sm:$0xff] }
 0x2e9   :  { %1289 = vmatprep.subr.mxu1 %v7278_v50  ;;  %1220 = vmatprep.subr.mxu0 %v7284_v52  ;;  %12795 = vst [vmem:[#allocation137_spill] sm:$0xff] %v7290_v6  ;;  %12796 = vst [vmem:[#allocation138_spill] sm:$0xff] %v7296_v7  ;;  %v7302_v50 = vld [vmem:[%s11520_s3 + $0x2b8] sm:$0xff]  ;;  %v7308_v52 = vld [vmem:[%s11520_s3 + $0x288] sm:$0xff] }
 0x2ea   :  { %1290 = vmatpush2.msra.mxu1 %v7290_v6  ;;  %1221 = vmatpush2.msra.mxu0 %v7296_v7  ;;  %12797 = vst [vmem:[#allocation139_spill] sm:$0xff] %v7302_v50  ;;  %12798 = vst [vmem:[#allocation140_spill] sm:$0xff] %v7308_v52  ;;  %v7314_v6 = vld [vmem:[%s11520_s3 + $0x2b0] sm:$0xff]  ;;  %v7320_v7 = vld [vmem:[%s11520_s3 + $0x280] sm:$0xff] }
 0x2eb   :  { %1291 = vmatprep.subr.mxu1 %v7302_v50  ;;  %1222 = vmatprep.subr.mxu0 %v7308_v52  ;;  %12799 = vst [vmem:[#allocation141_spill] sm:$0xff] %v7314_v6  ;;  %12800 = vst [vmem:[#allocation142_spill] sm:$0xff] %v7320_v7  ;;  %v7326_v50 = vld [vmem:[%s11520_s3 + $0x298] sm:$0xff]  ;;  %v7332_v52 = vld [vmem:[%s11520_s3 + $0x268] sm:$0xff] }
 0x2ec   :  { %1292 = vmatpush2.msra.mxu1 %v7314_v6  ;;  %1223 = vmatpush2.msra.mxu0 %v7320_v7  ;;  %12801 = vst [vmem:[#allocation143_spill] sm:$0xff] %v7326_v50  ;;  %12802 = vst [vmem:[#allocation144_spill] sm:$0xff] %v7332_v52  ;;  %v7338_v6 = vld [vmem:[%s11520_s3 + $0x290] sm:$0xff]  ;;  %v7344_v7 = vld [vmem:[%s11520_s3 + $0x260] sm:$0xff] }
 0x2ed   :  { %1293 = vmatprep.subr.mxu1 %v7326_v50  ;;  %1224 = vmatprep.subr.mxu0 %v7332_v52  ;;  %12803 = vst [vmem:[#allocation145_spill] sm:$0xff] %v7338_v6  ;;  %12804 = vst [vmem:[#allocation146_spill] sm:$0xff] %v7344_v7  ;;  %v7350_v50 = vld [vmem:[%s11520_s3 + $0x278] sm:$0xff]  ;;  %v7356_v52 = vld [vmem:[%s11520_s3 + $0x248] sm:$0xff] }
 0x2ee   :  { %1294 = vmatpush2.msra.mxu1 %v7338_v6  ;;  %1225 = vmatpush2.msra.mxu0 %v7344_v7  ;;  %12805 = vst [vmem:[#allocation147_spill] sm:$0xff] %v7350_v50  ;;  %12806 = vst [vmem:[#allocation148_spill] sm:$0xff] %v7356_v52  ;;  %v7362_v6 = vld [vmem:[%s11520_s3 + $0x270] sm:$0xff]  ;;  %v7368_v7 = vld [vmem:[%s11520_s3 + $0x240] sm:$0xff] }
 0x2ef   :  { %1295 = vmatprep.subr.mxu1 %v7350_v50  ;;  %1226 = vmatprep.subr.mxu0 %v7356_v52  ;;  %12807 = vst [vmem:[#allocation149_spill] sm:$0xff] %v7362_v6  ;;  %12808 = vst [vmem:[#allocation150_spill] sm:$0xff] %v7368_v7  ;;  %v7374_v50 = vld [vmem:[%s11520_s3 + $0x258] sm:$0xff]  ;;  %v7380_v52 = vld [vmem:[%s11520_s3 + $0x228] sm:$0xff] }
 0x2f0   :  { %1296 = vmatpush2.msra.mxu1 %v7362_v6  ;;  %1227 = vmatpush2.msra.mxu0 %v7368_v7  ;;  %12809 = vst [vmem:[#allocation151_spill] sm:$0xff] %v7374_v50  ;;  %12810 = vst [vmem:[#allocation153_spill] sm:$0xff] %v7380_v52  ;;  %v7386_v6 = vld [vmem:[%s11520_s3 + $0x250] sm:$0xff]  ;;  %v7392_v7 = vld [vmem:[%s11520_s3 + $0x220] sm:$0xff] }
 0x2f1   :  { %1297 = vmatprep.subr.mxu1 %v7374_v50  ;;  %1228 = vmatprep.subr.mxu0 %v7380_v52  ;;  %12811 = vst [vmem:[#allocation152_spill] sm:$0xff] %v7386_v6  ;;  %12812 = vst [vmem:[#allocation154_spill] sm:$0xff] %v7392_v7  ;;  %v7398_v50 = vld [vmem:[%s11520_s3 + $0x238] sm:$0xff]  ;;  %v7404_v52 = vld [vmem:[%s11520_s3 + $0x208] sm:$0xff] }
 0x2f2   :  { %1298 = vmatpush2.msra.mxu1 %v7386_v6  ;;  %1229 = vmatpush2.msra.mxu0 %v7392_v7  ;;  %12813 = vst [vmem:[#allocation155_spill] sm:$0xff] %v7398_v50  ;;  %12814 = vst [vmem:[#allocation156_spill] sm:$0xff] %v7404_v52  ;;  %v7410_v6 = vld [vmem:[%s11520_s3 + $0x230] sm:$0xff]  ;;  %v7416_v7 = vld [vmem:[%s11520_s3 + $0x200] sm:$0xff] }
 0x2f3   :  { %1299 = vmatprep.subr.mxu1 %v7398_v50  ;;  %1230 = vmatprep.subr.mxu0 %v7404_v52  ;;  %12815 = vst [vmem:[#allocation157_spill] sm:$0xff] %v7410_v6  ;;  %12816 = vst [vmem:[#allocation158_spill] sm:$0xff] %v7416_v7  ;;  %v7422_v50 = vld [vmem:[%s11520_s3 + $0x218] sm:$0xff]  ;;  %v7428_v52 = vld [vmem:[%s11518_s1 + $0x1e8] sm:$0xff] }
 0x2f4   :  { %1300 = vmatpush2.msra.mxu1 %v7410_v6  ;;  %1231 = vmatpush2.msra.mxu0 %v7416_v7  ;;  %12817 = vst [vmem:[#allocation159_spill] sm:$0xff] %v7422_v50  ;;  %12818 = vst [vmem:[#allocation160_spill] sm:$0xff] %v7428_v52  ;;  %v7434_v6 = vld [vmem:[%s11520_s3 + $0x210] sm:$0xff] }
 0x2f5   :  { %1301 = vmatprep.subr.mxu1 %v7422_v50  ;;  %1336 = vmatprep.subr.mxu0 %v7428_v52  ;;  %12819 = vst [vmem:[#allocation161_spill] sm:$0xff] %v7434_v6 }
 0x2f6   :  { %1302 = vmatpush2.msra.mxu1 %v7434_v6 }
 0x2f7   :  { %1407 = vmatprep.subr.mxu1 %v6187_v24 }
 0x334   :  { %v900_v7 = vpop.f32.mrf.mxu0  ;;  %v971_v52 = vpop.f32.mrf.mxu1 }
 0x335   :  { %v901_v48 = vadd.f32 %v900_v7, %v6195_v28  ;;  %v972_v42 = vadd.f32 %v971_v52, %v6205_v39 }
 0x336   :  { %v902_v50 = vpop.f32.mrf.mxu0  ;;  %v973_v41 = vpop.f32.mrf.mxu1 }
 0x337   :  { %v3033_v46 = vmul.f32 -1.442695, %v901_v48  ;;  %v903_v45 = vadd.f32 %v902_v50, %v6199_v30  ;;  %v3035_v40 = vmul.f32 -1.442695, %v972_v42  ;;  %v974_v6 = vadd.f32 %v973_v41, %v6210_v43 }
 0x339   :  { %3128 = vpow2.f32 %v3033_v46  ;;  %v3034_v44 = vmul.f32 -1.442695, %v903_v45 }
 0x33b   :  { %3130 = vpow2.f32 %v3034_v44 }
 0x33c   :  { %3132 = vpow2.f32 %v3035_v40 }
 0x346   :  { %v3129_v37 = vpop.eup %3128 }
 0x347   :  { %v985_v36 = vadd.f32 1.0, %v3129_v37 }
 0x348   :  { %v3131_v24 = vpop.eup %3130 }
 0x349   :  { %3134 = vrcp.f32 %v985_v36  ;;  %v986_v7 = vadd.f32 1.0, %v3131_v24  ;;  %v3133_v48 = vpop.eup %3132 }
 0x34a   :  { %3136 = vtanh.f32 %v974_v6  ;;  %v987_v44 = vadd.f32 1.0, %v3133_v48 }
 0x34b   :  { %3138 = vrcp.f32 %v986_v7 }
 0x34c   :  { %3140 = vrcp.f32 %v987_v44 }
 0x356   :  { %v3135_v50 = vpop.eup %3134 }
 0x357   :  { %v3137_v46 = vpop.eup %3136 }
 0x358   :  { %v3139_v45 = vpop.eup %3138  ;;  %v996_v52 = vmul.f32 %v3137_v46, %v3135_v50 }
 0x359   :  { %v995_v30 = vmul.f32 %v3139_v45, %v6213_v15  ;;  %v3141_v37 = vpop.eup %3140 }
 0x35b   :  { %v7443_v39 = vadd.f32 %v996_v52, %v995_v30 }
 0x35d   :  { %3142 = vtanh.f32 %v7443_v39 }
 0x36a   :  { %v3143_v41 = vpop.eup %3142 }
 0x36b   :  { %v999_v40 = vmul.f32 %v3143_v41, %v3141_v37 }
 0x36d   :  { %1232 = vmatprep.mubr.f32.mxu0 %v999_v40  ;;  %1303 = vmatprep.mubr.f32.mxu1 %v999_v40 }
 0x374   :  { %v1068_v36 = vpop.f32.mrf.mxu0 }
 0x375   :  { %v1069_v42 = vadd.f32 %v1068_v36, %v12621_v20 }
 0x376   :  { %v1070_v6 = vpop.f32.mrf.mxu0  ;;  %v1139_v30 = vpop.f32.mrf.mxu1 }
 0x377   :  { %v3037_v24 = vmul.f32 -1.442695, %v1069_v42  ;;  %v1071_v7 = vadd.f32 %v1070_v6, %v12622_v25  ;;  %v1140_v48 = vadd.f32 %v1139_v30, %v12623_v31 }
 0x378   :  { %v1141_v50 = vpop.f32.mrf.mxu1 }
 0x379   :  { %3144 = vpow2.f32 %v3037_v24  ;;  %v3038_v15 = vmul.f32 -1.442695, %v1071_v7  ;;  %v3039_v46 = vmul.f32 -1.442695, %v1140_v48  ;;  %v1142_v45 = vadd.f32 %v1141_v50, %v5600_v9 }
 0x37b   :  { %3146 = vpow2.f32 %v3038_v15 }
 0x37c   :  { %3148 = vpow2.f32 %v3039_v46 }
 0x37d   :  { %3150 = vtanh.f32 %v1142_v45  ;;  %v7457_v45 = vld [vmem:[%s11518_s1 + $0x1e0] sm:$0xff] }
 0x386   :  { %v3145_v44 = vpop.eup %3144 }
 0x387   :  { %v1153_v52 = vadd.f32 1.0, %v3145_v44  ;;  %v7469_v44 = vld [vmem:[%s11518_s1 + $0x1c0] sm:$0xff] }
 0x388   :  { %v3147_v37 = vpop.eup %3146 }
 0x389   :  { %3152 = vrcp.f32 %v1153_v52  ;;  %v1154_v41 = vadd.f32 1.0, %v3147_v37  ;;  %v3149_v40 = vpop.eup %3148  ;;  %v7475_v52 = vld [vmem:[%s11518_s1 + $0x1f0] sm:$0xff]  ;;  %v7481_v37 = vld [vmem:[%s11518_s1 + $0x1a8] sm:$0xff] }
 0x38a   :  { %v3151_v36 = vpop.eup %3150  ;;  %v1155_v24 = vadd.f32 1.0, %v3149_v40  ;;  %v7493_v40 = vld [vmem:[%s11518_s1 + $0x1a0] sm:$0xff] }
 0x38b   :  { %3154 = vrcp.f32 %v1154_v41  ;;  %v7487_v41 = vld [vmem:[%s11518_s1 + $0x1d8] sm:$0xff] }
 0x38c   :  { %3156 = vrcp.f32 %v1155_v24  ;;  %v7517_v24 = vld [vmem:[%s11518_s1 + $0x180] sm:$0xff] }
 0x396   :  { %v3153_v42 = vpop.eup %3152 }
 0x397   :  { %v1164_v15 = vmul.f32 %v3153_v42, %v3151_v36  ;;  %v7499_v36 = vld [vmem:[%s11518_s1 + $0x1d0] sm:$0xff]  ;;  %v7505_v42 = vld [vmem:[%s11518_s1 + $0x188] sm:$0xff] }
 0x398   :  { %v3155_v6 = vpop.eup %3154 }
 0x399   :  { %v1163_v7 = vmul.f32 %v3155_v6, %v6221_v54  ;;  %v3157_v48 = vpop.eup %3156  ;;  %v7463_v54 = vld [vmem:[%s11518_s1 + $0x1c8] sm:$0xff]  ;;  %v7511_v6 = vld [vmem:[%s11518_s1 + $0x1b8] sm:$0xff] }
 0x39b   :  { %v7451_v30 = vadd.f32 %v1164_v15, %v1163_v7  ;;  %v7523_v7 = vld [vmem:[%s11518_s1 + $0x1b0] sm:$0xff]  ;;  %v7529_v15 = vld [vmem:[%s11518_s1 + $0x168] sm:$0xff] }
 0x39c   :  { %12820 = vst [vmem:[#allocation162_spill] sm:$0xff] %v7529_v15 }
 0x39d   :  { %3158 = vtanh.f32 %v7451_v30 }
 0x3aa   :  { %v3159_v50 = vpop.eup %3158 }
 0x3ab   :  { %v1167_v46 = vmul.f32 %v3159_v50, %v3157_v48  ;;  %v7535_v48 = vld [vmem:[%s11518_s1 + $0x198] sm:$0xff]  ;;  %v7541_v50 = vld [vmem:[%s11518_s1 + $0x160] sm:$0xff] }
 0x3ac   :  { %12821 = vst [vmem:[#allocation163_spill] sm:$0xff] %v7535_v48  ;;  %12822 = vst [vmem:[#allocation164_spill] sm:$0xff] %v7541_v50 }
 0x3ad   :  { %1233 = vmatmul.mubr.f32.vlgmr.msra.gmra.mxu0 %v1167_v46  ;;  %1304 = vmatmul.mubr.f32.vlgmr.msra.gmra.mxu1 %v1167_v46 }
 0x3ae   :  { %1337 = vmatpush1.msra.mxu0 %v7457_v45  ;;  %1400 = vmatprep.mubr.f32.mxu0 %v1167_v46 }
 0x3af   :  { %1338 = vmatprep.subr.mxu0 %v7463_v54  ;;  %1471 = vmatprep.mubr.f32.mxu1 %v1167_v46  ;;  %v7547_v46 = vld [vmem:[%s11518_s1 + $0x190] sm:$0xff] }
 0x3b0   :  { %1339 = vmatpush1.msra.mxu0 %v7469_v44  ;;  %1408 = vmatpush1.msra.mxu1 %v7475_v52  ;;  %12823 = vst [vmem:[#allocation165_spill] sm:$0xff] %v7547_v46 }
 0x3b1   :  { %1340 = vmatprep.subr.mxu0 %v7481_v37  ;;  %1409 = vmatprep.subr.mxu1 %v7487_v41 }
 0x3b2   :  { %1341 = vmatpush1.msra.mxu0 %v7493_v40  ;;  %1410 = vmatpush1.msra.mxu1 %v7499_v36 }
 0x3b3   :  { %1342 = vmatprep.subr.mxu0 %v7505_v42  ;;  %1411 = vmatprep.subr.mxu1 %v7511_v6 }
 0x3b4   :  { %1343 = vmatpush1.msra.mxu0 %v7517_v24  ;;  %1412 = vmatpush1.msra.mxu1 %v7523_v7 }
 0x3b5   :  { %1344 = vmatprep.subr.mxu0 %v7529_v15  ;;  %1413 = vmatprep.subr.mxu1 %v7535_v48  ;;  %v7553_v15 = vld [vmem:[%s11518_s1 + $0x148] sm:$0xff]  ;;  %v7559_v48 = vld [vmem:[%s11518_s1 + $0x178] sm:$0xff] }
 0x3b6   :  { %1345 = vmatpush1.msra.mxu0 %v7541_v50  ;;  %1414 = vmatpush1.msra.mxu1 %v7547_v46  ;;  %12824 = vst [vmem:[#allocation166_spill] sm:$0xff] %v7553_v15  ;;  %12825 = vst [vmem:[#allocation167_spill] sm:$0xff] %v7559_v48  ;;  %v7565_v50 = vld [vmem:[%s11518_s1 + $0x140] sm:$0xff]  ;;  %v7571_v46 = vld [vmem:[%s11518_s1 + $0x170] sm:$0xff] }
 0x3b7   :  { %1346 = vmatprep.subr.mxu0 %v7553_v15  ;;  %1415 = vmatprep.subr.mxu1 %v7559_v48  ;;  %12826 = vst [vmem:[#allocation168_spill] sm:$0xff] %v7565_v50  ;;  %12827 = vst [vmem:[#allocation169_spill] sm:$0xff] %v7571_v46  ;;  %v7577_v15 = vld [vmem:[%s11518_s1 + $0x128] sm:$0xff]  ;;  %v7583_v48 = vld [vmem:[%s11518_s1 + $0x158] sm:$0xff] }
 0x3b8   :  { %1347 = vmatpush1.msra.mxu0 %v7565_v50  ;;  %1416 = vmatpush1.msra.mxu1 %v7571_v46  ;;  %12828 = vst [vmem:[#allocation170_spill] sm:$0xff] %v7577_v15  ;;  %12829 = vst [vmem:[#allocation171_spill] sm:$0xff] %v7583_v48  ;;  %v7589_v50 = vld [vmem:[%s11518_s1 + $0x120] sm:$0xff]  ;;  %v7595_v46 = vld [vmem:[%s11518_s1 + $0x150] sm:$0xff] }
 0x3b9   :  { %1348 = vmatprep.subr.mxu0 %v7577_v15  ;;  %1417 = vmatprep.subr.mxu1 %v7583_v48  ;;  %12830 = vst [vmem:[#allocation172_spill] sm:$0xff] %v7589_v50  ;;  %12831 = vst [vmem:[#allocation173_spill] sm:$0xff] %v7595_v46  ;;  %v7601_v15 = vld [vmem:[%s11518_s1 + $0x108] sm:$0xff]  ;;  %v7607_v48 = vld [vmem:[%s11518_s1 + $0x138] sm:$0xff] }
 0x3ba   :  { %1349 = vmatpush1.msra.mxu0 %v7589_v50  ;;  %1418 = vmatpush1.msra.mxu1 %v7595_v46  ;;  %12832 = vst [vmem:[#allocation174_spill] sm:$0xff] %v7601_v15  ;;  %12833 = vst [vmem:[#allocation175_spill] sm:$0xff] %v7607_v48  ;;  %v7613_v50 = vld [vmem:[%s11518_s1 + $0x100] sm:$0xff]  ;;  %v7619_v46 = vld [vmem:[%s11518_s1 + $0x130] sm:$0xff] }
 0x3bb   :  { %1350 = vmatprep.subr.mxu0 %v7601_v15  ;;  %1419 = vmatprep.subr.mxu1 %v7607_v48  ;;  %12834 = vst [vmem:[#allocation176_spill] sm:$0xff] %v7613_v50  ;;  %12835 = vst [vmem:[#allocation177_spill] sm:$0xff] %v7619_v46  ;;  %v7625_v15 = vld [vmem:[%s11518_s1 + $0xe8] sm:$0xff]  ;;  %v7631_v48 = vld [vmem:[%s11518_s1 + $0x118] sm:$0xff] }
 0x3bc   :  { %1351 = vmatpush1.msra.mxu0 %v7613_v50  ;;  %1420 = vmatpush1.msra.mxu1 %v7619_v46  ;;  %12836 = vst [vmem:[#allocation178_spill] sm:$0xff] %v7625_v15  ;;  %12837 = vst [vmem:[#allocation179_spill] sm:$0xff] %v7631_v48  ;;  %v7637_v50 = vld [vmem:[%s11518_s1 + $0xe0] sm:$0xff]  ;;  %v7643_v46 = vld [vmem:[%s11518_s1 + $0x110] sm:$0xff] }
 0x3bd   :  { %1352 = vmatprep.subr.mxu0 %v7625_v15  ;;  %1421 = vmatprep.subr.mxu1 %v7631_v48  ;;  %12838 = vst [vmem:[#allocation180_spill] sm:$0xff] %v7637_v50  ;;  %12839 = vst [vmem:[#allocation181_spill] sm:$0xff] %v7643_v46  ;;  %v7649_v15 = vld [vmem:[%s11518_s1 + $0xc8] sm:$0xff]  ;;  %v7655_v48 = vld [vmem:[%s11518_s1 + $0xf8] sm:$0xff] }
 0x3be   :  { %1353 = vmatpush1.msra.mxu0 %v7637_v50  ;;  %1422 = vmatpush1.msra.mxu1 %v7643_v46  ;;  %12840 = vst [vmem:[#allocation182_spill] sm:$0xff] %v7649_v15  ;;  %12841 = vst [vmem:[#allocation183_spill] sm:$0xff] %v7655_v48  ;;  %v7661_v50 = vld [vmem:[%s11518_s1 + $0xc0] sm:$0xff]  ;;  %v7667_v46 = vld [vmem:[%s11518_s1 + $0xf0] sm:$0xff] }
 0x3bf   :  { %1354 = vmatprep.subr.mxu0 %v7649_v15  ;;  %1423 = vmatprep.subr.mxu1 %v7655_v48  ;;  %12842 = vst [vmem:[#allocation184_spill] sm:$0xff] %v7661_v50  ;;  %12843 = vst [vmem:[#allocation185_spill] sm:$0xff] %v7667_v46  ;;  %v7673_v15 = vld [vmem:[%s11518_s1 + $0xa8] sm:$0xff]  ;;  %v7679_v48 = vld [vmem:[%s11518_s1 + $0xd8] sm:$0xff] }
 0x3c0   :  { %1355 = vmatpush1.msra.mxu0 %v7661_v50  ;;  %1424 = vmatpush1.msra.mxu1 %v7667_v46  ;;  %12844 = vst [vmem:[#allocation186_spill] sm:$0xff] %v7673_v15  ;;  %12845 = vst [vmem:[#allocation187_spill] sm:$0xff] %v7679_v48  ;;  %v7685_v50 = vld [vmem:[%s11518_s1 + $0xa0] sm:$0xff]  ;;  %v7691_v46 = vld [vmem:[%s11518_s1 + $0xd0] sm:$0xff] }
 0x3c1   :  { %1356 = vmatprep.subr.mxu0 %v7673_v15  ;;  %1425 = vmatprep.subr.mxu1 %v7679_v48  ;;  %12846 = vst [vmem:[#allocation188_spill] sm:$0xff] %v7685_v50  ;;  %12847 = vst [vmem:[#allocation189_spill] sm:$0xff] %v7691_v46  ;;  %v7697_v15 = vld [vmem:[%s11518_s1 + $0x88] sm:$0xff]  ;;  %v7703_v48 = vld [vmem:[%s11518_s1 + $0xb8] sm:$0xff] }
 0x3c2   :  { %1357 = vmatpush1.msra.mxu0 %v7685_v50  ;;  %1426 = vmatpush1.msra.mxu1 %v7691_v46  ;;  %12848 = vst [vmem:[#allocation190_spill] sm:$0xff] %v7697_v15  ;;  %12849 = vst [vmem:[#allocation191_spill] sm:$0xff] %v7703_v48  ;;  %v7709_v50 = vld [vmem:[%s11518_s1 + $0x80] sm:$0xff]  ;;  %v7715_v46 = vld [vmem:[%s11518_s1 + $0xb0] sm:$0xff] }
 0x3c3   :  { %1358 = vmatprep.subr.mxu0 %v7697_v15  ;;  %1427 = vmatprep.subr.mxu1 %v7703_v48  ;;  %12850 = vst [vmem:[#allocation192_spill] sm:$0xff] %v7709_v50  ;;  %12851 = vst [vmem:[#allocation193_spill] sm:$0xff] %v7715_v46  ;;  %v7721_v15 = vld [vmem:[%s11518_s1 + $0x68] sm:$0xff]  ;;  %v7727_v48 = vld [vmem:[%s11518_s1 + $0x98] sm:$0xff] }
 0x3c4   :  { %1359 = vmatpush1.msra.mxu0 %v7709_v50  ;;  %1428 = vmatpush1.msra.mxu1 %v7715_v46  ;;  %12852 = vst [vmem:[#allocation194_spill] sm:$0xff] %v7721_v15  ;;  %12853 = vst [vmem:[#allocation195_spill] sm:$0xff] %v7727_v48  ;;  %v7733_v50 = vld [vmem:[%s11518_s1 + $0x60] sm:$0xff]  ;;  %v7739_v46 = vld [vmem:[%s11518_s1 + $0x90] sm:$0xff] }
 0x3c5   :  { %1360 = vmatprep.subr.mxu0 %v7721_v15  ;;  %1429 = vmatprep.subr.mxu1 %v7727_v48  ;;  %12854 = vst [vmem:[#allocation196_spill] sm:$0xff] %v7733_v50  ;;  %12855 = vst [vmem:[#allocation197_spill] sm:$0xff] %v7739_v46  ;;  %v7745_v15 = vld [vmem:[%s11518_s1 + $0x48] sm:$0xff]  ;;  %v7751_v48 = vld [vmem:[%s11518_s1 + $0x78] sm:$0xff] }
 0x3c6   :  { %1361 = vmatpush1.msra.mxu0 %v7733_v50  ;;  %1430 = vmatpush1.msra.mxu1 %v7739_v46  ;;  %12856 = vst [vmem:[#allocation198_spill] sm:$0xff] %v7745_v15  ;;  %12857 = vst [vmem:[#allocation199_spill] sm:$0xff] %v7751_v48  ;;  %v7757_v50 = vld [vmem:[%s11518_s1 + $0x40] sm:$0xff]  ;;  %v7763_v46 = vld [vmem:[%s11518_s1 + $0x70] sm:$0xff] }
 0x3c7   :  { %1362 = vmatprep.subr.mxu0 %v7745_v15  ;;  %1431 = vmatprep.subr.mxu1 %v7751_v48  ;;  %12858 = vst [vmem:[#allocation200_spill] sm:$0xff] %v7757_v50  ;;  %12859 = vst [vmem:[#allocation201_spill] sm:$0xff] %v7763_v46  ;;  %v7769_v15 = vld [vmem:[%s11518_s1 + $0x28] sm:$0xff]  ;;  %v7775_v48 = vld [vmem:[%s11518_s1 + $0x58] sm:$0xff] }
 0x3c8   :  { %1363 = vmatpush1.msra.mxu0 %v7757_v50  ;;  %1432 = vmatpush1.msra.mxu1 %v7763_v46  ;;  %12860 = vst [vmem:[#allocation202_spill] sm:$0xff] %v7769_v15  ;;  %12861 = vst [vmem:[#allocation203_spill] sm:$0xff] %v7775_v48  ;;  %v7781_v50 = vld [vmem:[%s11518_s1 + $0x20] sm:$0xff]  ;;  %v7787_v46 = vld [vmem:[%s11518_s1 + $0x50] sm:$0xff] }
 0x3c9   :  { %1364 = vmatprep.subr.mxu0 %v7769_v15  ;;  %1433 = vmatprep.subr.mxu1 %v7775_v48  ;;  %12862 = vst [vmem:[#allocation204_spill] sm:$0xff] %v7781_v50  ;;  %v7793_v15 = vld [vmem:[%s11518_s1 + $0x8] sm:$0xff]  ;;  %v7799_v48 = vld [vmem:[%s11518_s1 + $0x38] sm:$0xff] }
 0x3ca   :  { %1365 = vmatpush1.msra.mxu0 %v7781_v50  ;;  %1434 = vmatpush1.msra.mxu1 %v7787_v46  ;;  %12863 = vst [vmem:[#allocation205_spill] sm:$0xff] %v7793_v15  ;;  %12864 = vst [vmem:[#allocation206_spill] sm:$0xff] %v7799_v48  ;;  %v7805_v50 = vld [vmem:[%s11518_s1] sm:$0xff] }
 0x3cb   :  { %1366 = vmatprep.subr.mxu0 %v7793_v15  ;;  %1435 = vmatprep.subr.mxu1 %v7799_v48  ;;  %v7812_v15 = vld [vmem:[%s11518_s1 + $0x3e8] sm:$0xff]  ;;  %v7819_v48 = vld [vmem:[%s11518_s1 + $0x3e0] sm:$0xff] }
 0x3cc   :  { %1367 = vmatpush1.msra.mxu0 %v7805_v50  ;;  %1436 = vmatpush1.msra.mxu1 %v6286_v8  ;;  %v7826_v8 = vld [vmem:[%s11518_s1 + $0x3c8] sm:$0xff] }
 0x3cd   :  { %1368 = vmatprep.subr.mxu0 %v7812_v15  ;;  %1437 = vmatprep.subr.mxu1 %v6293_v47  ;;  %v7833_v47 = vld [vmem:[%s11518_s1 + $0x3c0] sm:$0xff] }
 0x3ce   :  { %1369 = vmatpush2.msra.mxu0 %v7819_v48  ;;  %1438 = vmatpush1.msra.mxu1 %v6300_v57  ;;  %v7840_v57 = vld [vmem:[%s11518_s1 + $0x3a8] sm:$0xff] }
 0x3cf   :  { %1370 = vmatprep.subr.mxu0 %v7826_v8  ;;  %1439 = vmatprep.subr.mxu1 %v6307_v59  ;;  %v12865_v59 = vld [vmem:[#allocation10_spill] sm:$0xff] }
 0x3d0   :  { %1371 = vmatpush2.msra.mxu0 %v7833_v47  ;;  %1440 = vmatpush2.msra.mxu1 %v6314_v58  ;;  %v12866_v58 = vld [vmem:[#allocation16_spill] sm:$0xff] }
 0x3d1   :  { %1372 = vmatprep.subr.mxu0 %v7840_v57  ;;  %1441 = vmatprep.subr.mxu1 %v6321_v4  ;;  %v12867_v4 = vld [vmem:[#allocation11_spill] sm:$0xff] }
 0x3d2   :  { %1373 = vmatpush2.msra.mxu0 %v6327_v1  ;;  %1442 = vmatpush2.msra.mxu1 %v6333_v3  ;;  %v12868_v1 = vld [vmem:[#allocation18_spill] sm:$0xff]  ;;  %v12869_v3 = vld [vmem:[#allocation12_spill] sm:$0xff] }
 0x3d3   :  { %1374 = vmatprep.subr.mxu0 %v6339_v5  ;;  %1443 = vmatprep.subr.mxu1 %v6345_v53  ;;  %v12870_v5 = vld [vmem:[#allocation19_spill] sm:$0xff]  ;;  %v12871_v53 = vld [vmem:[#allocation13_spill] sm:$0xff] }
 0x3d4   :  { %1375 = vmatpush2.msra.mxu0 %v6351_v49  ;;  %1444 = vmatpush2.msra.mxu1 %v6357_v51  ;;  %v12872_v49 = vld [vmem:[#allocation20_spill] sm:$0xff]  ;;  %v12873_v51 = vld [vmem:[#allocation15_spill] sm:$0xff] }
 0x3d5   :  { %1376 = vmatprep.subr.mxu0 %v6363_v55  ;;  %1445 = vmatprep.subr.mxu1 %v6369_v56  ;;  %v12874_v55 = vld [vmem:[#allocation21_spill] sm:$0xff] }
 0x3d6   :  { %1377 = vmatpush2.msra.mxu0 %v6375_v63  ;;  %1446 = vmatpush2.msra.mxu1 %v6381_v2  ;;  %v12875_v56 = vld [vmem:[#allocation17_spill] sm:$0xff]  ;;  %v12876_v63 = vld [vmem:[#allocation23_spill] sm:$0xff] }
 0x3d7   :  { %1378 = vmatprep.subr.mxu0 %v6387_v61  ;;  %1447 = vmatprep.subr.mxu1 %v6393_v38  ;;  %v12877_v2 = vld [vmem:[#allocation25_spill] sm:$0xff]  ;;  %v12878_v61 = vld [vmem:[#allocation27_spill] sm:$0xff]  ;;  %v12879_v38 = vld [vmem:[#allocation22_spill] sm:$0xff] }
 0x3d8   :  { %1379 = vmatpush2.msra.mxu0 %v6399_v0  ;;  %1448 = vmatpush2.msra.mxu1 %v6405_v60  ;;  %v3043_v0 = vld [vmem:[%s11517_s0 + $0x6] sm:$0x3] }
 0x3d9   :  { %1380 = vmatprep.subr.mxu0 %v6411_v62  ;;  %1449 = vmatprep.subr.mxu1 %v6417_v10  ;;  %v12880_v60 = vld [vmem:[#allocation24_spill] sm:$0xff]  ;;  %v12881_v62 = vld [vmem:[#allocation29_spill] sm:$0xff]  ;;  %v12882_v10 = vld [vmem:[#allocation26_spill] sm:$0xff] }
 0x3da   :  { %1381 = vmatpush2.msra.mxu0 %v6423_v11  ;;  %1450 = vmatpush2.msra.mxu1 %v6429_v12  ;;  %v12883_v11 = vld [vmem:[#allocation30_spill] sm:$0xff]  ;;  %v12884_v12 = vld [vmem:[#allocation28_spill] sm:$0xff] }
 0x3db   :  { %1382 = vmatprep.subr.mxu0 %v6435_v13  ;;  %1451 = vmatprep.subr.mxu1 %v6441_v14  ;;  %v12885_v13 = vld [vmem:[#allocation32_spill] sm:$0xff]  ;;  %v12886_v14 = vld [vmem:[#allocation31_spill] sm:$0xff] }
 0x3dc   :  { %1383 = vmatpush2.msra.mxu0 %v6447_v16  ;;  %1452 = vmatpush2.msra.mxu1 %v6453_v17  ;;  %v12887_v16 = vld [vmem:[#allocation34_spill] sm:$0xff]  ;;  %v12888_v17 = vld [vmem:[#allocation33_spill] sm:$0xff] }
 0x3dd   :  { %1384 = vmatprep.subr.mxu0 %v6459_v18  ;;  %1453 = vmatprep.subr.mxu1 %v6465_v19  ;;  %v12889_v18 = vld [vmem:[#allocation36_spill] sm:$0xff]  ;;  %v12890_v19 = vld [vmem:[#allocation35_spill] sm:$0xff] }
 0x3de   :  { %1385 = vmatpush2.msra.mxu0 %v6471_v21  ;;  %1454 = vmatpush2.msra.mxu1 %v6477_v22  ;;  %v12891_v21 = vld [vmem:[#allocation38_spill] sm:$0xff]  ;;  %v12892_v22 = vld [vmem:[#allocation37_spill] sm:$0xff] }
 0x3df   :  { %1386 = vmatprep.subr.mxu0 %v6483_v23  ;;  %1455 = vmatprep.subr.mxu1 %v6489_v26  ;;  %v12893_v23 = vld [vmem:[#allocation39_spill] sm:$0xff]  ;;  %v12894_v26 = vld [vmem:[#allocation40_spill] sm:$0xff] }
 0x3e0   :  { %1387 = vmatpush2.msra.mxu0 %v6495_v27  ;;  %1456 = vmatpush2.msra.mxu1 %v6501_v29  ;;  %v12895_v27 = vld [vmem:[#allocation41_spill] sm:$0xff]  ;;  %v12896_v29 = vld [vmem:[#allocation42_spill] sm:$0xff] }
 0x3e1   :  { %1388 = vmatprep.subr.mxu0 %v6507_v32  ;;  %1457 = vmatprep.subr.mxu1 %v6513_v33  ;;  %v12897_v32 = vld [vmem:[#allocation43_spill] sm:$0xff]  ;;  %v12898_v33 = vld [vmem:[#allocation44_spill] sm:$0xff] }
 0x3e2   :  { %1389 = vmatpush2.msra.mxu0 %v6519_v34  ;;  %1458 = vmatpush2.msra.mxu1 %v6525_v35  ;;  %v12899_v34 = vld [vmem:[#allocation45_spill] sm:$0xff]  ;;  %v12900_v35 = vld [vmem:[#allocation46_spill] sm:$0xff] }
 0x3e3   :  { %1390 = vmatprep.subr.mxu0 %v12865_v59  ;;  %1459 = vmatprep.subr.mxu1 %v12866_v58  ;;  %v12901_v59 = vld [vmem:[#allocation47_spill] sm:$0xff]  ;;  %v12902_v58 = vld [vmem:[#allocation48_spill] sm:$0xff] }
 0x3e4   :  { %1391 = vmatpush2.msra.mxu0 %v12867_v4  ;;  %1460 = vmatpush2.msra.mxu1 %v12868_v1  ;;  %v12903_v4 = vld [vmem:[#allocation49_spill] sm:$0xff]  ;;  %v12904_v1 = vld [vmem:[#allocation50_spill] sm:$0xff] }
 0x3e5   :  { %1392 = vmatprep.subr.mxu0 %v12869_v3  ;;  %1461 = vmatprep.subr.mxu1 %v12870_v5  ;;  %v12905_v3 = vld [vmem:[#allocation51_spill] sm:$0xff]  ;;  %v12906_v5 = vld [vmem:[#allocation52_spill] sm:$0xff] }
 0x3e6   :  { %1393 = vmatpush2.msra.mxu0 %v12871_v53  ;;  %1462 = vmatpush2.msra.mxu1 %v12872_v49  ;;  %v12907_v53 = vld [vmem:[#allocation53_spill] sm:$0xff]  ;;  %v12908_v49 = vld [vmem:[#allocation54_spill] sm:$0xff] }
 0x3e7   :  { %1394 = vmatprep.subr.mxu0 %v12873_v51  ;;  %1463 = vmatprep.subr.mxu1 %v12874_v55  ;;  %v12909_v51 = vld [vmem:[#allocation55_spill] sm:$0xff]  ;;  %v12910_v55 = vld [vmem:[#allocation56_spill] sm:$0xff] }
 0x3e8   :  { %1395 = vmatpush2.msra.mxu0 %v12875_v56  ;;  %1464 = vmatpush2.msra.mxu1 %v12876_v63  ;;  %v12911_v56 = vld [vmem:[#allocation57_spill] sm:$0xff]  ;;  %v12912_v63 = vld [vmem:[#allocation58_spill] sm:$0xff] }
 0x3e9   :  { %1396 = vmatprep.subr.mxu0 %v12877_v2  ;;  %1465 = vmatprep.subr.mxu1 %v12878_v61  ;;  %v12913_v2 = vld [vmem:[#allocation59_spill] sm:$0xff]  ;;  %v12914_v61 = vld [vmem:[#allocation60_spill] sm:$0xff] }
 0x3ea   :  { %1397 = vmatpush2.msra.mxu0 %v12879_v38  ;;  %1466 = vmatpush2.msra.mxu1 %v12880_v60  ;;  %v12915_v38 = vld [vmem:[#allocation61_spill] sm:$0xff]  ;;  %v12917_v60 = vld [vmem:[#allocation63_spill] sm:$0xff] }
 0x3eb   :  { %1398 = vmatprep.subr.mxu0 %v12881_v62  ;;  %1467 = vmatprep.subr.mxu1 %v12882_v10  ;;  %v12918_v62 = vld [vmem:[#allocation64_spill] sm:$0xff]  ;;  %v12919_v10 = vld [vmem:[#allocation65_spill] sm:$0xff] }
 0x3ec   :  { %1399 = vmatpush2.msra.mxu0 %v12883_v11  ;;  %1468 = vmatpush2.msra.mxu1 %v12884_v12  ;;  %v12920_v11 = vld [vmem:[#allocation66_spill] sm:$0xff]  ;;  %v12921_v12 = vld [vmem:[#allocation67_spill] sm:$0xff] }
 0x3ed   :  { %1401 = vmatmul.mubr.f32.vlgmr.msra.gmra.mxu0 %v3043_v0  ;;  %1469 = vmatprep.subr.mxu1 %v12885_v13  ;;  %v12922_v13 = vld [vmem:[#allocation68_spill] sm:$0xff] }
 0x3ee   :  { %1470 = vmatpush2.msra.mxu1 %v12886_v14  ;;  %1502 = vmatprep.subr.mxu0 %v12887_v16  ;;  %v12923_v14 = vld [vmem:[#allocation69_spill] sm:$0xff]  ;;  %v12924_v16 = vld [vmem:[#allocation70_spill] sm:$0xff] }
 0x3ef   :  { %1472 = vmatmul.mubr.f32.vlgmr.msra.gmra.mxu1 %v3043_v0  ;;  %1503 = vmatpush1.msra.mxu0 %v12888_v17  ;;  %v12916_v0 = vld [vmem:[#allocation62_spill] sm:$0xff]  ;;  %v12925_v17 = vld [vmem:[#allocation71_spill] sm:$0xff] }
 0x3f0   :  { %1573 = vmatprep.subr.mxu1 %v12889_v18  ;;  %1504 = vmatprep.subr.mxu0 %v12890_v19  ;;  %v12926_v18 = vld [vmem:[#allocation72_spill] sm:$0xff]  ;;  %v12927_v19 = vld [vmem:[#allocation73_spill] sm:$0xff] }
 0x3f1   :  { %1574 = vmatpush1.msra.mxu1 %v12891_v21  ;;  %1505 = vmatpush1.msra.mxu0 %v12892_v22  ;;  %v12928_v21 = vld [vmem:[#allocation74_spill] sm:$0xff]  ;;  %v12929_v22 = vld [vmem:[#allocation75_spill] sm:$0xff] }
 0x3f2   :  { %1575 = vmatprep.subr.mxu1 %v12893_v23  ;;  %1506 = vmatprep.subr.mxu0 %v12894_v26  ;;  %v12930_v23 = vld [vmem:[#allocation76_spill] sm:$0xff]  ;;  %v12931_v26 = vld [vmem:[#allocation77_spill] sm:$0xff] }
 0x3f3   :  { %1576 = vmatpush1.msra.mxu1 %v12895_v27  ;;  %1507 = vmatpush1.msra.mxu0 %v12896_v29  ;;  %v12932_v27 = vld [vmem:[#allocation78_spill] sm:$0xff]  ;;  %v12933_v29 = vld [vmem:[#allocation79_spill] sm:$0xff] }
 0x3f4   :  { %1577 = vmatprep.subr.mxu1 %v12897_v32  ;;  %1508 = vmatprep.subr.mxu0 %v12898_v33  ;;  %v12934_v32 = vld [vmem:[#allocation80_spill] sm:$0xff]  ;;  %v12935_v33 = vld [vmem:[#allocation81_spill] sm:$0xff] }
 0x3f5   :  { %1578 = vmatpush1.msra.mxu1 %v12899_v34  ;;  %1509 = vmatpush1.msra.mxu0 %v12900_v35  ;;  %v12936_v34 = vld [vmem:[#allocation82_spill] sm:$0xff]  ;;  %v12937_v35 = vld [vmem:[#allocation83_spill] sm:$0xff] }
 0x3f6   :  { %1579 = vmatprep.subr.mxu1 %v12901_v59  ;;  %1510 = vmatprep.subr.mxu0 %v12902_v58  ;;  %v12938_v59 = vld [vmem:[#allocation84_spill] sm:$0xff]  ;;  %v12939_v58 = vld [vmem:[#allocation85_spill] sm:$0xff] }
 0x3f7   :  { %1580 = vmatpush1.msra.mxu1 %v12903_v4  ;;  %1511 = vmatpush1.msra.mxu0 %v12904_v1  ;;  %v12940_v4 = vld [vmem:[#allocation86_spill] sm:$0xff]  ;;  %v12941_v1 = vld [vmem:[#allocation87_spill] sm:$0xff] }
 0x3f8   :  { %1581 = vmatprep.subr.mxu1 %v12905_v3  ;;  %1512 = vmatprep.subr.mxu0 %v12906_v5  ;;  %v12942_v3 = vld [vmem:[#allocation88_spill] sm:$0xff]  ;;  %v12943_v5 = vld [vmem:[#allocation89_spill] sm:$0xff] }
 0x3f9   :  { %1582 = vmatpush1.msra.mxu1 %v12907_v53  ;;  %1513 = vmatpush1.msra.mxu0 %v12908_v49  ;;  %v12944_v53 = vld [vmem:[#allocation90_spill] sm:$0xff]  ;;  %v12945_v49 = vld [vmem:[#allocation91_spill] sm:$0xff] }
 0x3fa   :  { %1583 = vmatprep.subr.mxu1 %v12909_v51  ;;  %1514 = vmatprep.subr.mxu0 %v12910_v55  ;;  %v12946_v51 = vld [vmem:[#allocation92_spill] sm:$0xff]  ;;  %v12947_v55 = vld [vmem:[#allocation93_spill] sm:$0xff] }
 0x3fb   :  { %1584 = vmatpush1.msra.mxu1 %v12911_v56  ;;  %1515 = vmatpush1.msra.mxu0 %v12912_v63  ;;  %v12948_v56 = vld [vmem:[#allocation94_spill] sm:$0xff]  ;;  %v12949_v63 = vld [vmem:[#allocation95_spill] sm:$0xff] }
 0x3fc   :  { %1585 = vmatprep.subr.mxu1 %v12913_v2  ;;  %1516 = vmatprep.subr.mxu0 %v12914_v61  ;;  %v12950_v2 = vld [vmem:[#allocation96_spill] sm:$0xff]  ;;  %v12951_v61 = vld [vmem:[#allocation97_spill] sm:$0xff] }
 0x3fd   :  { %1586 = vmatpush1.msra.mxu1 %v12915_v38  ;;  %1517 = vmatpush1.msra.mxu0 %v12916_v0  ;;  %v12952_v38 = vld [vmem:[#allocation98_spill] sm:$0xff]  ;;  %v12953_v0 = vld [vmem:[#allocation99_spill] sm:$0xff] }
 0x3fe   :  { %1587 = vmatprep.subr.mxu1 %v12917_v60  ;;  %1518 = vmatprep.subr.mxu0 %v12918_v62  ;;  %v12954_v60 = vld [vmem:[#allocation100_spill] sm:$0xff]  ;;  %v12955_v62 = vld [vmem:[#allocation101_spill] sm:$0xff] }
 0x3ff   :  { %1588 = vmatpush1.msra.mxu1 %v12919_v10  ;;  %1519 = vmatpush1.msra.mxu0 %v12920_v11  ;;  %v12956_v10 = vld [vmem:[#allocation102_spill] sm:$0xff]  ;;  %v12957_v11 = vld [vmem:[#allocation103_spill] sm:$0xff] }
 0x400   :  { %1589 = vmatprep.subr.mxu1 %v12921_v12  ;;  %1520 = vmatprep.subr.mxu0 %v12922_v13  ;;  %v12958_v12 = vld [vmem:[#allocation104_spill] sm:$0xff]  ;;  %v12959_v13 = vld [vmem:[#allocation105_spill] sm:$0xff] }
 0x401   :  { %1590 = vmatpush1.msra.mxu1 %v12923_v14  ;;  %1521 = vmatpush1.msra.mxu0 %v12924_v16  ;;  %v12960_v14 = vld [vmem:[#allocation106_spill] sm:$0xff]  ;;  %v12961_v16 = vld [vmem:[#allocation107_spill] sm:$0xff] }
 0x402   :  { %1591 = vmatprep.subr.mxu1 %v12925_v17  ;;  %1522 = vmatprep.subr.mxu0 %v12926_v18  ;;  %v12962_v17 = vld [vmem:[#allocation108_spill] sm:$0xff]  ;;  %v12963_v18 = vld [vmem:[#allocation109_spill] sm:$0xff] }
 0x403   :  { %1592 = vmatpush1.msra.mxu1 %v12927_v19  ;;  %1523 = vmatpush1.msra.mxu0 %v12928_v21  ;;  %v12964_v19 = vld [vmem:[#allocation110_spill] sm:$0xff]  ;;  %v12965_v21 = vld [vmem:[#allocation111_spill] sm:$0xff] }
 0x404   :  { %1593 = vmatprep.subr.mxu1 %v12929_v22  ;;  %1524 = vmatprep.subr.mxu0 %v12930_v23  ;;  %v12966_v22 = vld [vmem:[#allocation112_spill] sm:$0xff]  ;;  %v12967_v23 = vld [vmem:[#allocation113_spill] sm:$0xff] }
 0x405   :  { %1594 = vmatpush1.msra.mxu1 %v12931_v26  ;;  %1525 = vmatpush1.msra.mxu0 %v12932_v27  ;;  %v12968_v26 = vld [vmem:[#allocation114_spill] sm:$0xff]  ;;  %v12969_v27 = vld [vmem:[#allocation115_spill] sm:$0xff] }
 0x406   :  { %1595 = vmatprep.subr.mxu1 %v12933_v29  ;;  %1526 = vmatprep.subr.mxu0 %v12934_v32  ;;  %v12970_v29 = vld [vmem:[#allocation116_spill] sm:$0xff]  ;;  %v12971_v32 = vld [vmem:[#allocation117_spill] sm:$0xff] }
 0x407   :  { %1596 = vmatpush1.msra.mxu1 %v12935_v33  ;;  %1527 = vmatpush1.msra.mxu0 %v12936_v34  ;;  %v12972_v33 = vld [vmem:[#allocation118_spill] sm:$0xff]  ;;  %v12973_v34 = vld [vmem:[#allocation119_spill] sm:$0xff] }
 0x408   :  { %1597 = vmatprep.subr.mxu1 %v12937_v35  ;;  %1528 = vmatprep.subr.mxu0 %v12938_v59  ;;  %v12974_v35 = vld [vmem:[#allocation120_spill] sm:$0xff]  ;;  %v12975_v59 = vld [vmem:[#allocation121_spill] sm:$0xff] }
 0x409   :  { %1598 = vmatpush1.msra.mxu1 %v12939_v58  ;;  %1529 = vmatpush1.msra.mxu0 %v12940_v4  ;;  %v12976_v58 = vld [vmem:[#allocation122_spill] sm:$0xff]  ;;  %v12977_v4 = vld [vmem:[#allocation123_spill] sm:$0xff] }
 0x40a   :  { %1599 = vmatprep.subr.mxu1 %v12941_v1  ;;  %1530 = vmatprep.subr.mxu0 %v12942_v3  ;;  %v12978_v1 = vld [vmem:[#allocation124_spill] sm:$0xff]  ;;  %v12979_v3 = vld [vmem:[#allocation125_spill] sm:$0xff] }
 0x40b   :  { %1600 = vmatpush1.msra.mxu1 %v12943_v5  ;;  %1531 = vmatpush1.msra.mxu0 %v12944_v53  ;;  %v12980_v5 = vld [vmem:[#allocation126_spill] sm:$0xff]  ;;  %v12981_v53 = vld [vmem:[#allocation127_spill] sm:$0xff] }
 0x40c   :  { %1601 = vmatprep.subr.mxu1 %v12945_v49  ;;  %1532 = vmatprep.subr.mxu0 %v12946_v51  ;;  %v12982_v49 = vld [vmem:[#allocation128_spill] sm:$0xff]  ;;  %v12983_v51 = vld [vmem:[#allocation129_spill] sm:$0xff] }
 0x40d   :  { %1602 = vmatpush1.msra.mxu1 %v12947_v55  ;;  %1533 = vmatpush1.msra.mxu0 %v12948_v56  ;;  %v12984_v55 = vld [vmem:[#allocation130_spill] sm:$0xff]  ;;  %v12985_v56 = vld [vmem:[#allocation131_spill] sm:$0xff] }
 0x40e   :  { %1603 = vmatprep.subr.mxu1 %v12949_v63  ;;  %1534 = vmatprep.subr.mxu0 %v12950_v2  ;;  %v12986_v63 = vld [vmem:[#allocation132_spill] sm:$0xff]  ;;  %v12987_v2 = vld [vmem:[#allocation133_spill] sm:$0xff] }
 0x40f   :  { %1604 = vmatpush1.msra.mxu1 %v12951_v61  ;;  %1535 = vmatpush2.msra.mxu0 %v12952_v38  ;;  %v12988_v61 = vld [vmem:[#allocation134_spill] sm:$0xff]  ;;  %v12989_v38 = vld [vmem:[#allocation135_spill] sm:$0xff] }
 0x410   :  { %1605 = vmatprep.subr.mxu1 %v12953_v0  ;;  %1536 = vmatprep.subr.mxu0 %v12954_v60  ;;  %v12990_v0 = vld [vmem:[#allocation136_spill] sm:$0xff]  ;;  %v12991_v60 = vld [vmem:[#allocation137_spill] sm:$0xff] }
 0x411   :  { %1606 = vmatpush2.msra.mxu1 %v12955_v62  ;;  %1537 = vmatpush2.msra.mxu0 %v12956_v10  ;;  %v12992_v62 = vld [vmem:[#allocation138_spill] sm:$0xff]  ;;  %v12993_v10 = vld [vmem:[#allocation139_spill] sm:$0xff] }
 0x412   :  { %1607 = vmatprep.subr.mxu1 %v12957_v11  ;;  %1538 = vmatprep.subr.mxu0 %v12958_v12  ;;  %v12994_v11 = vld [vmem:[#allocation140_spill] sm:$0xff]  ;;  %v12995_v12 = vld [vmem:[#allocation141_spill] sm:$0xff] }
 0x413   :  { %1608 = vmatpush2.msra.mxu1 %v12959_v13  ;;  %1539 = vmatpush2.msra.mxu0 %v12960_v14  ;;  %v12996_v13 = vld [vmem:[#allocation142_spill] sm:$0xff]  ;;  %v12997_v14 = vld [vmem:[#allocation143_spill] sm:$0xff] }
 0x414   :  { %1609 = vmatprep.subr.mxu1 %v12961_v16  ;;  %1540 = vmatprep.subr.mxu0 %v12962_v17  ;;  %v12998_v16 = vld [vmem:[#allocation144_spill] sm:$0xff]  ;;  %v12999_v17 = vld [vmem:[#allocation145_spill] sm:$0xff] }
 0x415   :  { %1610 = vmatpush2.msra.mxu1 %v12963_v18  ;;  %1541 = vmatpush2.msra.mxu0 %v12964_v19  ;;  %v13000_v18 = vld [vmem:[#allocation146_spill] sm:$0xff]  ;;  %v13001_v19 = vld [vmem:[#allocation147_spill] sm:$0xff] }
 0x416   :  { %1611 = vmatprep.subr.mxu1 %v12965_v21  ;;  %1542 = vmatprep.subr.mxu0 %v12966_v22  ;;  %v13002_v21 = vld [vmem:[#allocation148_spill] sm:$0xff]  ;;  %v13003_v22 = vld [vmem:[#allocation149_spill] sm:$0xff] }
 0x417   :  { %1612 = vmatpush2.msra.mxu1 %v12967_v23  ;;  %1543 = vmatpush2.msra.mxu0 %v12968_v26  ;;  %v13004_v23 = vld [vmem:[#allocation150_spill] sm:$0xff]  ;;  %v13005_v26 = vld [vmem:[#allocation151_spill] sm:$0xff] }
 0x418   :  { %1613 = vmatprep.subr.mxu1 %v12969_v27  ;;  %1544 = vmatprep.subr.mxu0 %v12970_v29  ;;  %v13006_v27 = vld [vmem:[#allocation153_spill] sm:$0xff]  ;;  %v13007_v29 = vld [vmem:[#allocation152_spill] sm:$0xff] }
 0x419   :  { %1614 = vmatpush2.msra.mxu1 %v12971_v32  ;;  %1545 = vmatpush2.msra.mxu0 %v12972_v33  ;;  %v13008_v32 = vld [vmem:[#allocation154_spill] sm:$0xff]  ;;  %v13009_v33 = vld [vmem:[#allocation155_spill] sm:$0xff] }
 0x41a   :  { %1615 = vmatprep.subr.mxu1 %v12973_v34  ;;  %1546 = vmatprep.subr.mxu0 %v12974_v35  ;;  %v13010_v34 = vld [vmem:[#allocation156_spill] sm:$0xff]  ;;  %v13011_v35 = vld [vmem:[#allocation157_spill] sm:$0xff] }
 0x41b   :  { %1616 = vmatpush2.msra.mxu1 %v12975_v59  ;;  %1547 = vmatpush2.msra.mxu0 %v12976_v58  ;;  %v13012_v59 = vld [vmem:[#allocation158_spill] sm:$0xff]  ;;  %v13013_v58 = vld [vmem:[#allocation159_spill] sm:$0xff] }
 0x41c   :  { %1617 = vmatprep.subr.mxu1 %v12977_v4  ;;  %1548 = vmatprep.subr.mxu0 %v12978_v1  ;;  %v13014_v4 = vld [vmem:[#allocation160_spill] sm:$0xff]  ;;  %v13015_v1 = vld [vmem:[#allocation161_spill] sm:$0xff] }
 0x41d   :  { %1618 = vmatpush2.msra.mxu1 %v12979_v3  ;;  %1549 = vmatpush2.msra.mxu0 %v12980_v5  ;;  %v8035_v3 = vld [vmem:[%s11518_s1 + $0x1f8] sm:$0xff] }
 0x41e   :  { %1619 = vmatprep.subr.mxu1 %v12981_v53  ;;  %1550 = vmatprep.subr.mxu0 %v12982_v49 }
 0x41f   :  { %1620 = vmatpush2.msra.mxu1 %v12983_v51  ;;  %1551 = vmatpush2.msra.mxu0 %v12984_v55  ;;  %v13016_v55 = vld [vmem:[#allocation9_spill] sm:$0xff] }
 0x420   :  { %1621 = vmatprep.subr.mxu1 %v12985_v56  ;;  %1552 = vmatprep.subr.mxu0 %v12986_v63 }
 0x421   :  { %1622 = vmatpush2.msra.mxu1 %v12987_v2  ;;  %1553 = vmatpush2.msra.mxu0 %v12988_v61  ;;  %v13017_v61 = vld [vmem:[#allocation14_spill] sm:$0xff] }
 0x422   :  { %1623 = vmatprep.subr.mxu1 %v12989_v38  ;;  %1554 = vmatprep.subr.mxu0 %v12990_v0 }
 0x423   :  { %1624 = vmatpush2.msra.mxu1 %v12991_v60  ;;  %1555 = vmatpush2.msra.mxu0 %v12992_v62 }
 0x424   :  { %1625 = vmatprep.subr.mxu1 %v12993_v10  ;;  %1556 = vmatprep.subr.mxu0 %v12994_v11 }
 0x425   :  { %1626 = vmatpush2.msra.mxu1 %v12995_v12  ;;  %1557 = vmatpush2.msra.mxu0 %v12996_v13 }
 0x426   :  { %1627 = vmatprep.subr.mxu1 %v12997_v14  ;;  %1558 = vmatprep.subr.mxu0 %v12998_v16 }
 0x427   :  { %1628 = vmatpush2.msra.mxu1 %v12999_v17  ;;  %1559 = vmatpush2.msra.mxu0 %v13000_v18 }
 0x428   :  { %1629 = vmatprep.subr.mxu1 %v13001_v19  ;;  %1560 = vmatprep.subr.mxu0 %v13002_v21 }
 0x429   :  { %1630 = vmatpush2.msra.mxu1 %v13003_v22  ;;  %1561 = vmatpush2.msra.mxu0 %v13004_v23 }
 0x42a   :  { %1631 = vmatprep.subr.mxu1 %v13005_v26  ;;  %1562 = vmatprep.subr.mxu0 %v13006_v27 }
 0x42b   :  { %1632 = vmatpush2.msra.mxu1 %v13007_v29  ;;  %1563 = vmatpush2.msra.mxu0 %v13008_v32 }
 0x42c   :  { %1633 = vmatprep.subr.mxu1 %v13009_v33  ;;  %1564 = vmatprep.subr.mxu0 %v13010_v34 }
 0x42d   :  { %1634 = vmatpush2.msra.mxu1 %v13011_v35  ;;  %1565 = vmatpush2.msra.mxu0 %v13012_v59 }
 0x42e   :  { %1635 = vmatprep.subr.mxu1 %v13013_v58  ;;  %1670 = vmatprep.subr.mxu0 %v13014_v4 }
 0x42f   :  { %1636 = vmatpush2.msra.mxu1 %v13015_v1 }
 0x430   :  { %1741 = vmatprep.subr.mxu1 %v8035_v3 }
 0x46d   :  { %v1234_v5 = vpop.f32.mrf.mxu0  ;;  %v1305_v2 = vpop.f32.mrf.mxu1 }
 0x46e   :  { %v1235_v53 = vadd.f32 %v1234_v5, %v6195_v28  ;;  %v1306_v38 = vadd.f32 %v1305_v2, %v13017_v61 }
 0x46f   :  { %v1236_v49 = vpop.f32.mrf.mxu0  ;;  %v1307_v0 = vpop.f32.mrf.mxu1 }
 0x470   :  { %v3040_v51 = vmul.f32 -1.442695, %v1235_v53  ;;  %v1237_v56 = vadd.f32 %v1236_v49, %v13016_v55  ;;  %v3042_v60 = vmul.f32 -1.442695, %v1306_v38  ;;  %v1308_v10 = vadd.f32 %v1307_v0, %v6210_v43 }
 0x472   :  { %3160 = vpow2.f32 %v3040_v51  ;;  %v3041_v63 = vmul.f32 -1.442695, %v1237_v56 }
 0x474   :  { %3162 = vpow2.f32 %v3041_v63 }
 0x475   :  { %3164 = vpow2.f32 %v3042_v60 }
 0x47f   :  { %v3161_v62 = vpop.eup %3160 }
 0x480   :  { %v1319_v11 = vadd.f32 1.0, %v3161_v62 }
 0x481   :  { %v3163_v12 = vpop.eup %3162 }
 0x482   :  { %3166 = vrcp.f32 %v1319_v11  ;;  %v1320_v13 = vadd.f32 1.0, %v3163_v12  ;;  %v3165_v14 = vpop.eup %3164 }
 0x483   :  { %3168 = vtanh.f32 %v1308_v10  ;;  %v1321_v19 = vadd.f32 1.0, %v3165_v14 }
 0x484   :  { %3170 = vrcp.f32 %v1320_v13 }
 0x485   :  { %3172 = vrcp.f32 %v1321_v19  ;;  %v13033_v19 = vld [vmem:[#allocation177_spill] sm:$0xff] }
 0x48f   :  { %v3167_v16 = vpop.eup %3166 }
 0x490   :  { %v3169_v17 = vpop.eup %3168 }
 0x491   :  { %v3171_v18 = vpop.eup %3170  ;;  %v1330_v22 = vmul.f32 %v3169_v17, %v3167_v16  ;;  %v13031_v17 = vld [vmem:[#allocation175_spill] sm:$0xff] }
 0x492   :  { %v1329_v21 = vmul.f32 %v3171_v18, %v7443_v39  ;;  %v3173_v26 = vpop.eup %3172  ;;  %v13032_v18 = vld [vmem:[#allocation176_spill] sm:$0xff] }
 0x494   :  { %v8043_v23 = vadd.f32 %v1330_v22, %v1329_v21  ;;  %v13034_v21 = vld [vmem:[#allocation178_spill] sm:$0xff]  ;;  %v13035_v22 = vld [vmem:[#allocation179_spill] sm:$0xff] }
 0x496   :  { %3174 = vtanh.f32 %v8043_v23 }
 0x4a3   :  { %v3175_v27 = vpop.eup %3174 }
 0x4a4   :  { %v1333_v29 = vmul.f32 %v3175_v27, %v3173_v26  ;;  %v13036_v26 = vld [vmem:[#allocation180_spill] sm:$0xff]  ;;  %v13037_v27 = vld [vmem:[#allocation181_spill] sm:$0xff] }
 0x4a6   :  { %1566 = vmatprep.mubr.f32.mxu0 %v1333_v29  ;;  %1637 = vmatprep.mubr.f32.mxu1 %v1333_v29  ;;  %v13038_v29 = vld [vmem:[#allocation182_spill] sm:$0xff] }
 0x4ad   :  { %v1402_v32 = vpop.f32.mrf.mxu0 }
 0x4ae   :  { %v1403_v33 = vadd.f32 %v1402_v32, %v12621_v20  ;;  %v13039_v32 = vld [vmem:[#allocation183_spill] sm:$0xff] }
 0x4af   :  { %v1404_v34 = vpop.f32.mrf.mxu0  ;;  %v1473_v58 = vpop.f32.mrf.mxu1 }
 0x4b0   :  { %v3044_v35 = vmul.f32 -1.442695, %v1403_v33  ;;  %v1405_v59 = vadd.f32 %v1404_v34, %v12622_v25  ;;  %v1474_v4 = vadd.f32 %v1473_v58, %v12623_v31  ;;  %v13040_v33 = vld [vmem:[#allocation184_spill] sm:$0xff]  ;;  %v13041_v34 = vld [vmem:[#allocation185_spill] sm:$0xff] }
 0x4b1   :  { %v1475_v1 = vpop.f32.mrf.mxu1  ;;  %v13045_v58 = vld [vmem:[#allocation189_spill] sm:$0xff] }
 0x4b2   :  { %3176 = vpow2.f32 %v3044_v35  ;;  %v3045_v39 = vmul.f32 -1.442695, %v1405_v59  ;;  %v3046_v5 = vmul.f32 -1.442695, %v1474_v4  ;;  %v1476_v53 = vadd.f32 %v1475_v1, %v5600_v9  ;;  %v13042_v35 = vld [vmem:[#allocation186_spill] sm:$0xff]  ;;  %v13043_v59 = vld [vmem:[#allocation187_spill] sm:$0xff] }
 0x4b3   :  { %v13046_v4 = vld [vmem:[#allocation190_spill] sm:$0xff]  ;;  %v13047_v1 = vld [vmem:[#allocation191_spill] sm:$0xff] }
 0x4b4   :  { %3178 = vpow2.f32 %v3045_v39  ;;  %v13044_v39 = vld [vmem:[#allocation188_spill] sm:$0xff] }
 0x4b5   :  { %3180 = vpow2.f32 %v3046_v5  ;;  %v13048_v5 = vld [vmem:[#allocation192_spill] sm:$0xff] }
 0x4b6   :  { %3182 = vtanh.f32 %v1476_v53  ;;  %v13049_v53 = vld [vmem:[#allocation193_spill] sm:$0xff] }
 0x4bf   :  { %v3177_v49 = vpop.eup %3176 }
 0x4c0   :  { %v1487_v51 = vadd.f32 1.0, %v3177_v49  ;;  %v13050_v49 = vld [vmem:[#allocation194_spill] sm:$0xff] }
 0x4c1   :  { %v3179_v56 = vpop.eup %3178 }
 0x4c2   :  { %3184 = vrcp.f32 %v1487_v51  ;;  %v1488_v63 = vadd.f32 1.0, %v3179_v56  ;;  %v3181_v2 = vpop.eup %3180  ;;  %v13051_v51 = vld [vmem:[#allocation195_spill] sm:$0xff]  ;;  %v13052_v56 = vld [vmem:[#allocation196_spill] sm:$0xff] }
 0x4c3   :  { %v3183_v38 = vpop.eup %3182  ;;  %v1489_v62 = vadd.f32 1.0, %v3181_v2  ;;  %v13054_v2 = vld [vmem:[#allocation198_spill] sm:$0xff] }
 0x4c4   :  { %3186 = vrcp.f32 %v1488_v63  ;;  %v13053_v63 = vld [vmem:[#allocation197_spill] sm:$0xff] }
 0x4c5   :  { %3188 = vrcp.f32 %v1489_v62  ;;  %v13058_v62 = vld [vmem:[#allocation202_spill] sm:$0xff] }
 0x4cf   :  { %v3185_v0 = vpop.eup %3184 }
 0x4d0   :  { %v1498_v11 = vmul.f32 %v3185_v0, %v3183_v38  ;;  %v13055_v38 = vld [vmem:[#allocation199_spill] sm:$0xff]  ;;  %v13056_v0 = vld [vmem:[#allocation200_spill] sm:$0xff] }
 0x4d1   :  { %v3187_v60 = vpop.eup %3186 }
 0x4d2   :  { %v1497_v10 = vmul.f32 %v3187_v60, %v7451_v30  ;;  %v3189_v13 = vpop.eup %3188  ;;  %v13018_v30 = vld [vmem:[#allocation162_spill] sm:$0xff]  ;;  %v13057_v60 = vld [vmem:[#allocation201_spill] sm:$0xff] }
 0x4d4   :  { %v8051_v12 = vadd.f32 %v1498_v11, %v1497_v10  ;;  %v13059_v10 = vld [vmem:[#allocation203_spill] sm:$0xff]  ;;  %v13060_v11 = vld [vmem:[#allocation204_spill] sm:$0xff] }
 0x4d6   :  { %3190 = vtanh.f32 %v8051_v12 }
 0x4e3   :  { %v3191_v14 = vpop.eup %3190 }
 0x4e4   :  { %v1501_v16 = vmul.f32 %v3191_v14, %v3189_v13  ;;  %v13061_v13 = vld [vmem:[#allocation205_spill] sm:$0xff]  ;;  %v13062_v14 = vld [vmem:[#allocation206_spill] sm:$0xff] }
 0x4e6   :  { %1567 = vmatmul.mubr.f32.vlgmr.msra.gmra.mxu0 %v1501_v16  ;;  %1638 = vmatmul.mubr.f32.vlgmr.msra.gmra.mxu1 %v1501_v16 }
 0x4e7   :  { %1671 = vmatpush1.msra.mxu0 %v7457_v45  ;;  %1734 = vmatprep.mubr.f32.mxu0 %v1501_v16  ;;  %v13019_v45 = vld [vmem:[#allocation163_spill] sm:$0xff] }
 0x4e8   :  { %1672 = vmatprep.subr.mxu0 %v7463_v54  ;;  %1805 = vmatprep.mubr.f32.mxu1 %v1501_v16  ;;  %v13020_v54 = vld [vmem:[#allocation164_spill] sm:$0xff]  ;;  %v8116_v16 = vld [vmem:[%s11518_s1 + $0x30] sm:$0xff] }
 0x4e9   :  { %1673 = vmatpush1.msra.mxu0 %v7469_v44  ;;  %1742 = vmatpush1.msra.mxu1 %v7475_v52  ;;  %v13021_v44 = vld [vmem:[#allocation165_spill] sm:$0xff]  ;;  %v13022_v52 = vld [vmem:[#allocation166_spill] sm:$0xff] }
 0x4ea   :  { %1674 = vmatprep.subr.mxu0 %v7481_v37  ;;  %1743 = vmatprep.subr.mxu1 %v7487_v41  ;;  %v13023_v37 = vld [vmem:[#allocation167_spill] sm:$0xff]  ;;  %v13024_v41 = vld [vmem:[#allocation168_spill] sm:$0xff] }
 0x4eb   :  { %1675 = vmatpush1.msra.mxu0 %v7493_v40  ;;  %1744 = vmatpush1.msra.mxu1 %v7499_v36  ;;  %v13025_v40 = vld [vmem:[#allocation169_spill] sm:$0xff]  ;;  %v13026_v36 = vld [vmem:[#allocation170_spill] sm:$0xff] }
 0x4ec   :  { %1676 = vmatprep.subr.mxu0 %v7505_v42  ;;  %1745 = vmatprep.subr.mxu1 %v7511_v6  ;;  %v13027_v42 = vld [vmem:[#allocation171_spill] sm:$0xff]  ;;  %v13028_v6 = vld [vmem:[#allocation172_spill] sm:$0xff] }
 0x4ed   :  { %1677 = vmatpush1.msra.mxu0 %v7517_v24  ;;  %1746 = vmatpush1.msra.mxu1 %v7523_v7  ;;  %v13029_v24 = vld [vmem:[#allocation173_spill] sm:$0xff]  ;;  %v13030_v7 = vld [vmem:[#allocation174_spill] sm:$0xff] }
 0x4ee   :  { %1678 = vmatprep.subr.mxu0 %v13018_v30  ;;  %1747 = vmatprep.subr.mxu1 %v13019_v45  ;;  %v8123_v30 = vld [vmem:[%s11518_s1 + $0x18] sm:$0xff] }
 0x4ef   :  { %1679 = vmatpush1.msra.mxu0 %v13020_v54  ;;  %1748 = vmatpush1.msra.mxu1 %v13021_v44  ;;  %v8175_v45 = vld [vmem:[%s11518_s1 + $0x3b8] sm:$0xff]  ;;  %v8181_v54 = vld [vmem:[%s11518_s1 + $0x380] sm:$0xff]  ;;  %v8187_v44 = vld [vmem:[%s11518_s1 + $0x3b0] sm:$0xff] }
 0x4f0   :  { %1680 = vmatprep.subr.mxu0 %v13022_v52  ;;  %1749 = vmatprep.subr.mxu1 %v13023_v37  ;;  %v8193_v52 = vld [vmem:[%s11518_s1 + $0x368] sm:$0xff]  ;;  %v8199_v37 = vld [vmem:[%s11518_s1 + $0x398] sm:$0xff] }
 0x4f1   :  { %1681 = vmatpush1.msra.mxu0 %v13024_v41  ;;  %1750 = vmatpush1.msra.mxu1 %v13025_v40  ;;  %v8205_v41 = vld [vmem:[%s11518_s1 + $0x360] sm:$0xff]  ;;  %v8211_v40 = vld [vmem:[%s11518_s1 + $0x390] sm:$0xff] }
 0x4f2   :  { %1682 = vmatprep.subr.mxu0 %v13026_v36  ;;  %1751 = vmatprep.subr.mxu1 %v13027_v42  ;;  %v8217_v36 = vld [vmem:[%s11518_s1 + $0x348] sm:$0xff]  ;;  %v8223_v42 = vld [vmem:[%s11518_s1 + $0x378] sm:$0xff] }
 0x4f3   :  { %1683 = vmatpush1.msra.mxu0 %v13028_v6  ;;  %1752 = vmatpush1.msra.mxu1 %v13029_v24  ;;  %v8229_v6 = vld [vmem:[%s11518_s1 + $0x340] sm:$0xff]  ;;  %v8235_v24 = vld [vmem:[%s11518_s1 + $0x370] sm:$0xff] }
 0x4f4   :  { %1684 = vmatprep.subr.mxu0 %v13030_v7  ;;  %1753 = vmatprep.subr.mxu1 %v13031_v17  ;;  %v8241_v7 = vld [vmem:[%s11518_s1 + $0x328] sm:$0xff]  ;;  %v8247_v17 = vld [vmem:[%s11518_s1 + $0x358] sm:$0xff] }
 0x4f5   :  { %1685 = vmatpush1.msra.mxu0 %v13032_v18  ;;  %1754 = vmatpush1.msra.mxu1 %v13033_v19  ;;  %v8253_v18 = vld [vmem:[%s11518_s1 + $0x320] sm:$0xff]  ;;  %v8259_v19 = vld [vmem:[%s11518_s1 + $0x350] sm:$0xff] }
 0x4f6   :  { %1686 = vmatprep.subr.mxu0 %v13034_v21  ;;  %1755 = vmatprep.subr.mxu1 %v13035_v22  ;;  %v8265_v21 = vld [vmem:[%s11518_s1 + $0x308] sm:$0xff]  ;;  %v8271_v22 = vld [vmem:[%s11518_s1 + $0x338] sm:$0xff] }
 0x4f7   :  { %1687 = vmatpush1.msra.mxu0 %v13036_v26  ;;  %1756 = vmatpush1.msra.mxu1 %v13037_v27  ;;  %v8277_v26 = vld [vmem:[%s11518_s1 + $0x300] sm:$0xff]  ;;  %v8283_v27 = vld [vmem:[%s11518_s1 + $0x330] sm:$0xff] }
 0x4f8   :  { %1688 = vmatprep.subr.mxu0 %v13038_v29  ;;  %1757 = vmatprep.subr.mxu1 %v13039_v32  ;;  %v8289_v29 = vld [vmem:[%s11518_s1 + $0x2e8] sm:$0xff]  ;;  %v8295_v32 = vld [vmem:[%s11518_s1 + $0x318] sm:$0xff] }
 0x4f9   :  { %1689 = vmatpush1.msra.mxu0 %v13040_v33  ;;  %1758 = vmatpush1.msra.mxu1 %v13041_v34  ;;  %v8301_v33 = vld [vmem:[%s11518_s1 + $0x2e0] sm:$0xff]  ;;  %v8307_v34 = vld [vmem:[%s11518_s1 + $0x310] sm:$0xff] }
 0x4fa   :  { %1690 = vmatprep.subr.mxu0 %v13042_v35  ;;  %1759 = vmatprep.subr.mxu1 %v13043_v59  ;;  %v8313_v35 = vld [vmem:[%s11518_s1 + $0x2c8] sm:$0xff]  ;;  %v8319_v59 = vld [vmem:[%s11518_s1 + $0x2f8] sm:$0xff] }
 0x4fb   :  { %1691 = vmatpush1.msra.mxu0 %v13044_v39  ;;  %1760 = vmatpush1.msra.mxu1 %v13045_v58  ;;  %v8325_v39 = vld [vmem:[%s11518_s1 + $0x2c0] sm:$0xff]  ;;  %v8331_v58 = vld [vmem:[%s11518_s1 + $0x2f0] sm:$0xff] }
 0x4fc   :  { %1692 = vmatprep.subr.mxu0 %v13046_v4  ;;  %1761 = vmatprep.subr.mxu1 %v13047_v1  ;;  %v8337_v4 = vld [vmem:[%s11518_s1 + $0x2a8] sm:$0xff]  ;;  %v8343_v1 = vld [vmem:[%s11518_s1 + $0x2d8] sm:$0xff] }
 0x4fd   :  { %1693 = vmatpush1.msra.mxu0 %v13048_v5  ;;  %1762 = vmatpush1.msra.mxu1 %v13049_v53  ;;  %v8349_v5 = vld [vmem:[%s11518_s1 + $0x2a0] sm:$0xff]  ;;  %v8355_v53 = vld [vmem:[%s11518_s1 + $0x2d0] sm:$0xff] }
 0x4fe   :  { %1694 = vmatprep.subr.mxu0 %v13050_v49  ;;  %1763 = vmatprep.subr.mxu1 %v13051_v51  ;;  %v8361_v49 = vld [vmem:[%s11518_s1 + $0x288] sm:$0xff]  ;;  %v8367_v51 = vld [vmem:[%s11518_s1 + $0x2b8] sm:$0xff] }
 0x4ff   :  { %1695 = vmatpush1.msra.mxu0 %v13052_v56  ;;  %1764 = vmatpush1.msra.mxu1 %v13053_v63  ;;  %13063 = vst [vmem:[#allocation10_spill] sm:$0xff] %v8361_v49  ;;  %13064 = vst [vmem:[#allocation16_spill] sm:$0xff] %v8367_v51  ;;  %v8373_v56 = vld [vmem:[%s11518_s1 + $0x280] sm:$0xff]  ;;  %v8379_v63 = vld [vmem:[%s11518_s1 + $0x2b0] sm:$0xff] }
 0x500   :  { %1696 = vmatprep.subr.mxu0 %v13054_v2  ;;  %1765 = vmatprep.subr.mxu1 %v13055_v38  ;;  %13065 = vst [vmem:[#allocation11_spill] sm:$0xff] %v8373_v56  ;;  %13066 = vst [vmem:[#allocation18_spill] sm:$0xff] %v8379_v63  ;;  %v8385_v2 = vld [vmem:[%s11518_s1 + $0x268] sm:$0xff]  ;;  %v8391_v38 = vld [vmem:[%s11518_s1 + $0x298] sm:$0xff] }
 0x501   :  { %1697 = vmatpush1.msra.mxu0 %v13056_v0  ;;  %1766 = vmatpush1.msra.mxu1 %v13057_v60  ;;  %13067 = vst [vmem:[#allocation12_spill] sm:$0xff] %v8385_v2  ;;  %13068 = vst [vmem:[#allocation19_spill] sm:$0xff] %v8391_v38  ;;  %v8397_v0 = vld [vmem:[%s11518_s1 + $0x260] sm:$0xff]  ;;  %v8403_v60 = vld [vmem:[%s11518_s1 + $0x290] sm:$0xff] }
 0x502   :  { %1698 = vmatprep.subr.mxu0 %v13058_v62  ;;  %1767 = vmatprep.subr.mxu1 %v13059_v10  ;;  %13069 = vst [vmem:[#allocation13_spill] sm:$0xff] %v8397_v0  ;;  %13070 = vst [vmem:[#allocation20_spill] sm:$0xff] %v8403_v60  ;;  %v8409_v62 = vld [vmem:[%s11518_s1 + $0x248] sm:$0xff]  ;;  %v8415_v10 = vld [vmem:[%s11518_s1 + $0x278] sm:$0xff] }
 0x503   :  { %1699 = vmatpush1.msra.mxu0 %v13060_v11  ;;  %1768 = vmatpush1.msra.mxu1 %v7787_v46  ;;  %v8151_v46 = vld [vmem:[%s11518_s1 + $0x3d8] sm:$0xff]  ;;  %13071 = vst [vmem:[#allocation15_spill] sm:$0xff] %v8409_v62  ;;  %13072 = vst [vmem:[#allocation21_spill] sm:$0xff] %v8415_v10  ;;  %v8421_v11 = vld [vmem:[%s11518_s1 + $0x240] sm:$0xff] }
 0x504   :  { %1700 = vmatprep.subr.mxu0 %v13061_v13  ;;  %1769 = vmatprep.subr.mxu1 %v13062_v14  ;;  %13073 = vst [vmem:[#allocation17_spill] sm:$0xff] %v8421_v11  ;;  %v8427_v13 = vld [vmem:[%s11518_s1 + $0x270] sm:$0xff]  ;;  %v8433_v14 = vld [vmem:[%s11518_s1 + $0x228] sm:$0xff] }
 0x505   :  { %1701 = vmatpush1.msra.mxu0 %v7805_v50  ;;  %1770 = vmatpush1.msra.mxu1 %v8116_v16  ;;  %v8130_v50 = vld [vmem:[%s11518_s1 + $0x10] sm:$0xff]  ;;  %13074 = vst [vmem:[#allocation23_spill] sm:$0xff] %v8427_v13  ;;  %13075 = vst [vmem:[#allocation25_spill] sm:$0xff] %v8433_v14 }
 0x506   :  { %1702 = vmatprep.subr.mxu0 %v7812_v15  ;;  %1771 = vmatprep.subr.mxu1 %v8123_v30  ;;  %v8137_v15 = vld [vmem:[%s11518_s1 + $0x3f8] sm:$0xff] }
 0x507   :  { %1703 = vmatpush2.msra.mxu0 %v7819_v48  ;;  %1772 = vmatpush1.msra.mxu1 %v8130_v50  ;;  %v8144_v48 = vld [vmem:[%s11518_s1 + $0x3f0] sm:$0xff] }
 0x508   :  { %1704 = vmatprep.subr.mxu0 %v7826_v8  ;;  %1773 = vmatprep.subr.mxu1 %v8137_v15  ;;  %v8157_v8 = vld [vmem:[%s11518_s1 + $0x3a0] sm:$0xff] }
 0x509   :  { %1705 = vmatpush2.msra.mxu0 %v7833_v47  ;;  %1774 = vmatpush2.msra.mxu1 %v8144_v48  ;;  %v8163_v47 = vld [vmem:[%s11518_s1 + $0x3d0] sm:$0xff] }
 0x50a   :  { %1706 = vmatprep.subr.mxu0 %v7840_v57  ;;  %1775 = vmatprep.subr.mxu1 %v8151_v46  ;;  %v8169_v57 = vld [vmem:[%s11518_s1 + $0x388] sm:$0xff] }
 0x50b   :  { %1707 = vmatpush2.msra.mxu0 %v8157_v8  ;;  %1776 = vmatpush2.msra.mxu1 %v8163_v47 }
 0x50c   :  { %1708 = vmatprep.subr.mxu0 %v8169_v57  ;;  %1777 = vmatprep.subr.mxu1 %v8175_v45 }
 0x50d   :  { %1709 = vmatpush2.msra.mxu0 %v8181_v54  ;;  %1778 = vmatpush2.msra.mxu1 %v8187_v44 }
 0x50e   :  { %1710 = vmatprep.subr.mxu0 %v8193_v52  ;;  %1779 = vmatprep.subr.mxu1 %v8199_v37 }
 0x50f   :  { %1711 = vmatpush2.msra.mxu0 %v8205_v41  ;;  %1780 = vmatpush2.msra.mxu1 %v8211_v40 }
 0x510   :  { %1712 = vmatprep.subr.mxu0 %v8217_v36  ;;  %1781 = vmatprep.subr.mxu1 %v8223_v42 }
 0x511   :  { %1713 = vmatpush2.msra.mxu0 %v8229_v6  ;;  %1782 = vmatpush2.msra.mxu1 %v8235_v24 }
 0x512   :  { %1714 = vmatprep.subr.mxu0 %v8241_v7  ;;  %1783 = vmatprep.subr.mxu1 %v8247_v17 }
 0x513   :  { %1715 = vmatpush2.msra.mxu0 %v8253_v18  ;;  %1784 = vmatpush2.msra.mxu1 %v8259_v19 }
 0x514   :  { %1716 = vmatprep.subr.mxu0 %v8265_v21  ;;  %1785 = vmatprep.subr.mxu1 %v8271_v22 }
 0x515   :  { %1717 = vmatpush2.msra.mxu0 %v8277_v26  ;;  %1786 = vmatpush2.msra.mxu1 %v8283_v27 }
 0x516   :  { %1718 = vmatprep.subr.mxu0 %v8289_v29  ;;  %1787 = vmatprep.subr.mxu1 %v8295_v32 }
 0x517   :  { %1719 = vmatpush2.msra.mxu0 %v8301_v33  ;;  %1788 = vmatpush2.msra.mxu1 %v8307_v34 }
 0x518   :  { %1720 = vmatprep.subr.mxu0 %v8313_v35  ;;  %1789 = vmatprep.subr.mxu1 %v8319_v59 }
 0x519   :  { %1721 = vmatpush2.msra.mxu0 %v8325_v39  ;;  %1790 = vmatpush2.msra.mxu1 %v8331_v58 }
 0x51a   :  { %1722 = vmatprep.subr.mxu0 %v8337_v4  ;;  %1791 = vmatprep.subr.mxu1 %v8343_v1 }
 0x51b   :  { %1723 = vmatpush2.msra.mxu0 %v8349_v5  ;;  %1792 = vmatpush2.msra.mxu1 %v8355_v53 }
 0x51c   :  { %1724 = vmatprep.subr.mxu0 %v8361_v49  ;;  %1793 = vmatprep.subr.mxu1 %v8367_v51 }
 0x51d   :  { %1725 = vmatpush2.msra.mxu0 %v8373_v56  ;;  %1794 = vmatpush2.msra.mxu1 %v8379_v63 }
 0x51e   :  { %1726 = vmatprep.subr.mxu0 %v8385_v2  ;;  %1795 = vmatprep.subr.mxu1 %v8391_v38 }
 0x51f   :  { %1727 = vmatpush2.msra.mxu0 %v8397_v0  ;;  %1796 = vmatpush2.msra.mxu1 %v8403_v60 }
 0x520   :  { %1728 = vmatprep.subr.mxu0 %v8409_v62  ;;  %1797 = vmatprep.subr.mxu1 %v8415_v10  ;;  %v8439_v10 = vld [vmem:[%s11518_s1 + $0x258] sm:$0xff]  ;;  %v8472_v62 = vld [vmem:[%s11518_s1 + $0x200] sm:$0xff] }
 0x521   :  { %1729 = vmatpush2.msra.mxu0 %v8421_v11  ;;  %1798 = vmatpush2.msra.mxu1 %v8427_v13  ;;  %13076 = vst [vmem:[#allocation27_spill] sm:$0xff] %v8439_v10  ;;  %v8445_v11 = vld [vmem:[%s11518_s1 + $0x220] sm:$0xff]  ;;  %v3050_v13 = vld [vmem:[%s11517_s0 + $0x8] sm:$0x3]  ;;  %13081 = vst [vmem:[#allocation30_spill] sm:$0xff] %v8472_v62 }
 0x522   :  { %1730 = vmatprep.subr.mxu0 %v8433_v14  ;;  %1799 = vmatprep.subr.mxu1 %v8439_v10  ;;  %13077 = vst [vmem:[#allocation22_spill] sm:$0xff] %v8445_v11  ;;  %v8454_v14 = vld [vmem:[%s11518_s1 + $0x250] sm:$0xff]  ;;  %v8460_v10 = vld [vmem:[%s11518_s1 + $0x208] sm:$0xff] }
 0x523   :  { %1731 = vmatpush2.msra.mxu0 %v8445_v11  ;;  %13078 = vst [vmem:[#allocation24_spill] sm:$0xff] %v8454_v14  ;;  %1800 = vmatpush2.msra.mxu1 %v8454_v14  ;;  %13079 = vst [vmem:[#allocation29_spill] sm:$0xff] %v8460_v10  ;;  %v8466_v11 = vld [vmem:[%s11518_s1 + $0x238] sm:$0xff]  ;;  %v8478_v14 = vld [vmem:[%s11518_s1 + $0x230] sm:$0xff] }
 0x524   :  { %1732 = vmatprep.subr.mxu0 %v8460_v10  ;;  %13080 = vst [vmem:[#allocation26_spill] sm:$0xff] %v8466_v11  ;;  %1801 = vmatprep.subr.mxu1 %v8466_v11  ;;  %13082 = vst [vmem:[#allocation28_spill] sm:$0xff] %v8478_v14  ;;  %v8484_v10 = vld [vmem:[%s11518_s1 + $0x218] sm:$0xff]  ;;  %v8490_v11 = vld [vmem:[%s11518_s1 + $0x210] sm:$0xff] }
 0x525   :  { %1733 = vmatpush2.msra.mxu0 %v8472_v62  ;;  %1802 = vmatpush2.msra.mxu1 %v8478_v14  ;;  %13083 = vst [vmem:[#allocation32_spill] sm:$0xff] %v8484_v10  ;;  %13084 = vst [vmem:[#allocation31_spill] sm:$0xff] %v8490_v11  ;;  %v8496_v62 = vld [vmem:[%s11520_s3 + $0x1e8] sm:$0xff]  ;;  %v8502_v14 = vld [vmem:[%s11520_s3 + $0x1e0] sm:$0xff] }
 0x526   :  { %1735 = vmatmul.mubr.f32.vlgmr.msra.gmra.mxu0 %v3050_v13  ;;  %1803 = vmatprep.subr.mxu1 %v8484_v10  ;;  %13085 = vst [vmem:[#allocation34_spill] sm:$0xff] %v8496_v62  ;;  %13086 = vst [vmem:[#allocation33_spill] sm:$0xff] %v8502_v14  ;;  %v8508_v10 = vld [vmem:[%s11520_s3 + $0x1f8] sm:$0xff] }
 0x527   :  { %1804 = vmatpush2.msra.mxu1 %v8490_v11  ;;  %1836 = vmatprep.subr.mxu0 %v8496_v62  ;;  %13087 = vst [vmem:[#allocation36_spill] sm:$0xff] %v8508_v10  ;;  %v8514_v11 = vld [vmem:[%s11520_s3 + $0x1c8] sm:$0xff] }
 0x528   :  { %1806 = vmatmul.mubr.f32.vlgmr.msra.gmra.mxu1 %v3050_v13  ;;  %1837 = vmatpush1.msra.mxu0 %v8502_v14  ;;  %13088 = vst [vmem:[#allocation35_spill] sm:$0xff] %v8514_v11  ;;  %v8520_v13 = vld [vmem:[%s11520_s3 + $0x1f0] sm:$0xff]  ;;  %v8526_v14 = vld [vmem:[%s11520_s3 + $0x1c0] sm:$0xff] }
 0x529   :  { %1907 = vmatprep.subr.mxu1 %v8508_v10  ;;  %1838 = vmatprep.subr.mxu0 %v8514_v11  ;;  %13089 = vst [vmem:[#allocation38_spill] sm:$0xff] %v8520_v13  ;;  %13090 = vst [vmem:[#allocation37_spill] sm:$0xff] %v8526_v14  ;;  %v8532_v10 = vld [vmem:[%s11520_s3 + $0x1d8] sm:$0xff]  ;;  %v8538_v11 = vld [vmem:[%s11520_s3 + $0x1a8] sm:$0xff] }
 0x52a   :  { %1908 = vmatpush1.msra.mxu1 %v8520_v13  ;;  %1839 = vmatpush1.msra.mxu0 %v8526_v14  ;;  %13091 = vst [vmem:[#allocation39_spill] sm:$0xff] %v8532_v10  ;;  %13092 = vst [vmem:[#allocation40_spill] sm:$0xff] %v8538_v11  ;;  %v8544_v13 = vld [vmem:[%s11520_s3 + $0x1d0] sm:$0xff]  ;;  %v8550_v14 = vld [vmem:[%s11520_s3 + $0x1a0] sm:$0xff] }
 0x52b   :  { %1909 = vmatprep.subr.mxu1 %v8532_v10  ;;  %1840 = vmatprep.subr.mxu0 %v8538_v11  ;;  %13093 = vst [vmem:[#allocation41_spill] sm:$0xff] %v8544_v13  ;;  %13094 = vst [vmem:[#allocation42_spill] sm:$0xff] %v8550_v14  ;;  %v8556_v10 = vld [vmem:[%s11520_s3 + $0x1b8] sm:$0xff]  ;;  %v8562_v11 = vld [vmem:[%s11520_s3 + $0x188] sm:$0xff] }
 0x52c   :  { %1910 = vmatpush1.msra.mxu1 %v8544_v13  ;;  %1841 = vmatpush1.msra.mxu0 %v8550_v14  ;;  %13095 = vst [vmem:[#allocation43_spill] sm:$0xff] %v8556_v10  ;;  %13096 = vst [vmem:[#allocation44_spill] sm:$0xff] %v8562_v11  ;;  %v8568_v13 = vld [vmem:[%s11520_s3 + $0x1b0] sm:$0xff]  ;;  %v8574_v14 = vld [vmem:[%s11520_s3 + $0x180] sm:$0xff] }
 0x52d   :  { %1911 = vmatprep.subr.mxu1 %v8556_v10  ;;  %1842 = vmatprep.subr.mxu0 %v8562_v11  ;;  %13097 = vst [vmem:[#allocation45_spill] sm:$0xff] %v8568_v13  ;;  %13098 = vst [vmem:[#allocation46_spill] sm:$0xff] %v8574_v14  ;;  %v8580_v10 = vld [vmem:[%s11520_s3 + $0x198] sm:$0xff]  ;;  %v8586_v11 = vld [vmem:[%s11520_s3 + $0x168] sm:$0xff] }
 0x52e   :  { %1912 = vmatpush1.msra.mxu1 %v8568_v13  ;;  %1843 = vmatpush1.msra.mxu0 %v8574_v14  ;;  %13099 = vst [vmem:[#allocation47_spill] sm:$0xff] %v8580_v10  ;;  %13100 = vst [vmem:[#allocation48_spill] sm:$0xff] %v8586_v11  ;;  %v8592_v13 = vld [vmem:[%s11520_s3 + $0x190] sm:$0xff]  ;;  %v8598_v14 = vld [vmem:[%s11520_s3 + $0x160] sm:$0xff] }
 0x52f   :  { %1913 = vmatprep.subr.mxu1 %v8580_v10  ;;  %1844 = vmatprep.subr.mxu0 %v8586_v11  ;;  %13101 = vst [vmem:[#allocation49_spill] sm:$0xff] %v8592_v13  ;;  %13102 = vst [vmem:[#allocation50_spill] sm:$0xff] %v8598_v14  ;;  %v8604_v10 = vld [vmem:[%s11520_s3 + $0x178] sm:$0xff]  ;;  %v8610_v11 = vld [vmem:[%s11520_s3 + $0x148] sm:$0xff] }
 0x530   :  { %1914 = vmatpush1.msra.mxu1 %v8592_v13  ;;  %1845 = vmatpush1.msra.mxu0 %v8598_v14  ;;  %13103 = vst [vmem:[#allocation51_spill] sm:$0xff] %v8604_v10  ;;  %13104 = vst [vmem:[#allocation52_spill] sm:$0xff] %v8610_v11  ;;  %v8616_v13 = vld [vmem:[%s11520_s3 + $0x170] sm:$0xff]  ;;  %v8622_v14 = vld [vmem:[%s11520_s3 + $0x140] sm:$0xff] }
 0x531   :  { %1915 = vmatprep.subr.mxu1 %v8604_v10  ;;  %1846 = vmatprep.subr.mxu0 %v8610_v11  ;;  %13105 = vst [vmem:[#allocation53_spill] sm:$0xff] %v8616_v13  ;;  %13106 = vst [vmem:[#allocation54_spill] sm:$0xff] %v8622_v14  ;;  %v8628_v10 = vld [vmem:[%s11520_s3 + $0x158] sm:$0xff]  ;;  %v8634_v11 = vld [vmem:[%s11520_s3 + $0x128] sm:$0xff] }
 0x532   :  { %1916 = vmatpush1.msra.mxu1 %v8616_v13  ;;  %1847 = vmatpush1.msra.mxu0 %v8622_v14  ;;  %13107 = vst [vmem:[#allocation55_spill] sm:$0xff] %v8628_v10  ;;  %13108 = vst [vmem:[#allocation56_spill] sm:$0xff] %v8634_v11  ;;  %v8640_v13 = vld [vmem:[%s11520_s3 + $0x150] sm:$0xff]  ;;  %v8646_v14 = vld [vmem:[%s11520_s3 + $0x120] sm:$0xff] }
 0x533   :  { %1917 = vmatprep.subr.mxu1 %v8628_v10  ;;  %1848 = vmatprep.subr.mxu0 %v8634_v11  ;;  %13109 = vst [vmem:[#allocation57_spill] sm:$0xff] %v8640_v13  ;;  %13110 = vst [vmem:[#allocation58_spill] sm:$0xff] %v8646_v14  ;;  %v8652_v10 = vld [vmem:[%s11520_s3 + $0x138] sm:$0xff]  ;;  %v8658_v11 = vld [vmem:[%s11520_s3 + $0x108] sm:$0xff] }
 0x534   :  { %1918 = vmatpush1.msra.mxu1 %v8640_v13  ;;  %1849 = vmatpush1.msra.mxu0 %v8646_v14  ;;  %13111 = vst [vmem:[#allocation59_spill] sm:$0xff] %v8652_v10  ;;  %13112 = vst [vmem:[#allocation60_spill] sm:$0xff] %v8658_v11  ;;  %v8664_v13 = vld [vmem:[%s11520_s3 + $0x130] sm:$0xff]  ;;  %v8670_v14 = vld [vmem:[%s11520_s3 + $0x100] sm:$0xff] }
 0x535   :  { %1919 = vmatprep.subr.mxu1 %v8652_v10  ;;  %1850 = vmatprep.subr.mxu0 %v8658_v11  ;;  %13113 = vst [vmem:[#allocation61_spill] sm:$0xff] %v8664_v13  ;;  %13114 = vst [vmem:[#allocation62_spill] sm:$0xff] %v8670_v14  ;;  %v8676_v10 = vld [vmem:[%s11520_s3 + $0x118] sm:$0xff]  ;;  %v8682_v11 = vld [vmem:[%s11520_s3 + $0xe8] sm:$0xff] }
 0x536   :  { %1920 = vmatpush1.msra.mxu1 %v8664_v13  ;;  %1851 = vmatpush1.msra.mxu0 %v8670_v14  ;;  %13115 = vst [vmem:[#allocation63_spill] sm:$0xff] %v8676_v10  ;;  %13116 = vst [vmem:[#allocation64_spill] sm:$0xff] %v8682_v11  ;;  %v8688_v13 = vld [vmem:[%s11520_s3 + $0x110] sm:$0xff]  ;;  %v8694_v14 = vld [vmem:[%s11520_s3 + $0xe0] sm:$0xff] }
 0x537   :  { %1921 = vmatprep.subr.mxu1 %v8676_v10  ;;  %1852 = vmatprep.subr.mxu0 %v8682_v11  ;;  %13117 = vst [vmem:[#allocation65_spill] sm:$0xff] %v8688_v13  ;;  %13118 = vst [vmem:[#allocation66_spill] sm:$0xff] %v8694_v14  ;;  %v8700_v10 = vld [vmem:[%s11520_s3 + $0xf8] sm:$0xff]  ;;  %v8706_v11 = vld [vmem:[%s11520_s3 + $0xc8] sm:$0xff] }
 0x538   :  { %1922 = vmatpush1.msra.mxu1 %v8688_v13  ;;  %1853 = vmatpush1.msra.mxu0 %v8694_v14  ;;  %13119 = vst [vmem:[#allocation67_spill] sm:$0xff] %v8700_v10  ;;  %13120 = vst [vmem:[#allocation68_spill] sm:$0xff] %v8706_v11  ;;  %v8712_v13 = vld [vmem:[%s11520_s3 + $0xf0] sm:$0xff]  ;;  %v8718_v14 = vld [vmem:[%s11520_s3 + $0xc0] sm:$0xff] }
 0x539   :  { %1923 = vmatprep.subr.mxu1 %v8700_v10  ;;  %1854 = vmatprep.subr.mxu0 %v8706_v11  ;;  %13121 = vst [vmem:[#allocation69_spill] sm:$0xff] %v8712_v13  ;;  %13122 = vst [vmem:[#allocation70_spill] sm:$0xff] %v8718_v14  ;;  %v8724_v10 = vld [vmem:[%s11520_s3 + $0xd8] sm:$0xff]  ;;  %v8730_v11 = vld [vmem:[%s11520_s3 + $0xa8] sm:$0xff] }
 0x53a   :  { %1924 = vmatpush1.msra.mxu1 %v8712_v13  ;;  %1855 = vmatpush1.msra.mxu0 %v8718_v14  ;;  %13123 = vst [vmem:[#allocation71_spill] sm:$0xff] %v8724_v10  ;;  %13124 = vst [vmem:[#allocation72_spill] sm:$0xff] %v8730_v11  ;;  %v8736_v13 = vld [vmem:[%s11520_s3 + $0xd0] sm:$0xff]  ;;  %v8742_v14 = vld [vmem:[%s11520_s3 + $0xa0] sm:$0xff] }
 0x53b   :  { %1925 = vmatprep.subr.mxu1 %v8724_v10  ;;  %1856 = vmatprep.subr.mxu0 %v8730_v11  ;;  %13125 = vst [vmem:[#allocation73_spill] sm:$0xff] %v8736_v13  ;;  %13126 = vst [vmem:[#allocation74_spill] sm:$0xff] %v8742_v14  ;;  %v8748_v10 = vld [vmem:[%s11520_s3 + $0xb8] sm:$0xff]  ;;  %v8754_v11 = vld [vmem:[%s11520_s3 + $0x88] sm:$0xff] }
 0x53c   :  { %1926 = vmatpush1.msra.mxu1 %v8736_v13  ;;  %1857 = vmatpush1.msra.mxu0 %v8742_v14  ;;  %13127 = vst [vmem:[#allocation75_spill] sm:$0xff] %v8748_v10  ;;  %13128 = vst [vmem:[#allocation76_spill] sm:$0xff] %v8754_v11  ;;  %v8760_v13 = vld [vmem:[%s11520_s3 + $0xb0] sm:$0xff]  ;;  %v8766_v14 = vld [vmem:[%s11520_s3 + $0x80] sm:$0xff] }
 0x53d   :  { %1927 = vmatprep.subr.mxu1 %v8748_v10  ;;  %1858 = vmatprep.subr.mxu0 %v8754_v11  ;;  %13129 = vst [vmem:[#allocation77_spill] sm:$0xff] %v8760_v13  ;;  %13130 = vst [vmem:[#allocation78_spill] sm:$0xff] %v8766_v14  ;;  %v8772_v10 = vld [vmem:[%s11520_s3 + $0x98] sm:$0xff]  ;;  %v8778_v11 = vld [vmem:[%s11520_s3 + $0x68] sm:$0xff] }
 0x53e   :  { %1928 = vmatpush1.msra.mxu1 %v8760_v13  ;;  %1859 = vmatpush1.msra.mxu0 %v8766_v14  ;;  %13131 = vst [vmem:[#allocation79_spill] sm:$0xff] %v8772_v10  ;;  %13132 = vst [vmem:[#allocation80_spill] sm:$0xff] %v8778_v11  ;;  %v8784_v13 = vld [vmem:[%s11520_s3 + $0x90] sm:$0xff]  ;;  %v8790_v14 = vld [vmem:[%s11520_s3 + $0x60] sm:$0xff] }
 0x53f   :  { %1929 = vmatprep.subr.mxu1 %v8772_v10  ;;  %1860 = vmatprep.subr.mxu0 %v8778_v11  ;;  %13133 = vst [vmem:[#allocation81_spill] sm:$0xff] %v8784_v13  ;;  %13134 = vst [vmem:[#allocation82_spill] sm:$0xff] %v8790_v14  ;;  %v8796_v10 = vld [vmem:[%s11520_s3 + $0x78] sm:$0xff]  ;;  %v8802_v11 = vld [vmem:[%s11520_s3 + $0x48] sm:$0xff] }
 0x540   :  { %1930 = vmatpush1.msra.mxu1 %v8784_v13  ;;  %1861 = vmatpush1.msra.mxu0 %v8790_v14  ;;  %13135 = vst [vmem:[#allocation83_spill] sm:$0xff] %v8796_v10  ;;  %13136 = vst [vmem:[#allocation84_spill] sm:$0xff] %v8802_v11  ;;  %v8808_v13 = vld [vmem:[%s11520_s3 + $0x70] sm:$0xff]  ;;  %v8814_v14 = vld [vmem:[%s11520_s3 + $0x40] sm:$0xff] }
 0x541   :  { %1931 = vmatprep.subr.mxu1 %v8796_v10  ;;  %1862 = vmatprep.subr.mxu0 %v8802_v11  ;;  %13137 = vst [vmem:[#allocation85_spill] sm:$0xff] %v8808_v13  ;;  %13138 = vst [vmem:[#allocation86_spill] sm:$0xff] %v8814_v14  ;;  %v8820_v10 = vld [vmem:[%s11520_s3 + $0x58] sm:$0xff]  ;;  %v8826_v11 = vld [vmem:[%s11520_s3 + $0x28] sm:$0xff] }
 0x542   :  { %1932 = vmatpush1.msra.mxu1 %v8808_v13  ;;  %1863 = vmatpush1.msra.mxu0 %v8814_v14  ;;  %13139 = vst [vmem:[#allocation87_spill] sm:$0xff] %v8820_v10  ;;  %13140 = vst [vmem:[#allocation88_spill] sm:$0xff] %v8826_v11  ;;  %v8832_v13 = vld [vmem:[%s11520_s3 + $0x50] sm:$0xff]  ;;  %v8838_v14 = vld [vmem:[%s11520_s3 + $0x20] sm:$0xff] }
 0x543   :  { %1933 = vmatprep.subr.mxu1 %v8820_v10  ;;  %1864 = vmatprep.subr.mxu0 %v8826_v11  ;;  %13141 = vst [vmem:[#allocation89_spill] sm:$0xff] %v8832_v13  ;;  %13142 = vst [vmem:[#allocation90_spill] sm:$0xff] %v8838_v14  ;;  %v8844_v10 = vld [vmem:[%s11520_s3 + $0x38] sm:$0xff]  ;;  %v8850_v11 = vld [vmem:[%s11520_s3 + $0x8] sm:$0xff] }
 0x544   :  { %1934 = vmatpush1.msra.mxu1 %v8832_v13  ;;  %1865 = vmatpush1.msra.mxu0 %v8838_v14  ;;  %13143 = vst [vmem:[#allocation91_spill] sm:$0xff] %v8844_v10  ;;  %13144 = vst [vmem:[#allocation92_spill] sm:$0xff] %v8850_v11  ;;  %v8856_v13 = vld [vmem:[%s11520_s3 + $0x30] sm:$0xff]  ;;  %v8862_v14 = vld [vmem:[%s11520_s3] sm:$0xff] }
 0x545   :  { %1935 = vmatprep.subr.mxu1 %v8844_v10  ;;  %1866 = vmatprep.subr.mxu0 %v8850_v11  ;;  %13145 = vst [vmem:[#allocation93_spill] sm:$0xff] %v8856_v13  ;;  %13146 = vst [vmem:[#allocation94_spill] sm:$0xff] %v8862_v14  ;;  %v8868_v10 = vld [vmem:[%s11520_s3 + $0x18] sm:$0xff]  ;;  %v8874_v11 = vld [vmem:[%s11520_s3 + $0x3e8] sm:$0xff] }
 0x546   :  { %1936 = vmatpush1.msra.mxu1 %v8856_v13  ;;  %1867 = vmatpush1.msra.mxu0 %v8862_v14  ;;  %13147 = vst [vmem:[#allocation95_spill] sm:$0xff] %v8868_v10  ;;  %13148 = vst [vmem:[#allocation96_spill] sm:$0xff] %v8874_v11  ;;  %v8880_v13 = vld [vmem:[%s11520_s3 + $0x10] sm:$0xff]  ;;  %v8886_v14 = vld [vmem:[%s11520_s3 + $0x3e0] sm:$0xff] }
 0x547   :  { %1937 = vmatprep.subr.mxu1 %v8868_v10  ;;  %1868 = vmatprep.subr.mxu0 %v8874_v11  ;;  %13149 = vst [vmem:[#allocation97_spill] sm:$0xff] %v8880_v13  ;;  %13150 = vst [vmem:[#allocation98_spill] sm:$0xff] %v8886_v14  ;;  %v8892_v10 = vld [vmem:[%s11520_s3 + $0x3f8] sm:$0xff]  ;;  %v8898_v11 = vld [vmem:[%s11520_s3 + $0x3c8] sm:$0xff] }
 0x548   :  { %1938 = vmatpush1.msra.mxu1 %v8880_v13  ;;  %1869 = vmatpush2.msra.mxu0 %v8886_v14  ;;  %13151 = vst [vmem:[#allocation99_spill] sm:$0xff] %v8892_v10  ;;  %13152 = vst [vmem:[#allocation100_spill] sm:$0xff] %v8898_v11  ;;  %v8904_v13 = vld [vmem:[%s11520_s3 + $0x3f0] sm:$0xff]  ;;  %v8910_v14 = vld [vmem:[%s11520_s3 + $0x3c0] sm:$0xff] }
 0x549   :  { %1939 = vmatprep.subr.mxu1 %v8892_v10  ;;  %1870 = vmatprep.subr.mxu0 %v8898_v11  ;;  %13153 = vst [vmem:[#allocation101_spill] sm:$0xff] %v8904_v13  ;;  %13154 = vst [vmem:[#allocation102_spill] sm:$0xff] %v8910_v14  ;;  %v8916_v10 = vld [vmem:[%s11520_s3 + $0x3d8] sm:$0xff]  ;;  %v8922_v11 = vld [vmem:[%s11520_s3 + $0x3a8] sm:$0xff] }
 0x54a   :  { %1940 = vmatpush2.msra.mxu1 %v8904_v13  ;;  %1871 = vmatpush2.msra.mxu0 %v8910_v14  ;;  %13155 = vst [vmem:[#allocation103_spill] sm:$0xff] %v8916_v10  ;;  %13156 = vst [vmem:[#allocation104_spill] sm:$0xff] %v8922_v11  ;;  %v8928_v13 = vld [vmem:[%s11520_s3 + $0x3d0] sm:$0xff]  ;;  %v8934_v14 = vld [vmem:[%s11520_s3 + $0x3a0] sm:$0xff] }
 0x54b   :  { %1941 = vmatprep.subr.mxu1 %v8916_v10  ;;  %1872 = vmatprep.subr.mxu0 %v8922_v11  ;;  %13157 = vst [vmem:[#allocation105_spill] sm:$0xff] %v8928_v13  ;;  %13158 = vst [vmem:[#allocation106_spill] sm:$0xff] %v8934_v14  ;;  %v8940_v10 = vld [vmem:[%s11520_s3 + $0x3b8] sm:$0xff]  ;;  %v8946_v11 = vld [vmem:[%s11520_s3 + $0x388] sm:$0xff] }
 0x54c   :  { %1942 = vmatpush2.msra.mxu1 %v8928_v13  ;;  %1873 = vmatpush2.msra.mxu0 %v8934_v14  ;;  %13159 = vst [vmem:[#allocation107_spill] sm:$0xff] %v8940_v10  ;;  %13160 = vst [vmem:[#allocation108_spill] sm:$0xff] %v8946_v11  ;;  %v8952_v13 = vld [vmem:[%s11520_s3 + $0x3b0] sm:$0xff]  ;;  %v8958_v14 = vld [vmem:[%s11520_s3 + $0x380] sm:$0xff] }
 0x54d   :  { %1943 = vmatprep.subr.mxu1 %v8940_v10  ;;  %1874 = vmatprep.subr.mxu0 %v8946_v11  ;;  %13161 = vst [vmem:[#allocation109_spill] sm:$0xff] %v8952_v13  ;;  %13162 = vst [vmem:[#allocation110_spill] sm:$0xff] %v8958_v14  ;;  %v8964_v10 = vld [vmem:[%s11520_s3 + $0x398] sm:$0xff]  ;;  %v8970_v11 = vld [vmem:[%s11520_s3 + $0x368] sm:$0xff] }
 0x54e   :  { %1944 = vmatpush2.msra.mxu1 %v8952_v13  ;;  %1875 = vmatpush2.msra.mxu0 %v8958_v14  ;;  %13163 = vst [vmem:[#allocation111_spill] sm:$0xff] %v8964_v10  ;;  %13164 = vst [vmem:[#allocation112_spill] sm:$0xff] %v8970_v11  ;;  %v8976_v13 = vld [vmem:[%s11520_s3 + $0x390] sm:$0xff]  ;;  %v8982_v14 = vld [vmem:[%s11520_s3 + $0x360] sm:$0xff] }
 0x54f   :  { %1945 = vmatprep.subr.mxu1 %v8964_v10  ;;  %1876 = vmatprep.subr.mxu0 %v8970_v11  ;;  %13165 = vst [vmem:[#allocation113_spill] sm:$0xff] %v8976_v13  ;;  %13166 = vst [vmem:[#allocation114_spill] sm:$0xff] %v8982_v14  ;;  %v8988_v10 = vld [vmem:[%s11520_s3 + $0x378] sm:$0xff]  ;;  %v8994_v11 = vld [vmem:[%s11520_s3 + $0x348] sm:$0xff] }
 0x550   :  { %1946 = vmatpush2.msra.mxu1 %v8976_v13  ;;  %1877 = vmatpush2.msra.mxu0 %v8982_v14  ;;  %13167 = vst [vmem:[#allocation115_spill] sm:$0xff] %v8988_v10  ;;  %13168 = vst [vmem:[#allocation116_spill] sm:$0xff] %v8994_v11  ;;  %v9000_v13 = vld [vmem:[%s11520_s3 + $0x370] sm:$0xff]  ;;  %v9006_v14 = vld [vmem:[%s11520_s3 + $0x340] sm:$0xff] }
 0x551   :  { %1947 = vmatprep.subr.mxu1 %v8988_v10  ;;  %1878 = vmatprep.subr.mxu0 %v8994_v11  ;;  %13169 = vst [vmem:[#allocation117_spill] sm:$0xff] %v9000_v13  ;;  %13170 = vst [vmem:[#allocation118_spill] sm:$0xff] %v9006_v14  ;;  %v9012_v10 = vld [vmem:[%s11520_s3 + $0x358] sm:$0xff]  ;;  %v9018_v11 = vld [vmem:[%s11520_s3 + $0x328] sm:$0xff] }
 0x552   :  { %1948 = vmatpush2.msra.mxu1 %v9000_v13  ;;  %1879 = vmatpush2.msra.mxu0 %v9006_v14  ;;  %13171 = vst [vmem:[#allocation119_spill] sm:$0xff] %v9012_v10  ;;  %13172 = vst [vmem:[#allocation120_spill] sm:$0xff] %v9018_v11  ;;  %v9024_v13 = vld [vmem:[%s11520_s3 + $0x350] sm:$0xff]  ;;  %v9030_v14 = vld [vmem:[%s11520_s3 + $0x320] sm:$0xff] }
 0x553   :  { %1949 = vmatprep.subr.mxu1 %v9012_v10  ;;  %1880 = vmatprep.subr.mxu0 %v9018_v11  ;;  %13173 = vst [vmem:[#allocation121_spill] sm:$0xff] %v9024_v13  ;;  %13174 = vst [vmem:[#allocation122_spill] sm:$0xff] %v9030_v14  ;;  %v9036_v10 = vld [vmem:[%s11520_s3 + $0x338] sm:$0xff]  ;;  %v9042_v11 = vld [vmem:[%s11520_s3 + $0x308] sm:$0xff] }
 0x554   :  { %1950 = vmatpush2.msra.mxu1 %v9024_v13  ;;  %1881 = vmatpush2.msra.mxu0 %v9030_v14  ;;  %13175 = vst [vmem:[#allocation123_spill] sm:$0xff] %v9036_v10  ;;  %13176 = vst [vmem:[#allocation124_spill] sm:$0xff] %v9042_v11  ;;  %v9048_v13 = vld [vmem:[%s11520_s3 + $0x330] sm:$0xff]  ;;  %v9054_v14 = vld [vmem:[%s11520_s3 + $0x300] sm:$0xff] }
 0x555   :  { %1951 = vmatprep.subr.mxu1 %v9036_v10  ;;  %1882 = vmatprep.subr.mxu0 %v9042_v11  ;;  %13177 = vst [vmem:[#allocation125_spill] sm:$0xff] %v9048_v13  ;;  %13178 = vst [vmem:[#allocation126_spill] sm:$0xff] %v9054_v14  ;;  %v9060_v10 = vld [vmem:[%s11520_s3 + $0x318] sm:$0xff]  ;;  %v9066_v11 = vld [vmem:[%s11520_s3 + $0x2e8] sm:$0xff] }
 0x556   :  { %1952 = vmatpush2.msra.mxu1 %v9048_v13  ;;  %1883 = vmatpush2.msra.mxu0 %v9054_v14  ;;  %13179 = vst [vmem:[#allocation127_spill] sm:$0xff] %v9060_v10  ;;  %13180 = vst [vmem:[#allocation128_spill] sm:$0xff] %v9066_v11  ;;  %v9072_v13 = vld [vmem:[%s11520_s3 + $0x310] sm:$0xff]  ;;  %v9078_v14 = vld [vmem:[%s11520_s3 + $0x2e0] sm:$0xff] }
 0x557   :  { %1953 = vmatprep.subr.mxu1 %v9060_v10  ;;  %1884 = vmatprep.subr.mxu0 %v9066_v11  ;;  %13181 = vst [vmem:[#allocation129_spill] sm:$0xff] %v9072_v13  ;;  %13182 = vst [vmem:[#allocation130_spill] sm:$0xff] %v9078_v14  ;;  %v9084_v10 = vld [vmem:[%s11520_s3 + $0x2f8] sm:$0xff]  ;;  %v9090_v11 = vld [vmem:[%s11520_s3 + $0x2c8] sm:$0xff] }
 0x558   :  { %1954 = vmatpush2.msra.mxu1 %v9072_v13  ;;  %1885 = vmatpush2.msra.mxu0 %v9078_v14  ;;  %13183 = vst [vmem:[#allocation131_spill] sm:$0xff] %v9084_v10  ;;  %13184 = vst [vmem:[#allocation132_spill] sm:$0xff] %v9090_v11  ;;  %v9096_v13 = vld [vmem:[%s11520_s3 + $0x2f0] sm:$0xff]  ;;  %v9102_v14 = vld [vmem:[%s11520_s3 + $0x2c0] sm:$0xff] }
 0x559   :  { %1955 = vmatprep.subr.mxu1 %v9084_v10  ;;  %1886 = vmatprep.subr.mxu0 %v9090_v11  ;;  %13185 = vst [vmem:[#allocation133_spill] sm:$0xff] %v9096_v13  ;;  %13186 = vst [vmem:[#allocation134_spill] sm:$0xff] %v9102_v14  ;;  %v9108_v10 = vld [vmem:[%s11520_s3 + $0x2d8] sm:$0xff]  ;;  %v9114_v11 = vld [vmem:[%s11520_s3 + $0x2a8] sm:$0xff] }
 0x55a   :  { %1956 = vmatpush2.msra.mxu1 %v9096_v13  ;;  %1887 = vmatpush2.msra.mxu0 %v9102_v14  ;;  %13187 = vst [vmem:[#allocation135_spill] sm:$0xff] %v9108_v10  ;;  %13188 = vst [vmem:[#allocation136_spill] sm:$0xff] %v9114_v11  ;;  %v9120_v13 = vld [vmem:[%s11520_s3 + $0x2d0] sm:$0xff]  ;;  %v9126_v14 = vld [vmem:[%s11520_s3 + $0x2a0] sm:$0xff] }
 0x55b   :  { %1957 = vmatprep.subr.mxu1 %v9108_v10  ;;  %1888 = vmatprep.subr.mxu0 %v9114_v11  ;;  %13189 = vst [vmem:[#allocation137_spill] sm:$0xff] %v9120_v13  ;;  %13190 = vst [vmem:[#allocation138_spill] sm:$0xff] %v9126_v14  ;;  %v9132_v10 = vld [vmem:[%s11520_s3 + $0x2b8] sm:$0xff]  ;;  %v9138_v11 = vld [vmem:[%s11520_s3 + $0x288] sm:$0xff] }
 0x55c   :  { %1958 = vmatpush2.msra.mxu1 %v9120_v13  ;;  %1889 = vmatpush2.msra.mxu0 %v9126_v14  ;;  %13191 = vst [vmem:[#allocation139_spill] sm:$0xff] %v9132_v10  ;;  %13192 = vst [vmem:[#allocation140_spill] sm:$0xff] %v9138_v11  ;;  %v9144_v13 = vld [vmem:[%s11520_s3 + $0x2b0] sm:$0xff]  ;;  %v9150_v14 = vld [vmem:[%s11520_s3 + $0x280] sm:$0xff] }
 0x55d   :  { %1959 = vmatprep.subr.mxu1 %v9132_v10  ;;  %1890 = vmatprep.subr.mxu0 %v9138_v11  ;;  %13193 = vst [vmem:[#allocation141_spill] sm:$0xff] %v9144_v13  ;;  %13194 = vst [vmem:[#allocation142_spill] sm:$0xff] %v9150_v14  ;;  %v9156_v10 = vld [vmem:[%s11520_s3 + $0x298] sm:$0xff]  ;;  %v9162_v11 = vld [vmem:[%s11520_s3 + $0x268] sm:$0xff] }
 0x55e   :  { %1960 = vmatpush2.msra.mxu1 %v9144_v13  ;;  %1891 = vmatpush2.msra.mxu0 %v9150_v14  ;;  %13195 = vst [vmem:[#allocation143_spill] sm:$0xff] %v9156_v10  ;;  %13196 = vst [vmem:[#allocation144_spill] sm:$0xff] %v9162_v11  ;;  %v9168_v13 = vld [vmem:[%s11520_s3 + $0x290] sm:$0xff]  ;;  %v9174_v14 = vld [vmem:[%s11520_s3 + $0x260] sm:$0xff] }
 0x55f   :  { %1961 = vmatprep.subr.mxu1 %v9156_v10  ;;  %1892 = vmatprep.subr.mxu0 %v9162_v11  ;;  %13197 = vst [vmem:[#allocation145_spill] sm:$0xff] %v9168_v13  ;;  %13198 = vst [vmem:[#allocation146_spill] sm:$0xff] %v9174_v14  ;;  %v9180_v10 = vld [vmem:[%s11520_s3 + $0x278] sm:$0xff]  ;;  %v9186_v11 = vld [vmem:[%s11520_s3 + $0x248] sm:$0xff] }
 0x560   :  { %1962 = vmatpush2.msra.mxu1 %v9168_v13  ;;  %1893 = vmatpush2.msra.mxu0 %v9174_v14  ;;  %13199 = vst [vmem:[#allocation147_spill] sm:$0xff] %v9180_v10  ;;  %13200 = vst [vmem:[#allocation148_spill] sm:$0xff] %v9186_v11  ;;  %v9192_v13 = vld [vmem:[%s11520_s3 + $0x270] sm:$0xff]  ;;  %v9198_v14 = vld [vmem:[%s11520_s3 + $0x240] sm:$0xff] }
 0x561   :  { %1963 = vmatprep.subr.mxu1 %v9180_v10  ;;  %1894 = vmatprep.subr.mxu0 %v9186_v11  ;;  %13201 = vst [vmem:[#allocation149_spill] sm:$0xff] %v9192_v13  ;;  %13202 = vst [vmem:[#allocation150_spill] sm:$0xff] %v9198_v14  ;;  %v9204_v10 = vld [vmem:[%s11520_s3 + $0x258] sm:$0xff]  ;;  %v9210_v11 = vld [vmem:[%s11520_s3 + $0x228] sm:$0xff] }
 0x562   :  { %1964 = vmatpush2.msra.mxu1 %v9192_v13  ;;  %1895 = vmatpush2.msra.mxu0 %v9198_v14  ;;  %13203 = vst [vmem:[#allocation151_spill] sm:$0xff] %v9204_v10  ;;  %13204 = vst [vmem:[#allocation153_spill] sm:$0xff] %v9210_v11  ;;  %v9216_v13 = vld [vmem:[%s11520_s3 + $0x250] sm:$0xff]  ;;  %v9222_v14 = vld [vmem:[%s11520_s3 + $0x220] sm:$0xff] }
 0x563   :  { %1965 = vmatprep.subr.mxu1 %v9204_v10  ;;  %1896 = vmatprep.subr.mxu0 %v9210_v11  ;;  %13205 = vst [vmem:[#allocation152_spill] sm:$0xff] %v9216_v13  ;;  %13206 = vst [vmem:[#allocation154_spill] sm:$0xff] %v9222_v14  ;;  %v9228_v10 = vld [vmem:[%s11520_s3 + $0x238] sm:$0xff]  ;;  %v9234_v11 = vld [vmem:[%s11520_s3 + $0x208] sm:$0xff] }
 0x564   :  { %1966 = vmatpush2.msra.mxu1 %v9216_v13  ;;  %1897 = vmatpush2.msra.mxu0 %v9222_v14  ;;  %13207 = vst [vmem:[#allocation155_spill] sm:$0xff] %v9228_v10  ;;  %13208 = vst [vmem:[#allocation156_spill] sm:$0xff] %v9234_v11  ;;  %v9240_v13 = vld [vmem:[%s11520_s3 + $0x230] sm:$0xff]  ;;  %v9246_v14 = vld [vmem:[%s11520_s3 + $0x200] sm:$0xff] }
 0x565   :  { %1967 = vmatprep.subr.mxu1 %v9228_v10  ;;  %1898 = vmatprep.subr.mxu0 %v9234_v11  ;;  %13209 = vst [vmem:[#allocation157_spill] sm:$0xff] %v9240_v13  ;;  %13210 = vst [vmem:[#allocation158_spill] sm:$0xff] %v9246_v14  ;;  %v9252_v10 = vld [vmem:[%s11520_s3 + $0x218] sm:$0xff]  ;;  %v9258_v11 = vld [vmem:[%s11518_s1 + $0x1e8] sm:$0xff] }
 0x566   :  { %1968 = vmatpush2.msra.mxu1 %v9240_v13  ;;  %1899 = vmatpush2.msra.mxu0 %v9246_v14  ;;  %13211 = vst [vmem:[#allocation159_spill] sm:$0xff] %v9252_v10  ;;  %13212 = vst [vmem:[#allocation160_spill] sm:$0xff] %v9258_v11  ;;  %v9264_v13 = vld [vmem:[%s11520_s3 + $0x210] sm:$0xff] }
 0x567   :  { %1969 = vmatprep.subr.mxu1 %v9252_v10  ;;  %2004 = vmatprep.subr.mxu0 %v9258_v11  ;;  %13213 = vst [vmem:[#allocation161_spill] sm:$0xff] %v9264_v13 }
 0x568   :  { %1970 = vmatpush2.msra.mxu1 %v9264_v13 }
 0x569   :  { %2075 = vmatprep.subr.mxu1 %v8035_v3 }
 0x5a6   :  { %v1568_v14 = vpop.f32.mrf.mxu0  ;;  %v1639_v11 = vpop.f32.mrf.mxu1 }
 0x5a7   :  { %v1569_v62 = vadd.f32 %v1568_v14, %v6195_v28  ;;  %v1640_v2 = vadd.f32 %v1639_v11, %v13017_v61 }
 0x5a8   :  { %v1570_v10 = vpop.f32.mrf.mxu0  ;;  %v1641_v63 = vpop.f32.mrf.mxu1 }
 0x5a9   :  { %v3047_v60 = vmul.f32 -1.442695, %v1569_v62  ;;  %v1571_v0 = vadd.f32 %v1570_v10, %v13016_v55  ;;  %v3049_v56 = vmul.f32 -1.442695, %v1640_v2  ;;  %v1642_v13 = vadd.f32 %v1641_v63, %v6210_v43 }
 0x5ab   :  { %3192 = vpow2.f32 %v3047_v60  ;;  %v3048_v38 = vmul.f32 -1.442695, %v1571_v0 }
 0x5ad   :  { %3194 = vpow2.f32 %v3048_v38 }
 0x5ae   :  { %3196 = vpow2.f32 %v3049_v56 }
 0x5b8   :  { %v3193_v51 = vpop.eup %3192 }
 0x5b9   :  { %v1653_v49 = vadd.f32 1.0, %v3193_v51 }
 0x5ba   :  { %v3195_v3 = vpop.eup %3194 }
 0x5bb   :  { %3198 = vrcp.f32 %v1653_v49  ;;  %v1654_v14 = vadd.f32 1.0, %v3195_v3  ;;  %v3197_v62 = vpop.eup %3196 }
 0x5bc   :  { %3200 = vtanh.f32 %v1642_v13  ;;  %v1655_v38 = vadd.f32 1.0, %v3197_v62 }
 0x5bd   :  { %3202 = vrcp.f32 %v1654_v14 }
 0x5be   :  { %3204 = vrcp.f32 %v1655_v38 }
 0x5c8   :  { %v3199_v10 = vpop.eup %3198 }
 0x5c9   :  { %v3201_v60 = vpop.eup %3200 }
 0x5ca   :  { %v3203_v0 = vpop.eup %3202  ;;  %v1664_v11 = vmul.f32 %v3201_v60, %v3199_v10 }
 0x5cb   :  { %v1663_v55 = vmul.f32 %v3203_v0, %v8043_v23  ;;  %v3205_v51 = vpop.eup %3204 }
 0x5cd   :  { %v9273_v61 = vadd.f32 %v1664_v11, %v1663_v55 }
 0x5cf   :  { %3206 = vtanh.f32 %v9273_v61 }
 0x5dc   :  { %v3207_v63 = vpop.eup %3206 }
 0x5dd   :  { %v1667_v56 = vmul.f32 %v3207_v63, %v3205_v51 }
 0x5df   :  { %1900 = vmatprep.mubr.f32.mxu0 %v1667_v56  ;;  %1971 = vmatprep.mubr.f32.mxu1 %v1667_v56 }
 0x5e6   :  { %v1736_v49 = vpop.f32.mrf.mxu0 }
 0x5e7   :  { %v1737_v2 = vadd.f32 %v1736_v49, %v12621_v20 }
 0x5e8   :  { %v1738_v13 = vpop.f32.mrf.mxu0  ;;  %v1807_v55 = vpop.f32.mrf.mxu1 }
 0x5e9   :  { %v3051_v3 = vmul.f32 -1.442695, %v1737_v2  ;;  %v1739_v14 = vadd.f32 %v1738_v13, %v12622_v25  ;;  %v1808_v62 = vadd.f32 %v1807_v55, %v12623_v31 }
 0x5ea   :  { %v1809_v10 = vpop.f32.mrf.mxu1 }
 0x5eb   :  { %3208 = vpow2.f32 %v3051_v3  ;;  %v3052_v23 = vmul.f32 -1.442695, %v1739_v14  ;;  %v3053_v60 = vmul.f32 -1.442695, %v1808_v62  ;;  %v1810_v0 = vadd.f32 %v1809_v10, %v5600_v9 }
 0x5ed   :  { %3210 = vpow2.f32 %v3052_v23 }
 0x5ee   :  { %3212 = vpow2.f32 %v3053_v60 }
 0x5ef   :  { %3214 = vtanh.f32 %v1810_v0  ;;  %v9287_v0 = vld [vmem:[%s11518_s1 + $0x1e0] sm:$0xff] }
 0x5f8   :  { %v3209_v38 = vpop.eup %3208 }
 0x5f9   :  { %v1821_v11 = vadd.f32 1.0, %v3209_v38  ;;  %v9299_v38 = vld [vmem:[%s11518_s1 + $0x1c0] sm:$0xff] }
 0x5fa   :  { %v3211_v51 = vpop.eup %3210 }
 0x5fb   :  { %3216 = vrcp.f32 %v1821_v11  ;;  %v1822_v63 = vadd.f32 1.0, %v3211_v51  ;;  %v3213_v56 = vpop.eup %3212  ;;  %v9305_v11 = vld [vmem:[%s11518_s1 + $0x1f0] sm:$0xff]  ;;  %v9311_v51 = vld [vmem:[%s11518_s1 + $0x1a8] sm:$0xff] }
 0x5fc   :  { %v3215_v49 = vpop.eup %3214  ;;  %v1823_v3 = vadd.f32 1.0, %v3213_v56  ;;  %v9323_v56 = vld [vmem:[%s11518_s1 + $0x1a0] sm:$0xff] }
 0x5fd   :  { %3218 = vrcp.f32 %v1822_v63  ;;  %v9317_v63 = vld [vmem:[%s11518_s1 + $0x1d8] sm:$0xff] }
 0x5fe   :  { %3220 = vrcp.f32 %v1823_v3  ;;  %v9347_v3 = vld [vmem:[%s11518_s1 + $0x180] sm:$0xff] }
 0x608   :  { %v3217_v2 = vpop.eup %3216 }
 0x609   :  { %v1832_v23 = vmul.f32 %v3217_v2, %v3215_v49  ;;  %v9329_v49 = vld [vmem:[%s11518_s1 + $0x1d0] sm:$0xff]  ;;  %v9335_v2 = vld [vmem:[%s11518_s1 + $0x188] sm:$0xff] }
 0x60a   :  { %v3219_v13 = vpop.eup %3218 }
 0x60b   :  { %v1831_v14 = vmul.f32 %v3219_v13, %v8051_v12  ;;  %v3221_v62 = vpop.eup %3220  ;;  %v9293_v12 = vld [vmem:[%s11518_s1 + $0x1c8] sm:$0xff]  ;;  %v9341_v13 = vld [vmem:[%s11518_s1 + $0x1b8] sm:$0xff] }
 0x60d   :  { %v9281_v55 = vadd.f32 %v1832_v23, %v1831_v14  ;;  %v9353_v14 = vld [vmem:[%s11518_s1 + $0x1b0] sm:$0xff]  ;;  %v9359_v23 = vld [vmem:[%s11518_s1 + $0x168] sm:$0xff] }
 0x60e   :  { %13214 = vst [vmem:[#allocation162_spill] sm:$0xff] %v9359_v23 }
 0x60f   :  { %3222 = vtanh.f32 %v9281_v55 }
 0x61c   :  { %v3223_v10 = vpop.eup %3222 }
 0x61d   :  { %v1835_v60 = vmul.f32 %v3223_v10, %v3221_v62  ;;  %v9365_v62 = vld [vmem:[%s11518_s1 + $0x198] sm:$0xff]  ;;  %v9371_v10 = vld [vmem:[%s11518_s1 + $0x160] sm:$0xff] }
 0x61e   :  { %13215 = vst [vmem:[#allocation163_spill] sm:$0xff] %v9365_v62  ;;  %13216 = vst [vmem:[#allocation164_spill] sm:$0xff] %v9371_v10 }
 0x61f   :  { %1901 = vmatmul.mubr.f32.vlgmr.msra.gmra.mxu0 %v1835_v60  ;;  %1972 = vmatmul.mubr.f32.vlgmr.msra.gmra.mxu1 %v1835_v60 }
 0x620   :  { %2005 = vmatpush1.msra.mxu0 %v9287_v0  ;;  %2068 = vmatprep.mubr.f32.mxu0 %v1835_v60 }
 0x621   :  { %2006 = vmatprep.subr.mxu0 %v9293_v12  ;;  %2139 = vmatprep.mubr.f32.mxu1 %v1835_v60  ;;  %v9377_v60 = vld [vmem:[%s11518_s1 + $0x190] sm:$0xff] }
 0x622   :  { %2007 = vmatpush1.msra.mxu0 %v9299_v38  ;;  %2076 = vmatpush1.msra.mxu1 %v9305_v11  ;;  %13217 = vst [vmem:[#allocation165_spill] sm:$0xff] %v9377_v60 }
 0x623   :  { %2008 = vmatprep.subr.mxu0 %v9311_v51  ;;  %2077 = vmatprep.subr.mxu1 %v9317_v63 }
 0x624   :  { %2009 = vmatpush1.msra.mxu0 %v9323_v56  ;;  %2078 = vmatpush1.msra.mxu1 %v9329_v49 }
 0x625   :  { %2010 = vmatprep.subr.mxu0 %v9335_v2  ;;  %2079 = vmatprep.subr.mxu1 %v9341_v13 }
 0x626   :  { %2011 = vmatpush1.msra.mxu0 %v9347_v3  ;;  %2080 = vmatpush1.msra.mxu1 %v9353_v14 }
 0x627   :  { %2012 = vmatprep.subr.mxu0 %v9359_v23  ;;  %2081 = vmatprep.subr.mxu1 %v9365_v62  ;;  %v9383_v23 = vld [vmem:[%s11518_s1 + $0x148] sm:$0xff]  ;;  %v9389_v62 = vld [vmem:[%s11518_s1 + $0x178] sm:$0xff] }
 0x628   :  { %2013 = vmatpush1.msra.mxu0 %v9371_v10  ;;  %2082 = vmatpush1.msra.mxu1 %v9377_v60  ;;  %13218 = vst [vmem:[#allocation166_spill] sm:$0xff] %v9383_v23  ;;  %13219 = vst [vmem:[#allocation167_spill] sm:$0xff] %v9389_v62  ;;  %v9395_v10 = vld [vmem:[%s11518_s1 + $0x140] sm:$0xff]  ;;  %v9401_v60 = vld [vmem:[%s11518_s1 + $0x170] sm:$0xff] }
 0x629   :  { %2014 = vmatprep.subr.mxu0 %v9383_v23  ;;  %2083 = vmatprep.subr.mxu1 %v9389_v62  ;;  %13220 = vst [vmem:[#allocation168_spill] sm:$0xff] %v9395_v10  ;;  %13221 = vst [vmem:[#allocation169_spill] sm:$0xff] %v9401_v60  ;;  %v9407_v23 = vld [vmem:[%s11518_s1 + $0x128] sm:$0xff]  ;;  %v9413_v62 = vld [vmem:[%s11518_s1 + $0x158] sm:$0xff] }
 0x62a   :  { %2015 = vmatpush1.msra.mxu0 %v9395_v10  ;;  %2084 = vmatpush1.msra.mxu1 %v9401_v60  ;;  %13222 = vst [vmem:[#allocation170_spill] sm:$0xff] %v9407_v23  ;;  %13223 = vst [vmem:[#allocation171_spill] sm:$0xff] %v9413_v62  ;;  %v9419_v10 = vld [vmem:[%s11518_s1 + $0x120] sm:$0xff]  ;;  %v9425_v60 = vld [vmem:[%s11518_s1 + $0x150] sm:$0xff] }
 0x62b   :  { %2016 = vmatprep.subr.mxu0 %v9407_v23  ;;  %2085 = vmatprep.subr.mxu1 %v9413_v62  ;;  %13224 = vst [vmem:[#allocation172_spill] sm:$0xff] %v9419_v10  ;;  %13225 = vst [vmem:[#allocation173_spill] sm:$0xff] %v9425_v60  ;;  %v9431_v23 = vld [vmem:[%s11518_s1 + $0x108] sm:$0xff]  ;;  %v9437_v62 = vld [vmem:[%s11518_s1 + $0x138] sm:$0xff] }
 0x62c   :  { %2017 = vmatpush1.msra.mxu0 %v9419_v10  ;;  %2086 = vmatpush1.msra.mxu1 %v9425_v60  ;;  %13226 = vst [vmem:[#allocation174_spill] sm:$0xff] %v9431_v23  ;;  %13227 = vst [vmem:[#allocation175_spill] sm:$0xff] %v9437_v62  ;;  %v9443_v10 = vld [vmem:[%s11518_s1 + $0x100] sm:$0xff]  ;;  %v9449_v60 = vld [vmem:[%s11518_s1 + $0x130] sm:$0xff] }
 0x62d   :  { %2018 = vmatprep.subr.mxu0 %v9431_v23  ;;  %2087 = vmatprep.subr.mxu1 %v9437_v62  ;;  %13228 = vst [vmem:[#allocation176_spill] sm:$0xff] %v9443_v10  ;;  %13229 = vst [vmem:[#allocation177_spill] sm:$0xff] %v9449_v60  ;;  %v9455_v23 = vld [vmem:[%s11518_s1 + $0xe8] sm:$0xff]  ;;  %v9461_v62 = vld [vmem:[%s11518_s1 + $0x118] sm:$0xff] }
 0x62e   :  { %2019 = vmatpush1.msra.mxu0 %v9443_v10  ;;  %2088 = vmatpush1.msra.mxu1 %v9449_v60  ;;  %13230 = vst [vmem:[#allocation178_spill] sm:$0xff] %v9455_v23  ;;  %13231 = vst [vmem:[#allocation179_spill] sm:$0xff] %v9461_v62  ;;  %v9467_v10 = vld [vmem:[%s11518_s1 + $0xe0] sm:$0xff]  ;;  %v9473_v60 = vld [vmem:[%s11518_s1 + $0x110] sm:$0xff] }
 0x62f   :  { %2020 = vmatprep.subr.mxu0 %v9455_v23  ;;  %2089 = vmatprep.subr.mxu1 %v9461_v62  ;;  %13232 = vst [vmem:[#allocation180_spill] sm:$0xff] %v9467_v10  ;;  %13233 = vst [vmem:[#allocation181_spill] sm:$0xff] %v9473_v60  ;;  %v9479_v23 = vld [vmem:[%s11518_s1 + $0xc8] sm:$0xff]  ;;  %v9485_v62 = vld [vmem:[%s11518_s1 + $0xf8] sm:$0xff] }
 0x630   :  { %2021 = vmatpush1.msra.mxu0 %v9467_v10  ;;  %2090 = vmatpush1.msra.mxu1 %v9473_v60  ;;  %13234 = vst [vmem:[#allocation182_spill] sm:$0xff] %v9479_v23  ;;  %13235 = vst [vmem:[#allocation183_spill] sm:$0xff] %v9485_v62  ;;  %v9491_v10 = vld [vmem:[%s11518_s1 + $0xc0] sm:$0xff]  ;;  %v9497_v60 = vld [vmem:[%s11518_s1 + $0xf0] sm:$0xff] }
 0x631   :  { %2022 = vmatprep.subr.mxu0 %v9479_v23  ;;  %2091 = vmatprep.subr.mxu1 %v9485_v62  ;;  %13236 = vst [vmem:[#allocation184_spill] sm:$0xff] %v9491_v10  ;;  %13237 = vst [vmem:[#allocation185_spill] sm:$0xff] %v9497_v60  ;;  %v9503_v23 = vld [vmem:[%s11518_s1 + $0xa8] sm:$0xff]  ;;  %v9509_v62 = vld [vmem:[%s11518_s1 + $0xd8] sm:$0xff] }
 0x632   :  { %2023 = vmatpush1.msra.mxu0 %v9491_v10  ;;  %2092 = vmatpush1.msra.mxu1 %v9497_v60  ;;  %13238 = vst [vmem:[#allocation186_spill] sm:$0xff] %v9503_v23  ;;  %13239 = vst [vmem:[#allocation187_spill] sm:$0xff] %v9509_v62  ;;  %v9515_v10 = vld [vmem:[%s11518_s1 + $0xa0] sm:$0xff]  ;;  %v9521_v60 = vld [vmem:[%s11518_s1 + $0xd0] sm:$0xff] }
 0x633   :  { %2024 = vmatprep.subr.mxu0 %v9503_v23  ;;  %2093 = vmatprep.subr.mxu1 %v9509_v62  ;;  %13240 = vst [vmem:[#allocation188_spill] sm:$0xff] %v9515_v10  ;;  %13241 = vst [vmem:[#allocation189_spill] sm:$0xff] %v9521_v60  ;;  %v9527_v23 = vld [vmem:[%s11518_s1 + $0x88] sm:$0xff]  ;;  %v9533_v62 = vld [vmem:[%s11518_s1 + $0xb8] sm:$0xff] }
 0x634   :  { %2025 = vmatpush1.msra.mxu0 %v9515_v10  ;;  %2094 = vmatpush1.msra.mxu1 %v9521_v60  ;;  %13242 = vst [vmem:[#allocation190_spill] sm:$0xff] %v9527_v23  ;;  %13243 = vst [vmem:[#allocation191_spill] sm:$0xff] %v9533_v62  ;;  %v9539_v10 = vld [vmem:[%s11518_s1 + $0x80] sm:$0xff]  ;;  %v9545_v60 = vld [vmem:[%s11518_s1 + $0xb0] sm:$0xff] }
 0x635   :  { %2026 = vmatprep.subr.mxu0 %v9527_v23  ;;  %2095 = vmatprep.subr.mxu1 %v9533_v62  ;;  %13244 = vst [vmem:[#allocation192_spill] sm:$0xff] %v9539_v10  ;;  %13245 = vst [vmem:[#allocation193_spill] sm:$0xff] %v9545_v60  ;;  %v9551_v23 = vld [vmem:[%s11518_s1 + $0x68] sm:$0xff]  ;;  %v9557_v62 = vld [vmem:[%s11518_s1 + $0x98] sm:$0xff] }
 0x636   :  { %2027 = vmatpush1.msra.mxu0 %v9539_v10  ;;  %2096 = vmatpush1.msra.mxu1 %v9545_v60  ;;  %13246 = vst [vmem:[#allocation194_spill] sm:$0xff] %v9551_v23  ;;  %13247 = vst [vmem:[#allocation195_spill] sm:$0xff] %v9557_v62  ;;  %v9563_v10 = vld [vmem:[%s11518_s1 + $0x60] sm:$0xff]  ;;  %v9569_v60 = vld [vmem:[%s11518_s1 + $0x90] sm:$0xff] }
 0x637   :  { %2028 = vmatprep.subr.mxu0 %v9551_v23  ;;  %2097 = vmatprep.subr.mxu1 %v9557_v62  ;;  %13248 = vst [vmem:[#allocation196_spill] sm:$0xff] %v9563_v10  ;;  %13249 = vst [vmem:[#allocation197_spill] sm:$0xff] %v9569_v60  ;;  %v9575_v23 = vld [vmem:[%s11518_s1 + $0x48] sm:$0xff]  ;;  %v9581_v62 = vld [vmem:[%s11518_s1 + $0x78] sm:$0xff] }
 0x638   :  { %2029 = vmatpush1.msra.mxu0 %v9563_v10  ;;  %2098 = vmatpush1.msra.mxu1 %v9569_v60  ;;  %13250 = vst [vmem:[#allocation198_spill] sm:$0xff] %v9575_v23  ;;  %13251 = vst [vmem:[#allocation199_spill] sm:$0xff] %v9581_v62  ;;  %v9587_v10 = vld [vmem:[%s11518_s1 + $0x40] sm:$0xff]  ;;  %v9593_v60 = vld [vmem:[%s11518_s1 + $0x70] sm:$0xff] }
 0x639   :  { %2030 = vmatprep.subr.mxu0 %v9575_v23  ;;  %2099 = vmatprep.subr.mxu1 %v9581_v62  ;;  %13252 = vst [vmem:[#allocation200_spill] sm:$0xff] %v9587_v10  ;;  %13253 = vst [vmem:[#allocation201_spill] sm:$0xff] %v9593_v60  ;;  %v9599_v23 = vld [vmem:[%s11518_s1 + $0x28] sm:$0xff]  ;;  %v9605_v62 = vld [vmem:[%s11518_s1 + $0x58] sm:$0xff] }
 0x63a   :  { %2031 = vmatpush1.msra.mxu0 %v9587_v10  ;;  %2100 = vmatpush1.msra.mxu1 %v9593_v60  ;;  %13254 = vst [vmem:[#allocation202_spill] sm:$0xff] %v9599_v23  ;;  %13255 = vst [vmem:[#allocation203_spill] sm:$0xff] %v9605_v62  ;;  %v9611_v10 = vld [vmem:[%s11518_s1 + $0x20] sm:$0xff]  ;;  %v9617_v60 = vld [vmem:[%s11518_s1 + $0x50] sm:$0xff] }
 0x63b   :  { %2032 = vmatprep.subr.mxu0 %v9599_v23  ;;  %2101 = vmatprep.subr.mxu1 %v9605_v62  ;;  %13256 = vst [vmem:[#allocation204_spill] sm:$0xff] %v9611_v10  ;;  %v9623_v23 = vld [vmem:[%s11518_s1 + $0x8] sm:$0xff]  ;;  %v9629_v62 = vld [vmem:[%s11518_s1 + $0x38] sm:$0xff] }
 0x63c   :  { %2033 = vmatpush1.msra.mxu0 %v9611_v10  ;;  %2102 = vmatpush1.msra.mxu1 %v9617_v60  ;;  %13257 = vst [vmem:[#allocation205_spill] sm:$0xff] %v9623_v23  ;;  %13258 = vst [vmem:[#allocation206_spill] sm:$0xff] %v9629_v62  ;;  %v9635_v10 = vld [vmem:[%s11518_s1] sm:$0xff] }
 0x63d   :  { %2034 = vmatprep.subr.mxu0 %v9623_v23  ;;  %2103 = vmatprep.subr.mxu1 %v9629_v62  ;;  %v9642_v23 = vld [vmem:[%s11518_s1 + $0x3e8] sm:$0xff]  ;;  %v9649_v62 = vld [vmem:[%s11518_s1 + $0x3e0] sm:$0xff] }
 0x63e   :  { %2035 = vmatpush1.msra.mxu0 %v9635_v10  ;;  %2104 = vmatpush1.msra.mxu1 %v8116_v16  ;;  %v9656_v16 = vld [vmem:[%s11518_s1 + $0x3c8] sm:$0xff] }
 0x63f   :  { %2036 = vmatprep.subr.mxu0 %v9642_v23  ;;  %2105 = vmatprep.subr.mxu1 %v8123_v30  ;;  %v9663_v30 = vld [vmem:[%s11518_s1 + $0x3c0] sm:$0xff] }
 0x640   :  { %2037 = vmatpush2.msra.mxu0 %v9649_v62  ;;  %2106 = vmatpush1.msra.mxu1 %v8130_v50  ;;  %v9670_v50 = vld [vmem:[%s11518_s1 + $0x3a8] sm:$0xff] }
 0x641   :  { %2038 = vmatprep.subr.mxu0 %v9656_v16  ;;  %2107 = vmatprep.subr.mxu1 %v8137_v15  ;;  %v13259_v15 = vld [vmem:[#allocation10_spill] sm:$0xff] }
 0x642   :  { %2039 = vmatpush2.msra.mxu0 %v9663_v30  ;;  %2108 = vmatpush2.msra.mxu1 %v8144_v48  ;;  %v13260_v48 = vld [vmem:[#allocation16_spill] sm:$0xff] }
 0x643   :  { %2040 = vmatprep.subr.mxu0 %v9670_v50  ;;  %2109 = vmatprep.subr.mxu1 %v8151_v46  ;;  %v13261_v46 = vld [vmem:[#allocation11_spill] sm:$0xff] }
 0x644   :  { %2041 = vmatpush2.msra.mxu0 %v8157_v8  ;;  %2110 = vmatpush2.msra.mxu1 %v8163_v47  ;;  %v13262_v8 = vld [vmem:[#allocation18_spill] sm:$0xff]  ;;  %v13263_v47 = vld [vmem:[#allocation12_spill] sm:$0xff] }
 0x645   :  { %2042 = vmatprep.subr.mxu0 %v8169_v57  ;;  %2111 = vmatprep.subr.mxu1 %v8175_v45  ;;  %v13264_v57 = vld [vmem:[#allocation19_spill] sm:$0xff]  ;;  %v13265_v45 = vld [vmem:[#allocation13_spill] sm:$0xff] }
 0x646   :  { %2043 = vmatpush2.msra.mxu0 %v8181_v54  ;;  %2112 = vmatpush2.msra.mxu1 %v8187_v44  ;;  %v13266_v54 = vld [vmem:[#allocation20_spill] sm:$0xff]  ;;  %v13267_v44 = vld [vmem:[#allocation15_spill] sm:$0xff] }
 0x647   :  { %2044 = vmatprep.subr.mxu0 %v8193_v52  ;;  %2113 = vmatprep.subr.mxu1 %v8199_v37  ;;  %v13268_v52 = vld [vmem:[#allocation21_spill] sm:$0xff] }
 0x648   :  { %2045 = vmatpush2.msra.mxu0 %v8205_v41  ;;  %2114 = vmatpush2.msra.mxu1 %v8211_v40  ;;  %v13269_v37 = vld [vmem:[#allocation17_spill] sm:$0xff]  ;;  %v13270_v41 = vld [vmem:[#allocation23_spill] sm:$0xff] }
 0x649   :  { %2046 = vmatprep.subr.mxu0 %v8217_v36  ;;  %2115 = vmatprep.subr.mxu1 %v8223_v42  ;;  %v13271_v40 = vld [vmem:[#allocation25_spill] sm:$0xff]  ;;  %v13272_v36 = vld [vmem:[#allocation27_spill] sm:$0xff]  ;;  %v13273_v42 = vld [vmem:[#allocation22_spill] sm:$0xff] }
 0x64a   :  { %2047 = vmatpush2.msra.mxu0 %v8229_v6  ;;  %2116 = vmatpush2.msra.mxu1 %v8235_v24  ;;  %v3057_v6 = vld [vmem:[%s11517_s0 + $0xa] sm:$0x3]  ;;  %v13274_v24 = vld [vmem:[#allocation24_spill] sm:$0xff] }
 0x64b   :  { %2048 = vmatprep.subr.mxu0 %v8241_v7  ;;  %2117 = vmatprep.subr.mxu1 %v8247_v17  ;;  %v13275_v7 = vld [vmem:[#allocation29_spill] sm:$0xff]  ;;  %v13276_v17 = vld [vmem:[#allocation26_spill] sm:$0xff] }
 0x64c   :  { %2049 = vmatpush2.msra.mxu0 %v8253_v18  ;;  %2118 = vmatpush2.msra.mxu1 %v8259_v19  ;;  %v13277_v18 = vld [vmem:[#allocation30_spill] sm:$0xff]  ;;  %v13278_v19 = vld [vmem:[#allocation28_spill] sm:$0xff] }
 0x64d   :  { %2050 = vmatprep.subr.mxu0 %v8265_v21  ;;  %2119 = vmatprep.subr.mxu1 %v8271_v22  ;;  %v13279_v21 = vld [vmem:[#allocation32_spill] sm:$0xff]  ;;  %v13280_v22 = vld [vmem:[#allocation31_spill] sm:$0xff] }
 0x64e   :  { %2051 = vmatpush2.msra.mxu0 %v8277_v26  ;;  %2120 = vmatpush2.msra.mxu1 %v8283_v27  ;;  %v13281_v26 = vld [vmem:[#allocation34_spill] sm:$0xff]  ;;  %v13282_v27 = vld [vmem:[#allocation33_spill] sm:$0xff] }
 0x64f   :  { %2052 = vmatprep.subr.mxu0 %v8289_v29  ;;  %2121 = vmatprep.subr.mxu1 %v8295_v32  ;;  %v13283_v29 = vld [vmem:[#allocation36_spill] sm:$0xff]  ;;  %v13284_v32 = vld [vmem:[#allocation35_spill] sm:$0xff] }
 0x650   :  { %2053 = vmatpush2.msra.mxu0 %v8301_v33  ;;  %2122 = vmatpush2.msra.mxu1 %v8307_v34  ;;  %v13285_v33 = vld [vmem:[#allocation38_spill] sm:$0xff]  ;;  %v13286_v34 = vld [vmem:[#allocation37_spill] sm:$0xff] }
 0x651   :  { %2054 = vmatprep.subr.mxu0 %v8313_v35  ;;  %2123 = vmatprep.subr.mxu1 %v8319_v59  ;;  %v13287_v35 = vld [vmem:[#allocation39_spill] sm:$0xff]  ;;  %v13288_v59 = vld [vmem:[#allocation40_spill] sm:$0xff] }
 0x652   :  { %2055 = vmatpush2.msra.mxu0 %v8325_v39  ;;  %2124 = vmatpush2.msra.mxu1 %v8331_v58  ;;  %v13289_v39 = vld [vmem:[#allocation41_spill] sm:$0xff]  ;;  %v13290_v58 = vld [vmem:[#allocation42_spill] sm:$0xff] }
 0x653   :  { %2056 = vmatprep.subr.mxu0 %v8337_v4  ;;  %2125 = vmatprep.subr.mxu1 %v8343_v1  ;;  %v13291_v4 = vld [vmem:[#allocation43_spill] sm:$0xff]  ;;  %v13292_v1 = vld [vmem:[#allocation44_spill] sm:$0xff] }
 0x654   :  { %2057 = vmatpush2.msra.mxu0 %v8349_v5  ;;  %2126 = vmatpush2.msra.mxu1 %v8355_v53  ;;  %v13293_v5 = vld [vmem:[#allocation45_spill] sm:$0xff]  ;;  %v13294_v53 = vld [vmem:[#allocation46_spill] sm:$0xff] }
 0x655   :  { %2058 = vmatprep.subr.mxu0 %v13259_v15  ;;  %2127 = vmatprep.subr.mxu1 %v13260_v48  ;;  %v13295_v15 = vld [vmem:[#allocation47_spill] sm:$0xff]  ;;  %v13296_v48 = vld [vmem:[#allocation48_spill] sm:$0xff] }
 0x656   :  { %2059 = vmatpush2.msra.mxu0 %v13261_v46  ;;  %2128 = vmatpush2.msra.mxu1 %v13262_v8  ;;  %v13297_v46 = vld [vmem:[#allocation49_spill] sm:$0xff]  ;;  %v13298_v8 = vld [vmem:[#allocation50_spill] sm:$0xff] }
 0x657   :  { %2060 = vmatprep.subr.mxu0 %v13263_v47  ;;  %2129 = vmatprep.subr.mxu1 %v13264_v57  ;;  %v13299_v47 = vld [vmem:[#allocation51_spill] sm:$0xff]  ;;  %v13300_v57 = vld [vmem:[#allocation52_spill] sm:$0xff] }
 0x658   :  { %2061 = vmatpush2.msra.mxu0 %v13265_v45  ;;  %2130 = vmatpush2.msra.mxu1 %v13266_v54  ;;  %v13301_v45 = vld [vmem:[#allocation53_spill] sm:$0xff]  ;;  %v13302_v54 = vld [vmem:[#allocation54_spill] sm:$0xff] }
 0x659   :  { %2062 = vmatprep.subr.mxu0 %v13267_v44  ;;  %2131 = vmatprep.subr.mxu1 %v13268_v52  ;;  %v13303_v44 = vld [vmem:[#allocation55_spill] sm:$0xff]  ;;  %v13304_v52 = vld [vmem:[#allocation56_spill] sm:$0xff] }
 0x65a   :  { %2063 = vmatpush2.msra.mxu0 %v13269_v37  ;;  %2132 = vmatpush2.msra.mxu1 %v13270_v41  ;;  %v13305_v37 = vld [vmem:[#allocation57_spill] sm:$0xff]  ;;  %v13306_v41 = vld [vmem:[#allocation58_spill] sm:$0xff] }
 0x65b   :  { %2064 = vmatprep.subr.mxu0 %v13271_v40  ;;  %2133 = vmatprep.subr.mxu1 %v13272_v36  ;;  %v13307_v40 = vld [vmem:[#allocation59_spill] sm:$0xff]  ;;  %v13308_v36 = vld [vmem:[#allocation60_spill] sm:$0xff] }
 0x65c   :  { %2065 = vmatpush2.msra.mxu0 %v13273_v42  ;;  %2134 = vmatpush2.msra.mxu1 %v13274_v24  ;;  %v13309_v42 = vld [vmem:[#allocation61_spill] sm:$0xff]  ;;  %v13311_v24 = vld [vmem:[#allocation63_spill] sm:$0xff] }
 0x65d   :  { %2066 = vmatprep.subr.mxu0 %v13275_v7  ;;  %2135 = vmatprep.subr.mxu1 %v13276_v17  ;;  %v13312_v7 = vld [vmem:[#allocation64_spill] sm:$0xff]  ;;  %v13313_v17 = vld [vmem:[#allocation65_spill] sm:$0xff] }
 0x65e   :  { %2067 = vmatpush2.msra.mxu0 %v13277_v18  ;;  %2136 = vmatpush2.msra.mxu1 %v13278_v19  ;;  %v13314_v18 = vld [vmem:[#allocation66_spill] sm:$0xff]  ;;  %v13315_v19 = vld [vmem:[#allocation67_spill] sm:$0xff] }
 0x65f   :  { %2069 = vmatmul.mubr.f32.vlgmr.msra.gmra.mxu0 %v3057_v6  ;;  %2137 = vmatprep.subr.mxu1 %v13279_v21  ;;  %v13316_v21 = vld [vmem:[#allocation68_spill] sm:$0xff] }
 0x660   :  { %2138 = vmatpush2.msra.mxu1 %v13280_v22  ;;  %2170 = vmatprep.subr.mxu0 %v13281_v26  ;;  %v13317_v22 = vld [vmem:[#allocation69_spill] sm:$0xff]  ;;  %v13318_v26 = vld [vmem:[#allocation70_spill] sm:$0xff] }
 0x661   :  { %2140 = vmatmul.mubr.f32.vlgmr.msra.gmra.mxu1 %v3057_v6  ;;  %2171 = vmatpush1.msra.mxu0 %v13282_v27  ;;  %v13310_v6 = vld [vmem:[#allocation62_spill] sm:$0xff]  ;;  %v13319_v27 = vld [vmem:[#allocation71_spill] sm:$0xff] }
 0x662   :  { %2241 = vmatprep.subr.mxu1 %v13283_v29  ;;  %2172 = vmatprep.subr.mxu0 %v13284_v32  ;;  %v13320_v29 = vld [vmem:[#allocation72_spill] sm:$0xff]  ;;  %v13321_v32 = vld [vmem:[#allocation73_spill] sm:$0xff] }
 0x663   :  { %2242 = vmatpush1.msra.mxu1 %v13285_v33  ;;  %2173 = vmatpush1.msra.mxu0 %v13286_v34  ;;  %v13322_v33 = vld [vmem:[#allocation74_spill] sm:$0xff]  ;;  %v13323_v34 = vld [vmem:[#allocation75_spill] sm:$0xff] }
 0x664   :  { %2243 = vmatprep.subr.mxu1 %v13287_v35  ;;  %2174 = vmatprep.subr.mxu0 %v13288_v59  ;;  %v13324_v35 = vld [vmem:[#allocation76_spill] sm:$0xff]  ;;  %v13325_v59 = vld [vmem:[#allocation77_spill] sm:$0xff] }
 0x665   :  { %2244 = vmatpush1.msra.mxu1 %v13289_v39  ;;  %2175 = vmatpush1.msra.mxu0 %v13290_v58  ;;  %v13326_v39 = vld [vmem:[#allocation78_spill] sm:$0xff]  ;;  %v13327_v58 = vld [vmem:[#allocation79_spill] sm:$0xff] }
 0x666   :  { %2245 = vmatprep.subr.mxu1 %v13291_v4  ;;  %2176 = vmatprep.subr.mxu0 %v13292_v1  ;;  %v13328_v4 = vld [vmem:[#allocation80_spill] sm:$0xff]  ;;  %v13329_v1 = vld [vmem:[#allocation81_spill] sm:$0xff] }
 0x667   :  { %2246 = vmatpush1.msra.mxu1 %v13293_v5  ;;  %2177 = vmatpush1.msra.mxu0 %v13294_v53  ;;  %v13330_v5 = vld [vmem:[#allocation82_spill] sm:$0xff]  ;;  %v13331_v53 = vld [vmem:[#allocation83_spill] sm:$0xff] }
 0x668   :  { %2247 = vmatprep.subr.mxu1 %v13295_v15  ;;  %2178 = vmatprep.subr.mxu0 %v13296_v48  ;;  %v13332_v15 = vld [vmem:[#allocation84_spill] sm:$0xff]  ;;  %v13333_v48 = vld [vmem:[#allocation85_spill] sm:$0xff] }
 0x669   :  { %2248 = vmatpush1.msra.mxu1 %v13297_v46  ;;  %2179 = vmatpush1.msra.mxu0 %v13298_v8  ;;  %v13334_v46 = vld [vmem:[#allocation86_spill] sm:$0xff]  ;;  %v13335_v8 = vld [vmem:[#allocation87_spill] sm:$0xff] }
 0x66a   :  { %2249 = vmatprep.subr.mxu1 %v13299_v47  ;;  %2180 = vmatprep.subr.mxu0 %v13300_v57  ;;  %v13336_v47 = vld [vmem:[#allocation88_spill] sm:$0xff]  ;;  %v13337_v57 = vld [vmem:[#allocation89_spill] sm:$0xff] }
 0x66b   :  { %2250 = vmatpush1.msra.mxu1 %v13301_v45  ;;  %2181 = vmatpush1.msra.mxu0 %v13302_v54  ;;  %v13338_v45 = vld [vmem:[#allocation90_spill] sm:$0xff]  ;;  %v13339_v54 = vld [vmem:[#allocation91_spill] sm:$0xff] }
 0x66c   :  { %2251 = vmatprep.subr.mxu1 %v13303_v44  ;;  %2182 = vmatprep.subr.mxu0 %v13304_v52  ;;  %v13340_v44 = vld [vmem:[#allocation92_spill] sm:$0xff]  ;;  %v13341_v52 = vld [vmem:[#allocation93_spill] sm:$0xff] }
 0x66d   :  { %2252 = vmatpush1.msra.mxu1 %v13305_v37  ;;  %2183 = vmatpush1.msra.mxu0 %v13306_v41  ;;  %v13342_v37 = vld [vmem:[#allocation94_spill] sm:$0xff]  ;;  %v13343_v41 = vld [vmem:[#allocation95_spill] sm:$0xff] }
 0x66e   :  { %2253 = vmatprep.subr.mxu1 %v13307_v40  ;;  %2184 = vmatprep.subr.mxu0 %v13308_v36  ;;  %v13344_v40 = vld [vmem:[#allocation96_spill] sm:$0xff]  ;;  %v13345_v36 = vld [vmem:[#allocation97_spill] sm:$0xff] }
 0x66f   :  { %2254 = vmatpush1.msra.mxu1 %v13309_v42  ;;  %2185 = vmatpush1.msra.mxu0 %v13310_v6  ;;  %v13346_v42 = vld [vmem:[#allocation98_spill] sm:$0xff]  ;;  %v13347_v6 = vld [vmem:[#allocation99_spill] sm:$0xff] }
 0x670   :  { %2255 = vmatprep.subr.mxu1 %v13311_v24  ;;  %2186 = vmatprep.subr.mxu0 %v13312_v7  ;;  %v13348_v24 = vld [vmem:[#allocation100_spill] sm:$0xff]  ;;  %v13349_v7 = vld [vmem:[#allocation101_spill] sm:$0xff] }
 0x671   :  { %2256 = vmatpush1.msra.mxu1 %v13313_v17  ;;  %2187 = vmatpush1.msra.mxu0 %v13314_v18  ;;  %v13350_v17 = vld [vmem:[#allocation102_spill] sm:$0xff]  ;;  %v13351_v18 = vld [vmem:[#allocation103_spill] sm:$0xff] }
 0x672   :  { %2257 = vmatprep.subr.mxu1 %v13315_v19  ;;  %2188 = vmatprep.subr.mxu0 %v13316_v21  ;;  %v13352_v19 = vld [vmem:[#allocation104_spill] sm:$0xff]  ;;  %v13353_v21 = vld [vmem:[#allocation105_spill] sm:$0xff] }
 0x673   :  { %2258 = vmatpush1.msra.mxu1 %v13317_v22  ;;  %2189 = vmatpush1.msra.mxu0 %v13318_v26  ;;  %v13354_v22 = vld [vmem:[#allocation106_spill] sm:$0xff]  ;;  %v13355_v26 = vld [vmem:[#allocation107_spill] sm:$0xff] }
 0x674   :  { %2259 = vmatprep.subr.mxu1 %v13319_v27  ;;  %2190 = vmatprep.subr.mxu0 %v13320_v29  ;;  %v13356_v27 = vld [vmem:[#allocation108_spill] sm:$0xff]  ;;  %v13357_v29 = vld [vmem:[#allocation109_spill] sm:$0xff] }
 0x675   :  { %2260 = vmatpush1.msra.mxu1 %v13321_v32  ;;  %2191 = vmatpush1.msra.mxu0 %v13322_v33  ;;  %v13358_v32 = vld [vmem:[#allocation110_spill] sm:$0xff]  ;;  %v13359_v33 = vld [vmem:[#allocation111_spill] sm:$0xff] }
 0x676   :  { %2261 = vmatprep.subr.mxu1 %v13323_v34  ;;  %2192 = vmatprep.subr.mxu0 %v13324_v35  ;;  %v13360_v34 = vld [vmem:[#allocation112_spill] sm:$0xff]  ;;  %v13361_v35 = vld [vmem:[#allocation113_spill] sm:$0xff] }
 0x677   :  { %2262 = vmatpush1.msra.mxu1 %v13325_v59  ;;  %2193 = vmatpush1.msra.mxu0 %v13326_v39  ;;  %v13362_v59 = vld [vmem:[#allocation114_spill] sm:$0xff]  ;;  %v13363_v39 = vld [vmem:[#allocation115_spill] sm:$0xff] }
 0x678   :  { %2263 = vmatprep.subr.mxu1 %v13327_v58  ;;  %2194 = vmatprep.subr.mxu0 %v13328_v4  ;;  %v13364_v58 = vld [vmem:[#allocation116_spill] sm:$0xff]  ;;  %v13365_v4 = vld [vmem:[#allocation117_spill] sm:$0xff] }
 0x679   :  { %2264 = vmatpush1.msra.mxu1 %v13329_v1  ;;  %2195 = vmatpush1.msra.mxu0 %v13330_v5  ;;  %v13366_v1 = vld [vmem:[#allocation118_spill] sm:$0xff]  ;;  %v13367_v5 = vld [vmem:[#allocation119_spill] sm:$0xff] }
 0x67a   :  { %2265 = vmatprep.subr.mxu1 %v13331_v53  ;;  %2196 = vmatprep.subr.mxu0 %v13332_v15  ;;  %v13368_v53 = vld [vmem:[#allocation120_spill] sm:$0xff]  ;;  %v13369_v15 = vld [vmem:[#allocation121_spill] sm:$0xff] }
 0x67b   :  { %2266 = vmatpush1.msra.mxu1 %v13333_v48  ;;  %2197 = vmatpush1.msra.mxu0 %v13334_v46  ;;  %v13370_v48 = vld [vmem:[#allocation122_spill] sm:$0xff]  ;;  %v13371_v46 = vld [vmem:[#allocation123_spill] sm:$0xff] }
 0x67c   :  { %2267 = vmatprep.subr.mxu1 %v13335_v8  ;;  %2198 = vmatprep.subr.mxu0 %v13336_v47  ;;  %v13372_v8 = vld [vmem:[#allocation124_spill] sm:$0xff]  ;;  %v13373_v47 = vld [vmem:[#allocation125_spill] sm:$0xff] }
 0x67d   :  { %2268 = vmatpush1.msra.mxu1 %v13337_v57  ;;  %2199 = vmatpush1.msra.mxu0 %v13338_v45  ;;  %v13374_v57 = vld [vmem:[#allocation126_spill] sm:$0xff]  ;;  %v13375_v45 = vld [vmem:[#allocation127_spill] sm:$0xff] }
 0x67e   :  { %2269 = vmatprep.subr.mxu1 %v13339_v54  ;;  %2200 = vmatprep.subr.mxu0 %v13340_v44  ;;  %v13376_v54 = vld [vmem:[#allocation128_spill] sm:$0xff]  ;;  %v13377_v44 = vld [vmem:[#allocation129_spill] sm:$0xff] }
 0x67f   :  { %2270 = vmatpush1.msra.mxu1 %v13341_v52  ;;  %2201 = vmatpush1.msra.mxu0 %v13342_v37  ;;  %v13378_v52 = vld [vmem:[#allocation130_spill] sm:$0xff]  ;;  %v13379_v37 = vld [vmem:[#allocation131_spill] sm:$0xff] }
 0x680   :  { %2271 = vmatprep.subr.mxu1 %v13343_v41  ;;  %2202 = vmatprep.subr.mxu0 %v13344_v40  ;;  %v13380_v41 = vld [vmem:[#allocation132_spill] sm:$0xff]  ;;  %v13381_v40 = vld [vmem:[#allocation133_spill] sm:$0xff] }
 0x681   :  { %2272 = vmatpush1.msra.mxu1 %v13345_v36  ;;  %2203 = vmatpush2.msra.mxu0 %v13346_v42  ;;  %v13382_v36 = vld [vmem:[#allocation134_spill] sm:$0xff]  ;;  %v13383_v42 = vld [vmem:[#allocation135_spill] sm:$0xff] }
 0x682   :  { %2273 = vmatprep.subr.mxu1 %v13347_v6  ;;  %2204 = vmatprep.subr.mxu0 %v13348_v24  ;;  %v13384_v6 = vld [vmem:[#allocation136_spill] sm:$0xff]  ;;  %v13385_v24 = vld [vmem:[#allocation137_spill] sm:$0xff] }
 0x683   :  { %2274 = vmatpush2.msra.mxu1 %v13349_v7  ;;  %2205 = vmatpush2.msra.mxu0 %v13350_v17  ;;  %v13386_v7 = vld [vmem:[#allocation138_spill] sm:$0xff]  ;;  %v13387_v17 = vld [vmem:[#allocation139_spill] sm:$0xff] }
 0x684   :  { %2275 = vmatprep.subr.mxu1 %v13351_v18  ;;  %2206 = vmatprep.subr.mxu0 %v13352_v19  ;;  %v13388_v18 = vld [vmem:[#allocation140_spill] sm:$0xff]  ;;  %v13389_v19 = vld [vmem:[#allocation141_spill] sm:$0xff] }
 0x685   :  { %2276 = vmatpush2.msra.mxu1 %v13353_v21  ;;  %2207 = vmatpush2.msra.mxu0 %v13354_v22  ;;  %v13390_v21 = vld [vmem:[#allocation142_spill] sm:$0xff]  ;;  %v13391_v22 = vld [vmem:[#allocation143_spill] sm:$0xff] }
 0x686   :  { %2277 = vmatprep.subr.mxu1 %v13355_v26  ;;  %2208 = vmatprep.subr.mxu0 %v13356_v27  ;;  %v13392_v26 = vld [vmem:[#allocation144_spill] sm:$0xff]  ;;  %v13393_v27 = vld [vmem:[#allocation145_spill] sm:$0xff] }
 0x687   :  { %2278 = vmatpush2.msra.mxu1 %v13357_v29  ;;  %2209 = vmatpush2.msra.mxu0 %v13358_v32  ;;  %v13394_v29 = vld [vmem:[#allocation146_spill] sm:$0xff]  ;;  %v13395_v32 = vld [vmem:[#allocation147_spill] sm:$0xff] }
 0x688   :  { %2279 = vmatprep.subr.mxu1 %v13359_v33  ;;  %2210 = vmatprep.subr.mxu0 %v13360_v34  ;;  %v13396_v33 = vld [vmem:[#allocation148_spill] sm:$0xff]  ;;  %v13397_v34 = vld [vmem:[#allocation149_spill] sm:$0xff] }
 0x689   :  { %2280 = vmatpush2.msra.mxu1 %v13361_v35  ;;  %2211 = vmatpush2.msra.mxu0 %v13362_v59  ;;  %v13398_v35 = vld [vmem:[#allocation150_spill] sm:$0xff]  ;;  %v13399_v59 = vld [vmem:[#allocation151_spill] sm:$0xff] }
 0x68a   :  { %2281 = vmatprep.subr.mxu1 %v13363_v39  ;;  %2212 = vmatprep.subr.mxu0 %v13364_v58  ;;  %v13400_v39 = vld [vmem:[#allocation153_spill] sm:$0xff]  ;;  %v13401_v58 = vld [vmem:[#allocation152_spill] sm:$0xff] }
 0x68b   :  { %2282 = vmatpush2.msra.mxu1 %v13365_v4  ;;  %2213 = vmatpush2.msra.mxu0 %v13366_v1  ;;  %v13402_v4 = vld [vmem:[#allocation154_spill] sm:$0xff]  ;;  %v13403_v1 = vld [vmem:[#allocation155_spill] sm:$0xff] }
 0x68c   :  { %2283 = vmatprep.subr.mxu1 %v13367_v5  ;;  %2214 = vmatprep.subr.mxu0 %v13368_v53  ;;  %v13404_v5 = vld [vmem:[#allocation156_spill] sm:$0xff]  ;;  %v13405_v53 = vld [vmem:[#allocation157_spill] sm:$0xff] }
 0x68d   :  { %2284 = vmatpush2.msra.mxu1 %v13369_v15  ;;  %2215 = vmatpush2.msra.mxu0 %v13370_v48  ;;  %v13406_v15 = vld [vmem:[#allocation158_spill] sm:$0xff]  ;;  %v13407_v48 = vld [vmem:[#allocation159_spill] sm:$0xff] }
 0x68e   :  { %2285 = vmatprep.subr.mxu1 %v13371_v46  ;;  %2216 = vmatprep.subr.mxu0 %v13372_v8  ;;  %v13408_v46 = vld [vmem:[#allocation160_spill] sm:$0xff]  ;;  %v13409_v8 = vld [vmem:[#allocation161_spill] sm:$0xff] }
 0x68f   :  { %2286 = vmatpush2.msra.mxu1 %v13373_v47  ;;  %2217 = vmatpush2.msra.mxu0 %v13374_v57  ;;  %v9865_v47 = vld [vmem:[%s11518_s1 + $0x1f8] sm:$0xff] }
 0x690   :  { %2287 = vmatprep.subr.mxu1 %v13375_v45  ;;  %2218 = vmatprep.subr.mxu0 %v13376_v54 }
 0x691   :  { %2288 = vmatpush2.msra.mxu1 %v13377_v44  ;;  %2219 = vmatpush2.msra.mxu0 %v13378_v52  ;;  %v13410_v52 = vld [vmem:[#allocation9_spill] sm:$0xff] }
 0x692   :  { %2289 = vmatprep.subr.mxu1 %v13379_v37  ;;  %2220 = vmatprep.subr.mxu0 %v13380_v41 }
 0x693   :  { %2290 = vmatpush2.msra.mxu1 %v13381_v40  ;;  %2221 = vmatpush2.msra.mxu0 %v13382_v36  ;;  %v13411_v36 = vld [vmem:[#allocation14_spill] sm:$0xff] }
 0x694   :  { %2291 = vmatprep.subr.mxu1 %v13383_v42  ;;  %2222 = vmatprep.subr.mxu0 %v13384_v6 }
 0x695   :  { %2292 = vmatpush2.msra.mxu1 %v13385_v24  ;;  %2223 = vmatpush2.msra.mxu0 %v13386_v7 }
 0x696   :  { %2293 = vmatprep.subr.mxu1 %v13387_v17  ;;  %2224 = vmatprep.subr.mxu0 %v13388_v18 }
 0x697   :  { %2294 = vmatpush2.msra.mxu1 %v13389_v19  ;;  %2225 = vmatpush2.msra.mxu0 %v13390_v21 }
 0x698   :  { %2295 = vmatprep.subr.mxu1 %v13391_v22  ;;  %2226 = vmatprep.subr.mxu0 %v13392_v26 }
 0x699   :  { %2296 = vmatpush2.msra.mxu1 %v13393_v27  ;;  %2227 = vmatpush2.msra.mxu0 %v13394_v29 }
 0x69a   :  { %2297 = vmatprep.subr.mxu1 %v13395_v32  ;;  %2228 = vmatprep.subr.mxu0 %v13396_v33 }
 0x69b   :  { %2298 = vmatpush2.msra.mxu1 %v13397_v34  ;;  %2229 = vmatpush2.msra.mxu0 %v13398_v35 }
 0x69c   :  { %2299 = vmatprep.subr.mxu1 %v13399_v59  ;;  %2230 = vmatprep.subr.mxu0 %v13400_v39 }
 0x69d   :  { %2300 = vmatpush2.msra.mxu1 %v13401_v58  ;;  %2231 = vmatpush2.msra.mxu0 %v13402_v4 }
 0x69e   :  { %2301 = vmatprep.subr.mxu1 %v13403_v1  ;;  %2232 = vmatprep.subr.mxu0 %v13404_v5 }
 0x69f   :  { %2302 = vmatpush2.msra.mxu1 %v13405_v53  ;;  %2233 = vmatpush2.msra.mxu0 %v13406_v15 }
 0x6a0   :  { %2303 = vmatprep.subr.mxu1 %v13407_v48  ;;  %2338 = vmatprep.subr.mxu0 %v13408_v46 }
 0x6a1   :  { %2304 = vmatpush2.msra.mxu1 %v13409_v8 }
 0x6a2   :  { %2409 = vmatprep.subr.mxu1 %v9865_v47 }
 0x6df   :  { %v1902_v57 = vpop.f32.mrf.mxu0  ;;  %v1973_v40 = vpop.f32.mrf.mxu1 }
 0x6e0   :  { %v1903_v45 = vadd.f32 %v1902_v57, %v6195_v28  ;;  %v1974_v42 = vadd.f32 %v1973_v40, %v13411_v36 }
 0x6e1   :  { %v1904_v54 = vpop.f32.mrf.mxu0  ;;  %v1975_v6 = vpop.f32.mrf.mxu1 }
 0x6e2   :  { %v3054_v44 = vmul.f32 -1.442695, %v1903_v45  ;;  %v1905_v37 = vadd.f32 %v1904_v54, %v13410_v52  ;;  %v3056_v24 = vmul.f32 -1.442695, %v1974_v42  ;;  %v1976_v17 = vadd.f32 %v1975_v6, %v6210_v43 }
 0x6e4   :  { %3224 = vpow2.f32 %v3054_v44  ;;  %v3055_v41 = vmul.f32 -1.442695, %v1905_v37 }
 0x6e6   :  { %3226 = vpow2.f32 %v3055_v41 }
 0x6e7   :  { %3228 = vpow2.f32 %v3056_v24 }
 0x6f1   :  { %v3225_v7 = vpop.eup %3224 }
 0x6f2   :  { %v1987_v18 = vadd.f32 1.0, %v3225_v7 }
 0x6f3   :  { %v3227_v19 = vpop.eup %3226 }
 0x6f4   :  { %3230 = vrcp.f32 %v1987_v18  ;;  %v1988_v21 = vadd.f32 1.0, %v3227_v19  ;;  %v3229_v22 = vpop.eup %3228 }
 0x6f5   :  { %3232 = vtanh.f32 %v1976_v17  ;;  %v1989_v32 = vadd.f32 1.0, %v3229_v22 }
 0x6f6   :  { %3234 = vrcp.f32 %v1988_v21 }
 0x6f7   :  { %3236 = vrcp.f32 %v1989_v32  ;;  %v13427_v32 = vld [vmem:[#allocation177_spill] sm:$0xff] }
 0x701   :  { %v3231_v26 = vpop.eup %3230 }
 0x702   :  { %v3233_v27 = vpop.eup %3232 }
 0x703   :  { %v3235_v29 = vpop.eup %3234  ;;  %v1998_v34 = vmul.f32 %v3233_v27, %v3231_v26  ;;  %v13425_v27 = vld [vmem:[#allocation175_spill] sm:$0xff] }
 0x704   :  { %v1997_v33 = vmul.f32 %v3235_v29, %v9273_v61  ;;  %v3237_v59 = vpop.eup %3236  ;;  %v13426_v29 = vld [vmem:[#allocation176_spill] sm:$0xff] }
 0x706   :  { %v9873_v35 = vadd.f32 %v1998_v34, %v1997_v33  ;;  %v13428_v33 = vld [vmem:[#allocation178_spill] sm:$0xff]  ;;  %v13429_v34 = vld [vmem:[#allocation179_spill] sm:$0xff] }
 0x708   :  { %3238 = vtanh.f32 %v9873_v35 }
 0x715   :  { %v3239_v39 = vpop.eup %3238 }
 0x716   :  { %v2001_v58 = vmul.f32 %v3239_v39, %v3237_v59  ;;  %v13430_v59 = vld [vmem:[#allocation180_spill] sm:$0xff]  ;;  %v13431_v39 = vld [vmem:[#allocation181_spill] sm:$0xff] }
 0x718   :  { %2234 = vmatprep.mubr.f32.mxu0 %v2001_v58  ;;  %2305 = vmatprep.mubr.f32.mxu1 %v2001_v58  ;;  %v13432_v58 = vld [vmem:[#allocation182_spill] sm:$0xff] }
 0x71f   :  { %v2070_v4 = vpop.f32.mrf.mxu0 }
 0x720   :  { %v2071_v1 = vadd.f32 %v2070_v4, %v12621_v20  ;;  %v13433_v4 = vld [vmem:[#allocation183_spill] sm:$0xff] }
 0x721   :  { %v2072_v5 = vpop.f32.mrf.mxu0  ;;  %v2141_v48 = vpop.f32.mrf.mxu1 }
 0x722   :  { %v3058_v53 = vmul.f32 -1.442695, %v2071_v1  ;;  %v2073_v15 = vadd.f32 %v2072_v5, %v12622_v25  ;;  %v2142_v46 = vadd.f32 %v2141_v48, %v12623_v31  ;;  %v13434_v1 = vld [vmem:[#allocation184_spill] sm:$0xff]  ;;  %v13435_v5 = vld [vmem:[#allocation185_spill] sm:$0xff] }
 0x723   :  { %v2143_v8 = vpop.f32.mrf.mxu1  ;;  %v13439_v48 = vld [vmem:[#allocation189_spill] sm:$0xff] }
 0x724   :  { %3240 = vpow2.f32 %v3058_v53  ;;  %v3059_v61 = vmul.f32 -1.442695, %v2073_v15  ;;  %v3060_v57 = vmul.f32 -1.442695, %v2142_v46  ;;  %v2144_v45 = vadd.f32 %v2143_v8, %v5600_v9  ;;  %v13436_v53 = vld [vmem:[#allocation186_spill] sm:$0xff]  ;;  %v13437_v15 = vld [vmem:[#allocation187_spill] sm:$0xff] }
 0x725   :  { %v13440_v46 = vld [vmem:[#allocation190_spill] sm:$0xff]  ;;  %v13441_v8 = vld [vmem:[#allocation191_spill] sm:$0xff] }
 0x726   :  { %3242 = vpow2.f32 %v3059_v61  ;;  %v13438_v61 = vld [vmem:[#allocation188_spill] sm:$0xff] }
 0x727   :  { %3244 = vpow2.f32 %v3060_v57  ;;  %v13442_v57 = vld [vmem:[#allocation192_spill] sm:$0xff] }
 0x728   :  { %3246 = vtanh.f32 %v2144_v45  ;;  %v13443_v45 = vld [vmem:[#allocation193_spill] sm:$0xff] }
 0x731   :  { %v3241_v54 = vpop.eup %3240 }
 0x732   :  { %v2155_v44 = vadd.f32 1.0, %v3241_v54  ;;  %v13444_v54 = vld [vmem:[#allocation194_spill] sm:$0xff] }
 0x733   :  { %v3243_v37 = vpop.eup %3242 }
 0x734   :  { %3248 = vrcp.f32 %v2155_v44  ;;  %v2156_v41 = vadd.f32 1.0, %v3243_v37  ;;  %v3245_v40 = vpop.eup %3244  ;;  %v13445_v44 = vld [vmem:[#allocation195_spill] sm:$0xff]  ;;  %v13446_v37 = vld [vmem:[#allocation196_spill] sm:$0xff] }
 0x735   :  { %v3247_v42 = vpop.eup %3246  ;;  %v2157_v7 = vadd.f32 1.0, %v3245_v40  ;;  %v13448_v40 = vld [vmem:[#allocation198_spill] sm:$0xff] }
 0x736   :  { %3250 = vrcp.f32 %v2156_v41  ;;  %v13447_v41 = vld [vmem:[#allocation197_spill] sm:$0xff] }
 0x737   :  { %3252 = vrcp.f32 %v2157_v7  ;;  %v13452_v7 = vld [vmem:[#allocation202_spill] sm:$0xff] }
 0x741   :  { %v3249_v6 = vpop.eup %3248 }
 0x742   :  { %v2166_v18 = vmul.f32 %v3249_v6, %v3247_v42  ;;  %v13449_v42 = vld [vmem:[#allocation199_spill] sm:$0xff]  ;;  %v13450_v6 = vld [vmem:[#allocation200_spill] sm:$0xff] }
 0x743   :  { %v3251_v24 = vpop.eup %3250 }
 0x744   :  { %v2165_v17 = vmul.f32 %v3251_v24, %v9281_v55  ;;  %v3253_v21 = vpop.eup %3252  ;;  %v13412_v55 = vld [vmem:[#allocation162_spill] sm:$0xff]  ;;  %v13451_v24 = vld [vmem:[#allocation201_spill] sm:$0xff] }
 0x746   :  { %v9881_v19 = vadd.f32 %v2166_v18, %v2165_v17  ;;  %v13453_v17 = vld [vmem:[#allocation203_spill] sm:$0xff]  ;;  %v13454_v18 = vld [vmem:[#allocation204_spill] sm:$0xff] }
 0x748   :  { %3254 = vtanh.f32 %v9881_v19 }
 0x755   :  { %v3255_v22 = vpop.eup %3254 }
 0x756   :  { %v2169_v26 = vmul.f32 %v3255_v22, %v3253_v21  ;;  %v13455_v21 = vld [vmem:[#allocation205_spill] sm:$0xff]  ;;  %v13456_v22 = vld [vmem:[#allocation206_spill] sm:$0xff] }
 0x758   :  { %2235 = vmatmul.mubr.f32.vlgmr.msra.gmra.mxu0 %v2169_v26  ;;  %2306 = vmatmul.mubr.f32.vlgmr.msra.gmra.mxu1 %v2169_v26 }
 0x759   :  { %2339 = vmatpush1.msra.mxu0 %v9287_v0  ;;  %2402 = vmatprep.mubr.f32.mxu0 %v2169_v26  ;;  %v13413_v0 = vld [vmem:[#allocation163_spill] sm:$0xff] }
 0x75a   :  { %2340 = vmatprep.subr.mxu0 %v9293_v12  ;;  %2473 = vmatprep.mubr.f32.mxu1 %v2169_v26  ;;  %v13414_v12 = vld [vmem:[#allocation164_spill] sm:$0xff]  ;;  %v9946_v26 = vld [vmem:[%s11518_s1 + $0x30] sm:$0xff] }
 0x75b   :  { %2341 = vmatpush1.msra.mxu0 %v9299_v38  ;;  %2410 = vmatpush1.msra.mxu1 %v9305_v11  ;;  %v13415_v38 = vld [vmem:[#allocation165_spill] sm:$0xff]  ;;  %v13416_v11 = vld [vmem:[#allocation166_spill] sm:$0xff] }
 0x75c   :  { %2342 = vmatprep.subr.mxu0 %v9311_v51  ;;  %2411 = vmatprep.subr.mxu1 %v9317_v63  ;;  %v13417_v51 = vld [vmem:[#allocation167_spill] sm:$0xff]  ;;  %v13418_v63 = vld [vmem:[#allocation168_spill] sm:$0xff] }
 0x75d   :  { %2343 = vmatpush1.msra.mxu0 %v9323_v56  ;;  %2412 = vmatpush1.msra.mxu1 %v9329_v49  ;;  %v13419_v56 = vld [vmem:[#allocation169_spill] sm:$0xff]  ;;  %v13420_v49 = vld [vmem:[#allocation170_spill] sm:$0xff] }
 0x75e   :  { %2344 = vmatprep.subr.mxu0 %v9335_v2  ;;  %2413 = vmatprep.subr.mxu1 %v9341_v13  ;;  %v13421_v2 = vld [vmem:[#allocation171_spill] sm:$0xff]  ;;  %v13422_v13 = vld [vmem:[#allocation172_spill] sm:$0xff] }
 0x75f   :  { %2345 = vmatpush1.msra.mxu0 %v9347_v3  ;;  %2414 = vmatpush1.msra.mxu1 %v9353_v14  ;;  %v13423_v3 = vld [vmem:[#allocation173_spill] sm:$0xff]  ;;  %v13424_v14 = vld [vmem:[#allocation174_spill] sm:$0xff] }
 0x760   :  { %2346 = vmatprep.subr.mxu0 %v13412_v55  ;;  %2415 = vmatprep.subr.mxu1 %v13413_v0  ;;  %v9953_v55 = vld [vmem:[%s11518_s1 + $0x18] sm:$0xff] }
 0x761   :  { %2347 = vmatpush1.msra.mxu0 %v13414_v12  ;;  %2416 = vmatpush1.msra.mxu1 %v13415_v38  ;;  %v10005_v0 = vld [vmem:[%s11518_s1 + $0x3b8] sm:$0xff]  ;;  %v10011_v12 = vld [vmem:[%s11518_s1 + $0x380] sm:$0xff]  ;;  %v10017_v38 = vld [vmem:[%s11518_s1 + $0x3b0] sm:$0xff] }
 0x762   :  { %2348 = vmatprep.subr.mxu0 %v13416_v11  ;;  %2417 = vmatprep.subr.mxu1 %v13417_v51  ;;  %v10023_v11 = vld [vmem:[%s11518_s1 + $0x368] sm:$0xff]  ;;  %v10029_v51 = vld [vmem:[%s11518_s1 + $0x398] sm:$0xff] }
 0x763   :  { %2349 = vmatpush1.msra.mxu0 %v13418_v63  ;;  %2418 = vmatpush1.msra.mxu1 %v13419_v56  ;;  %v10035_v63 = vld [vmem:[%s11518_s1 + $0x360] sm:$0xff]  ;;  %v10041_v56 = vld [vmem:[%s11518_s1 + $0x390] sm:$0xff] }
 0x764   :  { %2350 = vmatprep.subr.mxu0 %v13420_v49  ;;  %2419 = vmatprep.subr.mxu1 %v13421_v2  ;;  %v10047_v49 = vld [vmem:[%s11518_s1 + $0x348] sm:$0xff]  ;;  %v10053_v2 = vld [vmem:[%s11518_s1 + $0x378] sm:$0xff] }
 0x765   :  { %2351 = vmatpush1.msra.mxu0 %v13422_v13  ;;  %2420 = vmatpush1.msra.mxu1 %v13423_v3  ;;  %v10059_v13 = vld [vmem:[%s11518_s1 + $0x340] sm:$0xff]  ;;  %v10065_v3 = vld [vmem:[%s11518_s1 + $0x370] sm:$0xff] }
 0x766   :  { %2352 = vmatprep.subr.mxu0 %v13424_v14  ;;  %2421 = vmatprep.subr.mxu1 %v13425_v27  ;;  %v10071_v14 = vld [vmem:[%s11518_s1 + $0x328] sm:$0xff]  ;;  %v10077_v27 = vld [vmem:[%s11518_s1 + $0x358] sm:$0xff] }
 0x767   :  { %2353 = vmatpush1.msra.mxu0 %v13426_v29  ;;  %2422 = vmatpush1.msra.mxu1 %v13427_v32  ;;  %v10083_v29 = vld [vmem:[%s11518_s1 + $0x320] sm:$0xff]  ;;  %v10089_v32 = vld [vmem:[%s11518_s1 + $0x350] sm:$0xff] }
 0x768   :  { %2354 = vmatprep.subr.mxu0 %v13428_v33  ;;  %2423 = vmatprep.subr.mxu1 %v13429_v34  ;;  %v10095_v33 = vld [vmem:[%s11518_s1 + $0x308] sm:$0xff]  ;;  %v10101_v34 = vld [vmem:[%s11518_s1 + $0x338] sm:$0xff] }
 0x769   :  { %2355 = vmatpush1.msra.mxu0 %v13430_v59  ;;  %2424 = vmatpush1.msra.mxu1 %v13431_v39  ;;  %v10107_v59 = vld [vmem:[%s11518_s1 + $0x300] sm:$0xff]  ;;  %v10113_v39 = vld [vmem:[%s11518_s1 + $0x330] sm:$0xff] }
 0x76a   :  { %2356 = vmatprep.subr.mxu0 %v13432_v58  ;;  %2425 = vmatprep.subr.mxu1 %v13433_v4  ;;  %v10119_v58 = vld [vmem:[%s11518_s1 + $0x2e8] sm:$0xff]  ;;  %v10125_v4 = vld [vmem:[%s11518_s1 + $0x318] sm:$0xff] }
 0x76b   :  { %2357 = vmatpush1.msra.mxu0 %v13434_v1  ;;  %2426 = vmatpush1.msra.mxu1 %v13435_v5  ;;  %v10131_v1 = vld [vmem:[%s11518_s1 + $0x2e0] sm:$0xff]  ;;  %v10137_v5 = vld [vmem:[%s11518_s1 + $0x310] sm:$0xff] }
 0x76c   :  { %2358 = vmatprep.subr.mxu0 %v13436_v53  ;;  %2427 = vmatprep.subr.mxu1 %v13437_v15  ;;  %v10143_v53 = vld [vmem:[%s11518_s1 + $0x2c8] sm:$0xff]  ;;  %v10149_v15 = vld [vmem:[%s11518_s1 + $0x2f8] sm:$0xff] }
 0x76d   :  { %2359 = vmatpush1.msra.mxu0 %v13438_v61  ;;  %2428 = vmatpush1.msra.mxu1 %v13439_v48  ;;  %v10155_v61 = vld [vmem:[%s11518_s1 + $0x2c0] sm:$0xff]  ;;  %v10161_v48 = vld [vmem:[%s11518_s1 + $0x2f0] sm:$0xff] }
 0x76e   :  { %2360 = vmatprep.subr.mxu0 %v13440_v46  ;;  %2429 = vmatprep.subr.mxu1 %v13441_v8  ;;  %v10167_v46 = vld [vmem:[%s11518_s1 + $0x2a8] sm:$0xff]  ;;  %v10173_v8 = vld [vmem:[%s11518_s1 + $0x2d8] sm:$0xff] }
 0x76f   :  { %2361 = vmatpush1.msra.mxu0 %v13442_v57  ;;  %2430 = vmatpush1.msra.mxu1 %v13443_v45  ;;  %v10179_v57 = vld [vmem:[%s11518_s1 + $0x2a0] sm:$0xff]  ;;  %v10185_v45 = vld [vmem:[%s11518_s1 + $0x2d0] sm:$0xff] }
 0x770   :  { %2362 = vmatprep.subr.mxu0 %v13444_v54  ;;  %2431 = vmatprep.subr.mxu1 %v13445_v44  ;;  %v10191_v54 = vld [vmem:[%s11518_s1 + $0x288] sm:$0xff]  ;;  %v10197_v44 = vld [vmem:[%s11518_s1 + $0x2b8] sm:$0xff] }
 0x771   :  { %2363 = vmatpush1.msra.mxu0 %v13446_v37  ;;  %2432 = vmatpush1.msra.mxu1 %v13447_v41  ;;  %13457 = vst [vmem:[#allocation10_spill] sm:$0xff] %v10191_v54  ;;  %13458 = vst [vmem:[#allocation16_spill] sm:$0xff] %v10197_v44  ;;  %v10203_v37 = vld [vmem:[%s11518_s1 + $0x280] sm:$0xff]  ;;  %v10209_v41 = vld [vmem:[%s11518_s1 + $0x2b0] sm:$0xff] }
 0x772   :  { %2364 = vmatprep.subr.mxu0 %v13448_v40  ;;  %2433 = vmatprep.subr.mxu1 %v13449_v42  ;;  %13459 = vst [vmem:[#allocation11_spill] sm:$0xff] %v10203_v37  ;;  %13460 = vst [vmem:[#allocation18_spill] sm:$0xff] %v10209_v41  ;;  %v10215_v40 = vld [vmem:[%s11518_s1 + $0x268] sm:$0xff]  ;;  %v10221_v42 = vld [vmem:[%s11518_s1 + $0x298] sm:$0xff] }
 0x773   :  { %2365 = vmatpush1.msra.mxu0 %v13450_v6  ;;  %2434 = vmatpush1.msra.mxu1 %v13451_v24  ;;  %13461 = vst [vmem:[#allocation12_spill] sm:$0xff] %v10215_v40  ;;  %13462 = vst [vmem:[#allocation19_spill] sm:$0xff] %v10221_v42  ;;  %v10227_v6 = vld [vmem:[%s11518_s1 + $0x260] sm:$0xff]  ;;  %v10233_v24 = vld [vmem:[%s11518_s1 + $0x290] sm:$0xff] }
 0x774   :  { %2366 = vmatprep.subr.mxu0 %v13452_v7  ;;  %2435 = vmatprep.subr.mxu1 %v13453_v17  ;;  %13463 = vst [vmem:[#allocation13_spill] sm:$0xff] %v10227_v6  ;;  %13464 = vst [vmem:[#allocation20_spill] sm:$0xff] %v10233_v24  ;;  %v10239_v7 = vld [vmem:[%s11518_s1 + $0x248] sm:$0xff]  ;;  %v10245_v17 = vld [vmem:[%s11518_s1 + $0x278] sm:$0xff] }
 0x775   :  { %2367 = vmatpush1.msra.mxu0 %v13454_v18  ;;  %2436 = vmatpush1.msra.mxu1 %v9617_v60  ;;  %v9981_v60 = vld [vmem:[%s11518_s1 + $0x3d8] sm:$0xff]  ;;  %13465 = vst [vmem:[#allocation15_spill] sm:$0xff] %v10239_v7  ;;  %13466 = vst [vmem:[#allocation21_spill] sm:$0xff] %v10245_v17  ;;  %v10251_v18 = vld [vmem:[%s11518_s1 + $0x240] sm:$0xff] }
 0x776   :  { %2368 = vmatprep.subr.mxu0 %v13455_v21  ;;  %2437 = vmatprep.subr.mxu1 %v13456_v22  ;;  %13467 = vst [vmem:[#allocation17_spill] sm:$0xff] %v10251_v18  ;;  %v10257_v21 = vld [vmem:[%s11518_s1 + $0x270] sm:$0xff]  ;;  %v10263_v22 = vld [vmem:[%s11518_s1 + $0x228] sm:$0xff] }
 0x777   :  { %2369 = vmatpush1.msra.mxu0 %v9635_v10  ;;  %2438 = vmatpush1.msra.mxu1 %v9946_v26  ;;  %v9960_v10 = vld [vmem:[%s11518_s1 + $0x10] sm:$0xff]  ;;  %13468 = vst [vmem:[#allocation23_spill] sm:$0xff] %v10257_v21  ;;  %13469 = vst [vmem:[#allocation25_spill] sm:$0xff] %v10263_v22 }
 0x778   :  { %2370 = vmatprep.subr.mxu0 %v9642_v23  ;;  %2439 = vmatprep.subr.mxu1 %v9953_v55  ;;  %v9967_v23 = vld [vmem:[%s11518_s1 + $0x3f8] sm:$0xff] }
 0x779   :  { %2371 = vmatpush2.msra.mxu0 %v9649_v62  ;;  %2440 = vmatpush1.msra.mxu1 %v9960_v10  ;;  %v9974_v62 = vld [vmem:[%s11518_s1 + $0x3f0] sm:$0xff] }
 0x77a   :  { %2372 = vmatprep.subr.mxu0 %v9656_v16  ;;  %2441 = vmatprep.subr.mxu1 %v9967_v23  ;;  %v9987_v16 = vld [vmem:[%s11518_s1 + $0x3a0] sm:$0xff] }
 0x77b   :  { %2373 = vmatpush2.msra.mxu0 %v9663_v30  ;;  %2442 = vmatpush2.msra.mxu1 %v9974_v62  ;;  %v9993_v30 = vld [vmem:[%s11518_s1 + $0x3d0] sm:$0xff] }
 0x77c   :  { %2374 = vmatprep.subr.mxu0 %v9670_v50  ;;  %2443 = vmatprep.subr.mxu1 %v9981_v60  ;;  %v9999_v50 = vld [vmem:[%s11518_s1 + $0x388] sm:$0xff] }
 0x77d   :  { %2375 = vmatpush2.msra.mxu0 %v9987_v16  ;;  %2444 = vmatpush2.msra.mxu1 %v9993_v30 }
 0x77e   :  { %2376 = vmatprep.subr.mxu0 %v9999_v50  ;;  %2445 = vmatprep.subr.mxu1 %v10005_v0 }
 0x77f   :  { %2377 = vmatpush2.msra.mxu0 %v10011_v12  ;;  %2446 = vmatpush2.msra.mxu1 %v10017_v38 }
 0x780   :  { %2378 = vmatprep.subr.mxu0 %v10023_v11  ;;  %2447 = vmatprep.subr.mxu1 %v10029_v51 }
 0x781   :  { %2379 = vmatpush2.msra.mxu0 %v10035_v63  ;;  %2448 = vmatpush2.msra.mxu1 %v10041_v56 }
 0x782   :  { %2380 = vmatprep.subr.mxu0 %v10047_v49  ;;  %2449 = vmatprep.subr.mxu1 %v10053_v2 }
 0x783   :  { %2381 = vmatpush2.msra.mxu0 %v10059_v13  ;;  %2450 = vmatpush2.msra.mxu1 %v10065_v3 }
 0x784   :  { %2382 = vmatprep.subr.mxu0 %v10071_v14  ;;  %2451 = vmatprep.subr.mxu1 %v10077_v27 }
 0x785   :  { %2383 = vmatpush2.msra.mxu0 %v10083_v29  ;;  %2452 = vmatpush2.msra.mxu1 %v10089_v32 }
 0x786   :  { %2384 = vmatprep.subr.mxu0 %v10095_v33  ;;  %2453 = vmatprep.subr.mxu1 %v10101_v34 }
 0x787   :  { %2385 = vmatpush2.msra.mxu0 %v10107_v59  ;;  %2454 = vmatpush2.msra.mxu1 %v10113_v39 }
 0x788   :  { %2386 = vmatprep.subr.mxu0 %v10119_v58  ;;  %2455 = vmatprep.subr.mxu1 %v10125_v4 }
 0x789   :  { %2387 = vmatpush2.msra.mxu0 %v10131_v1  ;;  %2456 = vmatpush2.msra.mxu1 %v10137_v5 }
 0x78a   :  { %2388 = vmatprep.subr.mxu0 %v10143_v53  ;;  %2457 = vmatprep.subr.mxu1 %v10149_v15 }
 0x78b   :  { %2389 = vmatpush2.msra.mxu0 %v10155_v61  ;;  %2458 = vmatpush2.msra.mxu1 %v10161_v48 }
 0x78c   :  { %2390 = vmatprep.subr.mxu0 %v10167_v46  ;;  %2459 = vmatprep.subr.mxu1 %v10173_v8 }
 0x78d   :  { %2391 = vmatpush2.msra.mxu0 %v10179_v57  ;;  %2460 = vmatpush2.msra.mxu1 %v10185_v45 }
 0x78e   :  { %2392 = vmatprep.subr.mxu0 %v10191_v54  ;;  %2461 = vmatprep.subr.mxu1 %v10197_v44 }
 0x78f   :  { %2393 = vmatpush2.msra.mxu0 %v10203_v37  ;;  %2462 = vmatpush2.msra.mxu1 %v10209_v41 }
 0x790   :  { %2394 = vmatprep.subr.mxu0 %v10215_v40  ;;  %2463 = vmatprep.subr.mxu1 %v10221_v42 }
 0x791   :  { %2395 = vmatpush2.msra.mxu0 %v10227_v6  ;;  %2464 = vmatpush2.msra.mxu1 %v10233_v24 }
 0x792   :  { %2396 = vmatprep.subr.mxu0 %v10239_v7  ;;  %2465 = vmatprep.subr.mxu1 %v10245_v17  ;;  %v10269_v17 = vld [vmem:[%s11518_s1 + $0x258] sm:$0xff]  ;;  %v10302_v7 = vld [vmem:[%s11518_s1 + $0x200] sm:$0xff] }
 0x793   :  { %2397 = vmatpush2.msra.mxu0 %v10251_v18  ;;  %2466 = vmatpush2.msra.mxu1 %v10257_v21  ;;  %13470 = vst [vmem:[#allocation27_spill] sm:$0xff] %v10269_v17  ;;  %v10275_v18 = vld [vmem:[%s11518_s1 + $0x220] sm:$0xff]  ;;  %v3064_v21 = vld [vmem:[%s11517_s0 + $0xc] sm:$0x3]  ;;  %13475 = vst [vmem:[#allocation30_spill] sm:$0xff] %v10302_v7 }
 0x794   :  { %2398 = vmatprep.subr.mxu0 %v10263_v22  ;;  %2467 = vmatprep.subr.mxu1 %v10269_v17  ;;  %13471 = vst [vmem:[#allocation22_spill] sm:$0xff] %v10275_v18  ;;  %v10284_v22 = vld [vmem:[%s11518_s1 + $0x250] sm:$0xff]  ;;  %v10290_v17 = vld [vmem:[%s11518_s1 + $0x208] sm:$0xff] }
 0x795   :  { %2399 = vmatpush2.msra.mxu0 %v10275_v18  ;;  %13472 = vst [vmem:[#allocation24_spill] sm:$0xff] %v10284_v22  ;;  %2468 = vmatpush2.msra.mxu1 %v10284_v22  ;;  %13473 = vst [vmem:[#allocation29_spill] sm:$0xff] %v10290_v17  ;;  %v10296_v18 = vld [vmem:[%s11518_s1 + $0x238] sm:$0xff]  ;;  %v10308_v22 = vld [vmem:[%s11518_s1 + $0x230] sm:$0xff] }
 0x796   :  { %2400 = vmatprep.subr.mxu0 %v10290_v17  ;;  %13474 = vst [vmem:[#allocation26_spill] sm:$0xff] %v10296_v18  ;;  %2469 = vmatprep.subr.mxu1 %v10296_v18  ;;  %13476 = vst [vmem:[#allocation28_spill] sm:$0xff] %v10308_v22  ;;  %v10314_v17 = vld [vmem:[%s11518_s1 + $0x218] sm:$0xff]  ;;  %v10320_v18 = vld [vmem:[%s11518_s1 + $0x210] sm:$0xff] }
 0x797   :  { %2401 = vmatpush2.msra.mxu0 %v10302_v7  ;;  %2470 = vmatpush2.msra.mxu1 %v10308_v22  ;;  %13477 = vst [vmem:[#allocation32_spill] sm:$0xff] %v10314_v17  ;;  %13478 = vst [vmem:[#allocation31_spill] sm:$0xff] %v10320_v18  ;;  %v10326_v7 = vld [vmem:[%s11520_s3 + $0x1e8] sm:$0xff]  ;;  %v10332_v22 = vld [vmem:[%s11520_s3 + $0x1e0] sm:$0xff] }
 0x798   :  { %2403 = vmatmul.mubr.f32.vlgmr.msra.gmra.mxu0 %v3064_v21  ;;  %2471 = vmatprep.subr.mxu1 %v10314_v17  ;;  %13479 = vst [vmem:[#allocation34_spill] sm:$0xff] %v10326_v7  ;;  %13480 = vst [vmem:[#allocation33_spill] sm:$0xff] %v10332_v22  ;;  %v10338_v17 = vld [vmem:[%s11520_s3 + $0x1f8] sm:$0xff] }
 0x799   :  { %2472 = vmatpush2.msra.mxu1 %v10320_v18  ;;  %2504 = vmatprep.subr.mxu0 %v10326_v7  ;;  %13481 = vst [vmem:[#allocation36_spill] sm:$0xff] %v10338_v17  ;;  %v10344_v18 = vld [vmem:[%s11520_s3 + $0x1c8] sm:$0xff] }
 0x79a   :  { %2474 = vmatmul.mubr.f32.vlgmr.msra.gmra.mxu1 %v3064_v21  ;;  %2505 = vmatpush1.msra.mxu0 %v10332_v22  ;;  %13482 = vst [vmem:[#allocation35_spill] sm:$0xff] %v10344_v18  ;;  %v10350_v21 = vld [vmem:[%s11520_s3 + $0x1f0] sm:$0xff]  ;;  %v10356_v22 = vld [vmem:[%s11520_s3 + $0x1c0] sm:$0xff] }
 0x79b   :  { %2575 = vmatprep.subr.mxu1 %v10338_v17  ;;  %2506 = vmatprep.subr.mxu0 %v10344_v18  ;;  %13483 = vst [vmem:[#allocation38_spill] sm:$0xff] %v10350_v21  ;;  %13484 = vst [vmem:[#allocation37_spill] sm:$0xff] %v10356_v22  ;;  %v10362_v17 = vld [vmem:[%s11520_s3 + $0x1d8] sm:$0xff]  ;;  %v10368_v18 = vld [vmem:[%s11520_s3 + $0x1a8] sm:$0xff] }
 0x79c   :  { %2576 = vmatpush1.msra.mxu1 %v10350_v21  ;;  %2507 = vmatpush1.msra.mxu0 %v10356_v22  ;;  %13485 = vst [vmem:[#allocation39_spill] sm:$0xff] %v10362_v17  ;;  %13486 = vst [vmem:[#allocation40_spill] sm:$0xff] %v10368_v18  ;;  %v10374_v21 = vld [vmem:[%s11520_s3 + $0x1d0] sm:$0xff]  ;;  %v10380_v22 = vld [vmem:[%s11520_s3 + $0x1a0] sm:$0xff] }
 0x79d   :  { %2577 = vmatprep.subr.mxu1 %v10362_v17  ;;  %2508 = vmatprep.subr.mxu0 %v10368_v18  ;;  %13487 = vst [vmem:[#allocation41_spill] sm:$0xff] %v10374_v21  ;;  %13488 = vst [vmem:[#allocation42_spill] sm:$0xff] %v10380_v22  ;;  %v10386_v17 = vld [vmem:[%s11520_s3 + $0x1b8] sm:$0xff]  ;;  %v10392_v18 = vld [vmem:[%s11520_s3 + $0x188] sm:$0xff] }
 0x79e   :  { %2578 = vmatpush1.msra.mxu1 %v10374_v21  ;;  %2509 = vmatpush1.msra.mxu0 %v10380_v22  ;;  %13489 = vst [vmem:[#allocation43_spill] sm:$0xff] %v10386_v17  ;;  %13490 = vst [vmem:[#allocation44_spill] sm:$0xff] %v10392_v18  ;;  %v10398_v21 = vld [vmem:[%s11520_s3 + $0x1b0] sm:$0xff]  ;;  %v10404_v22 = vld [vmem:[%s11520_s3 + $0x180] sm:$0xff] }
 0x79f   :  { %2579 = vmatprep.subr.mxu1 %v10386_v17  ;;  %2510 = vmatprep.subr.mxu0 %v10392_v18  ;;  %13491 = vst [vmem:[#allocation45_spill] sm:$0xff] %v10398_v21  ;;  %13492 = vst [vmem:[#allocation46_spill] sm:$0xff] %v10404_v22  ;;  %v10410_v17 = vld [vmem:[%s11520_s3 + $0x198] sm:$0xff]  ;;  %v10416_v18 = vld [vmem:[%s11520_s3 + $0x168] sm:$0xff] }
 0x7a0   :  { %2580 = vmatpush1.msra.mxu1 %v10398_v21  ;;  %2511 = vmatpush1.msra.mxu0 %v10404_v22  ;;  %13493 = vst [vmem:[#allocation47_spill] sm:$0xff] %v10410_v17  ;;  %13494 = vst [vmem:[#allocation48_spill] sm:$0xff] %v10416_v18  ;;  %v10422_v21 = vld [vmem:[%s11520_s3 + $0x190] sm:$0xff]  ;;  %v10428_v22 = vld [vmem:[%s11520_s3 + $0x160] sm:$0xff] }
 0x7a1   :  { %2581 = vmatprep.subr.mxu1 %v10410_v17  ;;  %2512 = vmatprep.subr.mxu0 %v10416_v18  ;;  %13495 = vst [vmem:[#allocation49_spill] sm:$0xff] %v10422_v21  ;;  %13496 = vst [vmem:[#allocation50_spill] sm:$0xff] %v10428_v22  ;;  %v10434_v17 = vld [vmem:[%s11520_s3 + $0x178] sm:$0xff]  ;;  %v10440_v18 = vld [vmem:[%s11520_s3 + $0x148] sm:$0xff] }
 0x7a2   :  { %2582 = vmatpush1.msra.mxu1 %v10422_v21  ;;  %2513 = vmatpush1.msra.mxu0 %v10428_v22  ;;  %13497 = vst [vmem:[#allocation51_spill] sm:$0xff] %v10434_v17  ;;  %13498 = vst [vmem:[#allocation52_spill] sm:$0xff] %v10440_v18  ;;  %v10446_v21 = vld [vmem:[%s11520_s3 + $0x170] sm:$0xff]  ;;  %v10452_v22 = vld [vmem:[%s11520_s3 + $0x140] sm:$0xff] }
 0x7a3   :  { %2583 = vmatprep.subr.mxu1 %v10434_v17  ;;  %2514 = vmatprep.subr.mxu0 %v10440_v18  ;;  %13499 = vst [vmem:[#allocation53_spill] sm:$0xff] %v10446_v21  ;;  %13500 = vst [vmem:[#allocation54_spill] sm:$0xff] %v10452_v22  ;;  %v10458_v17 = vld [vmem:[%s11520_s3 + $0x158] sm:$0xff]  ;;  %v10464_v18 = vld [vmem:[%s11520_s3 + $0x128] sm:$0xff] }
 0x7a4   :  { %2584 = vmatpush1.msra.mxu1 %v10446_v21  ;;  %2515 = vmatpush1.msra.mxu0 %v10452_v22  ;;  %13501 = vst [vmem:[#allocation55_spill] sm:$0xff] %v10458_v17  ;;  %13502 = vst [vmem:[#allocation56_spill] sm:$0xff] %v10464_v18  ;;  %v10470_v21 = vld [vmem:[%s11520_s3 + $0x150] sm:$0xff]  ;;  %v10476_v22 = vld [vmem:[%s11520_s3 + $0x120] sm:$0xff] }
 0x7a5   :  { %2585 = vmatprep.subr.mxu1 %v10458_v17  ;;  %2516 = vmatprep.subr.mxu0 %v10464_v18  ;;  %13503 = vst [vmem:[#allocation57_spill] sm:$0xff] %v10470_v21  ;;  %13504 = vst [vmem:[#allocation58_spill] sm:$0xff] %v10476_v22  ;;  %v10482_v17 = vld [vmem:[%s11520_s3 + $0x138] sm:$0xff]  ;;  %v10488_v18 = vld [vmem:[%s11520_s3 + $0x108] sm:$0xff] }
 0x7a6   :  { %2586 = vmatpush1.msra.mxu1 %v10470_v21  ;;  %2517 = vmatpush1.msra.mxu0 %v10476_v22  ;;  %13505 = vst [vmem:[#allocation59_spill] sm:$0xff] %v10482_v17  ;;  %13506 = vst [vmem:[#allocation60_spill] sm:$0xff] %v10488_v18  ;;  %v10494_v21 = vld [vmem:[%s11520_s3 + $0x130] sm:$0xff]  ;;  %v10500_v22 = vld [vmem:[%s11520_s3 + $0x100] sm:$0xff] }
 0x7a7   :  { %2587 = vmatprep.subr.mxu1 %v10482_v17  ;;  %2518 = vmatprep.subr.mxu0 %v10488_v18  ;;  %13507 = vst [vmem:[#allocation61_spill] sm:$0xff] %v10494_v21  ;;  %13508 = vst [vmem:[#allocation62_spill] sm:$0xff] %v10500_v22  ;;  %v10506_v17 = vld [vmem:[%s11520_s3 + $0x118] sm:$0xff]  ;;  %v10512_v18 = vld [vmem:[%s11520_s3 + $0xe8] sm:$0xff] }
 0x7a8   :  { %2588 = vmatpush1.msra.mxu1 %v10494_v21  ;;  %2519 = vmatpush1.msra.mxu0 %v10500_v22  ;;  %13509 = vst [vmem:[#allocation63_spill] sm:$0xff] %v10506_v17  ;;  %13510 = vst [vmem:[#allocation64_spill] sm:$0xff] %v10512_v18  ;;  %v10518_v21 = vld [vmem:[%s11520_s3 + $0x110] sm:$0xff]  ;;  %v10524_v22 = vld [vmem:[%s11520_s3 + $0xe0] sm:$0xff] }
 0x7a9   :  { %2589 = vmatprep.subr.mxu1 %v10506_v17  ;;  %2520 = vmatprep.subr.mxu0 %v10512_v18  ;;  %13511 = vst [vmem:[#allocation65_spill] sm:$0xff] %v10518_v21  ;;  %13512 = vst [vmem:[#allocation66_spill] sm:$0xff] %v10524_v22  ;;  %v10530_v17 = vld [vmem:[%s11520_s3 + $0xf8] sm:$0xff]  ;;  %v10536_v18 = vld [vmem:[%s11520_s3 + $0xc8] sm:$0xff] }
 0x7aa   :  { %2590 = vmatpush1.msra.mxu1 %v10518_v21  ;;  %2521 = vmatpush1.msra.mxu0 %v10524_v22  ;;  %13513 = vst [vmem:[#allocation67_spill] sm:$0xff] %v10530_v17  ;;  %13514 = vst [vmem:[#allocation68_spill] sm:$0xff] %v10536_v18  ;;  %v10542_v21 = vld [vmem:[%s11520_s3 + $0xf0] sm:$0xff]  ;;  %v10548_v22 = vld [vmem:[%s11520_s3 + $0xc0] sm:$0xff] }
 0x7ab   :  { %2591 = vmatprep.subr.mxu1 %v10530_v17  ;;  %2522 = vmatprep.subr.mxu0 %v10536_v18  ;;  %13515 = vst [vmem:[#allocation69_spill] sm:$0xff] %v10542_v21  ;;  %13516 = vst [vmem:[#allocation70_spill] sm:$0xff] %v10548_v22  ;;  %v10554_v17 = vld [vmem:[%s11520_s3 + $0xd8] sm:$0xff]  ;;  %v10560_v18 = vld [vmem:[%s11520_s3 + $0xa8] sm:$0xff] }
 0x7ac   :  { %2592 = vmatpush1.msra.mxu1 %v10542_v21  ;;  %2523 = vmatpush1.msra.mxu0 %v10548_v22  ;;  %13517 = vst [vmem:[#allocation71_spill] sm:$0xff] %v10554_v17  ;;  %13518 = vst [vmem:[#allocation72_spill] sm:$0xff] %v10560_v18  ;;  %v10566_v21 = vld [vmem:[%s11520_s3 + $0xd0] sm:$0xff]  ;;  %v10572_v22 = vld [vmem:[%s11520_s3 + $0xa0] sm:$0xff] }
 0x7ad   :  { %2593 = vmatprep.subr.mxu1 %v10554_v17  ;;  %2524 = vmatprep.subr.mxu0 %v10560_v18  ;;  %13519 = vst [vmem:[#allocation73_spill] sm:$0xff] %v10566_v21  ;;  %13520 = vst [vmem:[#allocation74_spill] sm:$0xff] %v10572_v22  ;;  %v10578_v17 = vld [vmem:[%s11520_s3 + $0xb8] sm:$0xff]  ;;  %v10584_v18 = vld [vmem:[%s11520_s3 + $0x88] sm:$0xff] }
 0x7ae   :  { %2594 = vmatpush1.msra.mxu1 %v10566_v21  ;;  %2525 = vmatpush1.msra.mxu0 %v10572_v22  ;;  %13521 = vst [vmem:[#allocation75_spill] sm:$0xff] %v10578_v17  ;;  %13522 = vst [vmem:[#allocation76_spill] sm:$0xff] %v10584_v18  ;;  %v10590_v21 = vld [vmem:[%s11520_s3 + $0xb0] sm:$0xff]  ;;  %v10596_v22 = vld [vmem:[%s11520_s3 + $0x80] sm:$0xff] }
 0x7af   :  { %2595 = vmatprep.subr.mxu1 %v10578_v17  ;;  %2526 = vmatprep.subr.mxu0 %v10584_v18  ;;  %13523 = vst [vmem:[#allocation77_spill] sm:$0xff] %v10590_v21  ;;  %13524 = vst [vmem:[#allocation78_spill] sm:$0xff] %v10596_v22  ;;  %v10602_v17 = vld [vmem:[%s11520_s3 + $0x98] sm:$0xff]  ;;  %v10608_v18 = vld [vmem:[%s11520_s3 + $0x68] sm:$0xff] }
 0x7b0   :  { %2596 = vmatpush1.msra.mxu1 %v10590_v21  ;;  %2527 = vmatpush1.msra.mxu0 %v10596_v22  ;;  %13525 = vst [vmem:[#allocation79_spill] sm:$0xff] %v10602_v17  ;;  %13526 = vst [vmem:[#allocation80_spill] sm:$0xff] %v10608_v18  ;;  %v10614_v21 = vld [vmem:[%s11520_s3 + $0x90] sm:$0xff]  ;;  %v10620_v22 = vld [vmem:[%s11520_s3 + $0x60] sm:$0xff] }
 0x7b1   :  { %2597 = vmatprep.subr.mxu1 %v10602_v17  ;;  %2528 = vmatprep.subr.mxu0 %v10608_v18  ;;  %13527 = vst [vmem:[#allocation81_spill] sm:$0xff] %v10614_v21  ;;  %13528 = vst [vmem:[#allocation82_spill] sm:$0xff] %v10620_v22  ;;  %v10626_v17 = vld [vmem:[%s11520_s3 + $0x78] sm:$0xff]  ;;  %v10632_v18 = vld [vmem:[%s11520_s3 + $0x48] sm:$0xff] }
 0x7b2   :  { %2598 = vmatpush1.msra.mxu1 %v10614_v21  ;;  %2529 = vmatpush1.msra.mxu0 %v10620_v22  ;;  %13529 = vst [vmem:[#allocation83_spill] sm:$0xff] %v10626_v17  ;;  %13530 = vst [vmem:[#allocation84_spill] sm:$0xff] %v10632_v18  ;;  %v10638_v21 = vld [vmem:[%s11520_s3 + $0x70] sm:$0xff]  ;;  %v10644_v22 = vld [vmem:[%s11520_s3 + $0x40] sm:$0xff] }
 0x7b3   :  { %2599 = vmatprep.subr.mxu1 %v10626_v17  ;;  %2530 = vmatprep.subr.mxu0 %v10632_v18  ;;  %13531 = vst [vmem:[#allocation85_spill] sm:$0xff] %v10638_v21  ;;  %13532 = vst [vmem:[#allocation86_spill] sm:$0xff] %v10644_v22  ;;  %v10650_v17 = vld [vmem:[%s11520_s3 + $0x58] sm:$0xff]  ;;  %v10656_v18 = vld [vmem:[%s11520_s3 + $0x28] sm:$0xff] }
 0x7b4   :  { %2600 = vmatpush1.msra.mxu1 %v10638_v21  ;;  %2531 = vmatpush1.msra.mxu0 %v10644_v22  ;;  %13533 = vst [vmem:[#allocation87_spill] sm:$0xff] %v10650_v17  ;;  %13534 = vst [vmem:[#allocation88_spill] sm:$0xff] %v10656_v18  ;;  %v10662_v21 = vld [vmem:[%s11520_s3 + $0x50] sm:$0xff]  ;;  %v10668_v22 = vld [vmem:[%s11520_s3 + $0x20] sm:$0xff] }
 0x7b5   :  { %2601 = vmatprep.subr.mxu1 %v10650_v17  ;;  %2532 = vmatprep.subr.mxu0 %v10656_v18  ;;  %13535 = vst [vmem:[#allocation89_spill] sm:$0xff] %v10662_v21  ;;  %13536 = vst [vmem:[#allocation90_spill] sm:$0xff] %v10668_v22  ;;  %v10674_v17 = vld [vmem:[%s11520_s3 + $0x38] sm:$0xff]  ;;  %v10680_v18 = vld [vmem:[%s11520_s3 + $0x8] sm:$0xff] }
 0x7b6   :  { %2602 = vmatpush1.msra.mxu1 %v10662_v21  ;;  %2533 = vmatpush1.msra.mxu0 %v10668_v22  ;;  %13537 = vst [vmem:[#allocation91_spill] sm:$0xff] %v10674_v17  ;;  %13538 = vst [vmem:[#allocation92_spill] sm:$0xff] %v10680_v18  ;;  %v10686_v21 = vld [vmem:[%s11520_s3 + $0x30] sm:$0xff]  ;;  %v10692_v22 = vld [vmem:[%s11520_s3] sm:$0xff] }
 0x7b7   :  { %2603 = vmatprep.subr.mxu1 %v10674_v17  ;;  %2534 = vmatprep.subr.mxu0 %v10680_v18  ;;  %13539 = vst [vmem:[#allocation93_spill] sm:$0xff] %v10686_v21  ;;  %13540 = vst [vmem:[#allocation94_spill] sm:$0xff] %v10692_v22  ;;  %v10698_v17 = vld [vmem:[%s11520_s3 + $0x18] sm:$0xff]  ;;  %v10704_v18 = vld [vmem:[%s11520_s3 + $0x3e8] sm:$0xff] }
 0x7b8   :  { %2604 = vmatpush1.msra.mxu1 %v10686_v21  ;;  %2535 = vmatpush1.msra.mxu0 %v10692_v22  ;;  %13541 = vst [vmem:[#allocation95_spill] sm:$0xff] %v10698_v17  ;;  %13542 = vst [vmem:[#allocation96_spill] sm:$0xff] %v10704_v18  ;;  %v10710_v21 = vld [vmem:[%s11520_s3 + $0x10] sm:$0xff]  ;;  %v10716_v22 = vld [vmem:[%s11520_s3 + $0x3e0] sm:$0xff] }
 0x7b9   :  { %2605 = vmatprep.subr.mxu1 %v10698_v17  ;;  %2536 = vmatprep.subr.mxu0 %v10704_v18  ;;  %13543 = vst [vmem:[#allocation97_spill] sm:$0xff] %v10710_v21  ;;  %13544 = vst [vmem:[#allocation98_spill] sm:$0xff] %v10716_v22  ;;  %v10722_v17 = vld [vmem:[%s11520_s3 + $0x3f8] sm:$0xff]  ;;  %v10728_v18 = vld [vmem:[%s11520_s3 + $0x3c8] sm:$0xff] }
 0x7ba   :  { %2606 = vmatpush1.msra.mxu1 %v10710_v21  ;;  %2537 = vmatpush2.msra.mxu0 %v10716_v22  ;;  %13545 = vst [vmem:[#allocation99_spill] sm:$0xff] %v10722_v17  ;;  %13546 = vst [vmem:[#allocation100_spill] sm:$0xff] %v10728_v18  ;;  %v10734_v21 = vld [vmem:[%s11520_s3 + $0x3f0] sm:$0xff]  ;;  %v10740_v22 = vld [vmem:[%s11520_s3 + $0x3c0] sm:$0xff] }
 0x7bb   :  { %2607 = vmatprep.subr.mxu1 %v10722_v17  ;;  %2538 = vmatprep.subr.mxu0 %v10728_v18  ;;  %13547 = vst [vmem:[#allocation101_spill] sm:$0xff] %v10734_v21  ;;  %13548 = vst [vmem:[#allocation102_spill] sm:$0xff] %v10740_v22  ;;  %v10746_v17 = vld [vmem:[%s11520_s3 + $0x3d8] sm:$0xff]  ;;  %v10752_v18 = vld [vmem:[%s11520_s3 + $0x3a8] sm:$0xff] }
 0x7bc   :  { %2608 = vmatpush2.msra.mxu1 %v10734_v21  ;;  %2539 = vmatpush2.msra.mxu0 %v10740_v22  ;;  %13549 = vst [vmem:[#allocation103_spill] sm:$0xff] %v10746_v17  ;;  %13550 = vst [vmem:[#allocation104_spill] sm:$0xff] %v10752_v18  ;;  %v10758_v21 = vld [vmem:[%s11520_s3 + $0x3d0] sm:$0xff]  ;;  %v10764_v22 = vld [vmem:[%s11520_s3 + $0x3a0] sm:$0xff] }
 0x7bd   :  { %2609 = vmatprep.subr.mxu1 %v10746_v17  ;;  %2540 = vmatprep.subr.mxu0 %v10752_v18  ;;  %13551 = vst [vmem:[#allocation105_spill] sm:$0xff] %v10758_v21  ;;  %13552 = vst [vmem:[#allocation106_spill] sm:$0xff] %v10764_v22  ;;  %v10770_v17 = vld [vmem:[%s11520_s3 + $0x3b8] sm:$0xff]  ;;  %v10776_v18 = vld [vmem:[%s11520_s3 + $0x388] sm:$0xff] }
 0x7be   :  { %2610 = vmatpush2.msra.mxu1 %v10758_v21  ;;  %2541 = vmatpush2.msra.mxu0 %v10764_v22  ;;  %13553 = vst [vmem:[#allocation107_spill] sm:$0xff] %v10770_v17  ;;  %13554 = vst [vmem:[#allocation108_spill] sm:$0xff] %v10776_v18  ;;  %v10782_v21 = vld [vmem:[%s11520_s3 + $0x3b0] sm:$0xff]  ;;  %v10788_v22 = vld [vmem:[%s11520_s3 + $0x380] sm:$0xff] }
 0x7bf   :  { %2611 = vmatprep.subr.mxu1 %v10770_v17  ;;  %2542 = vmatprep.subr.mxu0 %v10776_v18  ;;  %13555 = vst [vmem:[#allocation109_spill] sm:$0xff] %v10782_v21  ;;  %13556 = vst [vmem:[#allocation110_spill] sm:$0xff] %v10788_v22  ;;  %v10794_v17 = vld [vmem:[%s11520_s3 + $0x398] sm:$0xff]  ;;  %v10800_v18 = vld [vmem:[%s11520_s3 + $0x368] sm:$0xff] }
 0x7c0   :  { %2612 = vmatpush2.msra.mxu1 %v10782_v21  ;;  %2543 = vmatpush2.msra.mxu0 %v10788_v22  ;;  %13557 = vst [vmem:[#allocation111_spill] sm:$0xff] %v10794_v17  ;;  %13558 = vst [vmem:[#allocation112_spill] sm:$0xff] %v10800_v18  ;;  %v10806_v21 = vld [vmem:[%s11520_s3 + $0x390] sm:$0xff]  ;;  %v10812_v22 = vld [vmem:[%s11520_s3 + $0x360] sm:$0xff] }
 0x7c1   :  { %2613 = vmatprep.subr.mxu1 %v10794_v17  ;;  %2544 = vmatprep.subr.mxu0 %v10800_v18  ;;  %13559 = vst [vmem:[#allocation113_spill] sm:$0xff] %v10806_v21  ;;  %13560 = vst [vmem:[#allocation114_spill] sm:$0xff] %v10812_v22  ;;  %v10818_v17 = vld [vmem:[%s11520_s3 + $0x378] sm:$0xff]  ;;  %v10824_v18 = vld [vmem:[%s11520_s3 + $0x348] sm:$0xff] }
 0x7c2   :  { %2614 = vmatpush2.msra.mxu1 %v10806_v21  ;;  %2545 = vmatpush2.msra.mxu0 %v10812_v22  ;;  %13561 = vst [vmem:[#allocation115_spill] sm:$0xff] %v10818_v17  ;;  %13562 = vst [vmem:[#allocation116_spill] sm:$0xff] %v10824_v18  ;;  %v10830_v21 = vld [vmem:[%s11520_s3 + $0x370] sm:$0xff]  ;;  %v10836_v22 = vld [vmem:[%s11520_s3 + $0x340] sm:$0xff] }
 0x7c3   :  { %2615 = vmatprep.subr.mxu1 %v10818_v17  ;;  %2546 = vmatprep.subr.mxu0 %v10824_v18  ;;  %13563 = vst [vmem:[#allocation117_spill] sm:$0xff] %v10830_v21  ;;  %13564 = vst [vmem:[#allocation118_spill] sm:$0xff] %v10836_v22  ;;  %v10842_v17 = vld [vmem:[%s11520_s3 + $0x358] sm:$0xff]  ;;  %v10848_v18 = vld [vmem:[%s11520_s3 + $0x328] sm:$0xff] }
 0x7c4   :  { %2616 = vmatpush2.msra.mxu1 %v10830_v21  ;;  %2547 = vmatpush2.msra.mxu0 %v10836_v22  ;;  %13565 = vst [vmem:[#allocation119_spill] sm:$0xff] %v10842_v17  ;;  %13566 = vst [vmem:[#allocation120_spill] sm:$0xff] %v10848_v18  ;;  %v10854_v21 = vld [vmem:[%s11520_s3 + $0x350] sm:$0xff]  ;;  %v10860_v22 = vld [vmem:[%s11520_s3 + $0x320] sm:$0xff] }
 0x7c5   :  { %2617 = vmatprep.subr.mxu1 %v10842_v17  ;;  %2548 = vmatprep.subr.mxu0 %v10848_v18  ;;  %13567 = vst [vmem:[#allocation121_spill] sm:$0xff] %v10854_v21  ;;  %13568 = vst [vmem:[#allocation122_spill] sm:$0xff] %v10860_v22  ;;  %v10866_v17 = vld [vmem:[%s11520_s3 + $0x338] sm:$0xff]  ;;  %v10872_v18 = vld [vmem:[%s11520_s3 + $0x308] sm:$0xff] }
 0x7c6   :  { %2618 = vmatpush2.msra.mxu1 %v10854_v21  ;;  %2549 = vmatpush2.msra.mxu0 %v10860_v22  ;;  %13569 = vst [vmem:[#allocation123_spill] sm:$0xff] %v10866_v17  ;;  %13570 = vst [vmem:[#allocation124_spill] sm:$0xff] %v10872_v18  ;;  %v10878_v21 = vld [vmem:[%s11520_s3 + $0x330] sm:$0xff]  ;;  %v10884_v22 = vld [vmem:[%s11520_s3 + $0x300] sm:$0xff] }
 0x7c7   :  { %2619 = vmatprep.subr.mxu1 %v10866_v17  ;;  %2550 = vmatprep.subr.mxu0 %v10872_v18  ;;  %13571 = vst [vmem:[#allocation125_spill] sm:$0xff] %v10878_v21  ;;  %13572 = vst [vmem:[#allocation126_spill] sm:$0xff] %v10884_v22  ;;  %v10890_v17 = vld [vmem:[%s11520_s3 + $0x318] sm:$0xff]  ;;  %v10896_v18 = vld [vmem:[%s11520_s3 + $0x2e8] sm:$0xff] }
 0x7c8   :  { %2620 = vmatpush2.msra.mxu1 %v10878_v21  ;;  %2551 = vmatpush2.msra.mxu0 %v10884_v22  ;;  %13573 = vst [vmem:[#allocation127_spill] sm:$0xff] %v10890_v17  ;;  %13574 = vst [vmem:[#allocation128_spill] sm:$0xff] %v10896_v18  ;;  %v10902_v21 = vld [vmem:[%s11520_s3 + $0x310] sm:$0xff]  ;;  %v10908_v22 = vld [vmem:[%s11520_s3 + $0x2e0] sm:$0xff] }
 0x7c9   :  { %2621 = vmatprep.subr.mxu1 %v10890_v17  ;;  %2552 = vmatprep.subr.mxu0 %v10896_v18  ;;  %13575 = vst [vmem:[#allocation129_spill] sm:$0xff] %v10902_v21  ;;  %13576 = vst [vmem:[#allocation130_spill] sm:$0xff] %v10908_v22  ;;  %v10914_v17 = vld [vmem:[%s11520_s3 + $0x2f8] sm:$0xff]  ;;  %v10920_v18 = vld [vmem:[%s11520_s3 + $0x2c8] sm:$0xff] }
 0x7ca   :  { %2622 = vmatpush2.msra.mxu1 %v10902_v21  ;;  %2553 = vmatpush2.msra.mxu0 %v10908_v22  ;;  %13577 = vst [vmem:[#allocation131_spill] sm:$0xff] %v10914_v17  ;;  %13578 = vst [vmem:[#allocation132_spill] sm:$0xff] %v10920_v18  ;;  %v10926_v21 = vld [vmem:[%s11520_s3 + $0x2f0] sm:$0xff]  ;;  %v10932_v22 = vld [vmem:[%s11520_s3 + $0x2c0] sm:$0xff] }
 0x7cb   :  { %2623 = vmatprep.subr.mxu1 %v10914_v17  ;;  %2554 = vmatprep.subr.mxu0 %v10920_v18  ;;  %13579 = vst [vmem:[#allocation133_spill] sm:$0xff] %v10926_v21  ;;  %13580 = vst [vmem:[#allocation134_spill] sm:$0xff] %v10932_v22  ;;  %v10938_v17 = vld [vmem:[%s11520_s3 + $0x2d8] sm:$0xff]  ;;  %v10944_v18 = vld [vmem:[%s11520_s3 + $0x2a8] sm:$0xff] }
 0x7cc   :  { %2624 = vmatpush2.msra.mxu1 %v10926_v21  ;;  %2555 = vmatpush2.msra.mxu0 %v10932_v22  ;;  %13581 = vst [vmem:[#allocation135_spill] sm:$0xff] %v10938_v17  ;;  %13582 = vst [vmem:[#allocation136_spill] sm:$0xff] %v10944_v18  ;;  %v10950_v21 = vld [vmem:[%s11520_s3 + $0x2d0] sm:$0xff]  ;;  %v10956_v22 = vld [vmem:[%s11520_s3 + $0x2a0] sm:$0xff] }
 0x7cd   :  { %2625 = vmatprep.subr.mxu1 %v10938_v17  ;;  %2556 = vmatprep.subr.mxu0 %v10944_v18  ;;  %13583 = vst [vmem:[#allocation137_spill] sm:$0xff] %v10950_v21  ;;  %13584 = vst [vmem:[#allocation138_spill] sm:$0xff] %v10956_v22  ;;  %v10962_v17 = vld [vmem:[%s11520_s3 + $0x2b8] sm:$0xff]  ;;  %v10968_v18 = vld [vmem:[%s11520_s3 + $0x288] sm:$0xff] }
 0x7ce   :  { %2626 = vmatpush2.msra.mxu1 %v10950_v21  ;;  %2557 = vmatpush2.msra.mxu0 %v10956_v22  ;;  %13585 = vst [vmem:[#allocation139_spill] sm:$0xff] %v10962_v17  ;;  %13586 = vst [vmem:[#allocation140_spill] sm:$0xff] %v10968_v18  ;;  %v10974_v21 = vld [vmem:[%s11520_s3 + $0x2b0] sm:$0xff]  ;;  %v10980_v22 = vld [vmem:[%s11520_s3 + $0x280] sm:$0xff] }
 0x7cf   :  { %2627 = vmatprep.subr.mxu1 %v10962_v17  ;;  %2558 = vmatprep.subr.mxu0 %v10968_v18  ;;  %13587 = vst [vmem:[#allocation141_spill] sm:$0xff] %v10974_v21  ;;  %13588 = vst [vmem:[#allocation142_spill] sm:$0xff] %v10980_v22  ;;  %v10986_v17 = vld [vmem:[%s11520_s3 + $0x298] sm:$0xff]  ;;  %v10992_v18 = vld [vmem:[%s11520_s3 + $0x268] sm:$0xff] }
 0x7d0   :  { %2628 = vmatpush2.msra.mxu1 %v10974_v21  ;;  %2559 = vmatpush2.msra.mxu0 %v10980_v22  ;;  %13589 = vst [vmem:[#allocation143_spill] sm:$0xff] %v10986_v17  ;;  %13590 = vst [vmem:[#allocation144_spill] sm:$0xff] %v10992_v18  ;;  %v10998_v21 = vld [vmem:[%s11520_s3 + $0x290] sm:$0xff]  ;;  %v11004_v22 = vld [vmem:[%s11520_s3 + $0x260] sm:$0xff] }
 0x7d1   :  { %2629 = vmatprep.subr.mxu1 %v10986_v17  ;;  %2560 = vmatprep.subr.mxu0 %v10992_v18  ;;  %13591 = vst [vmem:[#allocation145_spill] sm:$0xff] %v10998_v21  ;;  %13592 = vst [vmem:[#allocation146_spill] sm:$0xff] %v11004_v22  ;;  %v11010_v17 = vld [vmem:[%s11520_s3 + $0x278] sm:$0xff]  ;;  %v11016_v18 = vld [vmem:[%s11520_s3 + $0x248] sm:$0xff] }
 0x7d2   :  { %2630 = vmatpush2.msra.mxu1 %v10998_v21  ;;  %2561 = vmatpush2.msra.mxu0 %v11004_v22  ;;  %13593 = vst [vmem:[#allocation147_spill] sm:$0xff] %v11010_v17  ;;  %13594 = vst [vmem:[#allocation148_spill] sm:$0xff] %v11016_v18  ;;  %v11022_v21 = vld [vmem:[%s11520_s3 + $0x270] sm:$0xff]  ;;  %v11028_v22 = vld [vmem:[%s11520_s3 + $0x240] sm:$0xff] }
 0x7d3   :  { %2631 = vmatprep.subr.mxu1 %v11010_v17  ;;  %2562 = vmatprep.subr.mxu0 %v11016_v18  ;;  %13595 = vst [vmem:[#allocation149_spill] sm:$0xff] %v11022_v21  ;;  %13596 = vst [vmem:[#allocation150_spill] sm:$0xff] %v11028_v22  ;;  %v11034_v17 = vld [vmem:[%s11520_s3 + $0x258] sm:$0xff]  ;;  %v11040_v18 = vld [vmem:[%s11520_s3 + $0x228] sm:$0xff] }
 0x7d4   :  { %2632 = vmatpush2.msra.mxu1 %v11022_v21  ;;  %2563 = vmatpush2.msra.mxu0 %v11028_v22  ;;  %13597 = vst [vmem:[#allocation151_spill] sm:$0xff] %v11034_v17  ;;  %13598 = vst [vmem:[#allocation153_spill] sm:$0xff] %v11040_v18  ;;  %v11046_v21 = vld [vmem:[%s11520_s3 + $0x250] sm:$0xff]  ;;  %v11052_v22 = vld [vmem:[%s11520_s3 + $0x220] sm:$0xff] }
 0x7d5   :  { %2633 = vmatprep.subr.mxu1 %v11034_v17  ;;  %2564 = vmatprep.subr.mxu0 %v11040_v18  ;;  %13599 = vst [vmem:[#allocation152_spill] sm:$0xff] %v11046_v21  ;;  %13600 = vst [vmem:[#allocation154_spill] sm:$0xff] %v11052_v22  ;;  %v11058_v17 = vld [vmem:[%s11520_s3 + $0x238] sm:$0xff]  ;;  %v11064_v18 = vld [vmem:[%s11520_s3 + $0x208] sm:$0xff] }
 0x7d6   :  { %2634 = vmatpush2.msra.mxu1 %v11046_v21  ;;  %2565 = vmatpush2.msra.mxu0 %v11052_v22  ;;  %13601 = vst [vmem:[#allocation155_spill] sm:$0xff] %v11058_v17  ;;  %13602 = vst [vmem:[#allocation156_spill] sm:$0xff] %v11064_v18  ;;  %v11070_v21 = vld [vmem:[%s11520_s3 + $0x230] sm:$0xff]  ;;  %v11076_v22 = vld [vmem:[%s11520_s3 + $0x200] sm:$0xff] }
 0x7d7   :  { %2635 = vmatprep.subr.mxu1 %v11058_v17  ;;  %2566 = vmatprep.subr.mxu0 %v11064_v18  ;;  %13603 = vst [vmem:[#allocation157_spill] sm:$0xff] %v11070_v21  ;;  %13604 = vst [vmem:[#allocation158_spill] sm:$0xff] %v11076_v22  ;;  %v11082_v17 = vld [vmem:[%s11520_s3 + $0x218] sm:$0xff]  ;;  %v4103_v18 = vld [vmem:[%s11518_s1 + $0x1e8] sm:$0xff] }
 0x7d8   :  { %2636 = vmatpush2.msra.mxu1 %v11070_v21  ;;  %2567 = vmatpush2.msra.mxu0 %v11076_v22  ;;  %13605 = vst [vmem:[#allocation159_spill] sm:$0xff] %v11082_v17  ;;  %v11091_v21 = vld [vmem:[%s11520_s3 + $0x210] sm:$0xff] }
 0x7d9   :  { %2637 = vmatprep.subr.mxu1 %v11082_v17  ;;  %2672 = vmatprep.subr.mxu0 %v4103_v18  ;;  %13606 = vst [vmem:[#allocation160_spill] sm:$0xff] %v11091_v21 }
 0x7da   :  { %2638 = vmatpush2.msra.mxu1 %v11091_v21 }
 0x7db   :  { %2743 = vmatprep.subr.mxu1 %v9865_v47 }
 0x818   :  { %v2236_v22 = vpop.f32.mrf.mxu0  ;;  %v2307_v18 = vpop.f32.mrf.mxu1 }
 0x819   :  { %v2237_v7 = vadd.f32 %v2236_v22, %v6195_v28  ;;  %v2308_v40 = vadd.f32 %v2307_v18, %v13411_v36 }
 0x81a   :  { %v2238_v24 = vpop.f32.mrf.mxu0  ;;  %v2309_v41 = vpop.f32.mrf.mxu1 }
 0x81b   :  { %v3061_v6 = vmul.f32 -1.442695, %v2237_v7  ;;  %v2239_v17 = vadd.f32 %v2238_v24, %v13410_v52  ;;  %v3063_v37 = vmul.f32 -1.442695, %v2308_v40  ;;  %v2310_v21 = vadd.f32 %v2309_v41, %v6210_v43 }
 0x81d   :  { %3256 = vpow2.f32 %v3061_v6  ;;  %v3062_v42 = vmul.f32 -1.442695, %v2239_v17 }
 0x81f   :  { %3258 = vpow2.f32 %v3062_v42 }
 0x820   :  { %3260 = vpow2.f32 %v3063_v37 }
 0x82a   :  { %v3257_v44 = vpop.eup %3256 }
 0x82b   :  { %v2321_v54 = vadd.f32 1.0, %v3257_v44 }
 0x82c   :  { %v3259_v47 = vpop.eup %3258 }
 0x82d   :  { %3262 = vrcp.f32 %v2321_v54  ;;  %v2322_v22 = vadd.f32 1.0, %v3259_v47  ;;  %v3261_v7 = vpop.eup %3260 }
 0x82e   :  { %3264 = vtanh.f32 %v2310_v21  ;;  %v2323_v42 = vadd.f32 1.0, %v3261_v7 }
 0x82f   :  { %3266 = vrcp.f32 %v2322_v22 }
 0x830   :  { %3268 = vrcp.f32 %v2323_v42 }
 0x83a   :  { %v3263_v24 = vpop.eup %3262 }
 0x83b   :  { %v3265_v6 = vpop.eup %3264 }
 0x83c   :  { %v3267_v17 = vpop.eup %3266  ;;  %v2332_v18 = vmul.f32 %v3265_v6, %v3263_v24 }
 0x83d   :  { %v2331_v52 = vmul.f32 %v3267_v17, %v9873_v35  ;;  %v3269_v44 = vpop.eup %3268 }
 0x83f   :  { %v11100_v36 = vadd.f32 %v2332_v18, %v2331_v52 }
 0x841   :  { %3270 = vtanh.f32 %v11100_v36 }
 0x84e   :  { %v3271_v41 = vpop.eup %3270 }
 0x84f   :  { %v2335_v37 = vmul.f32 %v3271_v41, %v3269_v44 }
 0x851   :  { %2568 = vmatprep.mubr.f32.mxu0 %v2335_v37  ;;  %2639 = vmatprep.mubr.f32.mxu1 %v2335_v37 }
 0x858   :  { %v2404_v54 = vpop.f32.mrf.mxu0 }
 0x859   :  { %v2405_v40 = vadd.f32 %v2404_v54, %v12621_v20 }
 0x85a   :  { %v2406_v21 = vpop.f32.mrf.mxu0  ;;  %v2475_v52 = vpop.f32.mrf.mxu1 }
 0x85b   :  { %v3065_v47 = vmul.f32 -1.442695, %v2405_v40  ;;  %v2407_v22 = vadd.f32 %v2406_v21, %v12622_v25  ;;  %v2476_v7 = vadd.f32 %v2475_v52, %v12623_v31 }
 0x85c   :  { %v2477_v24 = vpop.f32.mrf.mxu1 }
 0x85d   :  { %3272 = vpow2.f32 %v3065_v47  ;;  %v3066_v35 = vmul.f32 -1.442695, %v2407_v22  ;;  %v3067_v6 = vmul.f32 -1.442695, %v2476_v7  ;;  %v2478_v17 = vadd.f32 %v2477_v24, %v5600_v9 }
 0x85f   :  { %3274 = vpow2.f32 %v3066_v35 }
 0x860   :  { %3276 = vpow2.f32 %v3067_v6 }
 0x861   :  { %3278 = vtanh.f32 %v2478_v17  ;;  %v4105_v17 = vld [vmem:[%s11518_s1 + $0x1e0] sm:$0xff] }
 0x86a   :  { %v3273_v42 = vpop.eup %3272 }
 0x86b   :  { %v2489_v18 = vadd.f32 1.0, %v3273_v42  ;;  %v4107_v42 = vld [vmem:[%s11518_s1 + $0x1c0] sm:$0xff] }
 0x86c   :  { %v3275_v44 = vpop.eup %3274 }
 0x86d   :  { %3280 = vrcp.f32 %v2489_v18  ;;  %v2490_v41 = vadd.f32 1.0, %v3275_v44  ;;  %v3277_v37 = vpop.eup %3276  ;;  %v4108_v18 = vld [vmem:[%s11518_s1 + $0x1f0] sm:$0xff]  ;;  %v4109_v44 = vld [vmem:[%s11518_s1 + $0x1a8] sm:$0xff] }
 0x86e   :  { %v3279_v54 = vpop.eup %3278  ;;  %v2491_v47 = vadd.f32 1.0, %v3277_v37  ;;  %v4111_v37 = vld [vmem:[%s11518_s1 + $0x1a0] sm:$0xff] }
 0x86f   :  { %3282 = vrcp.f32 %v2490_v41  ;;  %v4110_v41 = vld [vmem:[%s11518_s1 + $0x1d8] sm:$0xff] }
 0x870   :  { %3284 = vrcp.f32 %v2491_v47  ;;  %v4115_v47 = vld [vmem:[%s11518_s1 + $0x180] sm:$0xff] }
 0x87a   :  { %v3281_v40 = vpop.eup %3280 }
 0x87b   :  { %v2500_v35 = vmul.f32 %v3281_v40, %v3279_v54  ;;  %v4112_v54 = vld [vmem:[%s11518_s1 + $0x1d0] sm:$0xff]  ;;  %v4113_v40 = vld [vmem:[%s11518_s1 + $0x188] sm:$0xff] }
 0x87c   :  { %v3283_v21 = vpop.eup %3282 }
 0x87d   :  { %v2499_v22 = vmul.f32 %v3283_v21, %v9881_v19  ;;  %v3285_v7 = vpop.eup %3284  ;;  %v4106_v19 = vld [vmem:[%s11518_s1 + $0x1c8] sm:$0xff]  ;;  %v4114_v21 = vld [vmem:[%s11518_s1 + $0x1b8] sm:$0xff] }
 0x87f   :  { %v11108_v52 = vadd.f32 %v2500_v35, %v2499_v22  ;;  %v4116_v22 = vld [vmem:[%s11518_s1 + $0x1b0] sm:$0xff]  ;;  %v4117_v35 = vld [vmem:[%s11518_s1 + $0x168] sm:$0xff] }
 0x881   :  { %3286 = vtanh.f32 %v11108_v52 }
 0x88e   :  { %v3287_v24 = vpop.eup %3286 }
 0x88f   :  { %v2503_v6 = vmul.f32 %v3287_v24, %v3285_v7  ;;  %v4118_v7 = vld [vmem:[%s11518_s1 + $0x198] sm:$0xff]  ;;  %v4119_v24 = vld [vmem:[%s11518_s1 + $0x160] sm:$0xff] }
 0x891   :  { %2569 = vmatmul.mubr.f32.vlgmr.msra.gmra.mxu0 %v2503_v6  ;;  %2640 = vmatmul.mubr.f32.vlgmr.msra.gmra.mxu1 %v2503_v6 }
 0x892   :  { %2673 = vmatpush1.msra.mxu0 %v4105_v17  ;;  %2736 = vmatprep.mubr.f32.mxu0 %v2503_v6  ;;  %v4121_v17 = vld [vmem:[%s11518_s1 + $0x148] sm:$0xff] }
 0x893   :  { %2674 = vmatprep.subr.mxu0 %v4106_v19  ;;  %2807 = vmatprep.mubr.f32.mxu1 %v2503_v6  ;;  %v4120_v6 = vld [vmem:[%s11518_s1 + $0x190] sm:$0xff]  ;;  %v4122_v19 = vld [vmem:[%s11518_s1 + $0x178] sm:$0xff] }
 0x894   :  { %2675 = vmatpush1.msra.mxu0 %v4107_v42  ;;  %2744 = vmatpush1.msra.mxu1 %v4108_v18  ;;  %v4123_v42 = vld [vmem:[%s11518_s1 + $0x140] sm:$0xff]  ;;  %v4124_v18 = vld [vmem:[%s11518_s1 + $0x170] sm:$0xff] }
 0x895   :  { %2676 = vmatprep.subr.mxu0 %v4109_v44  ;;  %2745 = vmatprep.subr.mxu1 %v4110_v41  ;;  %v4125_v44 = vld [vmem:[%s11518_s1 + $0x128] sm:$0xff]  ;;  %v4126_v41 = vld [vmem:[%s11518_s1 + $0x158] sm:$0xff] }
 0x896   :  { %2677 = vmatpush1.msra.mxu0 %v4111_v37  ;;  %2746 = vmatpush1.msra.mxu1 %v4112_v54  ;;  %v4127_v37 = vld [vmem:[%s11518_s1 + $0x120] sm:$0xff]  ;;  %v4128_v54 = vld [vmem:[%s11518_s1 + $0x150] sm:$0xff] }
 0x897   :  { %2678 = vmatprep.subr.mxu0 %v4113_v40  ;;  %2747 = vmatprep.subr.mxu1 %v4114_v21  ;;  %v4129_v40 = vld [vmem:[%s11518_s1 + $0x108] sm:$0xff]  ;;  %v4130_v21 = vld [vmem:[%s11518_s1 + $0x138] sm:$0xff] }
 0x898   :  { %2679 = vmatpush1.msra.mxu0 %v4115_v47  ;;  %2748 = vmatpush1.msra.mxu1 %v4116_v22  ;;  %v4131_v47 = vld [vmem:[%s11518_s1 + $0x100] sm:$0xff]  ;;  %v4132_v22 = vld [vmem:[%s11518_s1 + $0x130] sm:$0xff] }
 0x899   :  { %2680 = vmatprep.subr.mxu0 %v4117_v35  ;;  %2749 = vmatprep.subr.mxu1 %v4118_v7  ;;  %v4133_v35 = vld [vmem:[%s11518_s1 + $0xe8] sm:$0xff]  ;;  %v4134_v7 = vld [vmem:[%s11518_s1 + $0x118] sm:$0xff] }
 0x89a   :  { %2681 = vmatpush1.msra.mxu0 %v4119_v24  ;;  %2750 = vmatpush1.msra.mxu1 %v4120_v6  ;;  %v4135_v24 = vld [vmem:[%s11518_s1 + $0xe0] sm:$0xff]  ;;  %v4136_v6 = vld [vmem:[%s11518_s1 + $0x110] sm:$0xff] }
 0x89b   :  { %2682 = vmatprep.subr.mxu0 %v4121_v17  ;;  %2751 = vmatprep.subr.mxu1 %v4122_v19  ;;  %v4137_v17 = vld [vmem:[%s11518_s1 + $0xc8] sm:$0xff]  ;;  %v4138_v19 = vld [vmem:[%s11518_s1 + $0xf8] sm:$0xff] }
 0x89c   :  { %2683 = vmatpush1.msra.mxu0 %v4123_v42  ;;  %2752 = vmatpush1.msra.mxu1 %v4124_v18  ;;  %v4139_v42 = vld [vmem:[%s11518_s1 + $0xc0] sm:$0xff]  ;;  %v4140_v18 = vld [vmem:[%s11518_s1 + $0xf0] sm:$0xff] }
 0x89d   :  { %2684 = vmatprep.subr.mxu0 %v4125_v44  ;;  %2753 = vmatprep.subr.mxu1 %v4126_v41  ;;  %v4141_v44 = vld [vmem:[%s11518_s1 + $0xa8] sm:$0xff]  ;;  %v4142_v41 = vld [vmem:[%s11518_s1 + $0xd8] sm:$0xff] }
 0x89e   :  { %2685 = vmatpush1.msra.mxu0 %v4127_v37  ;;  %2754 = vmatpush1.msra.mxu1 %v4128_v54  ;;  %v4143_v37 = vld [vmem:[%s11518_s1 + $0xa0] sm:$0xff]  ;;  %v4144_v54 = vld [vmem:[%s11518_s1 + $0xd0] sm:$0xff] }
 0x89f   :  { %2686 = vmatprep.subr.mxu0 %v4129_v40  ;;  %2755 = vmatprep.subr.mxu1 %v4130_v21  ;;  %v4145_v40 = vld [vmem:[%s11518_s1 + $0x88] sm:$0xff]  ;;  %v4146_v21 = vld [vmem:[%s11518_s1 + $0xb8] sm:$0xff] }
 0x8a0   :  { %2687 = vmatpush1.msra.mxu0 %v4131_v47  ;;  %2756 = vmatpush1.msra.mxu1 %v4132_v22  ;;  %v4147_v47 = vld [vmem:[%s11518_s1 + $0x80] sm:$0xff]  ;;  %v4148_v22 = vld [vmem:[%s11518_s1 + $0xb0] sm:$0xff] }
 0x8a1   :  { %2688 = vmatprep.subr.mxu0 %v4133_v35  ;;  %2757 = vmatprep.subr.mxu1 %v4134_v7  ;;  %v4149_v35 = vld [vmem:[%s11518_s1 + $0x68] sm:$0xff]  ;;  %v4150_v7 = vld [vmem:[%s11518_s1 + $0x98] sm:$0xff] }
 0x8a2   :  { %2689 = vmatpush1.msra.mxu0 %v4135_v24  ;;  %2758 = vmatpush1.msra.mxu1 %v4136_v6  ;;  %v4151_v24 = vld [vmem:[%s11518_s1 + $0x60] sm:$0xff]  ;;  %v4152_v6 = vld [vmem:[%s11518_s1 + $0x90] sm:$0xff] }
 0x8a3   :  { %2690 = vmatprep.subr.mxu0 %v4137_v17  ;;  %2759 = vmatprep.subr.mxu1 %v4138_v19  ;;  %v4153_v17 = vld [vmem:[%s11518_s1 + $0x48] sm:$0xff]  ;;  %v4154_v19 = vld [vmem:[%s11518_s1 + $0x78] sm:$0xff] }
 0x8a4   :  { %2691 = vmatpush1.msra.mxu0 %v4139_v42  ;;  %2760 = vmatpush1.msra.mxu1 %v4140_v18  ;;  %v4155_v42 = vld [vmem:[%s11518_s1 + $0x40] sm:$0xff]  ;;  %v4156_v18 = vld [vmem:[%s11518_s1 + $0x70] sm:$0xff] }
 0x8a5   :  { %2692 = vmatprep.subr.mxu0 %v4141_v44  ;;  %2761 = vmatprep.subr.mxu1 %v4142_v41  ;;  %v4157_v44 = vld [vmem:[%s11518_s1 + $0x28] sm:$0xff]  ;;  %v4158_v41 = vld [vmem:[%s11518_s1 + $0x58] sm:$0xff] }
 0x8a6   :  { %2693 = vmatpush1.msra.mxu0 %v4143_v37  ;;  %2762 = vmatpush1.msra.mxu1 %v4144_v54  ;;  %v4159_v37 = vld [vmem:[%s11518_s1 + $0x20] sm:$0xff]  ;;  %v4160_v54 = vld [vmem:[%s11518_s1 + $0x50] sm:$0xff] }
 0x8a7   :  { %2694 = vmatprep.subr.mxu0 %v4145_v40  ;;  %2763 = vmatprep.subr.mxu1 %v4146_v21  ;;  %v4161_v40 = vld [vmem:[%s11518_s1 + $0x8] sm:$0xff]  ;;  %v4162_v21 = vld [vmem:[%s11518_s1 + $0x38] sm:$0xff] }
 0x8a8   :  { %2695 = vmatpush1.msra.mxu0 %v4147_v47  ;;  %2764 = vmatpush1.msra.mxu1 %v4148_v22  ;;  %v4163_v47 = vld [vmem:[%s11518_s1] sm:$0xff]  ;;  %v4164_v22 = vld [vmem:[%s11518_s1 + $0x3e8] sm:$0xff] }
 0x8a9   :  { %2696 = vmatprep.subr.mxu0 %v4149_v35  ;;  %2765 = vmatprep.subr.mxu1 %v4150_v7  ;;  %v4165_v35 = vld [vmem:[%s11518_s1 + $0x3e0] sm:$0xff]  ;;  %v4166_v7 = vld [vmem:[%s11518_s1 + $0x3c8] sm:$0xff] }
 0x8aa   :  { %2697 = vmatpush1.msra.mxu0 %v4151_v24  ;;  %2766 = vmatpush1.msra.mxu1 %v4152_v6  ;;  %v13644_v24 = vld [vmem:[#allocation49_spill] sm:$0xff]  ;;  %v13645_v6 = vld [vmem:[#allocation48_spill] sm:$0xff] }
 0x8ab   :  { %2698 = vmatprep.subr.mxu0 %v4153_v17  ;;  %2767 = vmatprep.subr.mxu1 %v4154_v19  ;;  %v13646_v17 = vld [vmem:[#allocation51_spill] sm:$0xff]  ;;  %v13647_v19 = vld [vmem:[#allocation50_spill] sm:$0xff] }
 0x8ac   :  { %2699 = vmatpush1.msra.mxu0 %v4155_v42  ;;  %2768 = vmatpush1.msra.mxu1 %v4156_v18  ;;  %v13648_v42 = vld [vmem:[#allocation53_spill] sm:$0xff]  ;;  %v13649_v18 = vld [vmem:[#allocation52_spill] sm:$0xff] }
 0x8ad   :  { %2700 = vmatprep.subr.mxu0 %v4157_v44  ;;  %2769 = vmatprep.subr.mxu1 %v4158_v41  ;;  %v13650_v44 = vld [vmem:[#allocation55_spill] sm:$0xff]  ;;  %v13651_v41 = vld [vmem:[#allocation54_spill] sm:$0xff] }
 0x8ae   :  { %2701 = vmatpush1.msra.mxu0 %v4159_v37  ;;  %2770 = vmatpush1.msra.mxu1 %v4160_v54  ;;  %v13652_v37 = vld [vmem:[#allocation57_spill] sm:$0xff]  ;;  %v13653_v54 = vld [vmem:[#allocation56_spill] sm:$0xff] }
 0x8af   :  { %2702 = vmatprep.subr.mxu0 %v4161_v40  ;;  %2771 = vmatprep.subr.mxu1 %v4162_v21  ;;  %v13654_v40 = vld [vmem:[#allocation59_spill] sm:$0xff]  ;;  %v13655_v21 = vld [vmem:[#allocation58_spill] sm:$0xff] }
 0x8b0   :  { %2703 = vmatpush1.msra.mxu0 %v4163_v47  ;;  %2772 = vmatpush1.msra.mxu1 %v9946_v26  ;;  %v4167_v26 = vld [vmem:[%s11518_s1 + $0x3c0] sm:$0xff]  ;;  %v13656_v47 = vld [vmem:[#allocation61_spill] sm:$0xff] }
 0x8b1   :  { %2704 = vmatprep.subr.mxu0 %v4164_v22  ;;  %2773 = vmatprep.subr.mxu1 %v9953_v55  ;;  %v4168_v55 = vld [vmem:[%s11518_s1 + $0x3a8] sm:$0xff] }
 0x8b2   :  { %2705 = vmatpush2.msra.mxu0 %v4165_v35  ;;  %2774 = vmatpush1.msra.mxu1 %v9960_v10  ;;  %v13607_v10 = vld [vmem:[#allocation10_spill] sm:$0xff]  ;;  %v13657_v22 = vld [vmem:[#allocation60_spill] sm:$0xff]  ;;  %v13658_v35 = vld [vmem:[#allocation63_spill] sm:$0xff] }
 0x8b3   :  { %2706 = vmatprep.subr.mxu0 %v4166_v7  ;;  %2775 = vmatprep.subr.mxu1 %v9967_v23  ;;  %v13608_v23 = vld [vmem:[#allocation16_spill] sm:$0xff]  ;;  %v13659_v7 = vld [vmem:[#allocation62_spill] sm:$0xff] }
 0x8b4   :  { %2707 = vmatpush2.msra.mxu0 %v4167_v26  ;;  %2776 = vmatpush2.msra.mxu1 %v9974_v62  ;;  %v13609_v62 = vld [vmem:[#allocation11_spill] sm:$0xff]  ;;  %v13660_v26 = vld [vmem:[#allocation65_spill] sm:$0xff] }
 0x8b5   :  { %2708 = vmatprep.subr.mxu0 %v4168_v55  ;;  %2777 = vmatprep.subr.mxu1 %v9981_v60  ;;  %v13610_v60 = vld [vmem:[#allocation18_spill] sm:$0xff]  ;;  %v13661_v55 = vld [vmem:[#allocation64_spill] sm:$0xff] }
 0x8b6   :  { %2709 = vmatpush2.msra.mxu0 %v9987_v16  ;;  %2778 = vmatpush2.msra.mxu1 %v9993_v30  ;;  %v13611_v16 = vld [vmem:[#allocation12_spill] sm:$0xff]  ;;  %v13612_v30 = vld [vmem:[#allocation19_spill] sm:$0xff] }
 0x8b7   :  { %2710 = vmatprep.subr.mxu0 %v9999_v50  ;;  %2779 = vmatprep.subr.mxu1 %v10005_v0  ;;  %v13613_v50 = vld [vmem:[#allocation13_spill] sm:$0xff]  ;;  %v13614_v0 = vld [vmem:[#allocation20_spill] sm:$0xff] }
 0x8b8   :  { %2711 = vmatpush2.msra.mxu0 %v10011_v12  ;;  %2780 = vmatpush2.msra.mxu1 %v10017_v38  ;;  %v13615_v12 = vld [vmem:[#allocation15_spill] sm:$0xff]  ;;  %v13616_v38 = vld [vmem:[#allocation21_spill] sm:$0xff] }
 0x8b9   :  { %2712 = vmatprep.subr.mxu0 %v10023_v11  ;;  %2781 = vmatprep.subr.mxu1 %v10029_v51  ;;  %v13617_v11 = vld [vmem:[#allocation17_spill] sm:$0xff]  ;;  %v13618_v51 = vld [vmem:[#allocation23_spill] sm:$0xff] }
 0x8ba   :  { %2713 = vmatpush2.msra.mxu0 %v10035_v63  ;;  %2782 = vmatpush2.msra.mxu1 %v10041_v56  ;;  %v13619_v63 = vld [vmem:[#allocation25_spill] sm:$0xff]  ;;  %v13620_v56 = vld [vmem:[#allocation27_spill] sm:$0xff] }
 0x8bb   :  { %2714 = vmatprep.subr.mxu0 %v10047_v49  ;;  %2783 = vmatprep.subr.mxu1 %v10053_v2  ;;  %v13621_v49 = vld [vmem:[#allocation22_spill] sm:$0xff]  ;;  %v3071_v2 = vld [vmem:[%s11517_s0 + $0xe] sm:$0x3]  ;;  %s4192_s0 = smov [#allocation6]  }
 0x8bc   :  { %2715 = vmatpush2.msra.mxu0 %v10059_v13  ;;  %2784 = vmatpush2.msra.mxu1 %v10065_v3  ;;  %v13622_v13 = vld [vmem:[#allocation24_spill] sm:$0xff]  ;;  %v13623_v3 = vld [vmem:[#allocation29_spill] sm:$0xff]  ;;  %s3015_s14 = sshll.u32 %s4192_s0, 4  ;;  %s3016_s14 = int_to_ptr.vmem [resolvable:$true] %s3015_s14 }
 0x8bd   :  { %2716 = vmatprep.subr.mxu0 %v10071_v14  ;;  %2785 = vmatprep.subr.mxu1 %v10077_v27  ;;  %v13624_v14 = vld [vmem:[#allocation26_spill] sm:$0xff]  ;;  %s4169_s15 = scalar_lea.vmem %s3016_s14, 32  ;;  %p4174_p1 = scmp.lt.s32.totalorder %s3016_s14, %s3016_s14 }
 0x8be   :  { %2717 = vmatpush2.msra.mxu0 %v10083_v29  ;;  %2786 = vmatpush2.msra.mxu1 %v10089_v32  ;;  %v13625_v27 = vld [vmem:[#allocation30_spill] sm:$0xff]  ;;  %v13626_v29 = vld [vmem:[#allocation28_spill] sm:$0xff]  ;;  %p4170_p0 = scmp.ne.s32.totalorder %s3016_s14, %s4169_s15  ;;  %p4175_p2 = scmp.lt.s32.totalorder %s4169_s15, %s4169_s15 }
 0x8bf   :  { %2718 = vmatprep.subr.mxu0 %v10095_v33  ;;  %2787 = vmatprep.subr.mxu1 %v10101_v34  ;;  %v13627_v32 = vld [vmem:[#allocation32_spill] sm:$0xff]  ;;  %v13628_v33 = vld [vmem:[#allocation31_spill] sm:$0xff]  ;;  %v13629_v34 = vld [vmem:[#allocation34_spill] sm:$0xff] }
 0x8c0   :  { %2719 = vmatpush2.msra.mxu0 %v10107_v59  ;;  %2788 = vmatpush2.msra.mxu1 %v10113_v39  ;;  %v13630_v59 = vld [vmem:[#allocation36_spill] sm:$0xff]  ;;  %v13631_v39 = vld [vmem:[#allocation33_spill] sm:$0xff]  ;;  %p4176_p3 = por %p4175_p2, %p4174_p1 }
 0x8c1   :  { %2720 = vmatprep.subr.mxu0 %v10119_v58  ;;  %2789 = vmatprep.subr.mxu1 %v10125_v4  ;;  %v13632_v58 = vld [vmem:[#allocation38_spill] sm:$0xff]  ;;  %v13633_v4 = vld [vmem:[#allocation35_spill] sm:$0xff] }
 0x8c2   :  { %2721 = vmatpush2.msra.mxu0 %v10131_v1  ;;  %2790 = vmatpush2.msra.mxu1 %v10137_v5  ;;  %v13634_v1 = vld [vmem:[#allocation39_spill] sm:$0xff]  ;;  %v13635_v5 = vld [vmem:[#allocation37_spill] sm:$0xff]  ;;  %p4177_p4 = pnand %p4176_p3, %p4170_p0 }
 0x8c3   :  { %2722 = vmatprep.subr.mxu0 %v10143_v53  ;;  %2791 = vmatprep.subr.mxu1 %v10149_v15  ;;  %v13636_v53 = vld [vmem:[#allocation41_spill] sm:$0xff]  ;;  %v13637_v15 = vld [vmem:[#allocation40_spill] sm:$0xff] }
 0x8c4   :  { %2723 = vmatpush2.msra.mxu0 %v10155_v61  ;;  %2792 = vmatpush2.msra.mxu1 %v10161_v48  ;;  %v13638_v61 = vld [vmem:[#allocation43_spill] sm:$0xff]  ;;  %v13639_v48 = vld [vmem:[#allocation42_spill] sm:$0xff] }
 0x8c5   :  { %2724 = vmatprep.subr.mxu0 %v10167_v46  ;;  %2793 = vmatprep.subr.mxu1 %v10173_v8  ;;  %v13640_v46 = vld [vmem:[#allocation45_spill] sm:$0xff]  ;;  %v13641_v8 = vld [vmem:[#allocation44_spill] sm:$0xff] }
 0x8c6   :  { %2725 = vmatpush2.msra.mxu0 %v10179_v57  ;;  %2794 = vmatpush2.msra.mxu1 %v10185_v45  ;;  %v13642_v57 = vld [vmem:[#allocation47_spill] sm:$0xff]  ;;  %v13643_v45 = vld [vmem:[#allocation46_spill] sm:$0xff] }
 0x8c7   :  { %2726 = vmatprep.subr.mxu0 %v13607_v10  ;;  %2795 = vmatprep.subr.mxu1 %v13608_v23  ;;  %v13662_v10 = vld [vmem:[#allocation67_spill] sm:$0xff]  ;;  %v13663_v23 = vld [vmem:[#allocation66_spill] sm:$0xff] }
 0x8c8   :  { %2727 = vmatpush2.msra.mxu0 %v13609_v62  ;;  %2796 = vmatpush2.msra.mxu1 %v13610_v60  ;;  %v13664_v62 = vld [vmem:[#allocation69_spill] sm:$0xff]  ;;  %v13665_v60 = vld [vmem:[#allocation68_spill] sm:$0xff] }
 0x8c9   :  { %2728 = vmatprep.subr.mxu0 %v13611_v16  ;;  %2797 = vmatprep.subr.mxu1 %v13612_v30  ;;  %v13666_v16 = vld [vmem:[#allocation71_spill] sm:$0xff]  ;;  %v13667_v30 = vld [vmem:[#allocation70_spill] sm:$0xff] }
 0x8ca   :  { %2729 = vmatpush2.msra.mxu0 %v13613_v50  ;;  %2798 = vmatpush2.msra.mxu1 %v13614_v0  ;;  %v13668_v50 = vld [vmem:[#allocation73_spill] sm:$0xff]  ;;  %v13669_v0 = vld [vmem:[#allocation72_spill] sm:$0xff] }
 0x8cb   :  { %2730 = vmatprep.subr.mxu0 %v13615_v12  ;;  %2799 = vmatprep.subr.mxu1 %v13616_v38  ;;  %v13670_v12 = vld [vmem:[#allocation75_spill] sm:$0xff]  ;;  %v13671_v38 = vld [vmem:[#allocation74_spill] sm:$0xff] }
 0x8cc   :  { %2731 = vmatpush2.msra.mxu0 %v13617_v11  ;;  %2800 = vmatpush2.msra.mxu1 %v13618_v51  ;;  %v13672_v11 = vld [vmem:[#allocation77_spill] sm:$0xff]  ;;  %v13673_v51 = vld [vmem:[#allocation76_spill] sm:$0xff] }
 0x8cd   :  { %2732 = vmatprep.subr.mxu0 %v13619_v63  ;;  %2801 = vmatprep.subr.mxu1 %v13620_v56  ;;  %v13674_v63 = vld [vmem:[#allocation79_spill] sm:$0xff]  ;;  %v13675_v56 = vld [vmem:[#allocation78_spill] sm:$0xff] }
 0x8ce   :  { %2733 = vmatpush2.msra.mxu0 %v13621_v49  ;;  %2802 = vmatpush2.msra.mxu1 %v13622_v13  ;;  %v13676_v49 = vld [vmem:[#allocation81_spill] sm:$0xff]  ;;  %v13678_v13 = vld [vmem:[#allocation83_spill] sm:$0xff] }
 0x8cf   :  { %2734 = vmatprep.subr.mxu0 %v13623_v3  ;;  %2803 = vmatprep.subr.mxu1 %v13624_v14  ;;  %v13679_v3 = vld [vmem:[#allocation82_spill] sm:$0xff]  ;;  %v13680_v14 = vld [vmem:[#allocation85_spill] sm:$0xff] }
 0x8d0   :  { %2735 = vmatpush2.msra.mxu0 %v13625_v27  ;;  %2804 = vmatpush2.msra.mxu1 %v13626_v29  ;;  %v13681_v27 = vld [vmem:[#allocation84_spill] sm:$0xff]  ;;  %v13682_v29 = vld [vmem:[#allocation87_spill] sm:$0xff] }
 0x8d1   :  { %2737 = vmatmul.mubr.f32.vlgmr.msra.gmra.mxu0 %v3071_v2  ;;  %2805 = vmatprep.subr.mxu1 %v13627_v32  ;;  %v13683_v32 = vld [vmem:[#allocation86_spill] sm:$0xff] }
 0x8d2   :  { %2806 = vmatpush2.msra.mxu1 %v13628_v33  ;;  %2838 = vmatprep.subr.mxu0 %v13629_v34  ;;  %v13684_v33 = vld [vmem:[#allocation89_spill] sm:$0xff]  ;;  %v13685_v34 = vld [vmem:[#allocation88_spill] sm:$0xff] }
 0x8d3   :  { %2808 = vmatmul.mubr.f32.vlgmr.msra.gmra.mxu1 %v3071_v2  ;;  %2909 = vmatprep.subr.mxu1 %v13630_v59  ;;  %v13677_v2 = vld [vmem:[#allocation80_spill] sm:$0xff]  ;;  %v13686_v59 = vld [vmem:[#allocation91_spill] sm:$0xff] }
 0x8d4   :  { %2839 = vmatpush1.msra.mxu0 %v13631_v39  ;;  %2910 = vmatpush1.msra.mxu1 %v13632_v58  ;;  %v13687_v39 = vld [vmem:[#allocation90_spill] sm:$0xff]  ;;  %v13688_v58 = vld [vmem:[#allocation93_spill] sm:$0xff] }
 0x8d5   :  { %2840 = vmatprep.subr.mxu0 %v13633_v4  ;;  %2911 = vmatprep.subr.mxu1 %v13634_v1  ;;  %v13689_v4 = vld [vmem:[#allocation92_spill] sm:$0xff]  ;;  %v13690_v1 = vld [vmem:[#allocation95_spill] sm:$0xff] }
 0x8d6   :  { %2841 = vmatpush1.msra.mxu0 %v13635_v5  ;;  %2912 = vmatpush1.msra.mxu1 %v13636_v53  ;;  %v13691_v5 = vld [vmem:[#allocation94_spill] sm:$0xff]  ;;  %v13692_v53 = vld [vmem:[#allocation97_spill] sm:$0xff] }
 0x8d7   :  { %2842 = vmatprep.subr.mxu0 %v13637_v15  ;;  %2913 = vmatprep.subr.mxu1 %v13638_v61  ;;  %v13693_v15 = vld [vmem:[#allocation96_spill] sm:$0xff]  ;;  %v13694_v61 = vld [vmem:[#allocation99_spill] sm:$0xff] }
 0x8d8   :  { %2843 = vmatpush1.msra.mxu0 %v13639_v48  ;;  %2914 = vmatpush1.msra.mxu1 %v13640_v46  ;;  %v13695_v48 = vld [vmem:[#allocation98_spill] sm:$0xff]  ;;  %v13696_v46 = vld [vmem:[#allocation101_spill] sm:$0xff] }
 0x8d9   :  { %2844 = vmatprep.subr.mxu0 %v13641_v8  ;;  %2915 = vmatprep.subr.mxu1 %v13642_v57  ;;  %v13697_v8 = vld [vmem:[#allocation100_spill] sm:$0xff]  ;;  %v13698_v57 = vld [vmem:[#allocation103_spill] sm:$0xff] }
 0x8da   :  { %2845 = vmatpush1.msra.mxu0 %v13643_v45  ;;  %2916 = vmatpush1.msra.mxu1 %v13644_v24  ;;  %v13699_v45 = vld [vmem:[#allocation102_spill] sm:$0xff]  ;;  %v13700_v24 = vld [vmem:[#allocation105_spill] sm:$0xff] }
 0x8db   :  { %2846 = vmatprep.subr.mxu0 %v13645_v6  ;;  %2917 = vmatprep.subr.mxu1 %v13646_v17  ;;  %v13701_v6 = vld [vmem:[#allocation104_spill] sm:$0xff]  ;;  %v13702_v17 = vld [vmem:[#allocation107_spill] sm:$0xff] }
 0x8dc   :  { %2847 = vmatpush1.msra.mxu0 %v13647_v19  ;;  %2918 = vmatpush1.msra.mxu1 %v13648_v42  ;;  %v13703_v19 = vld [vmem:[#allocation106_spill] sm:$0xff]  ;;  %v13704_v42 = vld [vmem:[#allocation109_spill] sm:$0xff] }
 0x8dd   :  { %2848 = vmatprep.subr.mxu0 %v13649_v18  ;;  %2919 = vmatprep.subr.mxu1 %v13650_v44  ;;  %v13705_v18 = vld [vmem:[#allocation108_spill] sm:$0xff]  ;;  %v13706_v44 = vld [vmem:[#allocation111_spill] sm:$0xff] }
 0x8de   :  { %2849 = vmatpush1.msra.mxu0 %v13651_v41  ;;  %2920 = vmatpush1.msra.mxu1 %v13652_v37  ;;  %v13707_v41 = vld [vmem:[#allocation110_spill] sm:$0xff]  ;;  %v13708_v37 = vld [vmem:[#allocation113_spill] sm:$0xff] }
 0x8df   :  { %2850 = vmatprep.subr.mxu0 %v13653_v54  ;;  %2921 = vmatprep.subr.mxu1 %v13654_v40  ;;  %v13709_v54 = vld [vmem:[#allocation112_spill] sm:$0xff]  ;;  %v13710_v40 = vld [vmem:[#allocation115_spill] sm:$0xff] }
 0x8e0   :  { %2851 = vmatpush1.msra.mxu0 %v13655_v21  ;;  %2922 = vmatpush1.msra.mxu1 %v13656_v47  ;;  %v13711_v21 = vld [vmem:[#allocation114_spill] sm:$0xff]  ;;  %v13712_v47 = vld [vmem:[#allocation117_spill] sm:$0xff] }
 0x8e1   :  { %2852 = vmatprep.subr.mxu0 %v13657_v22  ;;  %2923 = vmatprep.subr.mxu1 %v13658_v35  ;;  %v13713_v22 = vld [vmem:[#allocation116_spill] sm:$0xff]  ;;  %v13714_v35 = vld [vmem:[#allocation119_spill] sm:$0xff] }
 0x8e2   :  { %2853 = vmatpush1.msra.mxu0 %v13659_v7  ;;  %2924 = vmatpush1.msra.mxu1 %v13660_v26  ;;  %v13715_v7 = vld [vmem:[#allocation118_spill] sm:$0xff]  ;;  %v13716_v26 = vld [vmem:[#allocation121_spill] sm:$0xff] }
 0x8e3   :  { %2854 = vmatprep.subr.mxu0 %v13661_v55  ;;  %2925 = vmatprep.subr.mxu1 %v13662_v10  ;;  %v13717_v55 = vld [vmem:[#allocation120_spill] sm:$0xff]  ;;  %v13718_v10 = vld [vmem:[#allocation123_spill] sm:$0xff] }
 0x8e4   :  { %2855 = vmatpush1.msra.mxu0 %v13663_v23  ;;  %2926 = vmatpush1.msra.mxu1 %v13664_v62  ;;  %v13719_v23 = vld [vmem:[#allocation122_spill] sm:$0xff]  ;;  %v13720_v62 = vld [vmem:[#allocation125_spill] sm:$0xff] }
 0x8e5   :  { %2856 = vmatprep.subr.mxu0 %v13665_v60  ;;  %2927 = vmatprep.subr.mxu1 %v13666_v16  ;;  %v13721_v60 = vld [vmem:[#allocation124_spill] sm:$0xff]  ;;  %v13722_v16 = vld [vmem:[#allocation127_spill] sm:$0xff] }
 0x8e6   :  { %2857 = vmatpush1.msra.mxu0 %v13667_v30  ;;  %2928 = vmatpush1.msra.mxu1 %v13668_v50  ;;  %v13723_v30 = vld [vmem:[#allocation126_spill] sm:$0xff]  ;;  %v13724_v50 = vld [vmem:[#allocation129_spill] sm:$0xff] }
 0x8e7   :  { %2858 = vmatprep.subr.mxu0 %v13669_v0  ;;  %2929 = vmatprep.subr.mxu1 %v13670_v12  ;;  %v13725_v0 = vld [vmem:[#allocation128_spill] sm:$0xff]  ;;  %v13726_v12 = vld [vmem:[#allocation131_spill] sm:$0xff] }
 0x8e8   :  { %2859 = vmatpush1.msra.mxu0 %v13671_v38  ;;  %2930 = vmatpush1.msra.mxu1 %v13672_v11  ;;  %v13727_v38 = vld [vmem:[#allocation130_spill] sm:$0xff]  ;;  %v13728_v11 = vld [vmem:[#allocation133_spill] sm:$0xff] }
 0x8e9   :  { %2860 = vmatprep.subr.mxu0 %v13673_v51  ;;  %2931 = vmatprep.subr.mxu1 %v13674_v63  ;;  %v13729_v51 = vld [vmem:[#allocation132_spill] sm:$0xff]  ;;  %v13730_v63 = vld [vmem:[#allocation135_spill] sm:$0xff] }
 0x8ea   :  { %2861 = vmatpush1.msra.mxu0 %v13675_v56  ;;  %2932 = vmatpush1.msra.mxu1 %v13676_v49  ;;  %v13731_v56 = vld [vmem:[#allocation134_spill] sm:$0xff]  ;;  %v13732_v49 = vld [vmem:[#allocation137_spill] sm:$0xff] }
 0x8eb   :  { %2862 = vmatprep.subr.mxu0 %v13677_v2  ;;  %2933 = vmatprep.subr.mxu1 %v13678_v13  ;;  %v13733_v2 = vld [vmem:[#allocation136_spill] sm:$0xff]  ;;  %v13734_v13 = vld [vmem:[#allocation139_spill] sm:$0xff] }
 0x8ec   :  { %2863 = vmatpush1.msra.mxu0 %v13679_v3  ;;  %2934 = vmatpush1.msra.mxu1 %v13680_v14  ;;  %v13735_v3 = vld [vmem:[#allocation138_spill] sm:$0xff]  ;;  %v13736_v14 = vld [vmem:[#allocation141_spill] sm:$0xff] }
 0x8ed   :  { %2864 = vmatprep.subr.mxu0 %v13681_v27  ;;  %2935 = vmatprep.subr.mxu1 %v13682_v29  ;;  %v13737_v27 = vld [vmem:[#allocation140_spill] sm:$0xff]  ;;  %v13738_v29 = vld [vmem:[#allocation143_spill] sm:$0xff] }
 0x8ee   :  { %2865 = vmatpush1.msra.mxu0 %v13683_v32  ;;  %2936 = vmatpush1.msra.mxu1 %v13684_v33  ;;  %v13739_v32 = vld [vmem:[#allocation142_spill] sm:$0xff]  ;;  %v13740_v33 = vld [vmem:[#allocation145_spill] sm:$0xff] }
 0x8ef   :  { %2866 = vmatprep.subr.mxu0 %v13685_v34  ;;  %2937 = vmatprep.subr.mxu1 %v13686_v59  ;;  %v13741_v34 = vld [vmem:[#allocation144_spill] sm:$0xff]  ;;  %v13742_v59 = vld [vmem:[#allocation147_spill] sm:$0xff] }
 0x8f0   :  { %2867 = vmatpush1.msra.mxu0 %v13687_v39  ;;  %2938 = vmatpush1.msra.mxu1 %v13688_v58  ;;  %v13743_v39 = vld [vmem:[#allocation146_spill] sm:$0xff]  ;;  %v13744_v58 = vld [vmem:[#allocation149_spill] sm:$0xff] }
 0x8f1   :  { %2868 = vmatprep.subr.mxu0 %v13689_v4  ;;  %2939 = vmatprep.subr.mxu1 %v13690_v1  ;;  %v13745_v4 = vld [vmem:[#allocation148_spill] sm:$0xff]  ;;  %v13746_v1 = vld [vmem:[#allocation151_spill] sm:$0xff] }
 0x8f2   :  { %2869 = vmatpush1.msra.mxu0 %v13691_v5  ;;  %2940 = vmatpush1.msra.mxu1 %v13692_v53  ;;  %v13747_v5 = vld [vmem:[#allocation150_spill] sm:$0xff]  ;;  %v13748_v53 = vld [vmem:[#allocation152_spill] sm:$0xff] }
 0x8f3   :  { %2870 = vmatprep.subr.mxu0 %v13693_v15  ;;  %2941 = vmatprep.subr.mxu1 %v13694_v61  ;;  %v13749_v15 = vld [vmem:[#allocation153_spill] sm:$0xff]  ;;  %v13750_v61 = vld [vmem:[#allocation155_spill] sm:$0xff] }
 0x8f4   :  { %2871 = vmatpush2.msra.mxu0 %v13695_v48  ;;  %2942 = vmatpush2.msra.mxu1 %v13696_v46  ;;  %v13751_v48 = vld [vmem:[#allocation154_spill] sm:$0xff]  ;;  %v13752_v46 = vld [vmem:[#allocation157_spill] sm:$0xff] }
 0x8f5   :  { %2872 = vmatprep.subr.mxu0 %v13697_v8  ;;  %2943 = vmatprep.subr.mxu1 %v13698_v57  ;;  %v13753_v8 = vld [vmem:[#allocation156_spill] sm:$0xff]  ;;  %v13754_v57 = vld [vmem:[#allocation159_spill] sm:$0xff] }
 0x8f6   :  { %2873 = vmatpush2.msra.mxu0 %v13699_v45  ;;  %2944 = vmatpush2.msra.mxu1 %v13700_v24  ;;  %v13755_v45 = vld [vmem:[#allocation158_spill] sm:$0xff]  ;;  %v13756_v24 = vld [vmem:[#allocation160_spill] sm:$0xff] }
 0x8f7   :  { %2874 = vmatprep.subr.mxu0 %v13701_v6  ;;  %2945 = vmatprep.subr.mxu1 %v13702_v17 }
 0x8f8   :  { %2875 = vmatpush2.msra.mxu0 %v13703_v19  ;;  %2946 = vmatpush2.msra.mxu1 %v13704_v42 }
 0x8f9   :  { %2876 = vmatprep.subr.mxu0 %v13705_v18  ;;  %2947 = vmatprep.subr.mxu1 %v13706_v44  ;;  %v13757_v18 = vld [vmem:[#allocation9_spill] sm:$0xff] }
 0x8fa   :  { %2877 = vmatpush2.msra.mxu0 %v13707_v41  ;;  %2948 = vmatpush2.msra.mxu1 %v13708_v37 }
 0x8fb   :  { %2878 = vmatprep.subr.mxu0 %v13709_v54  ;;  %2949 = vmatprep.subr.mxu1 %v13710_v40  ;;  %v13758_v54 = vld [vmem:[#allocation14_spill] sm:$0xff] }
 0x8fc   :  { %2879 = vmatpush2.msra.mxu0 %v13711_v21  ;;  %2950 = vmatpush2.msra.mxu1 %v13712_v47 }
 0x8fd   :  { %2880 = vmatprep.subr.mxu0 %v13713_v22  ;;  %2951 = vmatprep.subr.mxu1 %v13714_v35 }
 0x8fe   :  { %2881 = vmatpush2.msra.mxu0 %v13715_v7  ;;  %2952 = vmatpush2.msra.mxu1 %v13716_v26 }
 0x8ff   :  { %2882 = vmatprep.subr.mxu0 %v13717_v55  ;;  %2953 = vmatprep.subr.mxu1 %v13718_v10 }
 0x900   :  { %2883 = vmatpush2.msra.mxu0 %v13719_v23  ;;  %2954 = vmatpush2.msra.mxu1 %v13720_v62 }
 0x901   :  { %2884 = vmatprep.subr.mxu0 %v13721_v60  ;;  %2955 = vmatprep.subr.mxu1 %v13722_v16 }
 0x902   :  { %2885 = vmatpush2.msra.mxu0 %v13723_v30  ;;  %2956 = vmatpush2.msra.mxu1 %v13724_v50 }
 0x903   :  { %2886 = vmatprep.subr.mxu0 %v13725_v0  ;;  %2957 = vmatprep.subr.mxu1 %v13726_v12 }
 0x904   :  { %2887 = vmatpush2.msra.mxu0 %v13727_v38  ;;  %2958 = vmatpush2.msra.mxu1 %v13728_v11 }
 0x905   :  { %2888 = vmatprep.subr.mxu0 %v13729_v51  ;;  %2959 = vmatprep.subr.mxu1 %v13730_v63 }
 0x906   :  { %2889 = vmatpush2.msra.mxu0 %v13731_v56  ;;  %2960 = vmatpush2.msra.mxu1 %v13732_v49 }
 0x907   :  { %2890 = vmatprep.subr.mxu0 %v13733_v2  ;;  %2961 = vmatprep.subr.mxu1 %v13734_v13 }
 0x908   :  { %2891 = vmatpush2.msra.mxu0 %v13735_v3  ;;  %2962 = vmatpush2.msra.mxu1 %v13736_v14 }
 0x909   :  { %2892 = vmatprep.subr.mxu0 %v13737_v27  ;;  %2963 = vmatprep.subr.mxu1 %v13738_v29 }
 0x90a   :  { %2893 = vmatpush2.msra.mxu0 %v13739_v32  ;;  %2964 = vmatpush2.msra.mxu1 %v13740_v33 }
 0x90b   :  { %2894 = vmatprep.subr.mxu0 %v13741_v34  ;;  %2965 = vmatprep.subr.mxu1 %v13742_v59 }
 0x90c   :  { %2895 = vmatpush2.msra.mxu0 %v13743_v39  ;;  %2966 = vmatpush2.msra.mxu1 %v13744_v58 }
 0x90d   :  { %2896 = vmatprep.subr.mxu0 %v13745_v4  ;;  %2967 = vmatprep.subr.mxu1 %v13746_v1 }
 0x90e   :  { %2897 = vmatpush2.msra.mxu0 %v13747_v5  ;;  %2968 = vmatpush2.msra.mxu1 %v13748_v53 }
 0x90f   :  { %2898 = vmatprep.subr.mxu0 %v13749_v15  ;;  %2969 = vmatprep.subr.mxu1 %v13750_v61 }
 0x910   :  { %2899 = vmatpush2.msra.mxu0 %v13751_v48  ;;  %2970 = vmatpush2.msra.mxu1 %v13752_v46 }
 0x911   :  { %2900 = vmatprep.subr.mxu0 %v13753_v8  ;;  %2971 = vmatprep.subr.mxu1 %v13754_v57 }
 0x912   :  { %2901 = vmatpush2.msra.mxu0 %v13755_v45  ;;  %2972 = vmatpush2.msra.mxu1 %v13756_v24 }
 0x951   :  { %v2570_v6 = vpop.f32.mrf.mxu0  ;;  %v2641_v37 = vpop.f32.mrf.mxu1 }
 0x952   :  { %v2571_v17 = vadd.f32 %v2570_v6, %v6195_v28  ;;  %v2642_v40 = vadd.f32 %v2641_v37, %v13758_v54 }
 0x953   :  { %v2572_v19 = vpop.f32.mrf.mxu0  ;;  %v2643_v21 = vpop.f32.mrf.mxu1 }
 0x954   :  { %v3068_v42 = vmul.f32 -1.442695, %v2571_v17  ;;  %v2573_v44 = vadd.f32 %v2572_v19, %v13757_v18  ;;  %v3070_v47 = vmul.f32 -1.442695, %v2642_v40  ;;  %v2644_v35 = vadd.f32 %v2643_v21, %v6210_v43 }
 0x956   :  { %3288 = vpow2.f32 %v3068_v42  ;;  %v3069_v41 = vmul.f32 -1.442695, %v2573_v44 }
 0x958   :  { %3290 = vpow2.f32 %v3069_v41 }
 0x959   :  { %3292 = vpow2.f32 %v3070_v47 }
 0x963   :  { %v3289_v22 = vpop.eup %3288 }
 0x964   :  { %v2655_v7 = vadd.f32 1.0, %v3289_v22 }
 0x965   :  { %v3291_v26 = vpop.eup %3290 }
 0x966   :  { %3294 = vrcp.f32 %v2655_v7  ;;  %v2656_v55 = vadd.f32 1.0, %v3291_v26  ;;  %v3293_v10 = vpop.eup %3292 }
 0x967   :  { %3296 = vtanh.f32 %v2644_v35  ;;  %v2657_v16 = vadd.f32 1.0, %v3293_v10 }
 0x968   :  { %3298 = vrcp.f32 %v2656_v55 }
 0x969   :  { %3300 = vrcp.f32 %v2657_v16 }
 0x973   :  { %v3295_v23 = vpop.eup %3294 }
 0x974   :  { %v3297_v62 = vpop.eup %3296 }
 0x975   :  { %v3299_v60 = vpop.eup %3298  ;;  %v2666_v50 = vmul.f32 %v3297_v62, %v3295_v23 }
 0x976   :  { %v2665_v30 = vmul.f32 %v3299_v60, %v11100_v36  ;;  %v3301_v12 = vpop.eup %3300 }
 0x978   :  { %v11501_v0 = vadd.f32 %v2666_v50, %v2665_v30 }
 0x97a   :  { %3302 = vtanh.f32 %v11501_v0 }
 0x987   :  { %v3303_v38 = vpop.eup %3302 }
 0x988   :  { %v2669_v11 = vmul.f32 %v3303_v38, %v3301_v12 }
 0x98a   :  { %2902 = vmatprep.mubr.f32.mxu0 %v2669_v11  ;;  %2973 = vmatprep.mubr.f32.mxu1 %v2669_v11 }
 0x991   :  { %v2738_v51 = vpop.f32.mrf.mxu0 }
 0x992   :  { %v2739_v63 = vadd.f32 %v2738_v51, %v12621_v20 }
 0x993   :  { %v2740_v56 = vpop.f32.mrf.mxu0  ;;  %v2809_v13 = vpop.f32.mrf.mxu1 }
 0x994   :  { %v3072_v49 = vmul.f32 -1.442695, %v2739_v63  ;;  %v2741_v2 = vadd.f32 %v2740_v56, %v12622_v25  ;;  %v2810_v3 = vadd.f32 %v2809_v13, %v12623_v31 }
 0x995   :  { %v2811_v14 = vpop.f32.mrf.mxu1 }
 0x996   :  { %3304 = vpow2.f32 %v3072_v49  ;;  %v3073_v36 = vmul.f32 -1.442695, %v2741_v2  ;;  %v3074_v27 = vmul.f32 -1.442695, %v2810_v3  ;;  %v2812_v29 = vadd.f32 %v2811_v14, %v5600_v9 }
 0x998   :  { %3306 = vpow2.f32 %v3073_v36 }
 0x999   :  { %3308 = vpow2.f32 %v3074_v27 }
 0x99a   :  { %3310 = vtanh.f32 %v2812_v29 }
 0x9a3   :  { %v3305_v32 = vpop.eup %3304 }
 0x9a4   :  { %v2823_v33 = vadd.f32 1.0, %v3305_v32 }
 0x9a5   :  { %v3307_v34 = vpop.eup %3306 }
 0x9a6   :  { %3312 = vrcp.f32 %v2823_v33  ;;  %v2824_v20 = vadd.f32 1.0, %v3307_v34  ;;  %v3309_v59 = vpop.eup %3308 }
 0x9a7   :  { %v3311_v25 = vpop.eup %3310  ;;  %v2825_v4 = vadd.f32 1.0, %v3309_v59 }
 0x9a8   :  { %3314 = vrcp.f32 %v2824_v20 }
 0x9a9   :  { %3316 = vrcp.f32 %v2825_v4 }
 0x9b3   :  { %v3313_v39 = vpop.eup %3312 }
 0x9b4   :  { %v2834_v31 = vmul.f32 %v3313_v39, %v3311_v25 }
 0x9b5   :  { %v3315_v58 = vpop.eup %3314 }
 0x9b6   :  { %v2833_v1 = vmul.f32 %v3315_v58, %v11108_v52  ;;  %v3317_v9 = vpop.eup %3316 }
 0x9b8   :  { %v2835_v5 = vadd.f32 %v2834_v31, %v2833_v1 }
 0x9ba   :  { %3318 = vtanh.f32 %v2835_v5  ;;  %3005 = vst [vmem:[#allocation3] sm:$0x3] %v2835_v5 }
 0x9c7   :  { %v3319_v53 = vpop.eup %3318 }
 0x9c8   :  { %v2837_v15 = vmul.f32 %v3319_v53, %v3317_v9 }
 0x9ca   :  { %2903 = vmatmul.mubr.f32.vlgmr.msra.gmra.mxu0 %v2837_v15  ;;  %3004 = vst [vmem:[#allocation2] sm:$0x3] %v2837_v15  ;;  %2974 = vmatmul.mubr.f32.vlgmr.msra.gmra.mxu1 %v2837_v15 }
 0xa8a   :  { %v2904_v61 = vpop.f32.mrf.mxu0  ;;  %v2975_v45 = vpop.f32.mrf.mxu1 }
 0xa8b   :  { %v2905_v48 = vadd.f32 %v2904_v61, %v6195_v28  ;;  %v2976_v24 = vadd.f32 %v2975_v45, %v13758_v54 }
 0xa8c   :  { %v2906_v46 = vpop.f32.mrf.mxu0  ;;  %v2977_v6 = vpop.f32.mrf.mxu1 }
 0xa8d   :  { %v3075_v8 = vmul.f32 -1.442695, %v2905_v48  ;;  %v2907_v57 = vadd.f32 %v2906_v46, %v13757_v18  ;;  %v3077_v17 = vmul.f32 -1.442695, %v2976_v24  ;;  %v2978_v42 = vadd.f32 %v2977_v6, %v6210_v43 }
 0xa8f   :  { %3320 = vpow2.f32 %v3075_v8  ;;  %v3076_v52 = vmul.f32 -1.442695, %v2907_v57 }
 0xa91   :  { %3322 = vpow2.f32 %v3076_v52 }
 0xa92   :  { %3324 = vpow2.f32 %v3077_v17 }
 0xa9c   :  { %v3321_v19 = vpop.eup %3320 }
 0xa9d   :  { %v2989_v44 = vadd.f32 1.0, %v3321_v19 }
 0xa9e   :  { %v3323_v41 = vpop.eup %3322 }
 0xa9f   :  { %3326 = vrcp.f32 %v2989_v44  ;;  %v2990_v28 = vadd.f32 1.0, %v3323_v41  ;;  %v3325_v37 = vpop.eup %3324 }
 0xaa0   :  { %3328 = vtanh.f32 %v2978_v42  ;;  %v2991_v47 = vadd.f32 1.0, %v3325_v37 }
 0xaa1   :  { %3330 = vrcp.f32 %v2990_v28 }
 0xaa2   :  { %3332 = vrcp.f32 %v2991_v47 }
 0xaac   :  { %v3327_v18 = vpop.eup %3326 }
 0xaad   :  { %v3329_v40 = vpop.eup %3328 }
 0xaae   :  { %v3331_v21 = vpop.eup %3330  ;;  %v3000_v54 = vmul.f32 %v3329_v40, %v3327_v18 }
 0xaaf   :  { %v2999_v22 = vmul.f32 %v3331_v21, %v11501_v0  ;;  %v3333_v43 = vpop.eup %3332 }
 0xab1   :  { %v3001_v35 = vadd.f32 %v3000_v54, %v2999_v22 }
 0xab3   :  { %3007 = vst [vmem:[#allocation5] sm:$0x3] %v3001_v35  ;;  %3334 = vtanh.f32 %v3001_v35 }
 0xac0   :  { %v3335_v7 = vpop.eup %3334 }
 0xac1   :  { %v3003_v26 = vmul.f32 %v3335_v7, %v3333_v43 }
 0xac3   :  { %3006 = vst [vmem:[#allocation4] sm:$0x3] %v3003_v26  ;;  %3008 = vst [vmem:[#allocation6] sm:$0x3] %v3003_v26 }
 0xac4   :  { %4180 = shalt.err (!%p4177_p4)
}
 0xac5   :  { %3018 = dma.vmem_to_hbm [thread:$0]  %s3016_s14, 32, %s11522_s5, [#allocation7]  }
 0xac6   :  { %4189 = dma.done.wait [#allocation7], 32  }
 0xac7   :  { %4190 = vsyncadd [#allocation7], 4294967264 }
 0xac8   :  { %3022 = vsyncpa [#allocation7], 1 }

</bundles_post_ra>
